<compile_context>
chip_gen: v7x
topology: tpu7x:2x2x1
jax: 0.10.0
libtpu: 0.0.40
codegen_flags: <defaults>
</compile_context>

<pallas_src>
import math

import jax
import jax.numpy as jnp
from jax import lax
from jax.experimental import pallas as pl
from jax.experimental.pallas import tpu as pltpu


# ----------------------------------------------------------------------------
# Fused forward kernel (one grid step == one sample)
# ----------------------------------------------------------------------------
def _critic_kernel(x_ref, w1_ref, s1_ref, t1_ref, w2_ref, s2_ref, t2_ref,
                   fw1_ref, fb1_ref, fw2_ref, fb2_ref, fw3_ref, fb3_ref,
                   out_ref, h1_ref):
    # x_ref : (1, 4, 4, 3, 272) bf16   x4[h%4, w%4, c, (h//4)*16 + (w//4)]  (zero padded)
    # w1_ref: (25, 16, 3)  bf16        conv1 taps, (Cout, Cin) per tap
    # w2_ref: (25, 32, 16) bf16        conv2 taps, (Cout, Cin) per tap
    # s*/t* : (C, 1) f32               folded BatchNorm scale / shift (conv bias folded in)
    # fw1   : (32, 205, 128) bf16      fc1 weight, channel-major rows, junk columns zeroed
    # h1_ref: (4, 16, 240) bf16        scratch: conv1 output, phase-split & channel-major

    # ---- conv1 + bn1 + relu --------------------------------------------------
    # output (oh, ow) = (2*Hq + hp, 2*Wq + wp); stored at column r = 16*Hq + Wq
    for hp in range(2):
        for wp in range(2):
            acc = jnp.zeros((16, 240), jnp.float32)
            for kh in range(5):
                hh = 2 * hp + kh
                h4, dh = hh % 4, hh // 4
                for kw in range(5):
                    ww = 2 * wp + kw
                    w4, dw = ww % 4, ww // 4
                    off = 16 * dh + dw
                    xs = x_ref[0, h4, w4, :, off:off + 240]            # (3, 240)
                    acc = acc + jnp.dot(w1_ref[5 * kh + kw], xs,
                                        preferred_element_type=jnp.float32)
            h1 = jnp.maximum(acc * s1_ref[...] + t1_ref[...], 0.0)      # (16, 240)
            h1_ref[2 * hp + wp] = h1.astype(jnp.bfloat16)

    # ---- conv2 + bn2 + relu --------------------------------------------------
    # output (oh2, ow2) stored at column r2 = 16*oh2 + ow2, r2 in [0, 205)
    acc2 = jnp.zeros((32, 205), jnp.float32)
    for kh in range(5):
        for kw in range(5):
            p = 2 * (kh % 2) + (kw % 2)
            off = 16 * (kh // 2) + (kw // 2)
            hs = h1_ref[p, :, off:off + 205]                            # (16, 205)
            acc2 = acc2 + jnp.dot(w2_ref[5 * kh + kw], hs,
                                  preferred_element_type=jnp.float32)
    h2 = jnp.maximum(acc2 * s2_ref[...] + t2_ref[...], 0.0)             # (32, 205) f32

    # ---- fc1 -> relu -> fc2 -> relu -> fc3 ------------------------------------
    # PyTorch NCHW flatten == our channel-major layout; junk columns hit zero weights.
    y = fb1_ref[...]                                                    # (1, 128)
    for c in range(32):
        row = h2[c:c + 1, :].astype(jnp.bfloat16)                       # (1, 205)
        y = y + jnp.dot(row, fw1_ref[c], preferred_element_type=jnp.float32)
    y = jnp.maximum(y, 0.0)
    y = jnp.maximum(
        jnp.dot(y, fw2_ref[...], preferred_element_type=jnp.float32) + fb2_ref[...],
        0.0)
    y = jnp.dot(y, fw3_ref[...], preferred_element_type=jnp.float32) + fb3_ref[...]
    out_ref[0, :, :] = y                                                # (1, 1)


# ----------------------------------------------------------------------------
# Wrapper
# ----------------------------------------------------------------------------
def critic_forward(x_nchw, params):
    n = x_nchw.shape[0]
    x = x_nchw.astype(jnp.float32)
    # Same-size phase split (layout plumbing only, no im2col expansion):
    #   x4[n, h%4, w%4, c, (h//4)*16 + (w//4)], zero pad 256 -> 272 lanes so every
    #   conv1 tap is a contiguous 240-wide slice.
    x4 = x.reshape(n, 3, 16, 4, 16, 4).transpose(0, 3, 5, 1, 2, 4)
    x4 = x4.reshape(n, 4, 4, 3, 256)
    x4 = jnp.pad(x4, ((0, 0), (0, 0), (0, 0), (0, 0), (0, 16))).astype(jnp.bfloat16)

    weights = (params["w1t"], params["bn1_scale"], params["bn1_shift"],
               params["w2t"], params["bn2_scale"], params["bn2_shift"],
               params["fc1_w"], params["fc1_b"], params["fc2_w"], params["fc2_b"],
               params["fc3_w"], params["fc3_b"])

    def _const_spec(a):
        nd = a.ndim
        return pl.BlockSpec(a.shape, lambda i, _nd=nd: (0,) * _nd)

    in_specs = [pl.BlockSpec((1, 4, 4, 3, 272), lambda i: (i, 0, 0, 0, 0))]
    in_specs += [_const_spec(w) for w in weights]

    flops = 2 * n * (900 * 75 * 16 + 169 * 400 * 32 + 169 * 32 * 128 + 128 * 64 + 64)
    bytes_accessed = (int(x4.size) * 2
                      + sum(int(w.size) * w.dtype.itemsize for w in weights)
                      + n * 4)

    out = pl.pallas_call(
        _critic_kernel,
        out_shape=jax.ShapeDtypeStruct((n, 1, 1), jnp.float32),
        grid=(n,),
        in_specs=in_specs,
        out_specs=pl.BlockSpec((1, 1, 1), lambda i: (i, 0, 0)),
        scratch_shapes=[pltpu.VMEM((4, 16, 240), jnp.bfloat16)],
        compiler_params=pltpu.CompilerParams(dimension_semantics=("parallel",)),
        cost_estimate=pl.CostEstimate(flops=flops, transcendentals=0,
                                      bytes_accessed=bytes_accessed),
    )(x4, *weights)
    return out.reshape(n, 1)


# ----------------------------------------------------------------------------
# Parameter init (deterministic, PyTorch-like uniform(-1/sqrt(fan_in), +...))
# ----------------------------------------------------------------------------
def init_params(key):
    keys = jax.random.split(key, 10)

    def u(k, shape, fan_in):
        b = 1.0 / math.sqrt(fan_in)
        return jax.random.uniform(k, shape, jnp.float32, -b, b)

    eps = 1e-5
    raw = {
        "conv1_w": u(keys[0], (5, 5, 3, 16), 75),       # (KH, KW, Cin, Cout)
        "conv1_b": u(keys[1], (16,), 75),
        "conv2_w": u(keys[2], (5, 5, 16, 32), 400),
        "conv2_b": u(keys[3], (32,), 400),
        "fc1_w": u(keys[4], (5408, 128), 5408),         # (in, out), rows in NCHW-flatten order
        "fc1_b": u(keys[5], (128,), 5408),
        "fc2_w": u(keys[6], (128, 64), 128),
        "fc2_b": u(keys[7], (64,), 128),
        "fc3_w": u(keys[8], (64, 1), 64),
        "fc3_b": u(keys[9], (1,), 64),
    }

    p = {}
    # conv weights, per-tap (Cout, Cin), bf16 for the native MXU path
    p["w1t"] = raw["conv1_w"].transpose(0, 1, 3, 2).reshape(25, 16, 3).astype(jnp.bfloat16)
    p["w2t"] = raw["conv2_w"].transpose(0, 1, 3, 2).reshape(25, 32, 16).astype(jnp.bfloat16)

    # BatchNorm eval mode (gamma=1, beta=0, mean=0, var=1); conv bias folded into shift.
    # TODO(synk): training-mode batch statistics are not reproduced.
    for name, cb, c in (("bn1", raw["conv1_b"], 16), ("bn2", raw["conv2_b"], 32)):
        scale = jnp.ones((c,), jnp.float32) / jnp.sqrt(1.0 + eps)
        shift = cb * scale
        p[f"{name}_scale"] = scale.reshape(c, 1)
        p[f"{name}_shift"] = shift.reshape(c, 1)

    # fc1 weight: row (c*169 + i*13 + j) -> channel-major [c, i*16 + j] with zero rows
    # for junk columns j in {13,14,15}; stored bf16 (largest HBM read).
    w = raw["fc1_w"].reshape(32, 13, 13, 128)
    w = jnp.pad(w, ((0, 0), (0, 0), (0, 3), (0, 0))).reshape(32, 208, 128)[:, :205, :]
    p["fc1_w"] = w.astype(jnp.bfloat16)
    p["fc1_b"] = raw["fc1_b"].reshape(1, 128)
    p["fc2_w"] = raw["fc2_w"]
    p["fc2_b"] = raw["fc2_b"].reshape(1, 64)
    p["fc3_w"] = raw["fc3_w"]
    p["fc3_b"] = raw["fc3_b"].reshape(1, 1)
    return p, raw


# ----------------------------------------------------------------------------
# Pure-JAX reference (f32) for a correctness spot-check
# ----------------------------------------------------------------------------
def critic_reference(x_nchw, raw):
    eps = 1e-5
    dn = ("NCHW", "HWIO", "NCHW")
    x = x_nchw.astype(jnp.float32)
    y = lax.conv_general_dilated(x, raw["conv1_w"], (2, 2), "VALID", dimension_numbers=dn)
    y = (y + raw["conv1_b"].reshape(1, -1, 1, 1)) / jnp.sqrt(1.0 + eps)
    y = jnp.maximum(y, 0.0)
    y = lax.conv_general_dilated(y, raw["conv2_w"], (2, 2), "VALID", dimension_numbers=dn)
    y = (y + raw["conv2_b"].reshape(1, -1, 1, 1)) / jnp.sqrt(1.0 + eps)
    y = jnp.maximum(y, 0.0)
    f = y.reshape(y.shape[0], -1)
    f = jnp.maximum(f @ raw["fc1_w"] + raw["fc1_b"], 0.0)
    f = jnp.maximum(f @ raw["fc2_w"] + raw["fc2_b"], 0.0)
    return f @ raw["fc3_w"] + raw["fc3_b"]


if __name__ == "__main__":
    key = jax.random.PRNGKey(0)
    k_param, k_x = jax.random.split(key)
    params, raw = init_params(k_param)
    # Input implied by the module: (N, 3, 64, 64); keep batch small.
    x = jax.random.normal(k_x, (2, 3, 64, 64), dtype=jnp.float32)

    out = jax.jit(critic_forward)(x, params)
    out = jax.block_until_ready(out)
    assert out.shape == (2, 1) and out.dtype == jnp.float32

    ref = critic_reference(x, raw)
    err = float(jnp.max(jnp.abs(out - ref)))
    tol = 0.03 + 0.05 * float(jnp.max(jnp.abs(ref)))
    assert err < tol, f"kernel/reference mismatch: max_abs_err={err:.4f} tol={tol:.4f}"
    print("KERNEL_OK")
</pallas_src>

<mosaic_0001>
module attributes {stable_mosaic.version = 11 : i64} {
  func.func @_critic_kernel(%arg0: i32, %arg1: memref<1x4x4x3x272xbf16, #tpu.memory_space<vmem>>, %arg2: memref<25x16x3xbf16, #tpu.memory_space<vmem>>, %arg3: memref<16x1xf32, #tpu.memory_space<vmem>>, %arg4: memref<16x1xf32, #tpu.memory_space<vmem>>, %arg5: memref<25x32x16xbf16, #tpu.memory_space<vmem>>, %arg6: memref<32x1xf32, #tpu.memory_space<vmem>>, %arg7: memref<32x1xf32, #tpu.memory_space<vmem>>, %arg8: memref<32x205x128xbf16, #tpu.memory_space<vmem>>, %arg9: memref<1x128xf32, #tpu.memory_space<vmem>>, %arg10: memref<128x64xf32, #tpu.memory_space<vmem>>, %arg11: memref<1x64xf32, #tpu.memory_space<vmem>>, %arg12: memref<64x1xf32, #tpu.memory_space<vmem>>, %arg13: memref<1x1xf32, #tpu.memory_space<vmem>>, %arg14: memref<1x1x1xf32, #tpu.memory_space<vmem>>, %arg15: memref<4x16x240xbf16, #tpu.memory_space<vmem>>) attributes {dimension_semantics = [#tpu.dimension_semantics<parallel>], iteration_bounds = array<i64: 2>, scalar_prefetch = 0 : i64, scratch_operands = 1 : i64, tpu.core_type = #tpu.core_type<tc>, window_params = [{transform_indices = @transform_0, window_bounds = array<i64: 1, 4, 4, 3, 272>}, {pipeline_mode = #tpu.pipeline_mode<synchronous>, transform_indices = @transform_1, window_bounds = array<i64: 25, 16, 3>}, {pipeline_mode = #tpu.pipeline_mode<synchronous>, transform_indices = @transform_2, window_bounds = array<i64: 16, 1>}, {pipeline_mode = #tpu.pipeline_mode<synchronous>, transform_indices = @transform_3, window_bounds = array<i64: 16, 1>}, {pipeline_mode = #tpu.pipeline_mode<synchronous>, transform_indices = @transform_4, window_bounds = array<i64: 25, 32, 16>}, {pipeline_mode = #tpu.pipeline_mode<synchronous>, transform_indices = @transform_5, window_bounds = array<i64: 32, 1>}, {pipeline_mode = #tpu.pipeline_mode<synchronous>, transform_indices = @transform_6, window_bounds = array<i64: 32, 1>}, {pipeline_mode = #tpu.pipeline_mode<synchronous>, transform_indices = @transform_7, window_bounds = array<i64: 32, 205, 128>}, {pipeline_mode = #tpu.pipeline_mode<synchronous>, transform_indices = @transform_8, window_bounds = array<i64: 1, 128>}, {pipeline_mode = #tpu.pipeline_mode<synchronous>, transform_indices = @transform_9, window_bounds = array<i64: 128, 64>}, {pipeline_mode = #tpu.pipeline_mode<synchronous>, transform_indices = @transform_10, window_bounds = array<i64: 1, 64>}, {pipeline_mode = #tpu.pipeline_mode<synchronous>, transform_indices = @transform_11, window_bounds = array<i64: 64, 1>}, {pipeline_mode = #tpu.pipeline_mode<synchronous>, transform_indices = @transform_12, window_bounds = array<i64: 1, 1>}, {transform_indices = @transform_13, window_bounds = array<i64: 1, 1, 1>}]} {
    %cst = arith.constant 0.000000e+00 : f32
    %0 = vector.broadcast %cst : f32 to vector<16x240xf32>
    %c0 = arith.constant 0 : index
    %c0_0 = arith.constant 0 : index
    %c0_1 = arith.constant 0 : index
    %c0_2 = arith.constant 0 : index
    %c0_3 = arith.constant 0 : index
    %1 = vector.load %arg1[%c0, %c0_0, %c0_1, %c0_2, %c0_3] : memref<1x4x4x3x272xbf16, #tpu.memory_space<vmem>>, vector<1x1x1x3x240xbf16>
    %2 = vector.shape_cast %1 : vector<1x1x1x3x240xbf16> to vector<3x240xbf16>
    %c0_4 = arith.constant 0 : index
    %c0_5 = arith.constant 0 : index
    %c0_6 = arith.constant 0 : index
    %3 = vector.load %arg2[%c0_4, %c0_5, %c0_6] : memref<25x16x3xbf16, #tpu.memory_space<vmem>>, vector<1x16x3xbf16>
    %4 = vector.shape_cast %3 : vector<1x16x3xbf16> to vector<16x3xbf16>
    %cst_7 = arith.constant dense<0.000000e+00> : vector<16x240xf32>
    %5 = tpu.matmul %4, %2, %cst_7 {dimension_numbers = #tpu.dot_dimension_numbers<[1], [0], [0], [1], [0, 0, 1, 1], [], []>} : vector<16x3xbf16>, vector<3x240xbf16>, vector<16x240xf32> -> vector<16x240xf32>
    %6 = arith.addf %0, %5 : vector<16x240xf32>
    %c0_8 = arith.constant 0 : index
    %c0_9 = arith.constant 0 : index
    %c1 = arith.constant 1 : index
    %c0_10 = arith.constant 0 : index
    %c0_11 = arith.constant 0 : index
    %7 = vector.load %arg1[%c0_8, %c0_9, %c1, %c0_10, %c0_11] : memref<1x4x4x3x272xbf16, #tpu.memory_space<vmem>>, vector<1x1x1x3x240xbf16>
    %8 = vector.shape_cast %7 : vector<1x1x1x3x240xbf16> to vector<3x240xbf16>
    %c1_12 = arith.constant 1 : index
    %c0_13 = arith.constant 0 : index
    %c0_14 = arith.constant 0 : index
    %9 = vector.load %arg2[%c1_12, %c0_13, %c0_14] : memref<25x16x3xbf16, #tpu.memory_space<vmem>>, vector<1x16x3xbf16>
    %10 = vector.shape_cast %9 : vector<1x16x3xbf16> to vector<16x3xbf16>
    %cst_15 = arith.constant dense<0.000000e+00> : vector<16x240xf32>
    %11 = tpu.matmul %10, %8, %cst_15 {dimension_numbers = #tpu.dot_dimension_numbers<[1], [0], [0], [1], [0, 0, 1, 1], [], []>} : vector<16x3xbf16>, vector<3x240xbf16>, vector<16x240xf32> -> vector<16x240xf32>
    %12 = arith.addf %6, %11 : vector<16x240xf32>
    %c0_16 = arith.constant 0 : index
    %c0_17 = arith.constant 0 : index
    %c2 = arith.constant 2 : index
    %c0_18 = arith.constant 0 : index
    %c0_19 = arith.constant 0 : index
    %13 = vector.load %arg1[%c0_16, %c0_17, %c2, %c0_18, %c0_19] : memref<1x4x4x3x272xbf16, #tpu.memory_space<vmem>>, vector<1x1x1x3x240xbf16>
    %14 = vector.shape_cast %13 : vector<1x1x1x3x240xbf16> to vector<3x240xbf16>
    %c2_20 = arith.constant 2 : index
    %c0_21 = arith.constant 0 : index
    %c0_22 = arith.constant 0 : index
    %15 = vector.load %arg2[%c2_20, %c0_21, %c0_22] : memref<25x16x3xbf16, #tpu.memory_space<vmem>>, vector<1x16x3xbf16>
    %16 = vector.shape_cast %15 : vector<1x16x3xbf16> to vector<16x3xbf16>
    %cst_23 = arith.constant dense<0.000000e+00> : vector<16x240xf32>
    %17 = tpu.matmul %16, %14, %cst_23 {dimension_numbers = #tpu.dot_dimension_numbers<[1], [0], [0], [1], [0, 0, 1, 1], [], []>} : vector<16x3xbf16>, vector<3x240xbf16>, vector<16x240xf32> -> vector<16x240xf32>
    %18 = arith.addf %12, %17 : vector<16x240xf32>
    %c0_24 = arith.constant 0 : index
    %c0_25 = arith.constant 0 : index
    %c3 = arith.constant 3 : index
    %c0_26 = arith.constant 0 : index
    %c0_27 = arith.constant 0 : index
    %19 = vector.load %arg1[%c0_24, %c0_25, %c3, %c0_26, %c0_27] : memref<1x4x4x3x272xbf16, #tpu.memory_space<vmem>>, vector<1x1x1x3x240xbf16>
    %20 = vector.shape_cast %19 : vector<1x1x1x3x240xbf16> to vector<3x240xbf16>
    %c3_28 = arith.constant 3 : index
    %c0_29 = arith.constant 0 : index
    %c0_30 = arith.constant 0 : index
    %21 = vector.load %arg2[%c3_28, %c0_29, %c0_30] : memref<25x16x3xbf16, #tpu.memory_space<vmem>>, vector<1x16x3xbf16>
    %22 = vector.shape_cast %21 : vector<1x16x3xbf16> to vector<16x3xbf16>
    %cst_31 = arith.constant dense<0.000000e+00> : vector<16x240xf32>
    %23 = tpu.matmul %22, %20, %cst_31 {dimension_numbers = #tpu.dot_dimension_numbers<[1], [0], [0], [1], [0, 0, 1, 1], [], []>} : vector<16x3xbf16>, vector<3x240xbf16>, vector<16x240xf32> -> vector<16x240xf32>
    %24 = arith.addf %18, %23 : vector<16x240xf32>
    %c0_32 = arith.constant 0 : index
    %c0_33 = arith.constant 0 : index
    %c0_34 = arith.constant 0 : index
    %c0_35 = arith.constant 0 : index
    %c1_36 = arith.constant 1 : index
    %25 = vector.load %arg1[%c0_32, %c0_33, %c0_34, %c0_35, %c1_36] : memref<1x4x4x3x272xbf16, #tpu.memory_space<vmem>>, vector<1x1x1x3x240xbf16>
    %26 = vector.shape_cast %25 : vector<1x1x1x3x240xbf16> to vector<3x240xbf16>
    %c4 = arith.constant 4 : index
    %c0_37 = arith.constant 0 : index
    %c0_38 = arith.constant 0 : index
    %27 = vector.load %arg2[%c4, %c0_37, %c0_38] : memref<25x16x3xbf16, #tpu.memory_space<vmem>>, vector<1x16x3xbf16>
    %28 = vector.shape_cast %27 : vector<1x16x3xbf16> to vector<16x3xbf16>
    %cst_39 = arith.constant dense<0.000000e+00> : vector<16x240xf32>
    %29 = tpu.matmul %28, %26, %cst_39 {dimension_numbers = #tpu.dot_dimension_numbers<[1], [0], [0], [1], [0, 0, 1, 1], [], []>} : vector<16x3xbf16>, vector<3x240xbf16>, vector<16x240xf32> -> vector<16x240xf32>
    %30 = arith.addf %24, %29 : vector<16x240xf32>
    %c0_40 = arith.constant 0 : index
    %c1_41 = arith.constant 1 : index
    %c0_42 = arith.constant 0 : index
    %c0_43 = arith.constant 0 : index
    %c0_44 = arith.constant 0 : index
    %31 = vector.load %arg1[%c0_40, %c1_41, %c0_42, %c0_43, %c0_44] : memref<1x4x4x3x272xbf16, #tpu.memory_space<vmem>>, vector<1x1x1x3x240xbf16>
    %32 = vector.shape_cast %31 : vector<1x1x1x3x240xbf16> to vector<3x240xbf16>
    %c5 = arith.constant 5 : index
    %c0_45 = arith.constant 0 : index
    %c0_46 = arith.constant 0 : index
    %33 = vector.load %arg2[%c5, %c0_45, %c0_46] : memref<25x16x3xbf16, #tpu.memory_space<vmem>>, vector<1x16x3xbf16>
    %34 = vector.shape_cast %33 : vector<1x16x3xbf16> to vector<16x3xbf16>
    %cst_47 = arith.constant dense<0.000000e+00> : vector<16x240xf32>
    %35 = tpu.matmul %34, %32, %cst_47 {dimension_numbers = #tpu.dot_dimension_numbers<[1], [0], [0], [1], [0, 0, 1, 1], [], []>} : vector<16x3xbf16>, vector<3x240xbf16>, vector<16x240xf32> -> vector<16x240xf32>
    %36 = arith.addf %30, %35 : vector<16x240xf32>
    %c0_48 = arith.constant 0 : index
    %c1_49 = arith.constant 1 : index
    %c1_50 = arith.constant 1 : index
    %c0_51 = arith.constant 0 : index
    %c0_52 = arith.constant 0 : index
    %37 = vector.load %arg1[%c0_48, %c1_49, %c1_50, %c0_51, %c0_52] : memref<1x4x4x3x272xbf16, #tpu.memory_space<vmem>>, vector<1x1x1x3x240xbf16>
    %38 = vector.shape_cast %37 : vector<1x1x1x3x240xbf16> to vector<3x240xbf16>
    %c6 = arith.constant 6 : index
    %c0_53 = arith.constant 0 : index
    %c0_54 = arith.constant 0 : index
    %39 = vector.load %arg2[%c6, %c0_53, %c0_54] : memref<25x16x3xbf16, #tpu.memory_space<vmem>>, vector<1x16x3xbf16>
    %40 = vector.shape_cast %39 : vector<1x16x3xbf16> to vector<16x3xbf16>
    %cst_55 = arith.constant dense<0.000000e+00> : vector<16x240xf32>
    %41 = tpu.matmul %40, %38, %cst_55 {dimension_numbers = #tpu.dot_dimension_numbers<[1], [0], [0], [1], [0, 0, 1, 1], [], []>} : vector<16x3xbf16>, vector<3x240xbf16>, vector<16x240xf32> -> vector<16x240xf32>
    %42 = arith.addf %36, %41 : vector<16x240xf32>
    %c0_56 = arith.constant 0 : index
    %c1_57 = arith.constant 1 : index
    %c2_58 = arith.constant 2 : index
    %c0_59 = arith.constant 0 : index
    %c0_60 = arith.constant 0 : index
    %43 = vector.load %arg1[%c0_56, %c1_57, %c2_58, %c0_59, %c0_60] : memref<1x4x4x3x272xbf16, #tpu.memory_space<vmem>>, vector<1x1x1x3x240xbf16>
    %44 = vector.shape_cast %43 : vector<1x1x1x3x240xbf16> to vector<3x240xbf16>
    %c7 = arith.constant 7 : index
    %c0_61 = arith.constant 0 : index
    %c0_62 = arith.constant 0 : index
    %45 = vector.load %arg2[%c7, %c0_61, %c0_62] : memref<25x16x3xbf16, #tpu.memory_space<vmem>>, vector<1x16x3xbf16>
    %46 = vector.shape_cast %45 : vector<1x16x3xbf16> to vector<16x3xbf16>
    %cst_63 = arith.constant dense<0.000000e+00> : vector<16x240xf32>
    %47 = tpu.matmul %46, %44, %cst_63 {dimension_numbers = #tpu.dot_dimension_numbers<[1], [0], [0], [1], [0, 0, 1, 1], [], []>} : vector<16x3xbf16>, vector<3x240xbf16>, vector<16x240xf32> -> vector<16x240xf32>
    %48 = arith.addf %42, %47 : vector<16x240xf32>
    %c0_64 = arith.constant 0 : index
    %c1_65 = arith.constant 1 : index
    %c3_66 = arith.constant 3 : index
    %c0_67 = arith.constant 0 : index
    %c0_68 = arith.constant 0 : index
    %49 = vector.load %arg1[%c0_64, %c1_65, %c3_66, %c0_67, %c0_68] : memref<1x4x4x3x272xbf16, #tpu.memory_space<vmem>>, vector<1x1x1x3x240xbf16>
    %50 = vector.shape_cast %49 : vector<1x1x1x3x240xbf16> to vector<3x240xbf16>
    %c8 = arith.constant 8 : index
    %c0_69 = arith.constant 0 : index
    %c0_70 = arith.constant 0 : index
    %51 = vector.load %arg2[%c8, %c0_69, %c0_70] : memref<25x16x3xbf16, #tpu.memory_space<vmem>>, vector<1x16x3xbf16>
    %52 = vector.shape_cast %51 : vector<1x16x3xbf16> to vector<16x3xbf16>
    %cst_71 = arith.constant dense<0.000000e+00> : vector<16x240xf32>
    %53 = tpu.matmul %52, %50, %cst_71 {dimension_numbers = #tpu.dot_dimension_numbers<[1], [0], [0], [1], [0, 0, 1, 1], [], []>} : vector<16x3xbf16>, vector<3x240xbf16>, vector<16x240xf32> -> vector<16x240xf32>
    %54 = arith.addf %48, %53 : vector<16x240xf32>
    %c0_72 = arith.constant 0 : index
    %c1_73 = arith.constant 1 : index
    %c0_74 = arith.constant 0 : index
    %c0_75 = arith.constant 0 : index
    %c1_76 = arith.constant 1 : index
    %55 = vector.load %arg1[%c0_72, %c1_73, %c0_74, %c0_75, %c1_76] : memref<1x4x4x3x272xbf16, #tpu.memory_space<vmem>>, vector<1x1x1x3x240xbf16>
    %56 = vector.shape_cast %55 : vector<1x1x1x3x240xbf16> to vector<3x240xbf16>
    %c9 = arith.constant 9 : index
    %c0_77 = arith.constant 0 : index
    %c0_78 = arith.constant 0 : index
    %57 = vector.load %arg2[%c9, %c0_77, %c0_78] : memref<25x16x3xbf16, #tpu.memory_space<vmem>>, vector<1x16x3xbf16>
    %58 = vector.shape_cast %57 : vector<1x16x3xbf16> to vector<16x3xbf16>
    %cst_79 = arith.constant dense<0.000000e+00> : vector<16x240xf32>
    %59 = tpu.matmul %58, %56, %cst_79 {dimension_numbers = #tpu.dot_dimension_numbers<[1], [0], [0], [1], [0, 0, 1, 1], [], []>} : vector<16x3xbf16>, vector<3x240xbf16>, vector<16x240xf32> -> vector<16x240xf32>
    %60 = arith.addf %54, %59 : vector<16x240xf32>
    %c0_80 = arith.constant 0 : index
    %c2_81 = arith.constant 2 : index
    %c0_82 = arith.constant 0 : index
    %c0_83 = arith.constant 0 : index
    %c0_84 = arith.constant 0 : index
    %61 = vector.load %arg1[%c0_80, %c2_81, %c0_82, %c0_83, %c0_84] : memref<1x4x4x3x272xbf16, #tpu.memory_space<vmem>>, vector<1x1x1x3x240xbf16>
    %62 = vector.shape_cast %61 : vector<1x1x1x3x240xbf16> to vector<3x240xbf16>
    %c10 = arith.constant 10 : index
    %c0_85 = arith.constant 0 : index
    %c0_86 = arith.constant 0 : index
    %63 = vector.load %arg2[%c10, %c0_85, %c0_86] : memref<25x16x3xbf16, #tpu.memory_space<vmem>>, vector<1x16x3xbf16>
    %64 = vector.shape_cast %63 : vector<1x16x3xbf16> to vector<16x3xbf16>
    %cst_87 = arith.constant dense<0.000000e+00> : vector<16x240xf32>
    %65 = tpu.matmul %64, %62, %cst_87 {dimension_numbers = #tpu.dot_dimension_numbers<[1], [0], [0], [1], [0, 0, 1, 1], [], []>} : vector<16x3xbf16>, vector<3x240xbf16>, vector<16x240xf32> -> vector<16x240xf32>
    %66 = arith.addf %60, %65 : vector<16x240xf32>
    %c0_88 = arith.constant 0 : index
    %c2_89 = arith.constant 2 : index
    %c1_90 = arith.constant 1 : index
    %c0_91 = arith.constant 0 : index
    %c0_92 = arith.constant 0 : index
    %67 = vector.load %arg1[%c0_88, %c2_89, %c1_90, %c0_91, %c0_92] : memref<1x4x4x3x272xbf16, #tpu.memory_space<vmem>>, vector<1x1x1x3x240xbf16>
    %68 = vector.shape_cast %67 : vector<1x1x1x3x240xbf16> to vector<3x240xbf16>
    %c11 = arith.constant 11 : index
    %c0_93 = arith.constant 0 : index
    %c0_94 = arith.constant 0 : index
    %69 = vector.load %arg2[%c11, %c0_93, %c0_94] : memref<25x16x3xbf16, #tpu.memory_space<vmem>>, vector<1x16x3xbf16>
    %70 = vector.shape_cast %69 : vector<1x16x3xbf16> to vector<16x3xbf16>
    %cst_95 = arith.constant dense<0.000000e+00> : vector<16x240xf32>
    %71 = tpu.matmul %70, %68, %cst_95 {dimension_numbers = #tpu.dot_dimension_numbers<[1], [0], [0], [1], [0, 0, 1, 1], [], []>} : vector<16x3xbf16>, vector<3x240xbf16>, vector<16x240xf32> -> vector<16x240xf32>
    %72 = arith.addf %66, %71 : vector<16x240xf32>
    %c0_96 = arith.constant 0 : index
    %c2_97 = arith.constant 2 : index
    %c2_98 = arith.constant 2 : index
    %c0_99 = arith.constant 0 : index
    %c0_100 = arith.constant 0 : index
    %73 = vector.load %arg1[%c0_96, %c2_97, %c2_98, %c0_99, %c0_100] : memref<1x4x4x3x272xbf16, #tpu.memory_space<vmem>>, vector<1x1x1x3x240xbf16>
    %74 = vector.shape_cast %73 : vector<1x1x1x3x240xbf16> to vector<3x240xbf16>
    %c12 = arith.constant 12 : index
    %c0_101 = arith.constant 0 : index
    %c0_102 = arith.constant 0 : index
    %75 = vector.load %arg2[%c12, %c0_101, %c0_102] : memref<25x16x3xbf16, #tpu.memory_space<vmem>>, vector<1x16x3xbf16>
    %76 = vector.shape_cast %75 : vector<1x16x3xbf16> to vector<16x3xbf16>
    %cst_103 = arith.constant dense<0.000000e+00> : vector<16x240xf32>
    %77 = tpu.matmul %76, %74, %cst_103 {dimension_numbers = #tpu.dot_dimension_numbers<[1], [0], [0], [1], [0, 0, 1, 1], [], []>} : vector<16x3xbf16>, vector<3x240xbf16>, vector<16x240xf32> -> vector<16x240xf32>
    %78 = arith.addf %72, %77 : vector<16x240xf32>
    %c0_104 = arith.constant 0 : index
    %c2_105 = arith.constant 2 : index
    %c3_106 = arith.constant 3 : index
    %c0_107 = arith.constant 0 : index
    %c0_108 = arith.constant 0 : index
    %79 = vector.load %arg1[%c0_104, %c2_105, %c3_106, %c0_107, %c0_108] : memref<1x4x4x3x272xbf16, #tpu.memory_space<vmem>>, vector<1x1x1x3x240xbf16>
    %80 = vector.shape_cast %79 : vector<1x1x1x3x240xbf16> to vector<3x240xbf16>
    %c13 = arith.constant 13 : index
    %c0_109 = arith.constant 0 : index
    %c0_110 = arith.constant 0 : index
    %81 = vector.load %arg2[%c13, %c0_109, %c0_110] : memref<25x16x3xbf16, #tpu.memory_space<vmem>>, vector<1x16x3xbf16>
    %82 = vector.shape_cast %81 : vector<1x16x3xbf16> to vector<16x3xbf16>
    %cst_111 = arith.constant dense<0.000000e+00> : vector<16x240xf32>
    %83 = tpu.matmul %82, %80, %cst_111 {dimension_numbers = #tpu.dot_dimension_numbers<[1], [0], [0], [1], [0, 0, 1, 1], [], []>} : vector<16x3xbf16>, vector<3x240xbf16>, vector<16x240xf32> -> vector<16x240xf32>
    %84 = arith.addf %78, %83 : vector<16x240xf32>
    %c0_112 = arith.constant 0 : index
    %c2_113 = arith.constant 2 : index
    %c0_114 = arith.constant 0 : index
    %c0_115 = arith.constant 0 : index
    %c1_116 = arith.constant 1 : index
    %85 = vector.load %arg1[%c0_112, %c2_113, %c0_114, %c0_115, %c1_116] : memref<1x4x4x3x272xbf16, #tpu.memory_space<vmem>>, vector<1x1x1x3x240xbf16>
    %86 = vector.shape_cast %85 : vector<1x1x1x3x240xbf16> to vector<3x240xbf16>
    %c14 = arith.constant 14 : index
    %c0_117 = arith.constant 0 : index
    %c0_118 = arith.constant 0 : index
    %87 = vector.load %arg2[%c14, %c0_117, %c0_118] : memref<25x16x3xbf16, #tpu.memory_space<vmem>>, vector<1x16x3xbf16>
    %88 = vector.shape_cast %87 : vector<1x16x3xbf16> to vector<16x3xbf16>
    %cst_119 = arith.constant dense<0.000000e+00> : vector<16x240xf32>
    %89 = tpu.matmul %88, %86, %cst_119 {dimension_numbers = #tpu.dot_dimension_numbers<[1], [0], [0], [1], [0, 0, 1, 1], [], []>} : vector<16x3xbf16>, vector<3x240xbf16>, vector<16x240xf32> -> vector<16x240xf32>
    %90 = arith.addf %84, %89 : vector<16x240xf32>
    %c0_120 = arith.constant 0 : index
    %c3_121 = arith.constant 3 : index
    %c0_122 = arith.constant 0 : index
    %c0_123 = arith.constant 0 : index
    %c0_124 = arith.constant 0 : index
    %91 = vector.load %arg1[%c0_120, %c3_121, %c0_122, %c0_123, %c0_124] : memref<1x4x4x3x272xbf16, #tpu.memory_space<vmem>>, vector<1x1x1x3x240xbf16>
    %92 = vector.shape_cast %91 : vector<1x1x1x3x240xbf16> to vector<3x240xbf16>
    %c15 = arith.constant 15 : index
    %c0_125 = arith.constant 0 : index
    %c0_126 = arith.constant 0 : index
    %93 = vector.load %arg2[%c15, %c0_125, %c0_126] : memref<25x16x3xbf16, #tpu.memory_space<vmem>>, vector<1x16x3xbf16>
    %94 = vector.shape_cast %93 : vector<1x16x3xbf16> to vector<16x3xbf16>
    %cst_127 = arith.constant dense<0.000000e+00> : vector<16x240xf32>
    %95 = tpu.matmul %94, %92, %cst_127 {dimension_numbers = #tpu.dot_dimension_numbers<[1], [0], [0], [1], [0, 0, 1, 1], [], []>} : vector<16x3xbf16>, vector<3x240xbf16>, vector<16x240xf32> -> vector<16x240xf32>
    %96 = arith.addf %90, %95 : vector<16x240xf32>
    %c0_128 = arith.constant 0 : index
    %c3_129 = arith.constant 3 : index
    %c1_130 = arith.constant 1 : index
    %c0_131 = arith.constant 0 : index
    %c0_132 = arith.constant 0 : index
    %97 = vector.load %arg1[%c0_128, %c3_129, %c1_130, %c0_131, %c0_132] : memref<1x4x4x3x272xbf16, #tpu.memory_space<vmem>>, vector<1x1x1x3x240xbf16>
    %98 = vector.shape_cast %97 : vector<1x1x1x3x240xbf16> to vector<3x240xbf16>
    %c16 = arith.constant 16 : index
    %c0_133 = arith.constant 0 : index
    %c0_134 = arith.constant 0 : index
    %99 = vector.load %arg2[%c16, %c0_133, %c0_134] : memref<25x16x3xbf16, #tpu.memory_space<vmem>>, vector<1x16x3xbf16>
    %100 = vector.shape_cast %99 : vector<1x16x3xbf16> to vector<16x3xbf16>
    %cst_135 = arith.constant dense<0.000000e+00> : vector<16x240xf32>
    %101 = tpu.matmul %100, %98, %cst_135 {dimension_numbers = #tpu.dot_dimension_numbers<[1], [0], [0], [1], [0, 0, 1, 1], [], []>} : vector<16x3xbf16>, vector<3x240xbf16>, vector<16x240xf32> -> vector<16x240xf32>
    %102 = arith.addf %96, %101 : vector<16x240xf32>
    %c0_136 = arith.constant 0 : index
    %c3_137 = arith.constant 3 : index
    %c2_138 = arith.constant 2 : index
    %c0_139 = arith.constant 0 : index
    %c0_140 = arith.constant 0 : index
    %103 = vector.load %arg1[%c0_136, %c3_137, %c2_138, %c0_139, %c0_140] : memref<1x4x4x3x272xbf16, #tpu.memory_space<vmem>>, vector<1x1x1x3x240xbf16>
    %104 = vector.shape_cast %103 : vector<1x1x1x3x240xbf16> to vector<3x240xbf16>
    %c17 = arith.constant 17 : index
    %c0_141 = arith.constant 0 : index
    %c0_142 = arith.constant 0 : index
    %105 = vector.load %arg2[%c17, %c0_141, %c0_142] : memref<25x16x3xbf16, #tpu.memory_space<vmem>>, vector<1x16x3xbf16>
    %106 = vector.shape_cast %105 : vector<1x16x3xbf16> to vector<16x3xbf16>
    %cst_143 = arith.constant dense<0.000000e+00> : vector<16x240xf32>
    %107 = tpu.matmul %106, %104, %cst_143 {dimension_numbers = #tpu.dot_dimension_numbers<[1], [0], [0], [1], [0, 0, 1, 1], [], []>} : vector<16x3xbf16>, vector<3x240xbf16>, vector<16x240xf32> -> vector<16x240xf32>
    %108 = arith.addf %102, %107 : vector<16x240xf32>
    %c0_144 = arith.constant 0 : index
    %c3_145 = arith.constant 3 : index
    %c3_146 = arith.constant 3 : index
    %c0_147 = arith.constant 0 : index
    %c0_148 = arith.constant 0 : index
    %109 = vector.load %arg1[%c0_144, %c3_145, %c3_146, %c0_147, %c0_148] : memref<1x4x4x3x272xbf16, #tpu.memory_space<vmem>>, vector<1x1x1x3x240xbf16>
    %110 = vector.shape_cast %109 : vector<1x1x1x3x240xbf16> to vector<3x240xbf16>
    %c18 = arith.constant 18 : index
    %c0_149 = arith.constant 0 : index
    %c0_150 = arith.constant 0 : index
    %111 = vector.load %arg2[%c18, %c0_149, %c0_150] : memref<25x16x3xbf16, #tpu.memory_space<vmem>>, vector<1x16x3xbf16>
    %112 = vector.shape_cast %111 : vector<1x16x3xbf16> to vector<16x3xbf16>
    %cst_151 = arith.constant dense<0.000000e+00> : vector<16x240xf32>
    %113 = tpu.matmul %112, %110, %cst_151 {dimension_numbers = #tpu.dot_dimension_numbers<[1], [0], [0], [1], [0, 0, 1, 1], [], []>} : vector<16x3xbf16>, vector<3x240xbf16>, vector<16x240xf32> -> vector<16x240xf32>
    %114 = arith.addf %108, %113 : vector<16x240xf32>
    %c0_152 = arith.constant 0 : index
    %c3_153 = arith.constant 3 : index
    %c0_154 = arith.constant 0 : index
    %c0_155 = arith.constant 0 : index
    %c1_156 = arith.constant 1 : index
    %115 = vector.load %arg1[%c0_152, %c3_153, %c0_154, %c0_155, %c1_156] : memref<1x4x4x3x272xbf16, #tpu.memory_space<vmem>>, vector<1x1x1x3x240xbf16>
    %116 = vector.shape_cast %115 : vector<1x1x1x3x240xbf16> to vector<3x240xbf16>
    %c19 = arith.constant 19 : index
    %c0_157 = arith.constant 0 : index
    %c0_158 = arith.constant 0 : index
    %117 = vector.load %arg2[%c19, %c0_157, %c0_158] : memref<25x16x3xbf16, #tpu.memory_space<vmem>>, vector<1x16x3xbf16>
    %118 = vector.shape_cast %117 : vector<1x16x3xbf16> to vector<16x3xbf16>
    %cst_159 = arith.constant dense<0.000000e+00> : vector<16x240xf32>
    %119 = tpu.matmul %118, %116, %cst_159 {dimension_numbers = #tpu.dot_dimension_numbers<[1], [0], [0], [1], [0, 0, 1, 1], [], []>} : vector<16x3xbf16>, vector<3x240xbf16>, vector<16x240xf32> -> vector<16x240xf32>
    %120 = arith.addf %114, %119 : vector<16x240xf32>
    %c0_160 = arith.constant 0 : index
    %c0_161 = arith.constant 0 : index
    %c0_162 = arith.constant 0 : index
    %c0_163 = arith.constant 0 : index
    %c16_164 = arith.constant 16 : index
    %121 = vector.load %arg1[%c0_160, %c0_161, %c0_162, %c0_163, %c16_164] : memref<1x4x4x3x272xbf16, #tpu.memory_space<vmem>>, vector<1x1x1x3x240xbf16>
    %122 = vector.shape_cast %121 : vector<1x1x1x3x240xbf16> to vector<3x240xbf16>
    %c20 = arith.constant 20 : index
    %c0_165 = arith.constant 0 : index
    %c0_166 = arith.constant 0 : index
    %123 = vector.load %arg2[%c20, %c0_165, %c0_166] : memref<25x16x3xbf16, #tpu.memory_space<vmem>>, vector<1x16x3xbf16>
    %124 = vector.shape_cast %123 : vector<1x16x3xbf16> to vector<16x3xbf16>
    %cst_167 = arith.constant dense<0.000000e+00> : vector<16x240xf32>
    %125 = tpu.matmul %124, %122, %cst_167 {dimension_numbers = #tpu.dot_dimension_numbers<[1], [0], [0], [1], [0, 0, 1, 1], [], []>} : vector<16x3xbf16>, vector<3x240xbf16>, vector<16x240xf32> -> vector<16x240xf32>
    %126 = arith.addf %120, %125 : vector<16x240xf32>
    %c0_168 = arith.constant 0 : index
    %c0_169 = arith.constant 0 : index
    %c1_170 = arith.constant 1 : index
    %c0_171 = arith.constant 0 : index
    %c16_172 = arith.constant 16 : index
    %127 = vector.load %arg1[%c0_168, %c0_169, %c1_170, %c0_171, %c16_172] : memref<1x4x4x3x272xbf16, #tpu.memory_space<vmem>>, vector<1x1x1x3x240xbf16>
    %128 = vector.shape_cast %127 : vector<1x1x1x3x240xbf16> to vector<3x240xbf16>
    %c21 = arith.constant 21 : index
    %c0_173 = arith.constant 0 : index
    %c0_174 = arith.constant 0 : index
    %129 = vector.load %arg2[%c21, %c0_173, %c0_174] : memref<25x16x3xbf16, #tpu.memory_space<vmem>>, vector<1x16x3xbf16>
    %130 = vector.shape_cast %129 : vector<1x16x3xbf16> to vector<16x3xbf16>
    %cst_175 = arith.constant dense<0.000000e+00> : vector<16x240xf32>
    %131 = tpu.matmul %130, %128, %cst_175 {dimension_numbers = #tpu.dot_dimension_numbers<[1], [0], [0], [1], [0, 0, 1, 1], [], []>} : vector<16x3xbf16>, vector<3x240xbf16>, vector<16x240xf32> -> vector<16x240xf32>
    %132 = arith.addf %126, %131 : vector<16x240xf32>
    %c0_176 = arith.constant 0 : index
    %c0_177 = arith.constant 0 : index
    %c2_178 = arith.constant 2 : index
    %c0_179 = arith.constant 0 : index
    %c16_180 = arith.constant 16 : index
    %133 = vector.load %arg1[%c0_176, %c0_177, %c2_178, %c0_179, %c16_180] : memref<1x4x4x3x272xbf16, #tpu.memory_space<vmem>>, vector<1x1x1x3x240xbf16>
    %134 = vector.shape_cast %133 : vector<1x1x1x3x240xbf16> to vector<3x240xbf16>
    %c22 = arith.constant 22 : index
    %c0_181 = arith.constant 0 : index
    %c0_182 = arith.constant 0 : index
    %135 = vector.load %arg2[%c22, %c0_181, %c0_182] : memref<25x16x3xbf16, #tpu.memory_space<vmem>>, vector<1x16x3xbf16>
    %136 = vector.shape_cast %135 : vector<1x16x3xbf16> to vector<16x3xbf16>
    %cst_183 = arith.constant dense<0.000000e+00> : vector<16x240xf32>
    %137 = tpu.matmul %136, %134, %cst_183 {dimension_numbers = #tpu.dot_dimension_numbers<[1], [0], [0], [1], [0, 0, 1, 1], [], []>} : vector<16x3xbf16>, vector<3x240xbf16>, vector<16x240xf32> -> vector<16x240xf32>
    %138 = arith.addf %132, %137 : vector<16x240xf32>
    %c0_184 = arith.constant 0 : index
    %c0_185 = arith.constant 0 : index
    %c3_186 = arith.constant 3 : index
    %c0_187 = arith.constant 0 : index
    %c16_188 = arith.constant 16 : index
    %139 = vector.load %arg1[%c0_184, %c0_185, %c3_186, %c0_187, %c16_188] : memref<1x4x4x3x272xbf16, #tpu.memory_space<vmem>>, vector<1x1x1x3x240xbf16>
    %140 = vector.shape_cast %139 : vector<1x1x1x3x240xbf16> to vector<3x240xbf16>
    %c23 = arith.constant 23 : index
    %c0_189 = arith.constant 0 : index
    %c0_190 = arith.constant 0 : index
    %141 = vector.load %arg2[%c23, %c0_189, %c0_190] : memref<25x16x3xbf16, #tpu.memory_space<vmem>>, vector<1x16x3xbf16>
    %142 = vector.shape_cast %141 : vector<1x16x3xbf16> to vector<16x3xbf16>
    %cst_191 = arith.constant dense<0.000000e+00> : vector<16x240xf32>
    %143 = tpu.matmul %142, %140, %cst_191 {dimension_numbers = #tpu.dot_dimension_numbers<[1], [0], [0], [1], [0, 0, 1, 1], [], []>} : vector<16x3xbf16>, vector<3x240xbf16>, vector<16x240xf32> -> vector<16x240xf32>
    %144 = arith.addf %138, %143 : vector<16x240xf32>
    %c0_192 = arith.constant 0 : index
    %c0_193 = arith.constant 0 : index
    %c0_194 = arith.constant 0 : index
    %c0_195 = arith.constant 0 : index
    %c17_196 = arith.constant 17 : index
    %145 = vector.load %arg1[%c0_192, %c0_193, %c0_194, %c0_195, %c17_196] : memref<1x4x4x3x272xbf16, #tpu.memory_space<vmem>>, vector<1x1x1x3x240xbf16>
    %146 = vector.shape_cast %145 : vector<1x1x1x3x240xbf16> to vector<3x240xbf16>
    %c24 = arith.constant 24 : index
    %c0_197 = arith.constant 0 : index
    %c0_198 = arith.constant 0 : index
    %147 = vector.load %arg2[%c24, %c0_197, %c0_198] : memref<25x16x3xbf16, #tpu.memory_space<vmem>>, vector<1x16x3xbf16>
    %148 = vector.shape_cast %147 : vector<1x16x3xbf16> to vector<16x3xbf16>
    %cst_199 = arith.constant dense<0.000000e+00> : vector<16x240xf32>
    %149 = tpu.matmul %148, %146, %cst_199 {dimension_numbers = #tpu.dot_dimension_numbers<[1], [0], [0], [1], [0, 0, 1, 1], [], []>} : vector<16x3xbf16>, vector<3x240xbf16>, vector<16x240xf32> -> vector<16x240xf32>
    %150 = arith.addf %144, %149 : vector<16x240xf32>
    %c0_200 = arith.constant 0 : index
    %c0_201 = arith.constant 0 : index
    %151 = vector.load %arg3[%c0_200, %c0_201] : memref<16x1xf32, #tpu.memory_space<vmem>>, vector<16x1xf32>
    %152 = vector.broadcast %151 : vector<16x1xf32> to vector<16x240xf32>
    %153 = arith.mulf %150, %152 : vector<16x240xf32>
    %c0_202 = arith.constant 0 : index
    %c0_203 = arith.constant 0 : index
    %154 = vector.load %arg4[%c0_202, %c0_203] : memref<16x1xf32, #tpu.memory_space<vmem>>, vector<16x1xf32>
    %155 = vector.broadcast %154 : vector<16x1xf32> to vector<16x240xf32>
    %156 = arith.addf %153, %155 : vector<16x240xf32>
    %cst_204 = arith.constant 0.000000e+00 : f32
    %157 = vector.broadcast %cst_204 : f32 to vector<16x240xf32>
    %158 = arith.maximumf %156, %157 : vector<16x240xf32>
    %159 = arith.truncf %158 : vector<16x240xf32> to vector<16x240xbf16>
    %c0_205 = arith.constant 0 : index
    %c0_206 = arith.constant 0 : index
    %c0_207 = arith.constant 0 : index
    %160 = vector.load %arg15[%c0_205, %c0_206, %c0_207] : memref<4x16x240xbf16, #tpu.memory_space<vmem>>, vector<1x16x240xbf16>
    %161 = vector.shape_cast %160 : vector<1x16x240xbf16> to vector<16x240xbf16>
    %162 = vector.shape_cast %159 : vector<16x240xbf16> to vector<1x16x240xbf16>
    tpu.vector_store %arg15[%c0_205, %c0_206, %c0_207], %162 {strides = array<i32>} : memref<4x16x240xbf16, #tpu.memory_space<vmem>>, vector<1x16x240xbf16>,
    %cst_208 = arith.constant 0.000000e+00 : f32
    %163 = vector.broadcast %cst_208 : f32 to vector<16x240xf32>
    %c0_209 = arith.constant 0 : index
    %c0_210 = arith.constant 0 : index
    %c2_211 = arith.constant 2 : index
    %c0_212 = arith.constant 0 : index
    %c0_213 = arith.constant 0 : index
    %164 = vector.load %arg1[%c0_209, %c0_210, %c2_211, %c0_212, %c0_213] : memref<1x4x4x3x272xbf16, #tpu.memory_space<vmem>>, vector<1x1x1x3x240xbf16>
    %165 = vector.shape_cast %164 : vector<1x1x1x3x240xbf16> to vector<3x240xbf16>
    %c0_214 = arith.constant 0 : index
    %c0_215 = arith.constant 0 : index
    %c0_216 = arith.constant 0 : index
    %166 = vector.load %arg2[%c0_214, %c0_215, %c0_216] : memref<25x16x3xbf16, #tpu.memory_space<vmem>>, vector<1x16x3xbf16>
    %167 = vector.shape_cast %166 : vector<1x16x3xbf16> to vector<16x3xbf16>
    %cst_217 = arith.constant dense<0.000000e+00> : vector<16x240xf32>
    %168 = tpu.matmul %167, %165, %cst_217 {dimension_numbers = #tpu.dot_dimension_numbers<[1], [0], [0], [1], [0, 0, 1, 1], [], []>} : vector<16x3xbf16>, vector<3x240xbf16>, vector<16x240xf32> -> vector<16x240xf32>
    %169 = arith.addf %163, %168 : vector<16x240xf32>
    %c0_218 = arith.constant 0 : index
    %c0_219 = arith.constant 0 : index
    %c3_220 = arith.constant 3 : index
    %c0_221 = arith.constant 0 : index
    %c0_222 = arith.constant 0 : index
    %170 = vector.load %arg1[%c0_218, %c0_219, %c3_220, %c0_221, %c0_222] : memref<1x4x4x3x272xbf16, #tpu.memory_space<vmem>>, vector<1x1x1x3x240xbf16>
    %171 = vector.shape_cast %170 : vector<1x1x1x3x240xbf16> to vector<3x240xbf16>
    %c1_223 = arith.constant 1 : index
    %c0_224 = arith.constant 0 : index
    %c0_225 = arith.constant 0 : index
    %172 = vector.load %arg2[%c1_223, %c0_224, %c0_225] : memref<25x16x3xbf16, #tpu.memory_space<vmem>>, vector<1x16x3xbf16>
    %173 = vector.shape_cast %172 : vector<1x16x3xbf16> to vector<16x3xbf16>
    %cst_226 = arith.constant dense<0.000000e+00> : vector<16x240xf32>
    %174 = tpu.matmul %173, %171, %cst_226 {dimension_numbers = #tpu.dot_dimension_numbers<[1], [0], [0], [1], [0, 0, 1, 1], [], []>} : vector<16x3xbf16>, vector<3x240xbf16>, vector<16x240xf32> -> vector<16x240xf32>
    %175 = arith.addf %169, %174 : vector<16x240xf32>
    %c0_227 = arith.constant 0 : index
    %c0_228 = arith.constant 0 : index
    %c0_229 = arith.constant 0 : index
    %c0_230 = arith.constant 0 : index
    %c1_231 = arith.constant 1 : index
    %176 = vector.load %arg1[%c0_227, %c0_228, %c0_229, %c0_230, %c1_231] : memref<1x4x4x3x272xbf16, #tpu.memory_space<vmem>>, vector<1x1x1x3x240xbf16>
    %177 = vector.shape_cast %176 : vector<1x1x1x3x240xbf16> to vector<3x240xbf16>
    %c2_232 = arith.constant 2 : index
    %c0_233 = arith.constant 0 : index
    %c0_234 = arith.constant 0 : index
    %178 = vector.load %arg2[%c2_232, %c0_233, %c0_234] : memref<25x16x3xbf16, #tpu.memory_space<vmem>>, vector<1x16x3xbf16>
    %179 = vector.shape_cast %178 : vector<1x16x3xbf16> to vector<16x3xbf16>
    %cst_235 = arith.constant dense<0.000000e+00> : vector<16x240xf32>
    %180 = tpu.matmul %179, %177, %cst_235 {dimension_numbers = #tpu.dot_dimension_numbers<[1], [0], [0], [1], [0, 0, 1, 1], [], []>} : vector<16x3xbf16>, vector<3x240xbf16>, vector<16x240xf32> -> vector<16x240xf32>
    %181 = arith.addf %175, %180 : vector<16x240xf32>
    %c0_236 = arith.constant 0 : index
    %c0_237 = arith.constant 0 : index
    %c1_238 = arith.constant 1 : index
    %c0_239 = arith.constant 0 : index
    %c1_240 = arith.constant 1 : index
    %182 = vector.load %arg1[%c0_236, %c0_237, %c1_238, %c0_239, %c1_240] : memref<1x4x4x3x272xbf16, #tpu.memory_space<vmem>>, vector<1x1x1x3x240xbf16>
    %183 = vector.shape_cast %182 : vector<1x1x1x3x240xbf16> to vector<3x240xbf16>
    %c3_241 = arith.constant 3 : index
    %c0_242 = arith.constant 0 : index
    %c0_243 = arith.constant 0 : index
    %184 = vector.load %arg2[%c3_241, %c0_242, %c0_243] : memref<25x16x3xbf16, #tpu.memory_space<vmem>>, vector<1x16x3xbf16>
    %185 = vector.shape_cast %184 : vector<1x16x3xbf16> to vector<16x3xbf16>
    %cst_244 = arith.constant dense<0.000000e+00> : vector<16x240xf32>
    %186 = tpu.matmul %185, %183, %cst_244 {dimension_numbers = #tpu.dot_dimension_numbers<[1], [0], [0], [1], [0, 0, 1, 1], [], []>} : vector<16x3xbf16>, vector<3x240xbf16>, vector<16x240xf32> -> vector<16x240xf32>
    %187 = arith.addf %181, %186 : vector<16x240xf32>
    %c0_245 = arith.constant 0 : index
    %c0_246 = arith.constant 0 : index
    %c2_247 = arith.constant 2 : index
    %c0_248 = arith.constant 0 : index
    %c1_249 = arith.constant 1 : index
    %188 = vector.load %arg1[%c0_245, %c0_246, %c2_247, %c0_248, %c1_249] : memref<1x4x4x3x272xbf16, #tpu.memory_space<vmem>>, vector<1x1x1x3x240xbf16>
    %189 = vector.shape_cast %188 : vector<1x1x1x3x240xbf16> to vector<3x240xbf16>
    %c4_250 = arith.constant 4 : index
    %c0_251 = arith.constant 0 : index
    %c0_252 = arith.constant 0 : index
    %190 = vector.load %arg2[%c4_250, %c0_251, %c0_252] : memref<25x16x3xbf16, #tpu.memory_space<vmem>>, vector<1x16x3xbf16>
    %191 = vector.shape_cast %190 : vector<1x16x3xbf16> to vector<16x3xbf16>
    %cst_253 = arith.constant dense<0.000000e+00> : vector<16x240xf32>
    %192 = tpu.matmul %191, %189, %cst_253 {dimension_numbers = #tpu.dot_dimension_numbers<[1], [0], [0], [1], [0, 0, 1, 1], [], []>} : vector<16x3xbf16>, vector<3x240xbf16>, vector<16x240xf32> -> vector<16x240xf32>
    %193 = arith.addf %187, %192 : vector<16x240xf32>
    %c0_254 = arith.constant 0 : index
    %c1_255 = arith.constant 1 : index
    %c2_256 = arith.constant 2 : index
    %c0_257 = arith.constant 0 : index
    %c0_258 = arith.constant 0 : index
    %194 = vector.load %arg1[%c0_254, %c1_255, %c2_256, %c0_257, %c0_258] : memref<1x4x4x3x272xbf16, #tpu.memory_space<vmem>>, vector<1x1x1x3x240xbf16>
    %195 = vector.shape_cast %194 : vector<1x1x1x3x240xbf16> to vector<3x240xbf16>
    %c5_259 = arith.constant 5 : index
    %c0_260 = arith.constant 0 : index
    %c0_261 = arith.constant 0 : index
    %196 = vector.load %arg2[%c5_259, %c0_260, %c0_261] : memref<25x16x3xbf16, #tpu.memory_space<vmem>>, vector<1x16x3xbf16>
    %197 = vector.shape_cast %196 : vector<1x16x3xbf16> to vector<16x3xbf16>
    %cst_262 = arith.constant dense<0.000000e+00> : vector<16x240xf32>
    %198 = tpu.matmul %197, %195, %cst_262 {dimension_numbers = #tpu.dot_dimension_numbers<[1], [0], [0], [1], [0, 0, 1, 1], [], []>} : vector<16x3xbf16>, vector<3x240xbf16>, vector<16x240xf32> -> vector<16x240xf32>
    %199 = arith.addf %193, %198 : vector<16x240xf32>
    %c0_263 = arith.constant 0 : index
    %c1_264 = arith.constant 1 : index
    %c3_265 = arith.constant 3 : index
    %c0_266 = arith.constant 0 : index
    %c0_267 = arith.constant 0 : index
    %200 = vector.load %arg1[%c0_263, %c1_264, %c3_265, %c0_266, %c0_267] : memref<1x4x4x3x272xbf16, #tpu.memory_space<vmem>>, vector<1x1x1x3x240xbf16>
    %201 = vector.shape_cast %200 : vector<1x1x1x3x240xbf16> to vector<3x240xbf16>
    %c6_268 = arith.constant 6 : index
    %c0_269 = arith.constant 0 : index
    %c0_270 = arith.constant 0 : index
    %202 = vector.load %arg2[%c6_268, %c0_269, %c0_270] : memref<25x16x3xbf16, #tpu.memory_space<vmem>>, vector<1x16x3xbf16>
    %203 = vector.shape_cast %202 : vector<1x16x3xbf16> to vector<16x3xbf16>
    %cst_271 = arith.constant dense<0.000000e+00> : vector<16x240xf32>
    %204 = tpu.matmul %203, %201, %cst_271 {dimension_numbers = #tpu.dot_dimension_numbers<[1], [0], [0], [1], [0, 0, 1, 1], [], []>} : vector<16x3xbf16>, vector<3x240xbf16>, vector<16x240xf32> -> vector<16x240xf32>
    %205 = arith.addf %199, %204 : vector<16x240xf32>
    %c0_272 = arith.constant 0 : index
    %c1_273 = arith.constant 1 : index
    %c0_274 = arith.constant 0 : index
    %c0_275 = arith.constant 0 : index
    %c1_276 = arith.constant 1 : index
    %206 = vector.load %arg1[%c0_272, %c1_273, %c0_274, %c0_275, %c1_276] : memref<1x4x4x3x272xbf16, #tpu.memory_space<vmem>>, vector<1x1x1x3x240xbf16>
    %207 = vector.shape_cast %206 : vector<1x1x1x3x240xbf16> to vector<3x240xbf16>
    %c7_277 = arith.constant 7 : index
    %c0_278 = arith.constant 0 : index
    %c0_279 = arith.constant 0 : index
    %208 = vector.load %arg2[%c7_277, %c0_278, %c0_279] : memref<25x16x3xbf16, #tpu.memory_space<vmem>>, vector<1x16x3xbf16>
    %209 = vector.shape_cast %208 : vector<1x16x3xbf16> to vector<16x3xbf16>
    %cst_280 = arith.constant dense<0.000000e+00> : vector<16x240xf32>
    %210 = tpu.matmul %209, %207, %cst_280 {dimension_numbers = #tpu.dot_dimension_numbers<[1], [0], [0], [1], [0, 0, 1, 1], [], []>} : vector<16x3xbf16>, vector<3x240xbf16>, vector<16x240xf32> -> vector<16x240xf32>
    %211 = arith.addf %205, %210 : vector<16x240xf32>
    %c0_281 = arith.constant 0 : index
    %c1_282 = arith.constant 1 : index
    %c1_283 = arith.constant 1 : index
    %c0_284 = arith.constant 0 : index
    %c1_285 = arith.constant 1 : index
    %212 = vector.load %arg1[%c0_281, %c1_282, %c1_283, %c0_284, %c1_285] : memref<1x4x4x3x272xbf16, #tpu.memory_space<vmem>>, vector<1x1x1x3x240xbf16>
    %213 = vector.shape_cast %212 : vector<1x1x1x3x240xbf16> to vector<3x240xbf16>
    %c8_286 = arith.constant 8 : index
    %c0_287 = arith.constant 0 : index
    %c0_288 = arith.constant 0 : index
    %214 = vector.load %arg2[%c8_286, %c0_287, %c0_288] : memref<25x16x3xbf16, #tpu.memory_space<vmem>>, vector<1x16x3xbf16>
    %215 = vector.shape_cast %214 : vector<1x16x3xbf16> to vector<16x3xbf16>
    %cst_289 = arith.constant dense<0.000000e+00> : vector<16x240xf32>
    %216 = tpu.matmul %215, %213, %cst_289 {dimension_numbers = #tpu.dot_dimension_numbers<[1], [0], [0], [1], [0, 0, 1, 1], [], []>} : vector<16x3xbf16>, vector<3x240xbf16>, vector<16x240xf32> -> vector<16x240xf32>
    %217 = arith.addf %211, %216 : vector<16x240xf32>
    %c0_290 = arith.constant 0 : index
    %c1_291 = arith.constant 1 : index
    %c2_292 = arith.constant 2 : index
    %c0_293 = arith.constant 0 : index
    %c1_294 = arith.constant 1 : index
    %218 = vector.load %arg1[%c0_290, %c1_291, %c2_292, %c0_293, %c1_294] : memref<1x4x4x3x272xbf16, #tpu.memory_space<vmem>>, vector<1x1x1x3x240xbf16>
    %219 = vector.shape_cast %218 : vector<1x1x1x3x240xbf16> to vector<3x240xbf16>
    %c9_295 = arith.constant 9 : index
    %c0_296 = arith.constant 0 : index
    %c0_297 = arith.constant 0 : index
    %220 = vector.load %arg2[%c9_295, %c0_296, %c0_297] : memref<25x16x3xbf16, #tpu.memory_space<vmem>>, vector<1x16x3xbf16>
    %221 = vector.shape_cast %220 : vector<1x16x3xbf16> to vector<16x3xbf16>
    %cst_298 = arith.constant dense<0.000000e+00> : vector<16x240xf32>
    %222 = tpu.matmul %221, %219, %cst_298 {dimension_numbers = #tpu.dot_dimension_numbers<[1], [0], [0], [1], [0, 0, 1, 1], [], []>} : vector<16x3xbf16>, vector<3x240xbf16>, vector<16x240xf32> -> vector<16x240xf32>
    %223 = arith.addf %217, %222 : vector<16x240xf32>
    %c0_299 = arith.constant 0 : index
    %c2_300 = arith.constant 2 : index
    %c2_301 = arith.constant 2 : index
    %c0_302 = arith.constant 0 : index
    %c0_303 = arith.constant 0 : index
    %224 = vector.load %arg1[%c0_299, %c2_300, %c2_301, %c0_302, %c0_303] : memref<1x4x4x3x272xbf16, #tpu.memory_space<vmem>>, vector<1x1x1x3x240xbf16>
    %225 = vector.shape_cast %224 : vector<1x1x1x3x240xbf16> to vector<3x240xbf16>
    %c10_304 = arith.constant 10 : index
    %c0_305 = arith.constant 0 : index
    %c0_306 = arith.constant 0 : index
    %226 = vector.load %arg2[%c10_304, %c0_305, %c0_306] : memref<25x16x3xbf16, #tpu.memory_space<vmem>>, vector<1x16x3xbf16>
    %227 = vector.shape_cast %226 : vector<1x16x3xbf16> to vector<16x3xbf16>
    %cst_307 = arith.constant dense<0.000000e+00> : vector<16x240xf32>
    %228 = tpu.matmul %227, %225, %cst_307 {dimension_numbers = #tpu.dot_dimension_numbers<[1], [0], [0], [1], [0, 0, 1, 1], [], []>} : vector<16x3xbf16>, vector<3x240xbf16>, vector<16x240xf32> -> vector<16x240xf32>
    %229 = arith.addf %223, %228 : vector<16x240xf32>
    %c0_308 = arith.constant 0 : index
    %c2_309 = arith.constant 2 : index
    %c3_310 = arith.constant 3 : index
    %c0_311 = arith.constant 0 : index
    %c0_312 = arith.constant 0 : index
    %230 = vector.load %arg1[%c0_308, %c2_309, %c3_310, %c0_311, %c0_312] : memref<1x4x4x3x272xbf16, #tpu.memory_space<vmem>>, vector<1x1x1x3x240xbf16>
    %231 = vector.shape_cast %230 : vector<1x1x1x3x240xbf16> to vector<3x240xbf16>
    %c11_313 = arith.constant 11 : index
    %c0_314 = arith.constant 0 : index
    %c0_315 = arith.constant 0 : index
    %232 = vector.load %arg2[%c11_313, %c0_314, %c0_315] : memref<25x16x3xbf16, #tpu.memory_space<vmem>>, vector<1x16x3xbf16>
    %233 = vector.shape_cast %232 : vector<1x16x3xbf16> to vector<16x3xbf16>
    %cst_316 = arith.constant dense<0.000000e+00> : vector<16x240xf32>
    %234 = tpu.matmul %233, %231, %cst_316 {dimension_numbers = #tpu.dot_dimension_numbers<[1], [0], [0], [1], [0, 0, 1, 1], [], []>} : vector<16x3xbf16>, vector<3x240xbf16>, vector<16x240xf32> -> vector<16x240xf32>
    %235 = arith.addf %229, %234 : vector<16x240xf32>
    %c0_317 = arith.constant 0 : index
    %c2_318 = arith.constant 2 : index
    %c0_319 = arith.constant 0 : index
    %c0_320 = arith.constant 0 : index
    %c1_321 = arith.constant 1 : index
    %236 = vector.load %arg1[%c0_317, %c2_318, %c0_319, %c0_320, %c1_321] : memref<1x4x4x3x272xbf16, #tpu.memory_space<vmem>>, vector<1x1x1x3x240xbf16>
    %237 = vector.shape_cast %236 : vector<1x1x1x3x240xbf16> to vector<3x240xbf16>
    %c12_322 = arith.constant 12 : index
    %c0_323 = arith.constant 0 : index
    %c0_324 = arith.constant 0 : index
    %238 = vector.load %arg2[%c12_322, %c0_323, %c0_324] : memref<25x16x3xbf16, #tpu.memory_space<vmem>>, vector<1x16x3xbf16>
    %239 = vector.shape_cast %238 : vector<1x16x3xbf16> to vector<16x3xbf16>
    %cst_325 = arith.constant dense<0.000000e+00> : vector<16x240xf32>
    %240 = tpu.matmul %239, %237, %cst_325 {dimension_numbers = #tpu.dot_dimension_numbers<[1], [0], [0], [1], [0, 0, 1, 1], [], []>} : vector<16x3xbf16>, vector<3x240xbf16>, vector<16x240xf32> -> vector<16x240xf32>
    %241 = arith.addf %235, %240 : vector<16x240xf32>
    %c0_326 = arith.constant 0 : index
    %c2_327 = arith.constant 2 : index
    %c1_328 = arith.constant 1 : index
    %c0_329 = arith.constant 0 : index
    %c1_330 = arith.constant 1 : index
    %242 = vector.load %arg1[%c0_326, %c2_327, %c1_328, %c0_329, %c1_330] : memref<1x4x4x3x272xbf16, #tpu.memory_space<vmem>>, vector<1x1x1x3x240xbf16>
    %243 = vector.shape_cast %242 : vector<1x1x1x3x240xbf16> to vector<3x240xbf16>
    %c13_331 = arith.constant 13 : index
    %c0_332 = arith.constant 0 : index
    %c0_333 = arith.constant 0 : index
    %244 = vector.load %arg2[%c13_331, %c0_332, %c0_333] : memref<25x16x3xbf16, #tpu.memory_space<vmem>>, vector<1x16x3xbf16>
    %245 = vector.shape_cast %244 : vector<1x16x3xbf16> to vector<16x3xbf16>
    %cst_334 = arith.constant dense<0.000000e+00> : vector<16x240xf32>
    %246 = tpu.matmul %245, %243, %cst_334 {dimension_numbers = #tpu.dot_dimension_numbers<[1], [0], [0], [1], [0, 0, 1, 1], [], []>} : vector<16x3xbf16>, vector<3x240xbf16>, vector<16x240xf32> -> vector<16x240xf32>
    %247 = arith.addf %241, %246 : vector<16x240xf32>
    %c0_335 = arith.constant 0 : index
    %c2_336 = arith.constant 2 : index
    %c2_337 = arith.constant 2 : index
    %c0_338 = arith.constant 0 : index
    %c1_339 = arith.constant 1 : index
    %248 = vector.load %arg1[%c0_335, %c2_336, %c2_337, %c0_338, %c1_339] : memref<1x4x4x3x272xbf16, #tpu.memory_space<vmem>>, vector<1x1x1x3x240xbf16>
    %249 = vector.shape_cast %248 : vector<1x1x1x3x240xbf16> to vector<3x240xbf16>
    %c14_340 = arith.constant 14 : index
    %c0_341 = arith.constant 0 : index
    %c0_342 = arith.constant 0 : index
    %250 = vector.load %arg2[%c14_340, %c0_341, %c0_342] : memref<25x16x3xbf16, #tpu.memory_space<vmem>>, vector<1x16x3xbf16>
    %251 = vector.shape_cast %250 : vector<1x16x3xbf16> to vector<16x3xbf16>
    %cst_343 = arith.constant dense<0.000000e+00> : vector<16x240xf32>
    %252 = tpu.matmul %251, %249, %cst_343 {dimension_numbers = #tpu.dot_dimension_numbers<[1], [0], [0], [1], [0, 0, 1, 1], [], []>} : vector<16x3xbf16>, vector<3x240xbf16>, vector<16x240xf32> -> vector<16x240xf32>
    %253 = arith.addf %247, %252 : vector<16x240xf32>
    %c0_344 = arith.constant 0 : index
    %c3_345 = arith.constant 3 : index
    %c2_346 = arith.constant 2 : index
    %c0_347 = arith.constant 0 : index
    %c0_348 = arith.constant 0 : index
    %254 = vector.load %arg1[%c0_344, %c3_345, %c2_346, %c0_347, %c0_348] : memref<1x4x4x3x272xbf16, #tpu.memory_space<vmem>>, vector<1x1x1x3x240xbf16>
    %255 = vector.shape_cast %254 : vector<1x1x1x3x240xbf16> to vector<3x240xbf16>
    %c15_349 = arith.constant 15 : index
    %c0_350 = arith.constant 0 : index
    %c0_351 = arith.constant 0 : index
    %256 = vector.load %arg2[%c15_349, %c0_350, %c0_351] : memref<25x16x3xbf16, #tpu.memory_space<vmem>>, vector<1x16x3xbf16>
    %257 = vector.shape_cast %256 : vector<1x16x3xbf16> to vector<16x3xbf16>
    %cst_352 = arith.constant dense<0.000000e+00> : vector<16x240xf32>
    %258 = tpu.matmul %257, %255, %cst_352 {dimension_numbers = #tpu.dot_dimension_numbers<[1], [0], [0], [1], [0, 0, 1, 1], [], []>} : vector<16x3xbf16>, vector<3x240xbf16>, vector<16x240xf32> -> vector<16x240xf32>
    %259 = arith.addf %253, %258 : vector<16x240xf32>
    %c0_353 = arith.constant 0 : index
    %c3_354 = arith.constant 3 : index
    %c3_355 = arith.constant 3 : index
    %c0_356 = arith.constant 0 : index
    %c0_357 = arith.constant 0 : index
    %260 = vector.load %arg1[%c0_353, %c3_354, %c3_355, %c0_356, %c0_357] : memref<1x4x4x3x272xbf16, #tpu.memory_space<vmem>>, vector<1x1x1x3x240xbf16>
    %261 = vector.shape_cast %260 : vector<1x1x1x3x240xbf16> to vector<3x240xbf16>
    %c16_358 = arith.constant 16 : index
    %c0_359 = arith.constant 0 : index
    %c0_360 = arith.constant 0 : index
    %262 = vector.load %arg2[%c16_358, %c0_359, %c0_360] : memref<25x16x3xbf16, #tpu.memory_space<vmem>>, vector<1x16x3xbf16>
    %263 = vector.shape_cast %262 : vector<1x16x3xbf16> to vector<16x3xbf16>
    %cst_361 = arith.constant dense<0.000000e+00> : vector<16x240xf32>
    %264 = tpu.matmul %263, %261, %cst_361 {dimension_numbers = #tpu.dot_dimension_numbers<[1], [0], [0], [1], [0, 0, 1, 1], [], []>} : vector<16x3xbf16>, vector<3x240xbf16>, vector<16x240xf32> -> vector<16x240xf32>
    %265 = arith.addf %259, %264 : vector<16x240xf32>
    %c0_362 = arith.constant 0 : index
    %c3_363 = arith.constant 3 : index
    %c0_364 = arith.constant 0 : index
    %c0_365 = arith.constant 0 : index
    %c1_366 = arith.constant 1 : index
    %266 = vector.load %arg1[%c0_362, %c3_363, %c0_364, %c0_365, %c1_366] : memref<1x4x4x3x272xbf16, #tpu.memory_space<vmem>>, vector<1x1x1x3x240xbf16>
    %267 = vector.shape_cast %266 : vector<1x1x1x3x240xbf16> to vector<3x240xbf16>
    %c17_367 = arith.constant 17 : index
    %c0_368 = arith.constant 0 : index
    %c0_369 = arith.constant 0 : index
    %268 = vector.load %arg2[%c17_367, %c0_368, %c0_369] : memref<25x16x3xbf16, #tpu.memory_space<vmem>>, vector<1x16x3xbf16>
    %269 = vector.shape_cast %268 : vector<1x16x3xbf16> to vector<16x3xbf16>
    %cst_370 = arith.constant dense<0.000000e+00> : vector<16x240xf32>
    %270 = tpu.matmul %269, %267, %cst_370 {dimension_numbers = #tpu.dot_dimension_numbers<[1], [0], [0], [1], [0, 0, 1, 1], [], []>} : vector<16x3xbf16>, vector<3x240xbf16>, vector<16x240xf32> -> vector<16x240xf32>
    %271 = arith.addf %265, %270 : vector<16x240xf32>
    %c0_371 = arith.constant 0 : index
    %c3_372 = arith.constant 3 : index
    %c1_373 = arith.constant 1 : index
    %c0_374 = arith.constant 0 : index
    %c1_375 = arith.constant 1 : index
    %272 = vector.load %arg1[%c0_371, %c3_372, %c1_373, %c0_374, %c1_375] : memref<1x4x4x3x272xbf16, #tpu.memory_space<vmem>>, vector<1x1x1x3x240xbf16>
    %273 = vector.shape_cast %272 : vector<1x1x1x3x240xbf16> to vector<3x240xbf16>
    %c18_376 = arith.constant 18 : index
    %c0_377 = arith.constant 0 : index
    %c0_378 = arith.constant 0 : index
    %274 = vector.load %arg2[%c18_376, %c0_377, %c0_378] : memref<25x16x3xbf16, #tpu.memory_space<vmem>>, vector<1x16x3xbf16>
    %275 = vector.shape_cast %274 : vector<1x16x3xbf16> to vector<16x3xbf16>
    %cst_379 = arith.constant dense<0.000000e+00> : vector<16x240xf32>
    %276 = tpu.matmul %275, %273, %cst_379 {dimension_numbers = #tpu.dot_dimension_numbers<[1], [0], [0], [1], [0, 0, 1, 1], [], []>} : vector<16x3xbf16>, vector<3x240xbf16>, vector<16x240xf32> -> vector<16x240xf32>
    %277 = arith.addf %271, %276 : vector<16x240xf32>
    %c0_380 = arith.constant 0 : index
    %c3_381 = arith.constant 3 : index
    %c2_382 = arith.constant 2 : index
    %c0_383 = arith.constant 0 : index
    %c1_384 = arith.constant 1 : index
    %278 = vector.load %arg1[%c0_380, %c3_381, %c2_382, %c0_383, %c1_384] : memref<1x4x4x3x272xbf16, #tpu.memory_space<vmem>>, vector<1x1x1x3x240xbf16>
    %279 = vector.shape_cast %278 : vector<1x1x1x3x240xbf16> to vector<3x240xbf16>
    %c19_385 = arith.constant 19 : index
    %c0_386 = arith.constant 0 : index
    %c0_387 = arith.constant 0 : index
    %280 = vector.load %arg2[%c19_385, %c0_386, %c0_387] : memref<25x16x3xbf16, #tpu.memory_space<vmem>>, vector<1x16x3xbf16>
    %281 = vector.shape_cast %280 : vector<1x16x3xbf16> to vector<16x3xbf16>
    %cst_388 = arith.constant dense<0.000000e+00> : vector<16x240xf32>
    %282 = tpu.matmul %281, %279, %cst_388 {dimension_numbers = #tpu.dot_dimension_numbers<[1], [0], [0], [1], [0, 0, 1, 1], [], []>} : vector<16x3xbf16>, vector<3x240xbf16>, vector<16x240xf32> -> vector<16x240xf32>
    %283 = arith.addf %277, %282 : vector<16x240xf32>
    %c0_389 = arith.constant 0 : index
    %c0_390 = arith.constant 0 : index
    %c2_391 = arith.constant 2 : index
    %c0_392 = arith.constant 0 : index
    %c16_393 = arith.constant 16 : index
    %284 = vector.load %arg1[%c0_389, %c0_390, %c2_391, %c0_392, %c16_393] : memref<1x4x4x3x272xbf16, #tpu.memory_space<vmem>>, vector<1x1x1x3x240xbf16>
    %285 = vector.shape_cast %284 : vector<1x1x1x3x240xbf16> to vector<3x240xbf16>
    %c20_394 = arith.constant 20 : index
    %c0_395 = arith.constant 0 : index
    %c0_396 = arith.constant 0 : index
    %286 = vector.load %arg2[%c20_394, %c0_395, %c0_396] : memref<25x16x3xbf16, #tpu.memory_space<vmem>>, vector<1x16x3xbf16>
    %287 = vector.shape_cast %286 : vector<1x16x3xbf16> to vector<16x3xbf16>
    %cst_397 = arith.constant dense<0.000000e+00> : vector<16x240xf32>
    %288 = tpu.matmul %287, %285, %cst_397 {dimension_numbers = #tpu.dot_dimension_numbers<[1], [0], [0], [1], [0, 0, 1, 1], [], []>} : vector<16x3xbf16>, vector<3x240xbf16>, vector<16x240xf32> -> vector<16x240xf32>
    %289 = arith.addf %283, %288 : vector<16x240xf32>
    %c0_398 = arith.constant 0 : index
    %c0_399 = arith.constant 0 : index
    %c3_400 = arith.constant 3 : index
    %c0_401 = arith.constant 0 : index
    %c16_402 = arith.constant 16 : index
    %290 = vector.load %arg1[%c0_398, %c0_399, %c3_400, %c0_401, %c16_402] : memref<1x4x4x3x272xbf16, #tpu.memory_space<vmem>>, vector<1x1x1x3x240xbf16>
    %291 = vector.shape_cast %290 : vector<1x1x1x3x240xbf16> to vector<3x240xbf16>
    %c21_403 = arith.constant 21 : index
    %c0_404 = arith.constant 0 : index
    %c0_405 = arith.constant 0 : index
    %292 = vector.load %arg2[%c21_403, %c0_404, %c0_405] : memref<25x16x3xbf16, #tpu.memory_space<vmem>>, vector<1x16x3xbf16>
    %293 = vector.shape_cast %292 : vector<1x16x3xbf16> to vector<16x3xbf16>
    %cst_406 = arith.constant dense<0.000000e+00> : vector<16x240xf32>
    %294 = tpu.matmul %293, %291, %cst_406 {dimension_numbers = #tpu.dot_dimension_numbers<[1], [0], [0], [1], [0, 0, 1, 1], [], []>} : vector<16x3xbf16>, vector<3x240xbf16>, vector<16x240xf32> -> vector<16x240xf32>
    %295 = arith.addf %289, %294 : vector<16x240xf32>
    %c0_407 = arith.constant 0 : index
    %c0_408 = arith.constant 0 : index
    %c0_409 = arith.constant 0 : index
    %c0_410 = arith.constant 0 : index
    %c17_411 = arith.constant 17 : index
    %296 = vector.load %arg1[%c0_407, %c0_408, %c0_409, %c0_410, %c17_411] : memref<1x4x4x3x272xbf16, #tpu.memory_space<vmem>>, vector<1x1x1x3x240xbf16>
    %297 = vector.shape_cast %296 : vector<1x1x1x3x240xbf16> to vector<3x240xbf16>
    %c22_412 = arith.constant 22 : index
    %c0_413 = arith.constant 0 : index
    %c0_414 = arith.constant 0 : index
    %298 = vector.load %arg2[%c22_412, %c0_413, %c0_414] : memref<25x16x3xbf16, #tpu.memory_space<vmem>>, vector<1x16x3xbf16>
    %299 = vector.shape_cast %298 : vector<1x16x3xbf16> to vector<16x3xbf16>
    %cst_415 = arith.constant dense<0.000000e+00> : vector<16x240xf32>
    %300 = tpu.matmul %299, %297, %cst_415 {dimension_numbers = #tpu.dot_dimension_numbers<[1], [0], [0], [1], [0, 0, 1, 1], [], []>} : vector<16x3xbf16>, vector<3x240xbf16>, vector<16x240xf32> -> vector<16x240xf32>
    %301 = arith.addf %295, %300 : vector<16x240xf32>
    %c0_416 = arith.constant 0 : index
    %c0_417 = arith.constant 0 : index
    %c1_418 = arith.constant 1 : index
    %c0_419 = arith.constant 0 : index
    %c17_420 = arith.constant 17 : index
    %302 = vector.load %arg1[%c0_416, %c0_417, %c1_418, %c0_419, %c17_420] : memref<1x4x4x3x272xbf16, #tpu.memory_space<vmem>>, vector<1x1x1x3x240xbf16>
    %303 = vector.shape_cast %302 : vector<1x1x1x3x240xbf16> to vector<3x240xbf16>
    %c23_421 = arith.constant 23 : index
    %c0_422 = arith.constant 0 : index
    %c0_423 = arith.constant 0 : index
    %304 = vector.load %arg2[%c23_421, %c0_422, %c0_423] : memref<25x16x3xbf16, #tpu.memory_space<vmem>>, vector<1x16x3xbf16>
    %305 = vector.shape_cast %304 : vector<1x16x3xbf16> to vector<16x3xbf16>
    %cst_424 = arith.constant dense<0.000000e+00> : vector<16x240xf32>
    %306 = tpu.matmul %305, %303, %cst_424 {dimension_numbers = #tpu.dot_dimension_numbers<[1], [0], [0], [1], [0, 0, 1, 1], [], []>} : vector<16x3xbf16>, vector<3x240xbf16>, vector<16x240xf32> -> vector<16x240xf32>
    %307 = arith.addf %301, %306 : vector<16x240xf32>
    %c0_425 = arith.constant 0 : index
    %c0_426 = arith.constant 0 : index
    %c2_427 = arith.constant 2 : index
    %c0_428 = arith.constant 0 : index
    %c17_429 = arith.constant 17 : index
    %308 = vector.load %arg1[%c0_425, %c0_426, %c2_427, %c0_428, %c17_429] : memref<1x4x4x3x272xbf16, #tpu.memory_space<vmem>>, vector<1x1x1x3x240xbf16>
    %309 = vector.shape_cast %308 : vector<1x1x1x3x240xbf16> to vector<3x240xbf16>
    %c24_430 = arith.constant 24 : index
    %c0_431 = arith.constant 0 : index
    %c0_432 = arith.constant 0 : index
    %310 = vector.load %arg2[%c24_430, %c0_431, %c0_432] : memref<25x16x3xbf16, #tpu.memory_space<vmem>>, vector<1x16x3xbf16>
    %311 = vector.shape_cast %310 : vector<1x16x3xbf16> to vector<16x3xbf16>
    %cst_433 = arith.constant dense<0.000000e+00> : vector<16x240xf32>
    %312 = tpu.matmul %311, %309, %cst_433 {dimension_numbers = #tpu.dot_dimension_numbers<[1], [0], [0], [1], [0, 0, 1, 1], [], []>} : vector<16x3xbf16>, vector<3x240xbf16>, vector<16x240xf32> -> vector<16x240xf32>
    %313 = arith.addf %307, %312 : vector<16x240xf32>
    %c0_434 = arith.constant 0 : index
    %c0_435 = arith.constant 0 : index
    %314 = vector.load %arg3[%c0_434, %c0_435] : memref<16x1xf32, #tpu.memory_space<vmem>>, vector<16x1xf32>
    %315 = vector.broadcast %314 : vector<16x1xf32> to vector<16x240xf32>
    %316 = arith.mulf %313, %315 : vector<16x240xf32>
    %c0_436 = arith.constant 0 : index
    %c0_437 = arith.constant 0 : index
    %317 = vector.load %arg4[%c0_436, %c0_437] : memref<16x1xf32, #tpu.memory_space<vmem>>, vector<16x1xf32>
    %318 = vector.broadcast %317 : vector<16x1xf32> to vector<16x240xf32>
    %319 = arith.addf %316, %318 : vector<16x240xf32>
    %cst_438 = arith.constant 0.000000e+00 : f32
    %320 = vector.broadcast %cst_438 : f32 to vector<16x240xf32>
    %321 = arith.maximumf %319, %320 : vector<16x240xf32>
    %322 = arith.truncf %321 : vector<16x240xf32> to vector<16x240xbf16>
    %c1_439 = arith.constant 1 : index
    %c0_440 = arith.constant 0 : index
    %c0_441 = arith.constant 0 : index
    %323 = vector.load %arg15[%c1_439, %c0_440, %c0_441] : memref<4x16x240xbf16, #tpu.memory_space<vmem>>, vector<1x16x240xbf16>
    %324 = vector.shape_cast %323 : vector<1x16x240xbf16> to vector<16x240xbf16>
    %325 = vector.shape_cast %322 : vector<16x240xbf16> to vector<1x16x240xbf16>
    tpu.vector_store %arg15[%c1_439, %c0_440, %c0_441], %325 {strides = array<i32>} : memref<4x16x240xbf16, #tpu.memory_space<vmem>>, vector<1x16x240xbf16>,
    %cst_442 = arith.constant 0.000000e+00 : f32
    %326 = vector.broadcast %cst_442 : f32 to vector<16x240xf32>
    %c0_443 = arith.constant 0 : index
    %c2_444 = arith.constant 2 : index
    %c0_445 = arith.constant 0 : index
    %c0_446 = arith.constant 0 : index
    %c0_447 = arith.constant 0 : index
    %327 = vector.load %arg1[%c0_443, %c2_444, %c0_445, %c0_446, %c0_447] : memref<1x4x4x3x272xbf16, #tpu.memory_space<vmem>>, vector<1x1x1x3x240xbf16>
    %328 = vector.shape_cast %327 : vector<1x1x1x3x240xbf16> to vector<3x240xbf16>
    %c0_448 = arith.constant 0 : index
    %c0_449 = arith.constant 0 : index
    %c0_450 = arith.constant 0 : index
    %329 = vector.load %arg2[%c0_448, %c0_449, %c0_450] : memref<25x16x3xbf16, #tpu.memory_space<vmem>>, vector<1x16x3xbf16>
    %330 = vector.shape_cast %329 : vector<1x16x3xbf16> to vector<16x3xbf16>
    %cst_451 = arith.constant dense<0.000000e+00> : vector<16x240xf32>
    %331 = tpu.matmul %330, %328, %cst_451 {dimension_numbers = #tpu.dot_dimension_numbers<[1], [0], [0], [1], [0, 0, 1, 1], [], []>} : vector<16x3xbf16>, vector<3x240xbf16>, vector<16x240xf32> -> vector<16x240xf32>
    %332 = arith.addf %326, %331 : vector<16x240xf32>
    %c0_452 = arith.constant 0 : index
    %c2_453 = arith.constant 2 : index
    %c1_454 = arith.constant 1 : index
    %c0_455 = arith.constant 0 : index
    %c0_456 = arith.constant 0 : index
    %333 = vector.load %arg1[%c0_452, %c2_453, %c1_454, %c0_455, %c0_456] : memref<1x4x4x3x272xbf16, #tpu.memory_space<vmem>>, vector<1x1x1x3x240xbf16>
    %334 = vector.shape_cast %333 : vector<1x1x1x3x240xbf16> to vector<3x240xbf16>
    %c1_457 = arith.constant 1 : index
    %c0_458 = arith.constant 0 : index
    %c0_459 = arith.constant 0 : index
    %335 = vector.load %arg2[%c1_457, %c0_458, %c0_459] : memref<25x16x3xbf16, #tpu.memory_space<vmem>>, vector<1x16x3xbf16>
    %336 = vector.shape_cast %335 : vector<1x16x3xbf16> to vector<16x3xbf16>
    %cst_460 = arith.constant dense<0.000000e+00> : vector<16x240xf32>
    %337 = tpu.matmul %336, %334, %cst_460 {dimension_numbers = #tpu.dot_dimension_numbers<[1], [0], [0], [1], [0, 0, 1, 1], [], []>} : vector<16x3xbf16>, vector<3x240xbf16>, vector<16x240xf32> -> vector<16x240xf32>
    %338 = arith.addf %332, %337 : vector<16x240xf32>
    %c0_461 = arith.constant 0 : index
    %c2_462 = arith.constant 2 : index
    %c2_463 = arith.constant 2 : index
    %c0_464 = arith.constant 0 : index
    %c0_465 = arith.constant 0 : index
    %339 = vector.load %arg1[%c0_461, %c2_462, %c2_463, %c0_464, %c0_465] : memref<1x4x4x3x272xbf16, #tpu.memory_space<vmem>>, vector<1x1x1x3x240xbf16>
    %340 = vector.shape_cast %339 : vector<1x1x1x3x240xbf16> to vector<3x240xbf16>
    %c2_466 = arith.constant 2 : index
    %c0_467 = arith.constant 0 : index
    %c0_468 = arith.constant 0 : index
    %341 = vector.load %arg2[%c2_466, %c0_467, %c0_468] : memref<25x16x3xbf16, #tpu.memory_space<vmem>>, vector<1x16x3xbf16>
    %342 = vector.shape_cast %341 : vector<1x16x3xbf16> to vector<16x3xbf16>
    %cst_469 = arith.constant dense<0.000000e+00> : vector<16x240xf32>
    %343 = tpu.matmul %342, %340, %cst_469 {dimension_numbers = #tpu.dot_dimension_numbers<[1], [0], [0], [1], [0, 0, 1, 1], [], []>} : vector<16x3xbf16>, vector<3x240xbf16>, vector<16x240xf32> -> vector<16x240xf32>
    %344 = arith.addf %338, %343 : vector<16x240xf32>
    %c0_470 = arith.constant 0 : index
    %c2_471 = arith.constant 2 : index
    %c3_472 = arith.constant 3 : index
    %c0_473 = arith.constant 0 : index
    %c0_474 = arith.constant 0 : index
    %345 = vector.load %arg1[%c0_470, %c2_471, %c3_472, %c0_473, %c0_474] : memref<1x4x4x3x272xbf16, #tpu.memory_space<vmem>>, vector<1x1x1x3x240xbf16>
    %346 = vector.shape_cast %345 : vector<1x1x1x3x240xbf16> to vector<3x240xbf16>
    %c3_475 = arith.constant 3 : index
    %c0_476 = arith.constant 0 : index
    %c0_477 = arith.constant 0 : index
    %347 = vector.load %arg2[%c3_475, %c0_476, %c0_477] : memref<25x16x3xbf16, #tpu.memory_space<vmem>>, vector<1x16x3xbf16>
    %348 = vector.shape_cast %347 : vector<1x16x3xbf16> to vector<16x3xbf16>
    %cst_478 = arith.constant dense<0.000000e+00> : vector<16x240xf32>
    %349 = tpu.matmul %348, %346, %cst_478 {dimension_numbers = #tpu.dot_dimension_numbers<[1], [0], [0], [1], [0, 0, 1, 1], [], []>} : vector<16x3xbf16>, vector<3x240xbf16>, vector<16x240xf32> -> vector<16x240xf32>
    %350 = arith.addf %344, %349 : vector<16x240xf32>
    %c0_479 = arith.constant 0 : index
    %c2_480 = arith.constant 2 : index
    %c0_481 = arith.constant 0 : index
    %c0_482 = arith.constant 0 : index
    %c1_483 = arith.constant 1 : index
    %351 = vector.load %arg1[%c0_479, %c2_480, %c0_481, %c0_482, %c1_483] : memref<1x4x4x3x272xbf16, #tpu.memory_space<vmem>>, vector<1x1x1x3x240xbf16>
    %352 = vector.shape_cast %351 : vector<1x1x1x3x240xbf16> to vector<3x240xbf16>
    %c4_484 = arith.constant 4 : index
    %c0_485 = arith.constant 0 : index
    %c0_486 = arith.constant 0 : index
    %353 = vector.load %arg2[%c4_484, %c0_485, %c0_486] : memref<25x16x3xbf16, #tpu.memory_space<vmem>>, vector<1x16x3xbf16>
    %354 = vector.shape_cast %353 : vector<1x16x3xbf16> to vector<16x3xbf16>
    %cst_487 = arith.constant dense<0.000000e+00> : vector<16x240xf32>
    %355 = tpu.matmul %354, %352, %cst_487 {dimension_numbers = #tpu.dot_dimension_numbers<[1], [0], [0], [1], [0, 0, 1, 1], [], []>} : vector<16x3xbf16>, vector<3x240xbf16>, vector<16x240xf32> -> vector<16x240xf32>
    %356 = arith.addf %350, %355 : vector<16x240xf32>
    %c0_488 = arith.constant 0 : index
    %c3_489 = arith.constant 3 : index
    %c0_490 = arith.constant 0 : index
    %c0_491 = arith.constant 0 : index
    %c0_492 = arith.constant 0 : index
    %357 = vector.load %arg1[%c0_488, %c3_489, %c0_490, %c0_491, %c0_492] : memref<1x4x4x3x272xbf16, #tpu.memory_space<vmem>>, vector<1x1x1x3x240xbf16>
    %358 = vector.shape_cast %357 : vector<1x1x1x3x240xbf16> to vector<3x240xbf16>
    %c5_493 = arith.constant 5 : index
    %c0_494 = arith.constant 0 : index
    %c0_495 = arith.constant 0 : index
    %359 = vector.load %arg2[%c5_493, %c0_494, %c0_495] : memref<25x16x3xbf16, #tpu.memory_space<vmem>>, vector<1x16x3xbf16>
    %360 = vector.shape_cast %359 : vector<1x16x3xbf16> to vector<16x3xbf16>
    %cst_496 = arith.constant dense<0.000000e+00> : vector<16x240xf32>
    %361 = tpu.matmul %360, %358, %cst_496 {dimension_numbers = #tpu.dot_dimension_numbers<[1], [0], [0], [1], [0, 0, 1, 1], [], []>} : vector<16x3xbf16>, vector<3x240xbf16>, vector<16x240xf32> -> vector<16x240xf32>
    %362 = arith.addf %356, %361 : vector<16x240xf32>
    %c0_497 = arith.constant 0 : index
    %c3_498 = arith.constant 3 : index
    %c1_499 = arith.constant 1 : index
    %c0_500 = arith.constant 0 : index
    %c0_501 = arith.constant 0 : index
    %363 = vector.load %arg1[%c0_497, %c3_498, %c1_499, %c0_500, %c0_501] : memref<1x4x4x3x272xbf16, #tpu.memory_space<vmem>>, vector<1x1x1x3x240xbf16>
    %364 = vector.shape_cast %363 : vector<1x1x1x3x240xbf16> to vector<3x240xbf16>
    %c6_502 = arith.constant 6 : index
    %c0_503 = arith.constant 0 : index
    %c0_504 = arith.constant 0 : index
    %365 = vector.load %arg2[%c6_502, %c0_503, %c0_504] : memref<25x16x3xbf16, #tpu.memory_space<vmem>>, vector<1x16x3xbf16>
    %366 = vector.shape_cast %365 : vector<1x16x3xbf16> to vector<16x3xbf16>
    %cst_505 = arith.constant dense<0.000000e+00> : vector<16x240xf32>
    %367 = tpu.matmul %366, %364, %cst_505 {dimension_numbers = #tpu.dot_dimension_numbers<[1], [0], [0], [1], [0, 0, 1, 1], [], []>} : vector<16x3xbf16>, vector<3x240xbf16>, vector<16x240xf32> -> vector<16x240xf32>
    %368 = arith.addf %362, %367 : vector<16x240xf32>
    %c0_506 = arith.constant 0 : index
    %c3_507 = arith.constant 3 : index
    %c2_508 = arith.constant 2 : index
    %c0_509 = arith.constant 0 : index
    %c0_510 = arith.constant 0 : index
    %369 = vector.load %arg1[%c0_506, %c3_507, %c2_508, %c0_509, %c0_510] : memref<1x4x4x3x272xbf16, #tpu.memory_space<vmem>>, vector<1x1x1x3x240xbf16>
    %370 = vector.shape_cast %369 : vector<1x1x1x3x240xbf16> to vector<3x240xbf16>
    %c7_511 = arith.constant 7 : index
    %c0_512 = arith.constant 0 : index
    %c0_513 = arith.constant 0 : index
    %371 = vector.load %arg2[%c7_511, %c0_512, %c0_513] : memref<25x16x3xbf16, #tpu.memory_space<vmem>>, vector<1x16x3xbf16>
    %372 = vector.shape_cast %371 : vector<1x16x3xbf16> to vector<16x3xbf16>
    %cst_514 = arith.constant dense<0.000000e+00> : vector<16x240xf32>
    %373 = tpu.matmul %372, %370, %cst_514 {dimension_numbers = #tpu.dot_dimension_numbers<[1], [0], [0], [1], [0, 0, 1, 1], [], []>} : vector<16x3xbf16>, vector<3x240xbf16>, vector<16x240xf32> -> vector<16x240xf32>
    %374 = arith.addf %368, %373 : vector<16x240xf32>
    %c0_515 = arith.constant 0 : index
    %c3_516 = arith.constant 3 : index
    %c3_517 = arith.constant 3 : index
    %c0_518 = arith.constant 0 : index
    %c0_519 = arith.constant 0 : index
    %375 = vector.load %arg1[%c0_515, %c3_516, %c3_517, %c0_518, %c0_519] : memref<1x4x4x3x272xbf16, #tpu.memory_space<vmem>>, vector<1x1x1x3x240xbf16>
    %376 = vector.shape_cast %375 : vector<1x1x1x3x240xbf16> to vector<3x240xbf16>
    %c8_520 = arith.constant 8 : index
    %c0_521 = arith.constant 0 : index
    %c0_522 = arith.constant 0 : index
    %377 = vector.load %arg2[%c8_520, %c0_521, %c0_522] : memref<25x16x3xbf16, #tpu.memory_space<vmem>>, vector<1x16x3xbf16>
    %378 = vector.shape_cast %377 : vector<1x16x3xbf16> to vector<16x3xbf16>
    %cst_523 = arith.constant dense<0.000000e+00> : vector<16x240xf32>
    %379 = tpu.matmul %378, %376, %cst_523 {dimension_numbers = #tpu.dot_dimension_numbers<[1], [0], [0], [1], [0, 0, 1, 1], [], []>} : vector<16x3xbf16>, vector<3x240xbf16>, vector<16x240xf32> -> vector<16x240xf32>
    %380 = arith.addf %374, %379 : vector<16x240xf32>
    %c0_524 = arith.constant 0 : index
    %c3_525 = arith.constant 3 : index
    %c0_526 = arith.constant 0 : index
    %c0_527 = arith.constant 0 : index
    %c1_528 = arith.constant 1 : index
    %381 = vector.load %arg1[%c0_524, %c3_525, %c0_526, %c0_527, %c1_528] : memref<1x4x4x3x272xbf16, #tpu.memory_space<vmem>>, vector<1x1x1x3x240xbf16>
    %382 = vector.shape_cast %381 : vector<1x1x1x3x240xbf16> to vector<3x240xbf16>
    %c9_529 = arith.constant 9 : index
    %c0_530 = arith.constant 0 : index
    %c0_531 = arith.constant 0 : index
    %383 = vector.load %arg2[%c9_529, %c0_530, %c0_531] : memref<25x16x3xbf16, #tpu.memory_space<vmem>>, vector<1x16x3xbf16>
    %384 = vector.shape_cast %383 : vector<1x16x3xbf16> to vector<16x3xbf16>
    %cst_532 = arith.constant dense<0.000000e+00> : vector<16x240xf32>
    %385 = tpu.matmul %384, %382, %cst_532 {dimension_numbers = #tpu.dot_dimension_numbers<[1], [0], [0], [1], [0, 0, 1, 1], [], []>} : vector<16x3xbf16>, vector<3x240xbf16>, vector<16x240xf32> -> vector<16x240xf32>
    %386 = arith.addf %380, %385 : vector<16x240xf32>
    %c0_533 = arith.constant 0 : index
    %c0_534 = arith.constant 0 : index
    %c0_535 = arith.constant 0 : index
    %c0_536 = arith.constant 0 : index
    %c16_537 = arith.constant 16 : index
    %387 = vector.load %arg1[%c0_533, %c0_534, %c0_535, %c0_536, %c16_537] : memref<1x4x4x3x272xbf16, #tpu.memory_space<vmem>>, vector<1x1x1x3x240xbf16>
    %388 = vector.shape_cast %387 : vector<1x1x1x3x240xbf16> to vector<3x240xbf16>
    %c10_538 = arith.constant 10 : index
    %c0_539 = arith.constant 0 : index
    %c0_540 = arith.constant 0 : index
    %389 = vector.load %arg2[%c10_538, %c0_539, %c0_540] : memref<25x16x3xbf16, #tpu.memory_space<vmem>>, vector<1x16x3xbf16>
    %390 = vector.shape_cast %389 : vector<1x16x3xbf16> to vector<16x3xbf16>
    %cst_541 = arith.constant dense<0.000000e+00> : vector<16x240xf32>
    %391 = tpu.matmul %390, %388, %cst_541 {dimension_numbers = #tpu.dot_dimension_numbers<[1], [0], [0], [1], [0, 0, 1, 1], [], []>} : vector<16x3xbf16>, vector<3x240xbf16>, vector<16x240xf32> -> vector<16x240xf32>
    %392 = arith.addf %386, %391 : vector<16x240xf32>
    %c0_542 = arith.constant 0 : index
    %c0_543 = arith.constant 0 : index
    %c1_544 = arith.constant 1 : index
    %c0_545 = arith.constant 0 : index
    %c16_546 = arith.constant 16 : index
    %393 = vector.load %arg1[%c0_542, %c0_543, %c1_544, %c0_545, %c16_546] : memref<1x4x4x3x272xbf16, #tpu.memory_space<vmem>>, vector<1x1x1x3x240xbf16>
    %394 = vector.shape_cast %393 : vector<1x1x1x3x240xbf16> to vector<3x240xbf16>
    %c11_547 = arith.constant 11 : index
    %c0_548 = arith.constant 0 : index
    %c0_549 = arith.constant 0 : index
    %395 = vector.load %arg2[%c11_547, %c0_548, %c0_549] : memref<25x16x3xbf16, #tpu.memory_space<vmem>>, vector<1x16x3xbf16>
    %396 = vector.shape_cast %395 : vector<1x16x3xbf16> to vector<16x3xbf16>
    %cst_550 = arith.constant dense<0.000000e+00> : vector<16x240xf32>
    %397 = tpu.matmul %396, %394, %cst_550 {dimension_numbers = #tpu.dot_dimension_numbers<[1], [0], [0], [1], [0, 0, 1, 1], [], []>} : vector<16x3xbf16>, vector<3x240xbf16>, vector<16x240xf32> -> vector<16x240xf32>
    %398 = arith.addf %392, %397 : vector<16x240xf32>
    %c0_551 = arith.constant 0 : index
    %c0_552 = arith.constant 0 : index
    %c2_553 = arith.constant 2 : index
    %c0_554 = arith.constant 0 : index
    %c16_555 = arith.constant 16 : index
    %399 = vector.load %arg1[%c0_551, %c0_552, %c2_553, %c0_554, %c16_555] : memref<1x4x4x3x272xbf16, #tpu.memory_space<vmem>>, vector<1x1x1x3x240xbf16>
    %400 = vector.shape_cast %399 : vector<1x1x1x3x240xbf16> to vector<3x240xbf16>
    %c12_556 = arith.constant 12 : index
    %c0_557 = arith.constant 0 : index
    %c0_558 = arith.constant 0 : index
    %401 = vector.load %arg2[%c12_556, %c0_557, %c0_558] : memref<25x16x3xbf16, #tpu.memory_space<vmem>>, vector<1x16x3xbf16>
    %402 = vector.shape_cast %401 : vector<1x16x3xbf16> to vector<16x3xbf16>
    %cst_559 = arith.constant dense<0.000000e+00> : vector<16x240xf32>
    %403 = tpu.matmul %402, %400, %cst_559 {dimension_numbers = #tpu.dot_dimension_numbers<[1], [0], [0], [1], [0, 0, 1, 1], [], []>} : vector<16x3xbf16>, vector<3x240xbf16>, vector<16x240xf32> -> vector<16x240xf32>
    %404 = arith.addf %398, %403 : vector<16x240xf32>
    %c0_560 = arith.constant 0 : index
    %c0_561 = arith.constant 0 : index
    %c3_562 = arith.constant 3 : index
    %c0_563 = arith.constant 0 : index
    %c16_564 = arith.constant 16 : index
    %405 = vector.load %arg1[%c0_560, %c0_561, %c3_562, %c0_563, %c16_564] : memref<1x4x4x3x272xbf16, #tpu.memory_space<vmem>>, vector<1x1x1x3x240xbf16>
    %406 = vector.shape_cast %405 : vector<1x1x1x3x240xbf16> to vector<3x240xbf16>
    %c13_565 = arith.constant 13 : index
    %c0_566 = arith.constant 0 : index
    %c0_567 = arith.constant 0 : index
    %407 = vector.load %arg2[%c13_565, %c0_566, %c0_567] : memref<25x16x3xbf16, #tpu.memory_space<vmem>>, vector<1x16x3xbf16>
    %408 = vector.shape_cast %407 : vector<1x16x3xbf16> to vector<16x3xbf16>
    %cst_568 = arith.constant dense<0.000000e+00> : vector<16x240xf32>
    %409 = tpu.matmul %408, %406, %cst_568 {dimension_numbers = #tpu.dot_dimension_numbers<[1], [0], [0], [1], [0, 0, 1, 1], [], []>} : vector<16x3xbf16>, vector<3x240xbf16>, vector<16x240xf32> -> vector<16x240xf32>
    %410 = arith.addf %404, %409 : vector<16x240xf32>
    %c0_569 = arith.constant 0 : index
    %c0_570 = arith.constant 0 : index
    %c0_571 = arith.constant 0 : index
    %c0_572 = arith.constant 0 : index
    %c17_573 = arith.constant 17 : index
    %411 = vector.load %arg1[%c0_569, %c0_570, %c0_571, %c0_572, %c17_573] : memref<1x4x4x3x272xbf16, #tpu.memory_space<vmem>>, vector<1x1x1x3x240xbf16>
    %412 = vector.shape_cast %411 : vector<1x1x1x3x240xbf16> to vector<3x240xbf16>
    %c14_574 = arith.constant 14 : index
    %c0_575 = arith.constant 0 : index
    %c0_576 = arith.constant 0 : index
    %413 = vector.load %arg2[%c14_574, %c0_575, %c0_576] : memref<25x16x3xbf16, #tpu.memory_space<vmem>>, vector<1x16x3xbf16>
    %414 = vector.shape_cast %413 : vector<1x16x3xbf16> to vector<16x3xbf16>
    %cst_577 = arith.constant dense<0.000000e+00> : vector<16x240xf32>
    %415 = tpu.matmul %414, %412, %cst_577 {dimension_numbers = #tpu.dot_dimension_numbers<[1], [0], [0], [1], [0, 0, 1, 1], [], []>} : vector<16x3xbf16>, vector<3x240xbf16>, vector<16x240xf32> -> vector<16x240xf32>
    %416 = arith.addf %410, %415 : vector<16x240xf32>
    %c0_578 = arith.constant 0 : index
    %c1_579 = arith.constant 1 : index
    %c0_580 = arith.constant 0 : index
    %c0_581 = arith.constant 0 : index
    %c16_582 = arith.constant 16 : index
    %417 = vector.load %arg1[%c0_578, %c1_579, %c0_580, %c0_581, %c16_582] : memref<1x4x4x3x272xbf16, #tpu.memory_space<vmem>>, vector<1x1x1x3x240xbf16>
    %418 = vector.shape_cast %417 : vector<1x1x1x3x240xbf16> to vector<3x240xbf16>
    %c15_583 = arith.constant 15 : index
    %c0_584 = arith.constant 0 : index
    %c0_585 = arith.constant 0 : index
    %419 = vector.load %arg2[%c15_583, %c0_584, %c0_585] : memref<25x16x3xbf16, #tpu.memory_space<vmem>>, vector<1x16x3xbf16>
    %420 = vector.shape_cast %419 : vector<1x16x3xbf16> to vector<16x3xbf16>
    %cst_586 = arith.constant dense<0.000000e+00> : vector<16x240xf32>
    %421 = tpu.matmul %420, %418, %cst_586 {dimension_numbers = #tpu.dot_dimension_numbers<[1], [0], [0], [1], [0, 0, 1, 1], [], []>} : vector<16x3xbf16>, vector<3x240xbf16>, vector<16x240xf32> -> vector<16x240xf32>
    %422 = arith.addf %416, %421 : vector<16x240xf32>
    %c0_587 = arith.constant 0 : index
    %c1_588 = arith.constant 1 : index
    %c1_589 = arith.constant 1 : index
    %c0_590 = arith.constant 0 : index
    %c16_591 = arith.constant 16 : index
    %423 = vector.load %arg1[%c0_587, %c1_588, %c1_589, %c0_590, %c16_591] : memref<1x4x4x3x272xbf16, #tpu.memory_space<vmem>>, vector<1x1x1x3x240xbf16>
    %424 = vector.shape_cast %423 : vector<1x1x1x3x240xbf16> to vector<3x240xbf16>
    %c16_592 = arith.constant 16 : index
    %c0_593 = arith.constant 0 : index
    %c0_594 = arith.constant 0 : index
    %425 = vector.load %arg2[%c16_592, %c0_593, %c0_594] : memref<25x16x3xbf16, #tpu.memory_space<vmem>>, vector<1x16x3xbf16>
    %426 = vector.shape_cast %425 : vector<1x16x3xbf16> to vector<16x3xbf16>
    %cst_595 = arith.constant dense<0.000000e+00> : vector<16x240xf32>
    %427 = tpu.matmul %426, %424, %cst_595 {dimension_numbers = #tpu.dot_dimension_numbers<[1], [0], [0], [1], [0, 0, 1, 1], [], []>} : vector<16x3xbf16>, vector<3x240xbf16>, vector<16x240xf32> -> vector<16x240xf32>
    %428 = arith.addf %422, %427 : vector<16x240xf32>
    %c0_596 = arith.constant 0 : index
    %c1_597 = arith.constant 1 : index
    %c2_598 = arith.constant 2 : index
    %c0_599 = arith.constant 0 : index
    %c16_600 = arith.constant 16 : index
    %429 = vector.load %arg1[%c0_596, %c1_597, %c2_598, %c0_599, %c16_600] : memref<1x4x4x3x272xbf16, #tpu.memory_space<vmem>>, vector<1x1x1x3x240xbf16>
    %430 = vector.shape_cast %429 : vector<1x1x1x3x240xbf16> to vector<3x240xbf16>
    %c17_601 = arith.constant 17 : index
    %c0_602 = arith.constant 0 : index
    %c0_603 = arith.constant 0 : index
    %431 = vector.load %arg2[%c17_601, %c0_602, %c0_603] : memref<25x16x3xbf16, #tpu.memory_space<vmem>>, vector<1x16x3xbf16>
    %432 = vector.shape_cast %431 : vector<1x16x3xbf16> to vector<16x3xbf16>
    %cst_604 = arith.constant dense<0.000000e+00> : vector<16x240xf32>
    %433 = tpu.matmul %432, %430, %cst_604 {dimension_numbers = #tpu.dot_dimension_numbers<[1], [0], [0], [1], [0, 0, 1, 1], [], []>} : vector<16x3xbf16>, vector<3x240xbf16>, vector<16x240xf32> -> vector<16x240xf32>
    %434 = arith.addf %428, %433 : vector<16x240xf32>
    %c0_605 = arith.constant 0 : index
    %c1_606 = arith.constant 1 : index
    %c3_607 = arith.constant 3 : index
    %c0_608 = arith.constant 0 : index
    %c16_609 = arith.constant 16 : index
    %435 = vector.load %arg1[%c0_605, %c1_606, %c3_607, %c0_608, %c16_609] : memref<1x4x4x3x272xbf16, #tpu.memory_space<vmem>>, vector<1x1x1x3x240xbf16>
    %436 = vector.shape_cast %435 : vector<1x1x1x3x240xbf16> to vector<3x240xbf16>
    %c18_610 = arith.constant 18 : index
    %c0_611 = arith.constant 0 : index
    %c0_612 = arith.constant 0 : index
    %437 = vector.load %arg2[%c18_610, %c0_611, %c0_612] : memref<25x16x3xbf16, #tpu.memory_space<vmem>>, vector<1x16x3xbf16>
    %438 = vector.shape_cast %437 : vector<1x16x3xbf16> to vector<16x3xbf16>
    %cst_613 = arith.constant dense<0.000000e+00> : vector<16x240xf32>
    %439 = tpu.matmul %438, %436, %cst_613 {dimension_numbers = #tpu.dot_dimension_numbers<[1], [0], [0], [1], [0, 0, 1, 1], [], []>} : vector<16x3xbf16>, vector<3x240xbf16>, vector<16x240xf32> -> vector<16x240xf32>
    %440 = arith.addf %434, %439 : vector<16x240xf32>
    %c0_614 = arith.constant 0 : index
    %c1_615 = arith.constant 1 : index
    %c0_616 = arith.constant 0 : index
    %c0_617 = arith.constant 0 : index
    %c17_618 = arith.constant 17 : index
    %441 = vector.load %arg1[%c0_614, %c1_615, %c0_616, %c0_617, %c17_618] : memref<1x4x4x3x272xbf16, #tpu.memory_space<vmem>>, vector<1x1x1x3x240xbf16>
    %442 = vector.shape_cast %441 : vector<1x1x1x3x240xbf16> to vector<3x240xbf16>
    %c19_619 = arith.constant 19 : index
    %c0_620 = arith.constant 0 : index
    %c0_621 = arith.constant 0 : index
    %443 = vector.load %arg2[%c19_619, %c0_620, %c0_621] : memref<25x16x3xbf16, #tpu.memory_space<vmem>>, vector<1x16x3xbf16>
    %444 = vector.shape_cast %443 : vector<1x16x3xbf16> to vector<16x3xbf16>
    %cst_622 = arith.constant dense<0.000000e+00> : vector<16x240xf32>
    %445 = tpu.matmul %444, %442, %cst_622 {dimension_numbers = #tpu.dot_dimension_numbers<[1], [0], [0], [1], [0, 0, 1, 1], [], []>} : vector<16x3xbf16>, vector<3x240xbf16>, vector<16x240xf32> -> vector<16x240xf32>
    %446 = arith.addf %440, %445 : vector<16x240xf32>
    %c0_623 = arith.constant 0 : index
    %c2_624 = arith.constant 2 : index
    %c0_625 = arith.constant 0 : index
    %c0_626 = arith.constant 0 : index
    %c16_627 = arith.constant 16 : index
    %447 = vector.load %arg1[%c0_623, %c2_624, %c0_625, %c0_626, %c16_627] : memref<1x4x4x3x272xbf16, #tpu.memory_space<vmem>>, vector<1x1x1x3x240xbf16>
    %448 = vector.shape_cast %447 : vector<1x1x1x3x240xbf16> to vector<3x240xbf16>
    %c20_628 = arith.constant 20 : index
    %c0_629 = arith.constant 0 : index
    %c0_630 = arith.constant 0 : index
    %449 = vector.load %arg2[%c20_628, %c0_629, %c0_630] : memref<25x16x3xbf16, #tpu.memory_space<vmem>>, vector<1x16x3xbf16>
    %450 = vector.shape_cast %449 : vector<1x16x3xbf16> to vector<16x3xbf16>
    %cst_631 = arith.constant dense<0.000000e+00> : vector<16x240xf32>
    %451 = tpu.matmul %450, %448, %cst_631 {dimension_numbers = #tpu.dot_dimension_numbers<[1], [0], [0], [1], [0, 0, 1, 1], [], []>} : vector<16x3xbf16>, vector<3x240xbf16>, vector<16x240xf32> -> vector<16x240xf32>
    %452 = arith.addf %446, %451 : vector<16x240xf32>
    %c0_632 = arith.constant 0 : index
    %c2_633 = arith.constant 2 : index
    %c1_634 = arith.constant 1 : index
    %c0_635 = arith.constant 0 : index
    %c16_636 = arith.constant 16 : index
    %453 = vector.load %arg1[%c0_632, %c2_633, %c1_634, %c0_635, %c16_636] : memref<1x4x4x3x272xbf16, #tpu.memory_space<vmem>>, vector<1x1x1x3x240xbf16>
    %454 = vector.shape_cast %453 : vector<1x1x1x3x240xbf16> to vector<3x240xbf16>
    %c21_637 = arith.constant 21 : index
    %c0_638 = arith.constant 0 : index
    %c0_639 = arith.constant 0 : index
    %455 = vector.load %arg2[%c21_637, %c0_638, %c0_639] : memref<25x16x3xbf16, #tpu.memory_space<vmem>>, vector<1x16x3xbf16>
    %456 = vector.shape_cast %455 : vector<1x16x3xbf16> to vector<16x3xbf16>
    %cst_640 = arith.constant dense<0.000000e+00> : vector<16x240xf32>
    %457 = tpu.matmul %456, %454, %cst_640 {dimension_numbers = #tpu.dot_dimension_numbers<[1], [0], [0], [1], [0, 0, 1, 1], [], []>} : vector<16x3xbf16>, vector<3x240xbf16>, vector<16x240xf32> -> vector<16x240xf32>
    %458 = arith.addf %452, %457 : vector<16x240xf32>
    %c0_641 = arith.constant 0 : index
    %c2_642 = arith.constant 2 : index
    %c2_643 = arith.constant 2 : index
    %c0_644 = arith.constant 0 : index
    %c16_645 = arith.constant 16 : index
    %459 = vector.load %arg1[%c0_641, %c2_642, %c2_643, %c0_644, %c16_645] : memref<1x4x4x3x272xbf16, #tpu.memory_space<vmem>>, vector<1x1x1x3x240xbf16>
    %460 = vector.shape_cast %459 : vector<1x1x1x3x240xbf16> to vector<3x240xbf16>
    %c22_646 = arith.constant 22 : index
    %c0_647 = arith.constant 0 : index
    %c0_648 = arith.constant 0 : index
    %461 = vector.load %arg2[%c22_646, %c0_647, %c0_648] : memref<25x16x3xbf16, #tpu.memory_space<vmem>>, vector<1x16x3xbf16>
    %462 = vector.shape_cast %461 : vector<1x16x3xbf16> to vector<16x3xbf16>
    %cst_649 = arith.constant dense<0.000000e+00> : vector<16x240xf32>
    %463 = tpu.matmul %462, %460, %cst_649 {dimension_numbers = #tpu.dot_dimension_numbers<[1], [0], [0], [1], [0, 0, 1, 1], [], []>} : vector<16x3xbf16>, vector<3x240xbf16>, vector<16x240xf32> -> vector<16x240xf32>
    %464 = arith.addf %458, %463 : vector<16x240xf32>
    %c0_650 = arith.constant 0 : index
    %c2_651 = arith.constant 2 : index
    %c3_652 = arith.constant 3 : index
    %c0_653 = arith.constant 0 : index
    %c16_654 = arith.constant 16 : index
    %465 = vector.load %arg1[%c0_650, %c2_651, %c3_652, %c0_653, %c16_654] : memref<1x4x4x3x272xbf16, #tpu.memory_space<vmem>>, vector<1x1x1x3x240xbf16>
    %466 = vector.shape_cast %465 : vector<1x1x1x3x240xbf16> to vector<3x240xbf16>
    %c23_655 = arith.constant 23 : index
    %c0_656 = arith.constant 0 : index
    %c0_657 = arith.constant 0 : index
    %467 = vector.load %arg2[%c23_655, %c0_656, %c0_657] : memref<25x16x3xbf16, #tpu.memory_space<vmem>>, vector<1x16x3xbf16>
    %468 = vector.shape_cast %467 : vector<1x16x3xbf16> to vector<16x3xbf16>
    %cst_658 = arith.constant dense<0.000000e+00> : vector<16x240xf32>
    %469 = tpu.matmul %468, %466, %cst_658 {dimension_numbers = #tpu.dot_dimension_numbers<[1], [0], [0], [1], [0, 0, 1, 1], [], []>} : vector<16x3xbf16>, vector<3x240xbf16>, vector<16x240xf32> -> vector<16x240xf32>
    %470 = arith.addf %464, %469 : vector<16x240xf32>
    %c0_659 = arith.constant 0 : index
    %c2_660 = arith.constant 2 : index
    %c0_661 = arith.constant 0 : index
    %c0_662 = arith.constant 0 : index
    %c17_663 = arith.constant 17 : index
    %471 = vector.load %arg1[%c0_659, %c2_660, %c0_661, %c0_662, %c17_663] : memref<1x4x4x3x272xbf16, #tpu.memory_space<vmem>>, vector<1x1x1x3x240xbf16>
    %472 = vector.shape_cast %471 : vector<1x1x1x3x240xbf16> to vector<3x240xbf16>
    %c24_664 = arith.constant 24 : index
    %c0_665 = arith.constant 0 : index
    %c0_666 = arith.constant 0 : index
    %473 = vector.load %arg2[%c24_664, %c0_665, %c0_666] : memref<25x16x3xbf16, #tpu.memory_space<vmem>>, vector<1x16x3xbf16>
    %474 = vector.shape_cast %473 : vector<1x16x3xbf16> to vector<16x3xbf16>
    %cst_667 = arith.constant dense<0.000000e+00> : vector<16x240xf32>
    %475 = tpu.matmul %474, %472, %cst_667 {dimension_numbers = #tpu.dot_dimension_numbers<[1], [0], [0], [1], [0, 0, 1, 1], [], []>} : vector<16x3xbf16>, vector<3x240xbf16>, vector<16x240xf32> -> vector<16x240xf32>
    %476 = arith.addf %470, %475 : vector<16x240xf32>
    %c0_668 = arith.constant 0 : index
    %c0_669 = arith.constant 0 : index
    %477 = vector.load %arg3[%c0_668, %c0_669] : memref<16x1xf32, #tpu.memory_space<vmem>>, vector<16x1xf32>
    %478 = vector.broadcast %477 : vector<16x1xf32> to vector<16x240xf32>
    %479 = arith.mulf %476, %478 : vector<16x240xf32>
    %c0_670 = arith.constant 0 : index
    %c0_671 = arith.constant 0 : index
    %480 = vector.load %arg4[%c0_670, %c0_671] : memref<16x1xf32, #tpu.memory_space<vmem>>, vector<16x1xf32>
    %481 = vector.broadcast %480 : vector<16x1xf32> to vector<16x240xf32>
    %482 = arith.addf %479, %481 : vector<16x240xf32>
    %cst_672 = arith.constant 0.000000e+00 : f32
    %483 = vector.broadcast %cst_672 : f32 to vector<16x240xf32>
    %484 = arith.maximumf %482, %483 : vector<16x240xf32>
    %485 = arith.truncf %484 : vector<16x240xf32> to vector<16x240xbf16>
    %c2_673 = arith.constant 2 : index
    %c0_674 = arith.constant 0 : index
    %c0_675 = arith.constant 0 : index
    %486 = vector.load %arg15[%c2_673, %c0_674, %c0_675] : memref<4x16x240xbf16, #tpu.memory_space<vmem>>, vector<1x16x240xbf16>
    %487 = vector.shape_cast %486 : vector<1x16x240xbf16> to vector<16x240xbf16>
    %488 = vector.shape_cast %485 : vector<16x240xbf16> to vector<1x16x240xbf16>
    tpu.vector_store %arg15[%c2_673, %c0_674, %c0_675], %488 {strides = array<i32>} : memref<4x16x240xbf16, #tpu.memory_space<vmem>>, vector<1x16x240xbf16>,
    %cst_676 = arith.constant 0.000000e+00 : f32
    %489 = vector.broadcast %cst_676 : f32 to vector<16x240xf32>
    %c0_677 = arith.constant 0 : index
    %c2_678 = arith.constant 2 : index
    %c2_679 = arith.constant 2 : index
    %c0_680 = arith.constant 0 : index
    %c0_681 = arith.constant 0 : index
    %490 = vector.load %arg1[%c0_677, %c2_678, %c2_679, %c0_680, %c0_681] : memref<1x4x4x3x272xbf16, #tpu.memory_space<vmem>>, vector<1x1x1x3x240xbf16>
    %491 = vector.shape_cast %490 : vector<1x1x1x3x240xbf16> to vector<3x240xbf16>
    %c0_682 = arith.constant 0 : index
    %c0_683 = arith.constant 0 : index
    %c0_684 = arith.constant 0 : index
    %492 = vector.load %arg2[%c0_682, %c0_683, %c0_684] : memref<25x16x3xbf16, #tpu.memory_space<vmem>>, vector<1x16x3xbf16>
    %493 = vector.shape_cast %492 : vector<1x16x3xbf16> to vector<16x3xbf16>
    %cst_685 = arith.constant dense<0.000000e+00> : vector<16x240xf32>
    %494 = tpu.matmul %493, %491, %cst_685 {dimension_numbers = #tpu.dot_dimension_numbers<[1], [0], [0], [1], [0, 0, 1, 1], [], []>} : vector<16x3xbf16>, vector<3x240xbf16>, vector<16x240xf32> -> vector<16x240xf32>
    %495 = arith.addf %489, %494 : vector<16x240xf32>
    %c0_686 = arith.constant 0 : index
    %c2_687 = arith.constant 2 : index
    %c3_688 = arith.constant 3 : index
    %c0_689 = arith.constant 0 : index
    %c0_690 = arith.constant 0 : index
    %496 = vector.load %arg1[%c0_686, %c2_687, %c3_688, %c0_689, %c0_690] : memref<1x4x4x3x272xbf16, #tpu.memory_space<vmem>>, vector<1x1x1x3x240xbf16>
    %497 = vector.shape_cast %496 : vector<1x1x1x3x240xbf16> to vector<3x240xbf16>
    %c1_691 = arith.constant 1 : index
    %c0_692 = arith.constant 0 : index
    %c0_693 = arith.constant 0 : index
    %498 = vector.load %arg2[%c1_691, %c0_692, %c0_693] : memref<25x16x3xbf16, #tpu.memory_space<vmem>>, vector<1x16x3xbf16>
    %499 = vector.shape_cast %498 : vector<1x16x3xbf16> to vector<16x3xbf16>
    %cst_694 = arith.constant dense<0.000000e+00> : vector<16x240xf32>
    %500 = tpu.matmul %499, %497, %cst_694 {dimension_numbers = #tpu.dot_dimension_numbers<[1], [0], [0], [1], [0, 0, 1, 1], [], []>} : vector<16x3xbf16>, vector<3x240xbf16>, vector<16x240xf32> -> vector<16x240xf32>
    %501 = arith.addf %495, %500 : vector<16x240xf32>
    %c0_695 = arith.constant 0 : index
    %c2_696 = arith.constant 2 : index
    %c0_697 = arith.constant 0 : index
    %c0_698 = arith.constant 0 : index
    %c1_699 = arith.constant 1 : index
    %502 = vector.load %arg1[%c0_695, %c2_696, %c0_697, %c0_698, %c1_699] : memref<1x4x4x3x272xbf16, #tpu.memory_space<vmem>>, vector<1x1x1x3x240xbf16>
    %503 = vector.shape_cast %502 : vector<1x1x1x3x240xbf16> to vector<3x240xbf16>
    %c2_700 = arith.constant 2 : index
    %c0_701 = arith.constant 0 : index
    %c0_702 = arith.constant 0 : index
    %504 = vector.load %arg2[%c2_700, %c0_701, %c0_702] : memref<25x16x3xbf16, #tpu.memory_space<vmem>>, vector<1x16x3xbf16>
    %505 = vector.shape_cast %504 : vector<1x16x3xbf16> to vector<16x3xbf16>
    %cst_703 = arith.constant dense<0.000000e+00> : vector<16x240xf32>
    %506 = tpu.matmul %505, %503, %cst_703 {dimension_numbers = #tpu.dot_dimension_numbers<[1], [0], [0], [1], [0, 0, 1, 1], [], []>} : vector<16x3xbf16>, vector<3x240xbf16>, vector<16x240xf32> -> vector<16x240xf32>
    %507 = arith.addf %501, %506 : vector<16x240xf32>
    %c0_704 = arith.constant 0 : index
    %c2_705 = arith.constant 2 : index
    %c1_706 = arith.constant 1 : index
    %c0_707 = arith.constant 0 : index
    %c1_708 = arith.constant 1 : index
    %508 = vector.load %arg1[%c0_704, %c2_705, %c1_706, %c0_707, %c1_708] : memref<1x4x4x3x272xbf16, #tpu.memory_space<vmem>>, vector<1x1x1x3x240xbf16>
    %509 = vector.shape_cast %508 : vector<1x1x1x3x240xbf16> to vector<3x240xbf16>
    %c3_709 = arith.constant 3 : index
    %c0_710 = arith.constant 0 : index
    %c0_711 = arith.constant 0 : index
    %510 = vector.load %arg2[%c3_709, %c0_710, %c0_711] : memref<25x16x3xbf16, #tpu.memory_space<vmem>>, vector<1x16x3xbf16>
    %511 = vector.shape_cast %510 : vector<1x16x3xbf16> to vector<16x3xbf16>
    %cst_712 = arith.constant dense<0.000000e+00> : vector<16x240xf32>
    %512 = tpu.matmul %511, %509, %cst_712 {dimension_numbers = #tpu.dot_dimension_numbers<[1], [0], [0], [1], [0, 0, 1, 1], [], []>} : vector<16x3xbf16>, vector<3x240xbf16>, vector<16x240xf32> -> vector<16x240xf32>
    %513 = arith.addf %507, %512 : vector<16x240xf32>
    %c0_713 = arith.constant 0 : index
    %c2_714 = arith.constant 2 : index
    %c2_715 = arith.constant 2 : index
    %c0_716 = arith.constant 0 : index
    %c1_717 = arith.constant 1 : index
    %514 = vector.load %arg1[%c0_713, %c2_714, %c2_715, %c0_716, %c1_717] : memref<1x4x4x3x272xbf16, #tpu.memory_space<vmem>>, vector<1x1x1x3x240xbf16>
    %515 = vector.shape_cast %514 : vector<1x1x1x3x240xbf16> to vector<3x240xbf16>
    %c4_718 = arith.constant 4 : index
    %c0_719 = arith.constant 0 : index
    %c0_720 = arith.constant 0 : index
    %516 = vector.load %arg2[%c4_718, %c0_719, %c0_720] : memref<25x16x3xbf16, #tpu.memory_space<vmem>>, vector<1x16x3xbf16>
    %517 = vector.shape_cast %516 : vector<1x16x3xbf16> to vector<16x3xbf16>
    %cst_721 = arith.constant dense<0.000000e+00> : vector<16x240xf32>
    %518 = tpu.matmul %517, %515, %cst_721 {dimension_numbers = #tpu.dot_dimension_numbers<[1], [0], [0], [1], [0, 0, 1, 1], [], []>} : vector<16x3xbf16>, vector<3x240xbf16>, vector<16x240xf32> -> vector<16x240xf32>
    %519 = arith.addf %513, %518 : vector<16x240xf32>
    %c0_722 = arith.constant 0 : index
    %c3_723 = arith.constant 3 : index
    %c2_724 = arith.constant 2 : index
    %c0_725 = arith.constant 0 : index
    %c0_726 = arith.constant 0 : index
    %520 = vector.load %arg1[%c0_722, %c3_723, %c2_724, %c0_725, %c0_726] : memref<1x4x4x3x272xbf16, #tpu.memory_space<vmem>>, vector<1x1x1x3x240xbf16>
    %521 = vector.shape_cast %520 : vector<1x1x1x3x240xbf16> to vector<3x240xbf16>
    %c5_727 = arith.constant 5 : index
    %c0_728 = arith.constant 0 : index
    %c0_729 = arith.constant 0 : index
    %522 = vector.load %arg2[%c5_727, %c0_728, %c0_729] : memref<25x16x3xbf16, #tpu.memory_space<vmem>>, vector<1x16x3xbf16>
    %523 = vector.shape_cast %522 : vector<1x16x3xbf16> to vector<16x3xbf16>
    %cst_730 = arith.constant dense<0.000000e+00> : vector<16x240xf32>
    %524 = tpu.matmul %523, %521, %cst_730 {dimension_numbers = #tpu.dot_dimension_numbers<[1], [0], [0], [1], [0, 0, 1, 1], [], []>} : vector<16x3xbf16>, vector<3x240xbf16>, vector<16x240xf32> -> vector<16x240xf32>
    %525 = arith.addf %519, %524 : vector<16x240xf32>
    %c0_731 = arith.constant 0 : index
    %c3_732 = arith.constant 3 : index
    %c3_733 = arith.constant 3 : index
    %c0_734 = arith.constant 0 : index
    %c0_735 = arith.constant 0 : index
    %526 = vector.load %arg1[%c0_731, %c3_732, %c3_733, %c0_734, %c0_735] : memref<1x4x4x3x272xbf16, #tpu.memory_space<vmem>>, vector<1x1x1x3x240xbf16>
    %527 = vector.shape_cast %526 : vector<1x1x1x3x240xbf16> to vector<3x240xbf16>
    %c6_736 = arith.constant 6 : index
    %c0_737 = arith.constant 0 : index
    %c0_738 = arith.constant 0 : index
    %528 = vector.load %arg2[%c6_736, %c0_737, %c0_738] : memref<25x16x3xbf16, #tpu.memory_space<vmem>>, vector<1x16x3xbf16>
    %529 = vector.shape_cast %528 : vector<1x16x3xbf16> to vector<16x3xbf16>
    %cst_739 = arith.constant dense<0.000000e+00> : vector<16x240xf32>
    %530 = tpu.matmul %529, %527, %cst_739 {dimension_numbers = #tpu.dot_dimension_numbers<[1], [0], [0], [1], [0, 0, 1, 1], [], []>} : vector<16x3xbf16>, vector<3x240xbf16>, vector<16x240xf32> -> vector<16x240xf32>
    %531 = arith.addf %525, %530 : vector<16x240xf32>
    %c0_740 = arith.constant 0 : index
    %c3_741 = arith.constant 3 : index
    %c0_742 = arith.constant 0 : index
    %c0_743 = arith.constant 0 : index
    %c1_744 = arith.constant 1 : index
    %532 = vector.load %arg1[%c0_740, %c3_741, %c0_742, %c0_743, %c1_744] : memref<1x4x4x3x272xbf16, #tpu.memory_space<vmem>>, vector<1x1x1x3x240xbf16>
    %533 = vector.shape_cast %532 : vector<1x1x1x3x240xbf16> to vector<3x240xbf16>
    %c7_745 = arith.constant 7 : index
    %c0_746 = arith.constant 0 : index
    %c0_747 = arith.constant 0 : index
    %534 = vector.load %arg2[%c7_745, %c0_746, %c0_747] : memref<25x16x3xbf16, #tpu.memory_space<vmem>>, vector<1x16x3xbf16>
    %535 = vector.shape_cast %534 : vector<1x16x3xbf16> to vector<16x3xbf16>
    %cst_748 = arith.constant dense<0.000000e+00> : vector<16x240xf32>
    %536 = tpu.matmul %535, %533, %cst_748 {dimension_numbers = #tpu.dot_dimension_numbers<[1], [0], [0], [1], [0, 0, 1, 1], [], []>} : vector<16x3xbf16>, vector<3x240xbf16>, vector<16x240xf32> -> vector<16x240xf32>
    %537 = arith.addf %531, %536 : vector<16x240xf32>
    %c0_749 = arith.constant 0 : index
    %c3_750 = arith.constant 3 : index
    %c1_751 = arith.constant 1 : index
    %c0_752 = arith.constant 0 : index
    %c1_753 = arith.constant 1 : index
    %538 = vector.load %arg1[%c0_749, %c3_750, %c1_751, %c0_752, %c1_753] : memref<1x4x4x3x272xbf16, #tpu.memory_space<vmem>>, vector<1x1x1x3x240xbf16>
    %539 = vector.shape_cast %538 : vector<1x1x1x3x240xbf16> to vector<3x240xbf16>
    %c8_754 = arith.constant 8 : index
    %c0_755 = arith.constant 0 : index
    %c0_756 = arith.constant 0 : index
    %540 = vector.load %arg2[%c8_754, %c0_755, %c0_756] : memref<25x16x3xbf16, #tpu.memory_space<vmem>>, vector<1x16x3xbf16>
    %541 = vector.shape_cast %540 : vector<1x16x3xbf16> to vector<16x3xbf16>
    %cst_757 = arith.constant dense<0.000000e+00> : vector<16x240xf32>
    %542 = tpu.matmul %541, %539, %cst_757 {dimension_numbers = #tpu.dot_dimension_numbers<[1], [0], [0], [1], [0, 0, 1, 1], [], []>} : vector<16x3xbf16>, vector<3x240xbf16>, vector<16x240xf32> -> vector<16x240xf32>
    %543 = arith.addf %537, %542 : vector<16x240xf32>
    %c0_758 = arith.constant 0 : index
    %c3_759 = arith.constant 3 : index
    %c2_760 = arith.constant 2 : index
    %c0_761 = arith.constant 0 : index
    %c1_762 = arith.constant 1 : index
    %544 = vector.load %arg1[%c0_758, %c3_759, %c2_760, %c0_761, %c1_762] : memref<1x4x4x3x272xbf16, #tpu.memory_space<vmem>>, vector<1x1x1x3x240xbf16>
    %545 = vector.shape_cast %544 : vector<1x1x1x3x240xbf16> to vector<3x240xbf16>
    %c9_763 = arith.constant 9 : index
    %c0_764 = arith.constant 0 : index
    %c0_765 = arith.constant 0 : index
    %546 = vector.load %arg2[%c9_763, %c0_764, %c0_765] : memref<25x16x3xbf16, #tpu.memory_space<vmem>>, vector<1x16x3xbf16>
    %547 = vector.shape_cast %546 : vector<1x16x3xbf16> to vector<16x3xbf16>
    %cst_766 = arith.constant dense<0.000000e+00> : vector<16x240xf32>
    %548 = tpu.matmul %547, %545, %cst_766 {dimension_numbers = #tpu.dot_dimension_numbers<[1], [0], [0], [1], [0, 0, 1, 1], [], []>} : vector<16x3xbf16>, vector<3x240xbf16>, vector<16x240xf32> -> vector<16x240xf32>
    %549 = arith.addf %543, %548 : vector<16x240xf32>
    %c0_767 = arith.constant 0 : index
    %c0_768 = arith.constant 0 : index
    %c2_769 = arith.constant 2 : index
    %c0_770 = arith.constant 0 : index
    %c16_771 = arith.constant 16 : index
    %550 = vector.load %arg1[%c0_767, %c0_768, %c2_769, %c0_770, %c16_771] : memref<1x4x4x3x272xbf16, #tpu.memory_space<vmem>>, vector<1x1x1x3x240xbf16>
    %551 = vector.shape_cast %550 : vector<1x1x1x3x240xbf16> to vector<3x240xbf16>
    %c10_772 = arith.constant 10 : index
    %c0_773 = arith.constant 0 : index
    %c0_774 = arith.constant 0 : index
    %552 = vector.load %arg2[%c10_772, %c0_773, %c0_774] : memref<25x16x3xbf16, #tpu.memory_space<vmem>>, vector<1x16x3xbf16>
    %553 = vector.shape_cast %552 : vector<1x16x3xbf16> to vector<16x3xbf16>
    %cst_775 = arith.constant dense<0.000000e+00> : vector<16x240xf32>
    %554 = tpu.matmul %553, %551, %cst_775 {dimension_numbers = #tpu.dot_dimension_numbers<[1], [0], [0], [1], [0, 0, 1, 1], [], []>} : vector<16x3xbf16>, vector<3x240xbf16>, vector<16x240xf32> -> vector<16x240xf32>
    %555 = arith.addf %549, %554 : vector<16x240xf32>
    %c0_776 = arith.constant 0 : index
    %c0_777 = arith.constant 0 : index
    %c3_778 = arith.constant 3 : index
    %c0_779 = arith.constant 0 : index
    %c16_780 = arith.constant 16 : index
    %556 = vector.load %arg1[%c0_776, %c0_777, %c3_778, %c0_779, %c16_780] : memref<1x4x4x3x272xbf16, #tpu.memory_space<vmem>>, vector<1x1x1x3x240xbf16>
    %557 = vector.shape_cast %556 : vector<1x1x1x3x240xbf16> to vector<3x240xbf16>
    %c11_781 = arith.constant 11 : index
    %c0_782 = arith.constant 0 : index
    %c0_783 = arith.constant 0 : index
    %558 = vector.load %arg2[%c11_781, %c0_782, %c0_783] : memref<25x16x3xbf16, #tpu.memory_space<vmem>>, vector<1x16x3xbf16>
    %559 = vector.shape_cast %558 : vector<1x16x3xbf16> to vector<16x3xbf16>
    %cst_784 = arith.constant dense<0.000000e+00> : vector<16x240xf32>
    %560 = tpu.matmul %559, %557, %cst_784 {dimension_numbers = #tpu.dot_dimension_numbers<[1], [0], [0], [1], [0, 0, 1, 1], [], []>} : vector<16x3xbf16>, vector<3x240xbf16>, vector<16x240xf32> -> vector<16x240xf32>
    %561 = arith.addf %555, %560 : vector<16x240xf32>
    %c0_785 = arith.constant 0 : index
    %c0_786 = arith.constant 0 : index
    %c0_787 = arith.constant 0 : index
    %c0_788 = arith.constant 0 : index
    %c17_789 = arith.constant 17 : index
    %562 = vector.load %arg1[%c0_785, %c0_786, %c0_787, %c0_788, %c17_789] : memref<1x4x4x3x272xbf16, #tpu.memory_space<vmem>>, vector<1x1x1x3x240xbf16>
    %563 = vector.shape_cast %562 : vector<1x1x1x3x240xbf16> to vector<3x240xbf16>
    %c12_790 = arith.constant 12 : index
    %c0_791 = arith.constant 0 : index
    %c0_792 = arith.constant 0 : index
    %564 = vector.load %arg2[%c12_790, %c0_791, %c0_792] : memref<25x16x3xbf16, #tpu.memory_space<vmem>>, vector<1x16x3xbf16>
    %565 = vector.shape_cast %564 : vector<1x16x3xbf16> to vector<16x3xbf16>
    %cst_793 = arith.constant dense<0.000000e+00> : vector<16x240xf32>
    %566 = tpu.matmul %565, %563, %cst_793 {dimension_numbers = #tpu.dot_dimension_numbers<[1], [0], [0], [1], [0, 0, 1, 1], [], []>} : vector<16x3xbf16>, vector<3x240xbf16>, vector<16x240xf32> -> vector<16x240xf32>
    %567 = arith.addf %561, %566 : vector<16x240xf32>
    %c0_794 = arith.constant 0 : index
    %c0_795 = arith.constant 0 : index
    %c1_796 = arith.constant 1 : index
    %c0_797 = arith.constant 0 : index
    %c17_798 = arith.constant 17 : index
    %568 = vector.load %arg1[%c0_794, %c0_795, %c1_796, %c0_797, %c17_798] : memref<1x4x4x3x272xbf16, #tpu.memory_space<vmem>>, vector<1x1x1x3x240xbf16>
    %569 = vector.shape_cast %568 : vector<1x1x1x3x240xbf16> to vector<3x240xbf16>
    %c13_799 = arith.constant 13 : index
    %c0_800 = arith.constant 0 : index
    %c0_801 = arith.constant 0 : index
    %570 = vector.load %arg2[%c13_799, %c0_800, %c0_801] : memref<25x16x3xbf16, #tpu.memory_space<vmem>>, vector<1x16x3xbf16>
    %571 = vector.shape_cast %570 : vector<1x16x3xbf16> to vector<16x3xbf16>
    %cst_802 = arith.constant dense<0.000000e+00> : vector<16x240xf32>
    %572 = tpu.matmul %571, %569, %cst_802 {dimension_numbers = #tpu.dot_dimension_numbers<[1], [0], [0], [1], [0, 0, 1, 1], [], []>} : vector<16x3xbf16>, vector<3x240xbf16>, vector<16x240xf32> -> vector<16x240xf32>
    %573 = arith.addf %567, %572 : vector<16x240xf32>
    %c0_803 = arith.constant 0 : index
    %c0_804 = arith.constant 0 : index
    %c2_805 = arith.constant 2 : index
    %c0_806 = arith.constant 0 : index
    %c17_807 = arith.constant 17 : index
    %574 = vector.load %arg1[%c0_803, %c0_804, %c2_805, %c0_806, %c17_807] : memref<1x4x4x3x272xbf16, #tpu.memory_space<vmem>>, vector<1x1x1x3x240xbf16>
    %575 = vector.shape_cast %574 : vector<1x1x1x3x240xbf16> to vector<3x240xbf16>
    %c14_808 = arith.constant 14 : index
    %c0_809 = arith.constant 0 : index
    %c0_810 = arith.constant 0 : index
    %576 = vector.load %arg2[%c14_808, %c0_809, %c0_810] : memref<25x16x3xbf16, #tpu.memory_space<vmem>>, vector<1x16x3xbf16>
    %577 = vector.shape_cast %576 : vector<1x16x3xbf16> to vector<16x3xbf16>
    %cst_811 = arith.constant dense<0.000000e+00> : vector<16x240xf32>
    %578 = tpu.matmul %577, %575, %cst_811 {dimension_numbers = #tpu.dot_dimension_numbers<[1], [0], [0], [1], [0, 0, 1, 1], [], []>} : vector<16x3xbf16>, vector<3x240xbf16>, vector<16x240xf32> -> vector<16x240xf32>
    %579 = arith.addf %573, %578 : vector<16x240xf32>
    %c0_812 = arith.constant 0 : index
    %c1_813 = arith.constant 1 : index
    %c2_814 = arith.constant 2 : index
    %c0_815 = arith.constant 0 : index
    %c16_816 = arith.constant 16 : index
    %580 = vector.load %arg1[%c0_812, %c1_813, %c2_814, %c0_815, %c16_816] : memref<1x4x4x3x272xbf16, #tpu.memory_space<vmem>>, vector<1x1x1x3x240xbf16>
    %581 = vector.shape_cast %580 : vector<1x1x1x3x240xbf16> to vector<3x240xbf16>
    %c15_817 = arith.constant 15 : index
    %c0_818 = arith.constant 0 : index
    %c0_819 = arith.constant 0 : index
    %582 = vector.load %arg2[%c15_817, %c0_818, %c0_819] : memref<25x16x3xbf16, #tpu.memory_space<vmem>>, vector<1x16x3xbf16>
    %583 = vector.shape_cast %582 : vector<1x16x3xbf16> to vector<16x3xbf16>
    %cst_820 = arith.constant dense<0.000000e+00> : vector<16x240xf32>
    %584 = tpu.matmul %583, %581, %cst_820 {dimension_numbers = #tpu.dot_dimension_numbers<[1], [0], [0], [1], [0, 0, 1, 1], [], []>} : vector<16x3xbf16>, vector<3x240xbf16>, vector<16x240xf32> -> vector<16x240xf32>
    %585 = arith.addf %579, %584 : vector<16x240xf32>
    %c0_821 = arith.constant 0 : index
    %c1_822 = arith.constant 1 : index
    %c3_823 = arith.constant 3 : index
    %c0_824 = arith.constant 0 : index
    %c16_825 = arith.constant 16 : index
    %586 = vector.load %arg1[%c0_821, %c1_822, %c3_823, %c0_824, %c16_825] : memref<1x4x4x3x272xbf16, #tpu.memory_space<vmem>>, vector<1x1x1x3x240xbf16>
    %587 = vector.shape_cast %586 : vector<1x1x1x3x240xbf16> to vector<3x240xbf16>
    %c16_826 = arith.constant 16 : index
    %c0_827 = arith.constant 0 : index
    %c0_828 = arith.constant 0 : index
    %588 = vector.load %arg2[%c16_826, %c0_827, %c0_828] : memref<25x16x3xbf16, #tpu.memory_space<vmem>>, vector<1x16x3xbf16>
    %589 = vector.shape_cast %588 : vector<1x16x3xbf16> to vector<16x3xbf16>
    %cst_829 = arith.constant dense<0.000000e+00> : vector<16x240xf32>
    %590 = tpu.matmul %589, %587, %cst_829 {dimension_numbers = #tpu.dot_dimension_numbers<[1], [0], [0], [1], [0, 0, 1, 1], [], []>} : vector<16x3xbf16>, vector<3x240xbf16>, vector<16x240xf32> -> vector<16x240xf32>
    %591 = arith.addf %585, %590 : vector<16x240xf32>
    %c0_830 = arith.constant 0 : index
    %c1_831 = arith.constant 1 : index
    %c0_832 = arith.constant 0 : index
    %c0_833 = arith.constant 0 : index
    %c17_834 = arith.constant 17 : index
    %592 = vector.load %arg1[%c0_830, %c1_831, %c0_832, %c0_833, %c17_834] : memref<1x4x4x3x272xbf16, #tpu.memory_space<vmem>>, vector<1x1x1x3x240xbf16>
    %593 = vector.shape_cast %592 : vector<1x1x1x3x240xbf16> to vector<3x240xbf16>
    %c17_835 = arith.constant 17 : index
    %c0_836 = arith.constant 0 : index
    %c0_837 = arith.constant 0 : index
    %594 = vector.load %arg2[%c17_835, %c0_836, %c0_837] : memref<25x16x3xbf16, #tpu.memory_space<vmem>>, vector<1x16x3xbf16>
    %595 = vector.shape_cast %594 : vector<1x16x3xbf16> to vector<16x3xbf16>
    %cst_838 = arith.constant dense<0.000000e+00> : vector<16x240xf32>
    %596 = tpu.matmul %595, %593, %cst_838 {dimension_numbers = #tpu.dot_dimension_numbers<[1], [0], [0], [1], [0, 0, 1, 1], [], []>} : vector<16x3xbf16>, vector<3x240xbf16>, vector<16x240xf32> -> vector<16x240xf32>
    %597 = arith.addf %591, %596 : vector<16x240xf32>
    %c0_839 = arith.constant 0 : index
    %c1_840 = arith.constant 1 : index
    %c1_841 = arith.constant 1 : index
    %c0_842 = arith.constant 0 : index
    %c17_843 = arith.constant 17 : index
    %598 = vector.load %arg1[%c0_839, %c1_840, %c1_841, %c0_842, %c17_843] : memref<1x4x4x3x272xbf16, #tpu.memory_space<vmem>>, vector<1x1x1x3x240xbf16>
    %599 = vector.shape_cast %598 : vector<1x1x1x3x240xbf16> to vector<3x240xbf16>
    %c18_844 = arith.constant 18 : index
    %c0_845 = arith.constant 0 : index
    %c0_846 = arith.constant 0 : index
    %600 = vector.load %arg2[%c18_844, %c0_845, %c0_846] : memref<25x16x3xbf16, #tpu.memory_space<vmem>>, vector<1x16x3xbf16>
    %601 = vector.shape_cast %600 : vector<1x16x3xbf16> to vector<16x3xbf16>
    %cst_847 = arith.constant dense<0.000000e+00> : vector<16x240xf32>
    %602 = tpu.matmul %601, %599, %cst_847 {dimension_numbers = #tpu.dot_dimension_numbers<[1], [0], [0], [1], [0, 0, 1, 1], [], []>} : vector<16x3xbf16>, vector<3x240xbf16>, vector<16x240xf32> -> vector<16x240xf32>
    %603 = arith.addf %597, %602 : vector<16x240xf32>
    %c0_848 = arith.constant 0 : index
    %c1_849 = arith.constant 1 : index
    %c2_850 = arith.constant 2 : index
    %c0_851 = arith.constant 0 : index
    %c17_852 = arith.constant 17 : index
    %604 = vector.load %arg1[%c0_848, %c1_849, %c2_850, %c0_851, %c17_852] : memref<1x4x4x3x272xbf16, #tpu.memory_space<vmem>>, vector<1x1x1x3x240xbf16>
    %605 = vector.shape_cast %604 : vector<1x1x1x3x240xbf16> to vector<3x240xbf16>
    %c19_853 = arith.constant 19 : index
    %c0_854 = arith.constant 0 : index
    %c0_855 = arith.constant 0 : index
    %606 = vector.load %arg2[%c19_853, %c0_854, %c0_855] : memref<25x16x3xbf16, #tpu.memory_space<vmem>>, vector<1x16x3xbf16>
    %607 = vector.shape_cast %606 : vector<1x16x3xbf16> to vector<16x3xbf16>
    %cst_856 = arith.constant dense<0.000000e+00> : vector<16x240xf32>
    %608 = tpu.matmul %607, %605, %cst_856 {dimension_numbers = #tpu.dot_dimension_numbers<[1], [0], [0], [1], [0, 0, 1, 1], [], []>} : vector<16x3xbf16>, vector<3x240xbf16>, vector<16x240xf32> -> vector<16x240xf32>
    %609 = arith.addf %603, %608 : vector<16x240xf32>
    %c0_857 = arith.constant 0 : index
    %c2_858 = arith.constant 2 : index
    %c2_859 = arith.constant 2 : index
    %c0_860 = arith.constant 0 : index
    %c16_861 = arith.constant 16 : index
    %610 = vector.load %arg1[%c0_857, %c2_858, %c2_859, %c0_860, %c16_861] : memref<1x4x4x3x272xbf16, #tpu.memory_space<vmem>>, vector<1x1x1x3x240xbf16>
    %611 = vector.shape_cast %610 : vector<1x1x1x3x240xbf16> to vector<3x240xbf16>
    %c20_862 = arith.constant 20 : index
    %c0_863 = arith.constant 0 : index
    %c0_864 = arith.constant 0 : index
    %612 = vector.load %arg2[%c20_862, %c0_863, %c0_864] : memref<25x16x3xbf16, #tpu.memory_space<vmem>>, vector<1x16x3xbf16>
    %613 = vector.shape_cast %612 : vector<1x16x3xbf16> to vector<16x3xbf16>
    %cst_865 = arith.constant dense<0.000000e+00> : vector<16x240xf32>
    %614 = tpu.matmul %613, %611, %cst_865 {dimension_numbers = #tpu.dot_dimension_numbers<[1], [0], [0], [1], [0, 0, 1, 1], [], []>} : vector<16x3xbf16>, vector<3x240xbf16>, vector<16x240xf32> -> vector<16x240xf32>
    %615 = arith.addf %609, %614 : vector<16x240xf32>
    %c0_866 = arith.constant 0 : index
    %c2_867 = arith.constant 2 : index
    %c3_868 = arith.constant 3 : index
    %c0_869 = arith.constant 0 : index
    %c16_870 = arith.constant 16 : index
    %616 = vector.load %arg1[%c0_866, %c2_867, %c3_868, %c0_869, %c16_870] : memref<1x4x4x3x272xbf16, #tpu.memory_space<vmem>>, vector<1x1x1x3x240xbf16>
    %617 = vector.shape_cast %616 : vector<1x1x1x3x240xbf16> to vector<3x240xbf16>
    %c21_871 = arith.constant 21 : index
    %c0_872 = arith.constant 0 : index
    %c0_873 = arith.constant 0 : index
    %618 = vector.load %arg2[%c21_871, %c0_872, %c0_873] : memref<25x16x3xbf16, #tpu.memory_space<vmem>>, vector<1x16x3xbf16>
    %619 = vector.shape_cast %618 : vector<1x16x3xbf16> to vector<16x3xbf16>
    %cst_874 = arith.constant dense<0.000000e+00> : vector<16x240xf32>
    %620 = tpu.matmul %619, %617, %cst_874 {dimension_numbers = #tpu.dot_dimension_numbers<[1], [0], [0], [1], [0, 0, 1, 1], [], []>} : vector<16x3xbf16>, vector<3x240xbf16>, vector<16x240xf32> -> vector<16x240xf32>
    %621 = arith.addf %615, %620 : vector<16x240xf32>
    %c0_875 = arith.constant 0 : index
    %c2_876 = arith.constant 2 : index
    %c0_877 = arith.constant 0 : index
    %c0_878 = arith.constant 0 : index
    %c17_879 = arith.constant 17 : index
    %622 = vector.load %arg1[%c0_875, %c2_876, %c0_877, %c0_878, %c17_879] : memref<1x4x4x3x272xbf16, #tpu.memory_space<vmem>>, vector<1x1x1x3x240xbf16>
    %623 = vector.shape_cast %622 : vector<1x1x1x3x240xbf16> to vector<3x240xbf16>
    %c22_880 = arith.constant 22 : index
    %c0_881 = arith.constant 0 : index
    %c0_882 = arith.constant 0 : index
    %624 = vector.load %arg2[%c22_880, %c0_881, %c0_882] : memref<25x16x3xbf16, #tpu.memory_space<vmem>>, vector<1x16x3xbf16>
    %625 = vector.shape_cast %624 : vector<1x16x3xbf16> to vector<16x3xbf16>
    %cst_883 = arith.constant dense<0.000000e+00> : vector<16x240xf32>
    %626 = tpu.matmul %625, %623, %cst_883 {dimension_numbers = #tpu.dot_dimension_numbers<[1], [0], [0], [1], [0, 0, 1, 1], [], []>} : vector<16x3xbf16>, vector<3x240xbf16>, vector<16x240xf32> -> vector<16x240xf32>
    %627 = arith.addf %621, %626 : vector<16x240xf32>
    %c0_884 = arith.constant 0 : index
    %c2_885 = arith.constant 2 : index
    %c1_886 = arith.constant 1 : index
    %c0_887 = arith.constant 0 : index
    %c17_888 = arith.constant 17 : index
    %628 = vector.load %arg1[%c0_884, %c2_885, %c1_886, %c0_887, %c17_888] : memref<1x4x4x3x272xbf16, #tpu.memory_space<vmem>>, vector<1x1x1x3x240xbf16>
    %629 = vector.shape_cast %628 : vector<1x1x1x3x240xbf16> to vector<3x240xbf16>
    %c23_889 = arith.constant 23 : index
    %c0_890 = arith.constant 0 : index
    %c0_891 = arith.constant 0 : index
    %630 = vector.load %arg2[%c23_889, %c0_890, %c0_891] : memref<25x16x3xbf16, #tpu.memory_space<vmem>>, vector<1x16x3xbf16>
    %631 = vector.shape_cast %630 : vector<1x16x3xbf16> to vector<16x3xbf16>
    %cst_892 = arith.constant dense<0.000000e+00> : vector<16x240xf32>
    %632 = tpu.matmul %631, %629, %cst_892 {dimension_numbers = #tpu.dot_dimension_numbers<[1], [0], [0], [1], [0, 0, 1, 1], [], []>} : vector<16x3xbf16>, vector<3x240xbf16>, vector<16x240xf32> -> vector<16x240xf32>
    %633 = arith.addf %627, %632 : vector<16x240xf32>
    %c0_893 = arith.constant 0 : index
    %c2_894 = arith.constant 2 : index
    %c2_895 = arith.constant 2 : index
    %c0_896 = arith.constant 0 : index
    %c17_897 = arith.constant 17 : index
    %634 = vector.load %arg1[%c0_893, %c2_894, %c2_895, %c0_896, %c17_897] : memref<1x4x4x3x272xbf16, #tpu.memory_space<vmem>>, vector<1x1x1x3x240xbf16>
    %635 = vector.shape_cast %634 : vector<1x1x1x3x240xbf16> to vector<3x240xbf16>
    %c24_898 = arith.constant 24 : index
    %c0_899 = arith.constant 0 : index
    %c0_900 = arith.constant 0 : index
    %636 = vector.load %arg2[%c24_898, %c0_899, %c0_900] : memref<25x16x3xbf16, #tpu.memory_space<vmem>>, vector<1x16x3xbf16>
    %637 = vector.shape_cast %636 : vector<1x16x3xbf16> to vector<16x3xbf16>
    %cst_901 = arith.constant dense<0.000000e+00> : vector<16x240xf32>
    %638 = tpu.matmul %637, %635, %cst_901 {dimension_numbers = #tpu.dot_dimension_numbers<[1], [0], [0], [1], [0, 0, 1, 1], [], []>} : vector<16x3xbf16>, vector<3x240xbf16>, vector<16x240xf32> -> vector<16x240xf32>
    %639 = arith.addf %633, %638 : vector<16x240xf32>
    %c0_902 = arith.constant 0 : index
    %c0_903 = arith.constant 0 : index
    %640 = vector.load %arg3[%c0_902, %c0_903] : memref<16x1xf32, #tpu.memory_space<vmem>>, vector<16x1xf32>
    %641 = vector.broadcast %640 : vector<16x1xf32> to vector<16x240xf32>
    %642 = arith.mulf %639, %641 : vector<16x240xf32>
    %c0_904 = arith.constant 0 : index
    %c0_905 = arith.constant 0 : index
    %643 = vector.load %arg4[%c0_904, %c0_905] : memref<16x1xf32, #tpu.memory_space<vmem>>, vector<16x1xf32>
    %644 = vector.broadcast %643 : vector<16x1xf32> to vector<16x240xf32>
    %645 = arith.addf %642, %644 : vector<16x240xf32>
    %cst_906 = arith.constant 0.000000e+00 : f32
    %646 = vector.broadcast %cst_906 : f32 to vector<16x240xf32>
    %647 = arith.maximumf %645, %646 : vector<16x240xf32>
    %648 = arith.truncf %647 : vector<16x240xf32> to vector<16x240xbf16>
    %c3_907 = arith.constant 3 : index
    %c0_908 = arith.constant 0 : index
    %c0_909 = arith.constant 0 : index
    %649 = vector.load %arg15[%c3_907, %c0_908, %c0_909] : memref<4x16x240xbf16, #tpu.memory_space<vmem>>, vector<1x16x240xbf16>
    %650 = vector.shape_cast %649 : vector<1x16x240xbf16> to vector<16x240xbf16>
    %651 = vector.shape_cast %648 : vector<16x240xbf16> to vector<1x16x240xbf16>
    tpu.vector_store %arg15[%c3_907, %c0_908, %c0_909], %651 {strides = array<i32>} : memref<4x16x240xbf16, #tpu.memory_space<vmem>>, vector<1x16x240xbf16>,
    %cst_910 = arith.constant 0.000000e+00 : f32
    %652 = vector.broadcast %cst_910 : f32 to vector<32x205xf32>
    %c0_911 = arith.constant 0 : index
    %c0_912 = arith.constant 0 : index
    %c0_913 = arith.constant 0 : index
    %653 = vector.load %arg15[%c0_911, %c0_912, %c0_913] : memref<4x16x240xbf16, #tpu.memory_space<vmem>>, vector<1x16x205xbf16>
    %654 = vector.shape_cast %653 : vector<1x16x205xbf16> to vector<16x205xbf16>
    %c0_914 = arith.constant 0 : index
    %c0_915 = arith.constant 0 : index
    %c0_916 = arith.constant 0 : index
    %655 = vector.load %arg5[%c0_914, %c0_915, %c0_916] : memref<25x32x16xbf16, #tpu.memory_space<vmem>>, vector<1x32x16xbf16>
    %656 = vector.shape_cast %655 : vector<1x32x16xbf16> to vector<32x16xbf16>
    %cst_917 = arith.constant dense<0.000000e+00> : vector<32x205xf32>
    %657 = tpu.matmul %656, %654, %cst_917 {dimension_numbers = #tpu.dot_dimension_numbers<[1], [0], [0], [1], [0, 0, 1, 1], [], []>} : vector<32x16xbf16>, vector<16x205xbf16>, vector<32x205xf32> -> vector<32x205xf32>
    %658 = arith.addf %652, %657 : vector<32x205xf32>
    %c1_918 = arith.constant 1 : index
    %c0_919 = arith.constant 0 : index
    %c0_920 = arith.constant 0 : index
    %659 = vector.load %arg15[%c1_918, %c0_919, %c0_920] : memref<4x16x240xbf16, #tpu.memory_space<vmem>>, vector<1x16x205xbf16>
    %660 = vector.shape_cast %659 : vector<1x16x205xbf16> to vector<16x205xbf16>
    %c1_921 = arith.constant 1 : index
    %c0_922 = arith.constant 0 : index
    %c0_923 = arith.constant 0 : index
    %661 = vector.load %arg5[%c1_921, %c0_922, %c0_923] : memref<25x32x16xbf16, #tpu.memory_space<vmem>>, vector<1x32x16xbf16>
    %662 = vector.shape_cast %661 : vector<1x32x16xbf16> to vector<32x16xbf16>
    %cst_924 = arith.constant dense<0.000000e+00> : vector<32x205xf32>
    %663 = tpu.matmul %662, %660, %cst_924 {dimension_numbers = #tpu.dot_dimension_numbers<[1], [0], [0], [1], [0, 0, 1, 1], [], []>} : vector<32x16xbf16>, vector<16x205xbf16>, vector<32x205xf32> -> vector<32x205xf32>
    %664 = arith.addf %658, %663 : vector<32x205xf32>
    %c0_925 = arith.constant 0 : index
    %c0_926 = arith.constant 0 : index
    %c1_927 = arith.constant 1 : index
    %665 = vector.load %arg15[%c0_925, %c0_926, %c1_927] : memref<4x16x240xbf16, #tpu.memory_space<vmem>>, vector<1x16x205xbf16>
    %666 = vector.shape_cast %665 : vector<1x16x205xbf16> to vector<16x205xbf16>
    %c2_928 = arith.constant 2 : index
    %c0_929 = arith.constant 0 : index
    %c0_930 = arith.constant 0 : index
    %667 = vector.load %arg5[%c2_928, %c0_929, %c0_930] : memref<25x32x16xbf16, #tpu.memory_space<vmem>>, vector<1x32x16xbf16>
    %668 = vector.shape_cast %667 : vector<1x32x16xbf16> to vector<32x16xbf16>
    %cst_931 = arith.constant dense<0.000000e+00> : vector<32x205xf32>
    %669 = tpu.matmul %668, %666, %cst_931 {dimension_numbers = #tpu.dot_dimension_numbers<[1], [0], [0], [1], [0, 0, 1, 1], [], []>} : vector<32x16xbf16>, vector<16x205xbf16>, vector<32x205xf32> -> vector<32x205xf32>
    %670 = arith.addf %664, %669 : vector<32x205xf32>
    %c1_932 = arith.constant 1 : index
    %c0_933 = arith.constant 0 : index
    %c1_934 = arith.constant 1 : index
    %671 = vector.load %arg15[%c1_932, %c0_933, %c1_934] : memref<4x16x240xbf16, #tpu.memory_space<vmem>>, vector<1x16x205xbf16>
    %672 = vector.shape_cast %671 : vector<1x16x205xbf16> to vector<16x205xbf16>
    %c3_935 = arith.constant 3 : index
    %c0_936 = arith.constant 0 : index
    %c0_937 = arith.constant 0 : index
    %673 = vector.load %arg5[%c3_935, %c0_936, %c0_937] : memref<25x32x16xbf16, #tpu.memory_space<vmem>>, vector<1x32x16xbf16>
    %674 = vector.shape_cast %673 : vector<1x32x16xbf16> to vector<32x16xbf16>
    %cst_938 = arith.constant dense<0.000000e+00> : vector<32x205xf32>
    %675 = tpu.matmul %674, %672, %cst_938 {dimension_numbers = #tpu.dot_dimension_numbers<[1], [0], [0], [1], [0, 0, 1, 1], [], []>} : vector<32x16xbf16>, vector<16x205xbf16>, vector<32x205xf32> -> vector<32x205xf32>
    %676 = arith.addf %670, %675 : vector<32x205xf32>
    %c0_939 = arith.constant 0 : index
    %c0_940 = arith.constant 0 : index
    %c2_941 = arith.constant 2 : index
    %677 = vector.load %arg15[%c0_939, %c0_940, %c2_941] : memref<4x16x240xbf16, #tpu.memory_space<vmem>>, vector<1x16x205xbf16>
    %678 = vector.shape_cast %677 : vector<1x16x205xbf16> to vector<16x205xbf16>
    %c4_942 = arith.constant 4 : index
    %c0_943 = arith.constant 0 : index
    %c0_944 = arith.constant 0 : index
    %679 = vector.load %arg5[%c4_942, %c0_943, %c0_944] : memref<25x32x16xbf16, #tpu.memory_space<vmem>>, vector<1x32x16xbf16>
    %680 = vector.shape_cast %679 : vector<1x32x16xbf16> to vector<32x16xbf16>
    %cst_945 = arith.constant dense<0.000000e+00> : vector<32x205xf32>
    %681 = tpu.matmul %680, %678, %cst_945 {dimension_numbers = #tpu.dot_dimension_numbers<[1], [0], [0], [1], [0, 0, 1, 1], [], []>} : vector<32x16xbf16>, vector<16x205xbf16>, vector<32x205xf32> -> vector<32x205xf32>
    %682 = arith.addf %676, %681 : vector<32x205xf32>
    %c2_946 = arith.constant 2 : index
    %c0_947 = arith.constant 0 : index
    %c0_948 = arith.constant 0 : index
    %683 = vector.load %arg15[%c2_946, %c0_947, %c0_948] : memref<4x16x240xbf16, #tpu.memory_space<vmem>>, vector<1x16x205xbf16>
    %684 = vector.shape_cast %683 : vector<1x16x205xbf16> to vector<16x205xbf16>
    %c5_949 = arith.constant 5 : index
    %c0_950 = arith.constant 0 : index
    %c0_951 = arith.constant 0 : index
    %685 = vector.load %arg5[%c5_949, %c0_950, %c0_951] : memref<25x32x16xbf16, #tpu.memory_space<vmem>>, vector<1x32x16xbf16>
    %686 = vector.shape_cast %685 : vector<1x32x16xbf16> to vector<32x16xbf16>
    %cst_952 = arith.constant dense<0.000000e+00> : vector<32x205xf32>
    %687 = tpu.matmul %686, %684, %cst_952 {dimension_numbers = #tpu.dot_dimension_numbers<[1], [0], [0], [1], [0, 0, 1, 1], [], []>} : vector<32x16xbf16>, vector<16x205xbf16>, vector<32x205xf32> -> vector<32x205xf32>
    %688 = arith.addf %682, %687 : vector<32x205xf32>
    %c3_953 = arith.constant 3 : index
    %c0_954 = arith.constant 0 : index
    %c0_955 = arith.constant 0 : index
    %689 = vector.load %arg15[%c3_953, %c0_954, %c0_955] : memref<4x16x240xbf16, #tpu.memory_space<vmem>>, vector<1x16x205xbf16>
    %690 = vector.shape_cast %689 : vector<1x16x205xbf16> to vector<16x205xbf16>
    %c6_956 = arith.constant 6 : index
    %c0_957 = arith.constant 0 : index
    %c0_958 = arith.constant 0 : index
    %691 = vector.load %arg5[%c6_956, %c0_957, %c0_958] : memref<25x32x16xbf16, #tpu.memory_space<vmem>>, vector<1x32x16xbf16>
    %692 = vector.shape_cast %691 : vector<1x32x16xbf16> to vector<32x16xbf16>
    %cst_959 = arith.constant dense<0.000000e+00> : vector<32x205xf32>
    %693 = tpu.matmul %692, %690, %cst_959 {dimension_numbers = #tpu.dot_dimension_numbers<[1], [0], [0], [1], [0, 0, 1, 1], [], []>} : vector<32x16xbf16>, vector<16x205xbf16>, vector<32x205xf32> -> vector<32x205xf32>
    %694 = arith.addf %688, %693 : vector<32x205xf32>
    %c2_960 = arith.constant 2 : index
    %c0_961 = arith.constant 0 : index
    %c1_962 = arith.constant 1 : index
    %695 = vector.load %arg15[%c2_960, %c0_961, %c1_962] : memref<4x16x240xbf16, #tpu.memory_space<vmem>>, vector<1x16x205xbf16>
    %696 = vector.shape_cast %695 : vector<1x16x205xbf16> to vector<16x205xbf16>
    %c7_963 = arith.constant 7 : index
    %c0_964 = arith.constant 0 : index
    %c0_965 = arith.constant 0 : index
    %697 = vector.load %arg5[%c7_963, %c0_964, %c0_965] : memref<25x32x16xbf16, #tpu.memory_space<vmem>>, vector<1x32x16xbf16>
    %698 = vector.shape_cast %697 : vector<1x32x16xbf16> to vector<32x16xbf16>
    %cst_966 = arith.constant dense<0.000000e+00> : vector<32x205xf32>
    %699 = tpu.matmul %698, %696, %cst_966 {dimension_numbers = #tpu.dot_dimension_numbers<[1], [0], [0], [1], [0, 0, 1, 1], [], []>} : vector<32x16xbf16>, vector<16x205xbf16>, vector<32x205xf32> -> vector<32x205xf32>
    %700 = arith.addf %694, %699 : vector<32x205xf32>
    %c3_967 = arith.constant 3 : index
    %c0_968 = arith.constant 0 : index
    %c1_969 = arith.constant 1 : index
    %701 = vector.load %arg15[%c3_967, %c0_968, %c1_969] : memref<4x16x240xbf16, #tpu.memory_space<vmem>>, vector<1x16x205xbf16>
    %702 = vector.shape_cast %701 : vector<1x16x205xbf16> to vector<16x205xbf16>
    %c8_970 = arith.constant 8 : index
    %c0_971 = arith.constant 0 : index
    %c0_972 = arith.constant 0 : index
    %703 = vector.load %arg5[%c8_970, %c0_971, %c0_972] : memref<25x32x16xbf16, #tpu.memory_space<vmem>>, vector<1x32x16xbf16>
    %704 = vector.shape_cast %703 : vector<1x32x16xbf16> to vector<32x16xbf16>
    %cst_973 = arith.constant dense<0.000000e+00> : vector<32x205xf32>
    %705 = tpu.matmul %704, %702, %cst_973 {dimension_numbers = #tpu.dot_dimension_numbers<[1], [0], [0], [1], [0, 0, 1, 1], [], []>} : vector<32x16xbf16>, vector<16x205xbf16>, vector<32x205xf32> -> vector<32x205xf32>
    %706 = arith.addf %700, %705 : vector<32x205xf32>
    %c2_974 = arith.constant 2 : index
    %c0_975 = arith.constant 0 : index
    %c2_976 = arith.constant 2 : index
    %707 = vector.load %arg15[%c2_974, %c0_975, %c2_976] : memref<4x16x240xbf16, #tpu.memory_space<vmem>>, vector<1x16x205xbf16>
    %708 = vector.shape_cast %707 : vector<1x16x205xbf16> to vector<16x205xbf16>
    %c9_977 = arith.constant 9 : index
    %c0_978 = arith.constant 0 : index
    %c0_979 = arith.constant 0 : index
    %709 = vector.load %arg5[%c9_977, %c0_978, %c0_979] : memref<25x32x16xbf16, #tpu.memory_space<vmem>>, vector<1x32x16xbf16>
    %710 = vector.shape_cast %709 : vector<1x32x16xbf16> to vector<32x16xbf16>
    %cst_980 = arith.constant dense<0.000000e+00> : vector<32x205xf32>
    %711 = tpu.matmul %710, %708, %cst_980 {dimension_numbers = #tpu.dot_dimension_numbers<[1], [0], [0], [1], [0, 0, 1, 1], [], []>} : vector<32x16xbf16>, vector<16x205xbf16>, vector<32x205xf32> -> vector<32x205xf32>
    %712 = arith.addf %706, %711 : vector<32x205xf32>
    %c0_981 = arith.constant 0 : index
    %c0_982 = arith.constant 0 : index
    %c16_983 = arith.constant 16 : index
    %713 = vector.load %arg15[%c0_981, %c0_982, %c16_983] : memref<4x16x240xbf16, #tpu.memory_space<vmem>>, vector<1x16x205xbf16>
    %714 = vector.shape_cast %713 : vector<1x16x205xbf16> to vector<16x205xbf16>
    %c10_984 = arith.constant 10 : index
    %c0_985 = arith.constant 0 : index
    %c0_986 = arith.constant 0 : index
    %715 = vector.load %arg5[%c10_984, %c0_985, %c0_986] : memref<25x32x16xbf16, #tpu.memory_space<vmem>>, vector<1x32x16xbf16>
    %716 = vector.shape_cast %715 : vector<1x32x16xbf16> to vector<32x16xbf16>
    %cst_987 = arith.constant dense<0.000000e+00> : vector<32x205xf32>
    %717 = tpu.matmul %716, %714, %cst_987 {dimension_numbers = #tpu.dot_dimension_numbers<[1], [0], [0], [1], [0, 0, 1, 1], [], []>} : vector<32x16xbf16>, vector<16x205xbf16>, vector<32x205xf32> -> vector<32x205xf32>
    %718 = arith.addf %712, %717 : vector<32x205xf32>
    %c1_988 = arith.constant 1 : index
    %c0_989 = arith.constant 0 : index
    %c16_990 = arith.constant 16 : index
    %719 = vector.load %arg15[%c1_988, %c0_989, %c16_990] : memref<4x16x240xbf16, #tpu.memory_space<vmem>>, vector<1x16x205xbf16>
    %720 = vector.shape_cast %719 : vector<1x16x205xbf16> to vector<16x205xbf16>
    %c11_991 = arith.constant 11 : index
    %c0_992 = arith.constant 0 : index
    %c0_993 = arith.constant 0 : index
    %721 = vector.load %arg5[%c11_991, %c0_992, %c0_993] : memref<25x32x16xbf16, #tpu.memory_space<vmem>>, vector<1x32x16xbf16>
    %722 = vector.shape_cast %721 : vector<1x32x16xbf16> to vector<32x16xbf16>
    %cst_994 = arith.constant dense<0.000000e+00> : vector<32x205xf32>
    %723 = tpu.matmul %722, %720, %cst_994 {dimension_numbers = #tpu.dot_dimension_numbers<[1], [0], [0], [1], [0, 0, 1, 1], [], []>} : vector<32x16xbf16>, vector<16x205xbf16>, vector<32x205xf32> -> vector<32x205xf32>
    %724 = arith.addf %718, %723 : vector<32x205xf32>
    %c0_995 = arith.constant 0 : index
    %c0_996 = arith.constant 0 : index
    %c17_997 = arith.constant 17 : index
    %725 = vector.load %arg15[%c0_995, %c0_996, %c17_997] : memref<4x16x240xbf16, #tpu.memory_space<vmem>>, vector<1x16x205xbf16>
    %726 = vector.shape_cast %725 : vector<1x16x205xbf16> to vector<16x205xbf16>
    %c12_998 = arith.constant 12 : index
    %c0_999 = arith.constant 0 : index
    %c0_1000 = arith.constant 0 : index
    %727 = vector.load %arg5[%c12_998, %c0_999, %c0_1000] : memref<25x32x16xbf16, #tpu.memory_space<vmem>>, vector<1x32x16xbf16>
    %728 = vector.shape_cast %727 : vector<1x32x16xbf16> to vector<32x16xbf16>
    %cst_1001 = arith.constant dense<0.000000e+00> : vector<32x205xf32>
    %729 = tpu.matmul %728, %726, %cst_1001 {dimension_numbers = #tpu.dot_dimension_numbers<[1], [0], [0], [1], [0, 0, 1, 1], [], []>} : vector<32x16xbf16>, vector<16x205xbf16>, vector<32x205xf32> -> vector<32x205xf32>
    %730 = arith.addf %724, %729 : vector<32x205xf32>
    %c1_1002 = arith.constant 1 : index
    %c0_1003 = arith.constant 0 : index
    %c17_1004 = arith.constant 17 : index
    %731 = vector.load %arg15[%c1_1002, %c0_1003, %c17_1004] : memref<4x16x240xbf16, #tpu.memory_space<vmem>>, vector<1x16x205xbf16>
    %732 = vector.shape_cast %731 : vector<1x16x205xbf16> to vector<16x205xbf16>
    %c13_1005 = arith.constant 13 : index
    %c0_1006 = arith.constant 0 : index
    %c0_1007 = arith.constant 0 : index
    %733 = vector.load %arg5[%c13_1005, %c0_1006, %c0_1007] : memref<25x32x16xbf16, #tpu.memory_space<vmem>>, vector<1x32x16xbf16>
    %734 = vector.shape_cast %733 : vector<1x32x16xbf16> to vector<32x16xbf16>
    %cst_1008 = arith.constant dense<0.000000e+00> : vector<32x205xf32>
    %735 = tpu.matmul %734, %732, %cst_1008 {dimension_numbers = #tpu.dot_dimension_numbers<[1], [0], [0], [1], [0, 0, 1, 1], [], []>} : vector<32x16xbf16>, vector<16x205xbf16>, vector<32x205xf32> -> vector<32x205xf32>
    %736 = arith.addf %730, %735 : vector<32x205xf32>
    %c0_1009 = arith.constant 0 : index
    %c0_1010 = arith.constant 0 : index
    %c18_1011 = arith.constant 18 : index
    %737 = vector.load %arg15[%c0_1009, %c0_1010, %c18_1011] : memref<4x16x240xbf16, #tpu.memory_space<vmem>>, vector<1x16x205xbf16>
    %738 = vector.shape_cast %737 : vector<1x16x205xbf16> to vector<16x205xbf16>
    %c14_1012 = arith.constant 14 : index
    %c0_1013 = arith.constant 0 : index
    %c0_1014 = arith.constant 0 : index
    %739 = vector.load %arg5[%c14_1012, %c0_1013, %c0_1014] : memref<25x32x16xbf16, #tpu.memory_space<vmem>>, vector<1x32x16xbf16>
    %740 = vector.shape_cast %739 : vector<1x32x16xbf16> to vector<32x16xbf16>
    %cst_1015 = arith.constant dense<0.000000e+00> : vector<32x205xf32>
    %741 = tpu.matmul %740, %738, %cst_1015 {dimension_numbers = #tpu.dot_dimension_numbers<[1], [0], [0], [1], [0, 0, 1, 1], [], []>} : vector<32x16xbf16>, vector<16x205xbf16>, vector<32x205xf32> -> vector<32x205xf32>
    %742 = arith.addf %736, %741 : vector<32x205xf32>
    %c2_1016 = arith.constant 2 : index
    %c0_1017 = arith.constant 0 : index
    %c16_1018 = arith.constant 16 : index
    %743 = vector.load %arg15[%c2_1016, %c0_1017, %c16_1018] : memref<4x16x240xbf16, #tpu.memory_space<vmem>>, vector<1x16x205xbf16>
    %744 = vector.shape_cast %743 : vector<1x16x205xbf16> to vector<16x205xbf16>
    %c15_1019 = arith.constant 15 : index
    %c0_1020 = arith.constant 0 : index
    %c0_1021 = arith.constant 0 : index
    %745 = vector.load %arg5[%c15_1019, %c0_1020, %c0_1021] : memref<25x32x16xbf16, #tpu.memory_space<vmem>>, vector<1x32x16xbf16>
    %746 = vector.shape_cast %745 : vector<1x32x16xbf16> to vector<32x16xbf16>
    %cst_1022 = arith.constant dense<0.000000e+00> : vector<32x205xf32>
    %747 = tpu.matmul %746, %744, %cst_1022 {dimension_numbers = #tpu.dot_dimension_numbers<[1], [0], [0], [1], [0, 0, 1, 1], [], []>} : vector<32x16xbf16>, vector<16x205xbf16>, vector<32x205xf32> -> vector<32x205xf32>
    %748 = arith.addf %742, %747 : vector<32x205xf32>
    %c3_1023 = arith.constant 3 : index
    %c0_1024 = arith.constant 0 : index
    %c16_1025 = arith.constant 16 : index
    %749 = vector.load %arg15[%c3_1023, %c0_1024, %c16_1025] : memref<4x16x240xbf16, #tpu.memory_space<vmem>>, vector<1x16x205xbf16>
    %750 = vector.shape_cast %749 : vector<1x16x205xbf16> to vector<16x205xbf16>
    %c16_1026 = arith.constant 16 : index
    %c0_1027 = arith.constant 0 : index
    %c0_1028 = arith.constant 0 : index
    %751 = vector.load %arg5[%c16_1026, %c0_1027, %c0_1028] : memref<25x32x16xbf16, #tpu.memory_space<vmem>>, vector<1x32x16xbf16>
    %752 = vector.shape_cast %751 : vector<1x32x16xbf16> to vector<32x16xbf16>
    %cst_1029 = arith.constant dense<0.000000e+00> : vector<32x205xf32>
    %753 = tpu.matmul %752, %750, %cst_1029 {dimension_numbers = #tpu.dot_dimension_numbers<[1], [0], [0], [1], [0, 0, 1, 1], [], []>} : vector<32x16xbf16>, vector<16x205xbf16>, vector<32x205xf32> -> vector<32x205xf32>
    %754 = arith.addf %748, %753 : vector<32x205xf32>
    %c2_1030 = arith.constant 2 : index
    %c0_1031 = arith.constant 0 : index
    %c17_1032 = arith.constant 17 : index
    %755 = vector.load %arg15[%c2_1030, %c0_1031, %c17_1032] : memref<4x16x240xbf16, #tpu.memory_space<vmem>>, vector<1x16x205xbf16>
    %756 = vector.shape_cast %755 : vector<1x16x205xbf16> to vector<16x205xbf16>
    %c17_1033 = arith.constant 17 : index
    %c0_1034 = arith.constant 0 : index
    %c0_1035 = arith.constant 0 : index
    %757 = vector.load %arg5[%c17_1033, %c0_1034, %c0_1035] : memref<25x32x16xbf16, #tpu.memory_space<vmem>>, vector<1x32x16xbf16>
    %758 = vector.shape_cast %757 : vector<1x32x16xbf16> to vector<32x16xbf16>
    %cst_1036 = arith.constant dense<0.000000e+00> : vector<32x205xf32>
    %759 = tpu.matmul %758, %756, %cst_1036 {dimension_numbers = #tpu.dot_dimension_numbers<[1], [0], [0], [1], [0, 0, 1, 1], [], []>} : vector<32x16xbf16>, vector<16x205xbf16>, vector<32x205xf32> -> vector<32x205xf32>
    %760 = arith.addf %754, %759 : vector<32x205xf32>
    %c3_1037 = arith.constant 3 : index
    %c0_1038 = arith.constant 0 : index
    %c17_1039 = arith.constant 17 : index
    %761 = vector.load %arg15[%c3_1037, %c0_1038, %c17_1039] : memref<4x16x240xbf16, #tpu.memory_space<vmem>>, vector<1x16x205xbf16>
    %762 = vector.shape_cast %761 : vector<1x16x205xbf16> to vector<16x205xbf16>
    %c18_1040 = arith.constant 18 : index
    %c0_1041 = arith.constant 0 : index
    %c0_1042 = arith.constant 0 : index
    %763 = vector.load %arg5[%c18_1040, %c0_1041, %c0_1042] : memref<25x32x16xbf16, #tpu.memory_space<vmem>>, vector<1x32x16xbf16>
    %764 = vector.shape_cast %763 : vector<1x32x16xbf16> to vector<32x16xbf16>
    %cst_1043 = arith.constant dense<0.000000e+00> : vector<32x205xf32>
    %765 = tpu.matmul %764, %762, %cst_1043 {dimension_numbers = #tpu.dot_dimension_numbers<[1], [0], [0], [1], [0, 0, 1, 1], [], []>} : vector<32x16xbf16>, vector<16x205xbf16>, vector<32x205xf32> -> vector<32x205xf32>
    %766 = arith.addf %760, %765 : vector<32x205xf32>
    %c2_1044 = arith.constant 2 : index
    %c0_1045 = arith.constant 0 : index
    %c18_1046 = arith.constant 18 : index
    %767 = vector.load %arg15[%c2_1044, %c0_1045, %c18_1046] : memref<4x16x240xbf16, #tpu.memory_space<vmem>>, vector<1x16x205xbf16>
    %768 = vector.shape_cast %767 : vector<1x16x205xbf16> to vector<16x205xbf16>
    %c19_1047 = arith.constant 19 : index
    %c0_1048 = arith.constant 0 : index
    %c0_1049 = arith.constant 0 : index
    %769 = vector.load %arg5[%c19_1047, %c0_1048, %c0_1049] : memref<25x32x16xbf16, #tpu.memory_space<vmem>>, vector<1x32x16xbf16>
    %770 = vector.shape_cast %769 : vector<1x32x16xbf16> to vector<32x16xbf16>
    %cst_1050 = arith.constant dense<0.000000e+00> : vector<32x205xf32>
    %771 = tpu.matmul %770, %768, %cst_1050 {dimension_numbers = #tpu.dot_dimension_numbers<[1], [0], [0], [1], [0, 0, 1, 1], [], []>} : vector<32x16xbf16>, vector<16x205xbf16>, vector<32x205xf32> -> vector<32x205xf32>
    %772 = arith.addf %766, %771 : vector<32x205xf32>
    %c0_1051 = arith.constant 0 : index
    %c0_1052 = arith.constant 0 : index
    %c32 = arith.constant 32 : index
    %773 = vector.load %arg15[%c0_1051, %c0_1052, %c32] : memref<4x16x240xbf16, #tpu.memory_space<vmem>>, vector<1x16x205xbf16>
    %774 = vector.shape_cast %773 : vector<1x16x205xbf16> to vector<16x205xbf16>
    %c20_1053 = arith.constant 20 : index
    %c0_1054 = arith.constant 0 : index
    %c0_1055 = arith.constant 0 : index
    %775 = vector.load %arg5[%c20_1053, %c0_1054, %c0_1055] : memref<25x32x16xbf16, #tpu.memory_space<vmem>>, vector<1x32x16xbf16>
    %776 = vector.shape_cast %775 : vector<1x32x16xbf16> to vector<32x16xbf16>
    %cst_1056 = arith.constant dense<0.000000e+00> : vector<32x205xf32>
    %777 = tpu.matmul %776, %774, %cst_1056 {dimension_numbers = #tpu.dot_dimension_numbers<[1], [0], [0], [1], [0, 0, 1, 1], [], []>} : vector<32x16xbf16>, vector<16x205xbf16>, vector<32x205xf32> -> vector<32x205xf32>
    %778 = arith.addf %772, %777 : vector<32x205xf32>
    %c1_1057 = arith.constant 1 : index
    %c0_1058 = arith.constant 0 : index
    %c32_1059 = arith.constant 32 : index
    %779 = vector.load %arg15[%c1_1057, %c0_1058, %c32_1059] : memref<4x16x240xbf16, #tpu.memory_space<vmem>>, vector<1x16x205xbf16>
    %780 = vector.shape_cast %779 : vector<1x16x205xbf16> to vector<16x205xbf16>
    %c21_1060 = arith.constant 21 : index
    %c0_1061 = arith.constant 0 : index
    %c0_1062 = arith.constant 0 : index
    %781 = vector.load %arg5[%c21_1060, %c0_1061, %c0_1062] : memref<25x32x16xbf16, #tpu.memory_space<vmem>>, vector<1x32x16xbf16>
    %782 = vector.shape_cast %781 : vector<1x32x16xbf16> to vector<32x16xbf16>
    %cst_1063 = arith.constant dense<0.000000e+00> : vector<32x205xf32>
    %783 = tpu.matmul %782, %780, %cst_1063 {dimension_numbers = #tpu.dot_dimension_numbers<[1], [0], [0], [1], [0, 0, 1, 1], [], []>} : vector<32x16xbf16>, vector<16x205xbf16>, vector<32x205xf32> -> vector<32x205xf32>
    %784 = arith.addf %778, %783 : vector<32x205xf32>
    %c0_1064 = arith.constant 0 : index
    %c0_1065 = arith.constant 0 : index
    %c33 = arith.constant 33 : index
    %785 = vector.load %arg15[%c0_1064, %c0_1065, %c33] : memref<4x16x240xbf16, #tpu.memory_space<vmem>>, vector<1x16x205xbf16>
    %786 = vector.shape_cast %785 : vector<1x16x205xbf16> to vector<16x205xbf16>
    %c22_1066 = arith.constant 22 : index
    %c0_1067 = arith.constant 0 : index
    %c0_1068 = arith.constant 0 : index
    %787 = vector.load %arg5[%c22_1066, %c0_1067, %c0_1068] : memref<25x32x16xbf16, #tpu.memory_space<vmem>>, vector<1x32x16xbf16>
    %788 = vector.shape_cast %787 : vector<1x32x16xbf16> to vector<32x16xbf16>
    %cst_1069 = arith.constant dense<0.000000e+00> : vector<32x205xf32>
    %789 = tpu.matmul %788, %786, %cst_1069 {dimension_numbers = #tpu.dot_dimension_numbers<[1], [0], [0], [1], [0, 0, 1, 1], [], []>} : vector<32x16xbf16>, vector<16x205xbf16>, vector<32x205xf32> -> vector<32x205xf32>
    %790 = arith.addf %784, %789 : vector<32x205xf32>
    %c1_1070 = arith.constant 1 : index
    %c0_1071 = arith.constant 0 : index
    %c33_1072 = arith.constant 33 : index
    %791 = vector.load %arg15[%c1_1070, %c0_1071, %c33_1072] : memref<4x16x240xbf16, #tpu.memory_space<vmem>>, vector<1x16x205xbf16>
    %792 = vector.shape_cast %791 : vector<1x16x205xbf16> to vector<16x205xbf16>
    %c23_1073 = arith.constant 23 : index
    %c0_1074 = arith.constant 0 : index
    %c0_1075 = arith.constant 0 : index
    %793 = vector.load %arg5[%c23_1073, %c0_1074, %c0_1075] : memref<25x32x16xbf16, #tpu.memory_space<vmem>>, vector<1x32x16xbf16>
    %794 = vector.shape_cast %793 : vector<1x32x16xbf16> to vector<32x16xbf16>
    %cst_1076 = arith.constant dense<0.000000e+00> : vector<32x205xf32>
    %795 = tpu.matmul %794, %792, %cst_1076 {dimension_numbers = #tpu.dot_dimension_numbers<[1], [0], [0], [1], [0, 0, 1, 1], [], []>} : vector<32x16xbf16>, vector<16x205xbf16>, vector<32x205xf32> -> vector<32x205xf32>
    %796 = arith.addf %790, %795 : vector<32x205xf32>
    %c0_1077 = arith.constant 0 : index
    %c0_1078 = arith.constant 0 : index
    %c34 = arith.constant 34 : index
    %797 = vector.load %arg15[%c0_1077, %c0_1078, %c34] : memref<4x16x240xbf16, #tpu.memory_space<vmem>>, vector<1x16x205xbf16>
    %798 = vector.shape_cast %797 : vector<1x16x205xbf16> to vector<16x205xbf16>
    %c24_1079 = arith.constant 24 : index
    %c0_1080 = arith.constant 0 : index
    %c0_1081 = arith.constant 0 : index
    %799 = vector.load %arg5[%c24_1079, %c0_1080, %c0_1081] : memref<25x32x16xbf16, #tpu.memory_space<vmem>>, vector<1x32x16xbf16>
    %800 = vector.shape_cast %799 : vector<1x32x16xbf16> to vector<32x16xbf16>
    %cst_1082 = arith.constant dense<0.000000e+00> : vector<32x205xf32>
    %801 = tpu.matmul %800, %798, %cst_1082 {dimension_numbers = #tpu.dot_dimension_numbers<[1], [0], [0], [1], [0, 0, 1, 1], [], []>} : vector<32x16xbf16>, vector<16x205xbf16>, vector<32x205xf32> -> vector<32x205xf32>
    %802 = arith.addf %796, %801 : vector<32x205xf32>
    %c0_1083 = arith.constant 0 : index
    %c0_1084 = arith.constant 0 : index
    %803 = vector.load %arg6[%c0_1083, %c0_1084] : memref<32x1xf32, #tpu.memory_space<vmem>>, vector<32x1xf32>
    %804 = vector.broadcast %803 : vector<32x1xf32> to vector<32x205xf32>
    %805 = arith.mulf %802, %804 : vector<32x205xf32>
    %c0_1085 = arith.constant 0 : index
    %c0_1086 = arith.constant 0 : index
    %806 = vector.load %arg7[%c0_1085, %c0_1086] : memref<32x1xf32, #tpu.memory_space<vmem>>, vector<32x1xf32>
    %807 = vector.broadcast %806 : vector<32x1xf32> to vector<32x205xf32>
    %808 = arith.addf %805, %807 : vector<32x205xf32>
    %cst_1087 = arith.constant 0.000000e+00 : f32
    %809 = vector.broadcast %cst_1087 : f32 to vector<32x205xf32>
    %810 = arith.maximumf %808, %809 : vector<32x205xf32>
    %c0_1088 = arith.constant 0 : index
    %c0_1089 = arith.constant 0 : index
    %811 = vector.load %arg9[%c0_1088, %c0_1089] : memref<1x128xf32, #tpu.memory_space<vmem>>, vector<1x128xf32>
    %812 = vector.extract_strided_slice %810 {offsets = [0, 0], sizes = [1, 205], strides = [1, 1]} : vector<32x205xf32> to vector<1x205xf32>
    %813 = arith.truncf %812 : vector<1x205xf32> to vector<1x205xbf16>
    %c0_1090 = arith.constant 0 : index
    %c0_1091 = arith.constant 0 : index
    %c0_1092 = arith.constant 0 : index
    %814 = vector.load %arg8[%c0_1090, %c0_1091, %c0_1092] : memref<32x205x128xbf16, #tpu.memory_space<vmem>>, vector<1x205x128xbf16>
    %815 = vector.shape_cast %814 : vector<1x205x128xbf16> to vector<205x128xbf16>
    %cst_1093 = arith.constant dense<0.000000e+00> : vector<1x128xf32>
    %816 = tpu.matmul %813, %815, %cst_1093 {dimension_numbers = #tpu.dot_dimension_numbers<[1], [0], [0], [1], [0, 0, 1, 1], [], []>} : vector<1x205xbf16>, vector<205x128xbf16>, vector<1x128xf32> -> vector<1x128xf32>
    %817 = arith.addf %811, %816 : vector<1x128xf32>
    %818 = vector.extract_strided_slice %810 {offsets = [1, 0], sizes = [1, 205], strides = [1, 1]} : vector<32x205xf32> to vector<1x205xf32>
    %819 = arith.truncf %818 : vector<1x205xf32> to vector<1x205xbf16>
    %c1_1094 = arith.constant 1 : index
    %c0_1095 = arith.constant 0 : index
    %c0_1096 = arith.constant 0 : index
    %820 = vector.load %arg8[%c1_1094, %c0_1095, %c0_1096] : memref<32x205x128xbf16, #tpu.memory_space<vmem>>, vector<1x205x128xbf16>
    %821 = vector.shape_cast %820 : vector<1x205x128xbf16> to vector<205x128xbf16>
    %cst_1097 = arith.constant dense<0.000000e+00> : vector<1x128xf32>
    %822 = tpu.matmul %819, %821, %cst_1097 {dimension_numbers = #tpu.dot_dimension_numbers<[1], [0], [0], [1], [0, 0, 1, 1], [], []>} : vector<1x205xbf16>, vector<205x128xbf16>, vector<1x128xf32> -> vector<1x128xf32>
    %823 = arith.addf %817, %822 : vector<1x128xf32>
    %824 = vector.extract_strided_slice %810 {offsets = [2, 0], sizes = [1, 205], strides = [1, 1]} : vector<32x205xf32> to vector<1x205xf32>
    %825 = arith.truncf %824 : vector<1x205xf32> to vector<1x205xbf16>
    %c2_1098 = arith.constant 2 : index
    %c0_1099 = arith.constant 0 : index
    %c0_1100 = arith.constant 0 : index
    %826 = vector.load %arg8[%c2_1098, %c0_1099, %c0_1100] : memref<32x205x128xbf16, #tpu.memory_space<vmem>>, vector<1x205x128xbf16>
    %827 = vector.shape_cast %826 : vector<1x205x128xbf16> to vector<205x128xbf16>
    %cst_1101 = arith.constant dense<0.000000e+00> : vector<1x128xf32>
    %828 = tpu.matmul %825, %827, %cst_1101 {dimension_numbers = #tpu.dot_dimension_numbers<[1], [0], [0], [1], [0, 0, 1, 1], [], []>} : vector<1x205xbf16>, vector<205x128xbf16>, vector<1x128xf32> -> vector<1x128xf32>
    %829 = arith.addf %823, %828 : vector<1x128xf32>
    %830 = vector.extract_strided_slice %810 {offsets = [3, 0], sizes = [1, 205], strides = [1, 1]} : vector<32x205xf32> to vector<1x205xf32>
    %831 = arith.truncf %830 : vector<1x205xf32> to vector<1x205xbf16>
    %c3_1102 = arith.constant 3 : index
    %c0_1103 = arith.constant 0 : index
    %c0_1104 = arith.constant 0 : index
    %832 = vector.load %arg8[%c3_1102, %c0_1103, %c0_1104] : memref<32x205x128xbf16, #tpu.memory_space<vmem>>, vector<1x205x128xbf16>
    %833 = vector.shape_cast %832 : vector<1x205x128xbf16> to vector<205x128xbf16>
    %cst_1105 = arith.constant dense<0.000000e+00> : vector<1x128xf32>
    %834 = tpu.matmul %831, %833, %cst_1105 {dimension_numbers = #tpu.dot_dimension_numbers<[1], [0], [0], [1], [0, 0, 1, 1], [], []>} : vector<1x205xbf16>, vector<205x128xbf16>, vector<1x128xf32> -> vector<1x128xf32>
    %835 = arith.addf %829, %834 : vector<1x128xf32>
    %836 = vector.extract_strided_slice %810 {offsets = [4, 0], sizes = [1, 205], strides = [1, 1]} : vector<32x205xf32> to vector<1x205xf32>
    %837 = arith.truncf %836 : vector<1x205xf32> to vector<1x205xbf16>
    %c4_1106 = arith.constant 4 : index
    %c0_1107 = arith.constant 0 : index
    %c0_1108 = arith.constant 0 : index
    %838 = vector.load %arg8[%c4_1106, %c0_1107, %c0_1108] : memref<32x205x128xbf16, #tpu.memory_space<vmem>>, vector<1x205x128xbf16>
    %839 = vector.shape_cast %838 : vector<1x205x128xbf16> to vector<205x128xbf16>
    %cst_1109 = arith.constant dense<0.000000e+00> : vector<1x128xf32>
    %840 = tpu.matmul %837, %839, %cst_1109 {dimension_numbers = #tpu.dot_dimension_numbers<[1], [0], [0], [1], [0, 0, 1, 1], [], []>} : vector<1x205xbf16>, vector<205x128xbf16>, vector<1x128xf32> -> vector<1x128xf32>
    %841 = arith.addf %835, %840 : vector<1x128xf32>
    %842 = vector.extract_strided_slice %810 {offsets = [5, 0], sizes = [1, 205], strides = [1, 1]} : vector<32x205xf32> to vector<1x205xf32>
    %843 = arith.truncf %842 : vector<1x205xf32> to vector<1x205xbf16>
    %c5_1110 = arith.constant 5 : index
    %c0_1111 = arith.constant 0 : index
    %c0_1112 = arith.constant 0 : index
    %844 = vector.load %arg8[%c5_1110, %c0_1111, %c0_1112] : memref<32x205x128xbf16, #tpu.memory_space<vmem>>, vector<1x205x128xbf16>
    %845 = vector.shape_cast %844 : vector<1x205x128xbf16> to vector<205x128xbf16>
    %cst_1113 = arith.constant dense<0.000000e+00> : vector<1x128xf32>
    %846 = tpu.matmul %843, %845, %cst_1113 {dimension_numbers = #tpu.dot_dimension_numbers<[1], [0], [0], [1], [0, 0, 1, 1], [], []>} : vector<1x205xbf16>, vector<205x128xbf16>, vector<1x128xf32> -> vector<1x128xf32>
    %847 = arith.addf %841, %846 : vector<1x128xf32>
    %848 = vector.extract_strided_slice %810 {offsets = [6, 0], sizes = [1, 205], strides = [1, 1]} : vector<32x205xf32> to vector<1x205xf32>
    %849 = arith.truncf %848 : vector<1x205xf32> to vector<1x205xbf16>
    %c6_1114 = arith.constant 6 : index
    %c0_1115 = arith.constant 0 : index
    %c0_1116 = arith.constant 0 : index
    %850 = vector.load %arg8[%c6_1114, %c0_1115, %c0_1116] : memref<32x205x128xbf16, #tpu.memory_space<vmem>>, vector<1x205x128xbf16>
    %851 = vector.shape_cast %850 : vector<1x205x128xbf16> to vector<205x128xbf16>
    %cst_1117 = arith.constant dense<0.000000e+00> : vector<1x128xf32>
    %852 = tpu.matmul %849, %851, %cst_1117 {dimension_numbers = #tpu.dot_dimension_numbers<[1], [0], [0], [1], [0, 0, 1, 1], [], []>} : vector<1x205xbf16>, vector<205x128xbf16>, vector<1x128xf32> -> vector<1x128xf32>
    %853 = arith.addf %847, %852 : vector<1x128xf32>
    %854 = vector.extract_strided_slice %810 {offsets = [7, 0], sizes = [1, 205], strides = [1, 1]} : vector<32x205xf32> to vector<1x205xf32>
    %855 = arith.truncf %854 : vector<1x205xf32> to vector<1x205xbf16>
    %c7_1118 = arith.constant 7 : index
    %c0_1119 = arith.constant 0 : index
    %c0_1120 = arith.constant 0 : index
    %856 = vector.load %arg8[%c7_1118, %c0_1119, %c0_1120] : memref<32x205x128xbf16, #tpu.memory_space<vmem>>, vector<1x205x128xbf16>
    %857 = vector.shape_cast %856 : vector<1x205x128xbf16> to vector<205x128xbf16>
    %cst_1121 = arith.constant dense<0.000000e+00> : vector<1x128xf32>
    %858 = tpu.matmul %855, %857, %cst_1121 {dimension_numbers = #tpu.dot_dimension_numbers<[1], [0], [0], [1], [0, 0, 1, 1], [], []>} : vector<1x205xbf16>, vector<205x128xbf16>, vector<1x128xf32> -> vector<1x128xf32>
    %859 = arith.addf %853, %858 : vector<1x128xf32>
    %860 = vector.extract_strided_slice %810 {offsets = [8, 0], sizes = [1, 205], strides = [1, 1]} : vector<32x205xf32> to vector<1x205xf32>
    %861 = arith.truncf %860 : vector<1x205xf32> to vector<1x205xbf16>
    %c8_1122 = arith.constant 8 : index
    %c0_1123 = arith.constant 0 : index
    %c0_1124 = arith.constant 0 : index
    %862 = vector.load %arg8[%c8_1122, %c0_1123, %c0_1124] : memref<32x205x128xbf16, #tpu.memory_space<vmem>>, vector<1x205x128xbf16>
    %863 = vector.shape_cast %862 : vector<1x205x128xbf16> to vector<205x128xbf16>
    %cst_1125 = arith.constant dense<0.000000e+00> : vector<1x128xf32>
    %864 = tpu.matmul %861, %863, %cst_1125 {dimension_numbers = #tpu.dot_dimension_numbers<[1], [0], [0], [1], [0, 0, 1, 1], [], []>} : vector<1x205xbf16>, vector<205x128xbf16>, vector<1x128xf32> -> vector<1x128xf32>
    %865 = arith.addf %859, %864 : vector<1x128xf32>
    %866 = vector.extract_strided_slice %810 {offsets = [9, 0], sizes = [1, 205], strides = [1, 1]} : vector<32x205xf32> to vector<1x205xf32>
    %867 = arith.truncf %866 : vector<1x205xf32> to vector<1x205xbf16>
    %c9_1126 = arith.constant 9 : index
    %c0_1127 = arith.constant 0 : index
    %c0_1128 = arith.constant 0 : index
    %868 = vector.load %arg8[%c9_1126, %c0_1127, %c0_1128] : memref<32x205x128xbf16, #tpu.memory_space<vmem>>, vector<1x205x128xbf16>
    %869 = vector.shape_cast %868 : vector<1x205x128xbf16> to vector<205x128xbf16>
    %cst_1129 = arith.constant dense<0.000000e+00> : vector<1x128xf32>
    %870 = tpu.matmul %867, %869, %cst_1129 {dimension_numbers = #tpu.dot_dimension_numbers<[1], [0], [0], [1], [0, 0, 1, 1], [], []>} : vector<1x205xbf16>, vector<205x128xbf16>, vector<1x128xf32> -> vector<1x128xf32>
    %871 = arith.addf %865, %870 : vector<1x128xf32>
    %872 = vector.extract_strided_slice %810 {offsets = [10, 0], sizes = [1, 205], strides = [1, 1]} : vector<32x205xf32> to vector<1x205xf32>
    %873 = arith.truncf %872 : vector<1x205xf32> to vector<1x205xbf16>
    %c10_1130 = arith.constant 10 : index
    %c0_1131 = arith.constant 0 : index
    %c0_1132 = arith.constant 0 : index
    %874 = vector.load %arg8[%c10_1130, %c0_1131, %c0_1132] : memref<32x205x128xbf16, #tpu.memory_space<vmem>>, vector<1x205x128xbf16>
    %875 = vector.shape_cast %874 : vector<1x205x128xbf16> to vector<205x128xbf16>
    %cst_1133 = arith.constant dense<0.000000e+00> : vector<1x128xf32>
    %876 = tpu.matmul %873, %875, %cst_1133 {dimension_numbers = #tpu.dot_dimension_numbers<[1], [0], [0], [1], [0, 0, 1, 1], [], []>} : vector<1x205xbf16>, vector<205x128xbf16>, vector<1x128xf32> -> vector<1x128xf32>
    %877 = arith.addf %871, %876 : vector<1x128xf32>
    %878 = vector.extract_strided_slice %810 {offsets = [11, 0], sizes = [1, 205], strides = [1, 1]} : vector<32x205xf32> to vector<1x205xf32>
    %879 = arith.truncf %878 : vector<1x205xf32> to vector<1x205xbf16>
    %c11_1134 = arith.constant 11 : index
    %c0_1135 = arith.constant 0 : index
    %c0_1136 = arith.constant 0 : index
    %880 = vector.load %arg8[%c11_1134, %c0_1135, %c0_1136] : memref<32x205x128xbf16, #tpu.memory_space<vmem>>, vector<1x205x128xbf16>
    %881 = vector.shape_cast %880 : vector<1x205x128xbf16> to vector<205x128xbf16>
    %cst_1137 = arith.constant dense<0.000000e+00> : vector<1x128xf32>
    %882 = tpu.matmul %879, %881, %cst_1137 {dimension_numbers = #tpu.dot_dimension_numbers<[1], [0], [0], [1], [0, 0, 1, 1], [], []>} : vector<1x205xbf16>, vector<205x128xbf16>, vector<1x128xf32> -> vector<1x128xf32>
    %883 = arith.addf %877, %882 : vector<1x128xf32>
    %884 = vector.extract_strided_slice %810 {offsets = [12, 0], sizes = [1, 205], strides = [1, 1]} : vector<32x205xf32> to vector<1x205xf32>
    %885 = arith.truncf %884 : vector<1x205xf32> to vector<1x205xbf16>
    %c12_1138 = arith.constant 12 : index
    %c0_1139 = arith.constant 0 : index
    %c0_1140 = arith.constant 0 : index
    %886 = vector.load %arg8[%c12_1138, %c0_1139, %c0_1140] : memref<32x205x128xbf16, #tpu.memory_space<vmem>>, vector<1x205x128xbf16>
    %887 = vector.shape_cast %886 : vector<1x205x128xbf16> to vector<205x128xbf16>
    %cst_1141 = arith.constant dense<0.000000e+00> : vector<1x128xf32>
    %888 = tpu.matmul %885, %887, %cst_1141 {dimension_numbers = #tpu.dot_dimension_numbers<[1], [0], [0], [1], [0, 0, 1, 1], [], []>} : vector<1x205xbf16>, vector<205x128xbf16>, vector<1x128xf32> -> vector<1x128xf32>
    %889 = arith.addf %883, %888 : vector<1x128xf32>
    %890 = vector.extract_strided_slice %810 {offsets = [13, 0], sizes = [1, 205], strides = [1, 1]} : vector<32x205xf32> to vector<1x205xf32>
    %891 = arith.truncf %890 : vector<1x205xf32> to vector<1x205xbf16>
    %c13_1142 = arith.constant 13 : index
    %c0_1143 = arith.constant 0 : index
    %c0_1144 = arith.constant 0 : index
    %892 = vector.load %arg8[%c13_1142, %c0_1143, %c0_1144] : memref<32x205x128xbf16, #tpu.memory_space<vmem>>, vector<1x205x128xbf16>
    %893 = vector.shape_cast %892 : vector<1x205x128xbf16> to vector<205x128xbf16>
    %cst_1145 = arith.constant dense<0.000000e+00> : vector<1x128xf32>
    %894 = tpu.matmul %891, %893, %cst_1145 {dimension_numbers = #tpu.dot_dimension_numbers<[1], [0], [0], [1], [0, 0, 1, 1], [], []>} : vector<1x205xbf16>, vector<205x128xbf16>, vector<1x128xf32> -> vector<1x128xf32>
    %895 = arith.addf %889, %894 : vector<1x128xf32>
    %896 = vector.extract_strided_slice %810 {offsets = [14, 0], sizes = [1, 205], strides = [1, 1]} : vector<32x205xf32> to vector<1x205xf32>
    %897 = arith.truncf %896 : vector<1x205xf32> to vector<1x205xbf16>
    %c14_1146 = arith.constant 14 : index
    %c0_1147 = arith.constant 0 : index
    %c0_1148 = arith.constant 0 : index
    %898 = vector.load %arg8[%c14_1146, %c0_1147, %c0_1148] : memref<32x205x128xbf16, #tpu.memory_space<vmem>>, vector<1x205x128xbf16>
    %899 = vector.shape_cast %898 : vector<1x205x128xbf16> to vector<205x128xbf16>
    %cst_1149 = arith.constant dense<0.000000e+00> : vector<1x128xf32>
    %900 = tpu.matmul %897, %899, %cst_1149 {dimension_numbers = #tpu.dot_dimension_numbers<[1], [0], [0], [1], [0, 0, 1, 1], [], []>} : vector<1x205xbf16>, vector<205x128xbf16>, vector<1x128xf32> -> vector<1x128xf32>
    %901 = arith.addf %895, %900 : vector<1x128xf32>
    %902 = vector.extract_strided_slice %810 {offsets = [15, 0], sizes = [1, 205], strides = [1, 1]} : vector<32x205xf32> to vector<1x205xf32>
    %903 = arith.truncf %902 : vector<1x205xf32> to vector<1x205xbf16>
    %c15_1150 = arith.constant 15 : index
    %c0_1151 = arith.constant 0 : index
    %c0_1152 = arith.constant 0 : index
    %904 = vector.load %arg8[%c15_1150, %c0_1151, %c0_1152] : memref<32x205x128xbf16, #tpu.memory_space<vmem>>, vector<1x205x128xbf16>
    %905 = vector.shape_cast %904 : vector<1x205x128xbf16> to vector<205x128xbf16>
    %cst_1153 = arith.constant dense<0.000000e+00> : vector<1x128xf32>
    %906 = tpu.matmul %903, %905, %cst_1153 {dimension_numbers = #tpu.dot_dimension_numbers<[1], [0], [0], [1], [0, 0, 1, 1], [], []>} : vector<1x205xbf16>, vector<205x128xbf16>, vector<1x128xf32> -> vector<1x128xf32>
    %907 = arith.addf %901, %906 : vector<1x128xf32>
    %908 = vector.extract_strided_slice %810 {offsets = [16, 0], sizes = [1, 205], strides = [1, 1]} : vector<32x205xf32> to vector<1x205xf32>
    %909 = arith.truncf %908 : vector<1x205xf32> to vector<1x205xbf16>
    %c16_1154 = arith.constant 16 : index
    %c0_1155 = arith.constant 0 : index
    %c0_1156 = arith.constant 0 : index
    %910 = vector.load %arg8[%c16_1154, %c0_1155, %c0_1156] : memref<32x205x128xbf16, #tpu.memory_space<vmem>>, vector<1x205x128xbf16>
    %911 = vector.shape_cast %910 : vector<1x205x128xbf16> to vector<205x128xbf16>
    %cst_1157 = arith.constant dense<0.000000e+00> : vector<1x128xf32>
    %912 = tpu.matmul %909, %911, %cst_1157 {dimension_numbers = #tpu.dot_dimension_numbers<[1], [0], [0], [1], [0, 0, 1, 1], [], []>} : vector<1x205xbf16>, vector<205x128xbf16>, vector<1x128xf32> -> vector<1x128xf32>
    %913 = arith.addf %907, %912 : vector<1x128xf32>
    %914 = vector.extract_strided_slice %810 {offsets = [17, 0], sizes = [1, 205], strides = [1, 1]} : vector<32x205xf32> to vector<1x205xf32>
    %915 = arith.truncf %914 : vector<1x205xf32> to vector<1x205xbf16>
    %c17_1158 = arith.constant 17 : index
    %c0_1159 = arith.constant 0 : index
    %c0_1160 = arith.constant 0 : index
    %916 = vector.load %arg8[%c17_1158, %c0_1159, %c0_1160] : memref<32x205x128xbf16, #tpu.memory_space<vmem>>, vector<1x205x128xbf16>
    %917 = vector.shape_cast %916 : vector<1x205x128xbf16> to vector<205x128xbf16>
    %cst_1161 = arith.constant dense<0.000000e+00> : vector<1x128xf32>
    %918 = tpu.matmul %915, %917, %cst_1161 {dimension_numbers = #tpu.dot_dimension_numbers<[1], [0], [0], [1], [0, 0, 1, 1], [], []>} : vector<1x205xbf16>, vector<205x128xbf16>, vector<1x128xf32> -> vector<1x128xf32>
    %919 = arith.addf %913, %918 : vector<1x128xf32>
    %920 = vector.extract_strided_slice %810 {offsets = [18, 0], sizes = [1, 205], strides = [1, 1]} : vector<32x205xf32> to vector<1x205xf32>
    %921 = arith.truncf %920 : vector<1x205xf32> to vector<1x205xbf16>
    %c18_1162 = arith.constant 18 : index
    %c0_1163 = arith.constant 0 : index
    %c0_1164 = arith.constant 0 : index
    %922 = vector.load %arg8[%c18_1162, %c0_1163, %c0_1164] : memref<32x205x128xbf16, #tpu.memory_space<vmem>>, vector<1x205x128xbf16>
    %923 = vector.shape_cast %922 : vector<1x205x128xbf16> to vector<205x128xbf16>
    %cst_1165 = arith.constant dense<0.000000e+00> : vector<1x128xf32>
    %924 = tpu.matmul %921, %923, %cst_1165 {dimension_numbers = #tpu.dot_dimension_numbers<[1], [0], [0], [1], [0, 0, 1, 1], [], []>} : vector<1x205xbf16>, vector<205x128xbf16>, vector<1x128xf32> -> vector<1x128xf32>
    %925 = arith.addf %919, %924 : vector<1x128xf32>
    %926 = vector.extract_strided_slice %810 {offsets = [19, 0], sizes = [1, 205], strides = [1, 1]} : vector<32x205xf32> to vector<1x205xf32>
    %927 = arith.truncf %926 : vector<1x205xf32> to vector<1x205xbf16>
    %c19_1166 = arith.constant 19 : index
    %c0_1167 = arith.constant 0 : index
    %c0_1168 = arith.constant 0 : index
    %928 = vector.load %arg8[%c19_1166, %c0_1167, %c0_1168] : memref<32x205x128xbf16, #tpu.memory_space<vmem>>, vector<1x205x128xbf16>
    %929 = vector.shape_cast %928 : vector<1x205x128xbf16> to vector<205x128xbf16>
    %cst_1169 = arith.constant dense<0.000000e+00> : vector<1x128xf32>
    %930 = tpu.matmul %927, %929, %cst_1169 {dimension_numbers = #tpu.dot_dimension_numbers<[1], [0], [0], [1], [0, 0, 1, 1], [], []>} : vector<1x205xbf16>, vector<205x128xbf16>, vector<1x128xf32> -> vector<1x128xf32>
    %931 = arith.addf %925, %930 : vector<1x128xf32>
    %932 = vector.extract_strided_slice %810 {offsets = [20, 0], sizes = [1, 205], strides = [1, 1]} : vector<32x205xf32> to vector<1x205xf32>
    %933 = arith.truncf %932 : vector<1x205xf32> to vector<1x205xbf16>
    %c20_1170 = arith.constant 20 : index
    %c0_1171 = arith.constant 0 : index
    %c0_1172 = arith.constant 0 : index
    %934 = vector.load %arg8[%c20_1170, %c0_1171, %c0_1172] : memref<32x205x128xbf16, #tpu.memory_space<vmem>>, vector<1x205x128xbf16>
    %935 = vector.shape_cast %934 : vector<1x205x128xbf16> to vector<205x128xbf16>
    %cst_1173 = arith.constant dense<0.000000e+00> : vector<1x128xf32>
    %936 = tpu.matmul %933, %935, %cst_1173 {dimension_numbers = #tpu.dot_dimension_numbers<[1], [0], [0], [1], [0, 0, 1, 1], [], []>} : vector<1x205xbf16>, vector<205x128xbf16>, vector<1x128xf32> -> vector<1x128xf32>
    %937 = arith.addf %931, %936 : vector<1x128xf32>
    %938 = vector.extract_strided_slice %810 {offsets = [21, 0], sizes = [1, 205], strides = [1, 1]} : vector<32x205xf32> to vector<1x205xf32>
    %939 = arith.truncf %938 : vector<1x205xf32> to vector<1x205xbf16>
    %c21_1174 = arith.constant 21 : index
    %c0_1175 = arith.constant 0 : index
    %c0_1176 = arith.constant 0 : index
    %940 = vector.load %arg8[%c21_1174, %c0_1175, %c0_1176] : memref<32x205x128xbf16, #tpu.memory_space<vmem>>, vector<1x205x128xbf16>
    %941 = vector.shape_cast %940 : vector<1x205x128xbf16> to vector<205x128xbf16>
    %cst_1177 = arith.constant dense<0.000000e+00> : vector<1x128xf32>
    %942 = tpu.matmul %939, %941, %cst_1177 {dimension_numbers = #tpu.dot_dimension_numbers<[1], [0], [0], [1], [0, 0, 1, 1], [], []>} : vector<1x205xbf16>, vector<205x128xbf16>, vector<1x128xf32> -> vector<1x128xf32>
    %943 = arith.addf %937, %942 : vector<1x128xf32>
    %944 = vector.extract_strided_slice %810 {offsets = [22, 0], sizes = [1, 205], strides = [1, 1]} : vector<32x205xf32> to vector<1x205xf32>
    %945 = arith.truncf %944 : vector<1x205xf32> to vector<1x205xbf16>
    %c22_1178 = arith.constant 22 : index
    %c0_1179 = arith.constant 0 : index
    %c0_1180 = arith.constant 0 : index
    %946 = vector.load %arg8[%c22_1178, %c0_1179, %c0_1180] : memref<32x205x128xbf16, #tpu.memory_space<vmem>>, vector<1x205x128xbf16>
    %947 = vector.shape_cast %946 : vector<1x205x128xbf16> to vector<205x128xbf16>
    %cst_1181 = arith.constant dense<0.000000e+00> : vector<1x128xf32>
    %948 = tpu.matmul %945, %947, %cst_1181 {dimension_numbers = #tpu.dot_dimension_numbers<[1], [0], [0], [1], [0, 0, 1, 1], [], []>} : vector<1x205xbf16>, vector<205x128xbf16>, vector<1x128xf32> -> vector<1x128xf32>
    %949 = arith.addf %943, %948 : vector<1x128xf32>
    %950 = vector.extract_strided_slice %810 {offsets = [23, 0], sizes = [1, 205], strides = [1, 1]} : vector<32x205xf32> to vector<1x205xf32>
    %951 = arith.truncf %950 : vector<1x205xf32> to vector<1x205xbf16>
    %c23_1182 = arith.constant 23 : index
    %c0_1183 = arith.constant 0 : index
    %c0_1184 = arith.constant 0 : index
    %952 = vector.load %arg8[%c23_1182, %c0_1183, %c0_1184] : memref<32x205x128xbf16, #tpu.memory_space<vmem>>, vector<1x205x128xbf16>
    %953 = vector.shape_cast %952 : vector<1x205x128xbf16> to vector<205x128xbf16>
    %cst_1185 = arith.constant dense<0.000000e+00> : vector<1x128xf32>
    %954 = tpu.matmul %951, %953, %cst_1185 {dimension_numbers = #tpu.dot_dimension_numbers<[1], [0], [0], [1], [0, 0, 1, 1], [], []>} : vector<1x205xbf16>, vector<205x128xbf16>, vector<1x128xf32> -> vector<1x128xf32>
    %955 = arith.addf %949, %954 : vector<1x128xf32>
    %956 = vector.extract_strided_slice %810 {offsets = [24, 0], sizes = [1, 205], strides = [1, 1]} : vector<32x205xf32> to vector<1x205xf32>
    %957 = arith.truncf %956 : vector<1x205xf32> to vector<1x205xbf16>
    %c24_1186 = arith.constant 24 : index
    %c0_1187 = arith.constant 0 : index
    %c0_1188 = arith.constant 0 : index
    %958 = vector.load %arg8[%c24_1186, %c0_1187, %c0_1188] : memref<32x205x128xbf16, #tpu.memory_space<vmem>>, vector<1x205x128xbf16>
    %959 = vector.shape_cast %958 : vector<1x205x128xbf16> to vector<205x128xbf16>
    %cst_1189 = arith.constant dense<0.000000e+00> : vector<1x128xf32>
    %960 = tpu.matmul %957, %959, %cst_1189 {dimension_numbers = #tpu.dot_dimension_numbers<[1], [0], [0], [1], [0, 0, 1, 1], [], []>} : vector<1x205xbf16>, vector<205x128xbf16>, vector<1x128xf32> -> vector<1x128xf32>
    %961 = arith.addf %955, %960 : vector<1x128xf32>
    %962 = vector.extract_strided_slice %810 {offsets = [25, 0], sizes = [1, 205], strides = [1, 1]} : vector<32x205xf32> to vector<1x205xf32>
    %963 = arith.truncf %962 : vector<1x205xf32> to vector<1x205xbf16>
    %c25 = arith.constant 25 : index
    %c0_1190 = arith.constant 0 : index
    %c0_1191 = arith.constant 0 : index
    %964 = vector.load %arg8[%c25, %c0_1190, %c0_1191] : memref<32x205x128xbf16, #tpu.memory_space<vmem>>, vector<1x205x128xbf16>
    %965 = vector.shape_cast %964 : vector<1x205x128xbf16> to vector<205x128xbf16>
    %cst_1192 = arith.constant dense<0.000000e+00> : vector<1x128xf32>
    %966 = tpu.matmul %963, %965, %cst_1192 {dimension_numbers = #tpu.dot_dimension_numbers<[1], [0], [0], [1], [0, 0, 1, 1], [], []>} : vector<1x205xbf16>, vector<205x128xbf16>, vector<1x128xf32> -> vector<1x128xf32>
    %967 = arith.addf %961, %966 : vector<1x128xf32>
    %968 = vector.extract_strided_slice %810 {offsets = [26, 0], sizes = [1, 205], strides = [1, 1]} : vector<32x205xf32> to vector<1x205xf32>
    %969 = arith.truncf %968 : vector<1x205xf32> to vector<1x205xbf16>
    %c26 = arith.constant 26 : index
    %c0_1193 = arith.constant 0 : index
    %c0_1194 = arith.constant 0 : index
    %970 = vector.load %arg8[%c26, %c0_1193, %c0_1194] : memref<32x205x128xbf16, #tpu.memory_space<vmem>>, vector<1x205x128xbf16>
    %971 = vector.shape_cast %970 : vector<1x205x128xbf16> to vector<205x128xbf16>
    %cst_1195 = arith.constant dense<0.000000e+00> : vector<1x128xf32>
    %972 = tpu.matmul %969, %971, %cst_1195 {dimension_numbers = #tpu.dot_dimension_numbers<[1], [0], [0], [1], [0, 0, 1, 1], [], []>} : vector<1x205xbf16>, vector<205x128xbf16>, vector<1x128xf32> -> vector<1x128xf32>
    %973 = arith.addf %967, %972 : vector<1x128xf32>
    %974 = vector.extract_strided_slice %810 {offsets = [27, 0], sizes = [1, 205], strides = [1, 1]} : vector<32x205xf32> to vector<1x205xf32>
    %975 = arith.truncf %974 : vector<1x205xf32> to vector<1x205xbf16>
    %c27 = arith.constant 27 : index
    %c0_1196 = arith.constant 0 : index
    %c0_1197 = arith.constant 0 : index
    %976 = vector.load %arg8[%c27, %c0_1196, %c0_1197] : memref<32x205x128xbf16, #tpu.memory_space<vmem>>, vector<1x205x128xbf16>
    %977 = vector.shape_cast %976 : vector<1x205x128xbf16> to vector<205x128xbf16>
    %cst_1198 = arith.constant dense<0.000000e+00> : vector<1x128xf32>
    %978 = tpu.matmul %975, %977, %cst_1198 {dimension_numbers = #tpu.dot_dimension_numbers<[1], [0], [0], [1], [0, 0, 1, 1], [], []>} : vector<1x205xbf16>, vector<205x128xbf16>, vector<1x128xf32> -> vector<1x128xf32>
    %979 = arith.addf %973, %978 : vector<1x128xf32>
    %980 = vector.extract_strided_slice %810 {offsets = [28, 0], sizes = [1, 205], strides = [1, 1]} : vector<32x205xf32> to vector<1x205xf32>
    %981 = arith.truncf %980 : vector<1x205xf32> to vector<1x205xbf16>
    %c28 = arith.constant 28 : index
    %c0_1199 = arith.constant 0 : index
    %c0_1200 = arith.constant 0 : index
    %982 = vector.load %arg8[%c28, %c0_1199, %c0_1200] : memref<32x205x128xbf16, #tpu.memory_space<vmem>>, vector<1x205x128xbf16>
    %983 = vector.shape_cast %982 : vector<1x205x128xbf16> to vector<205x128xbf16>
    %cst_1201 = arith.constant dense<0.000000e+00> : vector<1x128xf32>
    %984 = tpu.matmul %981, %983, %cst_1201 {dimension_numbers = #tpu.dot_dimension_numbers<[1], [0], [0], [1], [0, 0, 1, 1], [], []>} : vector<1x205xbf16>, vector<205x128xbf16>, vector<1x128xf32> -> vector<1x128xf32>
    %985 = arith.addf %979, %984 : vector<1x128xf32>
    %986 = vector.extract_strided_slice %810 {offsets = [29, 0], sizes = [1, 205], strides = [1, 1]} : vector<32x205xf32> to vector<1x205xf32>
    %987 = arith.truncf %986 : vector<1x205xf32> to vector<1x205xbf16>
    %c29 = arith.constant 29 : index
    %c0_1202 = arith.constant 0 : index
    %c0_1203 = arith.constant 0 : index
    %988 = vector.load %arg8[%c29, %c0_1202, %c0_1203] : memref<32x205x128xbf16, #tpu.memory_space<vmem>>, vector<1x205x128xbf16>
    %989 = vector.shape_cast %988 : vector<1x205x128xbf16> to vector<205x128xbf16>
    %cst_1204 = arith.constant dense<0.000000e+00> : vector<1x128xf32>
    %990 = tpu.matmul %987, %989, %cst_1204 {dimension_numbers = #tpu.dot_dimension_numbers<[1], [0], [0], [1], [0, 0, 1, 1], [], []>} : vector<1x205xbf16>, vector<205x128xbf16>, vector<1x128xf32> -> vector<1x128xf32>
    %991 = arith.addf %985, %990 : vector<1x128xf32>
    %992 = vector.extract_strided_slice %810 {offsets = [30, 0], sizes = [1, 205], strides = [1, 1]} : vector<32x205xf32> to vector<1x205xf32>
    %993 = arith.truncf %992 : vector<1x205xf32> to vector<1x205xbf16>
    %c30 = arith.constant 30 : index
    %c0_1205 = arith.constant 0 : index
    %c0_1206 = arith.constant 0 : index
    %994 = vector.load %arg8[%c30, %c0_1205, %c0_1206] : memref<32x205x128xbf16, #tpu.memory_space<vmem>>, vector<1x205x128xbf16>
    %995 = vector.shape_cast %994 : vector<1x205x128xbf16> to vector<205x128xbf16>
    %cst_1207 = arith.constant dense<0.000000e+00> : vector<1x128xf32>
    %996 = tpu.matmul %993, %995, %cst_1207 {dimension_numbers = #tpu.dot_dimension_numbers<[1], [0], [0], [1], [0, 0, 1, 1], [], []>} : vector<1x205xbf16>, vector<205x128xbf16>, vector<1x128xf32> -> vector<1x128xf32>
    %997 = arith.addf %991, %996 : vector<1x128xf32>
    %998 = vector.extract_strided_slice %810 {offsets = [31, 0], sizes = [1, 205], strides = [1, 1]} : vector<32x205xf32> to vector<1x205xf32>
    %999 = arith.truncf %998 : vector<1x205xf32> to vector<1x205xbf16>
    %c31 = arith.constant 31 : index
    %c0_1208 = arith.constant 0 : index
    %c0_1209 = arith.constant 0 : index
    %1000 = vector.load %arg8[%c31, %c0_1208, %c0_1209] : memref<32x205x128xbf16, #tpu.memory_space<vmem>>, vector<1x205x128xbf16>
    %1001 = vector.shape_cast %1000 : vector<1x205x128xbf16> to vector<205x128xbf16>
    %cst_1210 = arith.constant dense<0.000000e+00> : vector<1x128xf32>
    %1002 = tpu.matmul %999, %1001, %cst_1210 {dimension_numbers = #tpu.dot_dimension_numbers<[1], [0], [0], [1], [0, 0, 1, 1], [], []>} : vector<1x205xbf16>, vector<205x128xbf16>, vector<1x128xf32> -> vector<1x128xf32>
    %1003 = arith.addf %997, %1002 : vector<1x128xf32>
    %cst_1211 = arith.constant 0.000000e+00 : f32
    %1004 = vector.broadcast %cst_1211 : f32 to vector<1x128xf32>
    %1005 = arith.maximumf %1003, %1004 : vector<1x128xf32>
    %c0_1212 = arith.constant 0 : index
    %c0_1213 = arith.constant 0 : index
    %1006 = vector.load %arg10[%c0_1212, %c0_1213] : memref<128x64xf32, #tpu.memory_space<vmem>>, vector<128x64xf32>
    %cst_1214 = arith.constant dense<0.000000e+00> : vector<1x64xf32>
    %1007 = tpu.matmul %1005, %1006, %cst_1214 {dimension_numbers = #tpu.dot_dimension_numbers<[1], [0], [0], [1], [0, 0, 1, 1], [], []>} : vector<1x128xf32>, vector<128x64xf32>, vector<1x64xf32> -> vector<1x64xf32>
    %c0_1215 = arith.constant 0 : index
    %c0_1216 = arith.constant 0 : index
    %1008 = vector.load %arg11[%c0_1215, %c0_1216] : memref<1x64xf32, #tpu.memory_space<vmem>>, vector<1x64xf32>
    %1009 = arith.addf %1007, %1008 : vector<1x64xf32>
    %cst_1217 = arith.constant 0.000000e+00 : f32
    %1010 = vector.broadcast %cst_1217 : f32 to vector<1x64xf32>
    %1011 = arith.maximumf %1009, %1010 : vector<1x64xf32>
    %c0_1218 = arith.constant 0 : index
    %c0_1219 = arith.constant 0 : index
    %1012 = vector.load %arg12[%c0_1218, %c0_1219] : memref<64x1xf32, #tpu.memory_space<vmem>>, vector<64x1xf32>
    %cst_1220 = arith.constant dense<0.000000e+00> : vector<1x1xf32>
    %1013 = tpu.matmul %1011, %1012, %cst_1220 {dimension_numbers = #tpu.dot_dimension_numbers<[1], [0], [0], [1], [0, 0, 1, 1], [], []>} : vector<1x64xf32>, vector<64x1xf32>, vector<1x1xf32> -> vector<1x1xf32>
    %c0_1221 = arith.constant 0 : index
    %c0_1222 = arith.constant 0 : index
    %1014 = vector.load %arg13[%c0_1221, %c0_1222] : memref<1x1xf32, #tpu.memory_space<vmem>>, vector<1x1xf32>
    %1015 = arith.addf %1013, %1014 : vector<1x1xf32>
    %c0_1223 = arith.constant 0 : index
    %c0_1224 = arith.constant 0 : index
    %c0_1225 = arith.constant 0 : index
    %1016 = vector.load %arg14[%c0_1223, %c0_1224, %c0_1225] : memref<1x1x1xf32, #tpu.memory_space<vmem>>, vector<1x1x1xf32>
    %1017 = vector.shape_cast %1016 : vector<1x1x1xf32> to vector<1x1xf32>
    %1018 = vector.shape_cast %1015 : vector<1x1xf32> to vector<1x1x1xf32>
    tpu.vector_store %arg14[%c0_1223, %c0_1224, %c0_1225], %1018 {strides = array<i32>} : memref<1x1x1xf32, #tpu.memory_space<vmem>>, vector<1x1x1xf32>,
    return
  }
  func.func @transform_0(%arg0: i32) -> (i32, i32, i32, i32, i32) {
    %c0_i32 = arith.constant 0 : i32
    %c0_i32_0 = arith.constant 0 : i32
    %c0_i32_1 = arith.constant 0 : i32
    %c0_i32_2 = arith.constant 0 : i32
    %c0_i32_3 = arith.constant 0 : i32
    return %arg0, %c0_i32, %c0_i32_0, %c0_i32_1, %c0_i32_2 : i32, i32, i32, i32, i32
  }
  func.func @transform_1(%arg0: i32) -> (i32, i32, i32) {
    %c0_i32 = arith.constant 0 : i32
    %c0_i32_0 = arith.constant 0 : i32
    %c0_i32_1 = arith.constant 0 : i32
    %c0_i32_2 = arith.constant 0 : i32
    return %c0_i32, %c0_i32_0, %c0_i32_1 : i32, i32, i32
  }
  func.func @transform_2(%arg0: i32) -> (i32, i32) {
    %c0_i32 = arith.constant 0 : i32
    %c0_i32_0 = arith.constant 0 : i32
    %c0_i32_1 = arith.constant 0 : i32
    return %c0_i32, %c0_i32_0 : i32, i32
  }
  func.func @transform_3(%arg0: i32) -> (i32, i32) {
    %c0_i32 = arith.constant 0 : i32
    %c0_i32_0 = arith.constant 0 : i32
    %c0_i32_1 = arith.constant 0 : i32
    return %c0_i32, %c0_i32_0 : i32, i32
  }
  func.func @transform_4(%arg0: i32) -> (i32, i32, i32) {
    %c0_i32 = arith.constant 0 : i32
    %c0_i32_0 = arith.constant 0 : i32
    %c0_i32_1 = arith.constant 0 : i32
    %c0_i32_2 = arith.constant 0 : i32
    return %c0_i32, %c0_i32_0, %c0_i32_1 : i32, i32, i32
  }
  func.func @transform_5(%arg0: i32) -> (i32, i32) {
    %c0_i32 = arith.constant 0 : i32
    %c0_i32_0 = arith.constant 0 : i32
    %c0_i32_1 = arith.constant 0 : i32
    return %c0_i32, %c0_i32_0 : i32, i32
  }
  func.func @transform_6(%arg0: i32) -> (i32, i32) {
    %c0_i32 = arith.constant 0 : i32
    %c0_i32_0 = arith.constant 0 : i32
    %c0_i32_1 = arith.constant 0 : i32
    return %c0_i32, %c0_i32_0 : i32, i32
  }
  func.func @transform_7(%arg0: i32) -> (i32, i32, i32) {
    %c0_i32 = arith.constant 0 : i32
    %c0_i32_0 = arith.constant 0 : i32
    %c0_i32_1 = arith.constant 0 : i32
    %c0_i32_2 = arith.constant 0 : i32
    return %c0_i32, %c0_i32_0, %c0_i32_1 : i32, i32, i32
  }
  func.func @transform_8(%arg0: i32) -> (i32, i32) {
    %c0_i32 = arith.constant 0 : i32
    %c0_i32_0 = arith.constant 0 : i32
    %c0_i32_1 = arith.constant 0 : i32
    return %c0_i32, %c0_i32_0 : i32, i32
  }
  func.func @transform_9(%arg0: i32) -> (i32, i32) {
    %c0_i32 = arith.constant 0 : i32
    %c0_i32_0 = arith.constant 0 : i32
    %c0_i32_1 = arith.constant 0 : i32
    return %c0_i32, %c0_i32_0 : i32, i32
  }
  func.func @transform_10(%arg0: i32) -> (i32, i32) {
    %c0_i32 = arith.constant 0 : i32
    %c0_i32_0 = arith.constant 0 : i32
    %c0_i32_1 = arith.constant 0 : i32
    return %c0_i32, %c0_i32_0 : i32, i32
  }
  func.func @transform_11(%arg0: i32) -> (i32, i32) {
    %c0_i32 = arith.constant 0 : i32
    %c0_i32_0 = arith.constant 0 : i32
    %c0_i32_1 = arith.constant 0 : i32
    return %c0_i32, %c0_i32_0 : i32, i32
  }
  func.func @transform_12(%arg0: i32) -> (i32, i32) {
    %c0_i32 = arith.constant 0 : i32
    %c0_i32_0 = arith.constant 0 : i32
    %c0_i32_1 = arith.constant 0 : i32
    return %c0_i32, %c0_i32_0 : i32, i32
  }
  func.func @transform_13(%arg0: i32) -> (i32, i32, i32) {
    %c0_i32 = arith.constant 0 : i32
    %c0_i32_0 = arith.constant 0 : i32
    %c0_i32_1 = arith.constant 0 : i32
    return %arg0, %c0_i32, %c0_i32_0 : i32, i32, i32
  }
}

</mosaic_0001>

<bundles_post_ra>
// kernel: critic_forward.1
= control target key start
LH: loop header
LB: loop body
LE: loop exit
PB: predicated region body
PF: predicated region fallthrough
CT: control target
= control target key end

     0   :  { %s19411_s27 = smov 0   ;;  %s23394_s0 = inlined_call_operand.vmem [shape: bf16[2,4,4,3,272], index: 0, kind: input, shape index: {}]   ;;  %s23395_s1 = inlined_call_operand.vmem [shape: bf16[25,16,3], index: 1, kind: input, shape index: {}]   ;;  %s23396_s2 = inlined_call_operand.vmem [shape: f32[16,1], index: 2, kind: input, shape index: {}]   ;;  %s23397_s3 = inlined_call_operand.vmem [shape: f32[16,1], index: 3, kind: input, shape index: {}]   ;;  %s23398_s4 = inlined_call_operand.vmem [shape: bf16[25,32,16], index: 4, kind: input, shape index: {}]   ;;  %s23399_s5 = inlined_call_operand.vmem [shape: f32[32,1], index: 5, kind: input, shape index: {}]   ;;  %s23400_s6 = inlined_call_operand.vmem [shape: f32[32,1], index: 6, kind: input, shape index: {}]   ;;  %s23401_s7 = inlined_call_operand.vmem [shape: bf16[32,205,128], index: 7, kind: input, shape index: {}]   ;;  %s23402_s8 = inlined_call_operand.vmem [shape: f32[1,128], index: 8, kind: input, shape index: {}]   ;;  %s23403_s9 = inlined_call_operand.vmem [shape: f32[128,64], index: 9, kind: input, shape index: {}]   ;;  %s23404_s10 = inlined_call_operand.vmem [shape: f32[1,64], index: 10, kind: input, shape index: {}]   ;;  %s23405_s11 = inlined_call_operand.vmem [shape: f32[64,1], index: 11, kind: input, shape index: {}]   ;;  %s23406_s12 = inlined_call_operand.<no memory space> [shape: f32[1,1], index: 12, kind: input, shape index: {}]   ;;  %s23407_s13 = inlined_call_operand.vmem [shape: f32[2,1,1], index: 13, kind: output, shape index: {}]  }
   0x1   :  { %v18_v0 = vstv %s23406_s12 }
   0x2   :  { %19 = vst [vmem:[#allocation3] sm:$0x1] %v18_v0 }
   0x3 LB: > { %s15859_s28 = sadd.s32 4294967295, %s19322_s27   ;;  %p15863_p0 = scmp.ge.s32.totalorder %s19322_s27, 1  ;;  %s19322_s27 = sphi %s19411_s27, %s25_s27  }
   0x4   : > { %p389_p1 = scmp.lt.s32.totalorder %s19322_s27, 3 }
   0x6   : > { %p390_p2 = pnand %p15863_p0, %p389_p1 }
   0x8   : > { %393 = sbr.rel (%p390_p2) target bundleno = 3177 (0xc69), region = 72 }
   0xf   : > { %p431_p3 = scmp.lt.s32.totalorder %s15859_s28, 1  ;;  %vm466_vm0 = vcmask 1040384   ;;  %v23409_v1 = vmov 0   ;;  %vm467_vm1 = vcmask 1041408   ;;  %v23408_v2 = vmov 65535   ;;  %s19326_s15 = smov 127  }
  0x10   : > { %508 = vmatprep.mubr.bf16.mxu0 %v23409_v1  ;;  %2462 = vmatprep.mubr.bf16.mxu1 %v23409_v1  ;;  %v468_v3 = vsel %vm466_vm0, 4294967295, %v23408_v2  ;;  %v18724_v13 = vld [vmem:[%s23395_s1 + $0x8] sm:$0xff]   ;;  %vm462_vm2 = vcmask 23552   ;;  %v18725_v25 = vld [vmem:[%s23395_s1] sm:$0xff]   ;;  %v18726_v32 = vld [vmem:[%s23395_s1 + $0x10] sm:$0xff]   ;;  %s19327_s29 = smov 112   ;;  %v2283_v47 = vlaneseq }
  0x11   : > { %s23435_s28 = smov (!%p431_p3, %s15859_s28), 1  ;;  %18723 = vset.pattern.permute.xlu1 %v23409_v1  ;;  %18722 = vset.pattern.permute.xlu0 %v23409_v1  ;;  %v19435_v5 = vsel %vm467_vm1, %v468_v3, 0  ;;  %v18727_v22 = vld [vmem:[%s23395_s1 + $0x8] sm:$0xff]   ;;  %v18729_v29 = vld [vmem:[%s23395_s1] sm:$0xff]   ;;  %v18728_v37 = vld [vmem:[%s23395_s1 + $0x18] sm:$0xff]   ;;  %s19329_s30 = smov 111  }
  0x12   : > { %s18699_s12 = smul.u32 96, %s23435_s28  ;;  %v19328_v45 = vmov 1983009808   ;;  %v2284_v49 = vshrl.u32 %v2283_v47, 7  ;;  %vm757_vm3 = vcmask 1039360   ;;  %v18733_v47 = vld [vmem:[%s23395_s1 + $0x18] sm:$0xff]   ;;  %s438_s26 = scalar_lea.vmem %s23407_s13, %s23435_s28 }
  0x13   : > { %v2281_v46 = vunpack.c.l.s4 %v19328_v45  ;;  %vm1974_vm4 = vcmask 916480   ;;  %vm2301_vm5 = vcmask 908288   ;;  %s19330_s25 = smov 126   ;;  %vm8438_vm6 = vcmask 130048   ;;  %s19332_s22 = smov 96  }
  0x14   : > { %s19430_s14 = scalar_lea.vmem %s23394_s0, %s18699_s12  ;;  %vm8768_vm7 = vcmask 1031168   ;;  %s19333_s23 = smov 95   ;;  %vm9653_vm8 = vcmask 900096   ;;  %vm10188_vm9 = vcmask 785408   ;;  %vm10367_vm10 = vcmask 777216  }
  0x15   : > { %v19433_v4 = vld.sshfl [vmem:[%s19430_s14] sm:$0x33 pattern:$0x76325410]  ;;  %v2282_v48 = vunpack.c.0.s8 %v2281_v46  ;;  %v16141_v63 = vld [vmem:[%s19430_s14 + $0x6] sm:$0x3f] }
  0x16   : > { %2556 = vrot.lane.b32.xlu0 %v19433_v4, %s19326_s15  ;;  %v19441_v6 = vcombine.high %v19433_v4, %v19433_v4  ;;  %753 = vrot.lane.b32.xlu1 %v19433_v4, %s19326_s15  ;;  %v19446_v7 = vld.sshfl [vmem:[%s19430_s14 + $0x6] sm:$0x33 pattern:$0x76325410]  ;;  %v537_v16 = vand.u32 %v19433_v4, %v19435_v5  ;;  %v4069_v51 = vld [vmem:[%s19430_s14] sm:$0x3f]  ;;  %v4167_v3 = vcombine.high %v16141_v63, %v16141_v63 }
  0x17   : > { %v19450_v8 = vcombine.high %v19446_v7, %v19446_v7  ;;  %v19453_v9 = vld.sshfl [vmem:[%s19430_s14 + $0xc] sm:$0x33 pattern:$0x76325410]  ;;  %v471_v10 = vand.u32 %v19446_v7, %v19435_v5  ;;  %v19654_v50 = vsub.s32 %v2282_v48, %v2284_v49  ;;  %v4078_v53 = vcombine.high %v4069_v51, %v4069_v51  ;;  %v2269_v55 = vld [vmem:[%s19430_s14] sm:$0x3f] }
  0x18   : > { %v540_v12 = vand.u32 %v19441_v6, %v19435_v5  ;;  %v19470_v14 = vcombine.high %v19453_v9, %v19453_v9  ;;  %v19473_v15 = vld.sshfl [vmem:[%s19430_s14 + $0x12] sm:$0x33 pattern:$0x76325410]  ;;  %v608_v26 = vand.u32 %v19453_v9, %v19435_v5  ;;  %v2279_v58 = vcombine.high %v2269_v55, %v2269_v55  ;;  %v18732_v46 = vld [vmem:[%s23395_s1 + $0x28] sm:$0xff]  }
  0x19   : > { %v474_v11 = vand.u32 %v19450_v8, %v19435_v5  ;;  %v19479_v17 = vcombine.high %v19473_v15, %v19473_v15  ;;  %v19482_v18 = vld.sshfl [vmem:[%s19430_s14 + $0x18] sm:$0x33 pattern:$0x76325410]  ;;  %v2425_v21 = vand.u32 %v19473_v15, %v19435_v5  ;;  %v4085_v52 = vrot.slane %v4069_v51, %v19654_v50 }
  0x1a   : > { %2558 = vrot.lane.b32.xlu0 %v19441_v6, %s19326_s15  ;;  %755 = vrot.lane.b32.xlu1 %v19441_v6, %s19326_s15  ;;  %v611_v19 = vand.u32 %v19470_v14, %v19435_v5  ;;  %v19505_v23 = vcombine.high %v19482_v18, %v19482_v18  ;;  %v19508_v24 = vld.sshfl [vmem:[%s19430_s14 + $0x1e] sm:$0x33 pattern:$0x76325410]  ;;  %v4092_v56 = vrot.slane %v4078_v53, %v19654_v50  ;;  %vm10546_vm11 = vcmask 769024  }
  0x1b   : > { %476 = vmatprep.subr.bf16.mxu0 %v474_v11  ;;  %v2428_v20 = vand.u32 %v19479_v17, %v19435_v5  ;;  %v19522_v27 = vld.sshfl [vmem:[%s19430_s14 + $0x24] sm:$0x33 pattern:$0x76325410]  ;;  %v19530_v28 = vcombine.high %v19508_v24, %v19508_v24  ;;  %v4093_v54 = vcombine.high %v4085_v52, %v4085_v52  ;;  %v2286_v57 = vrot.slane %v2269_v55, %v19654_v50 }
  0x1c   : > { %477 = vmatpush1.bf16.msra.mxu0 %v471_v10  ;;  %v19538_v30 = vld.sshfl [vmem:[%s19430_s14 + $0x30] sm:$0x33 pattern:$0x76325410]  ;;  %v19546_v31 = vcombine.high %v19522_v27, %v19522_v27  ;;  %v2293_v60 = vrot.slane %v2279_v58, %v19654_v50  ;;  %v4174_v0 = vrot.slane %v16141_v63, %v19654_v50  ;;  %vm10799_vm12 = vcmask 1045504  }
  0x1d   : > { %542 = vmatprep.subr.bf16.mxu0 %v540_v12  ;;  %2430 = vmatprep.subr.bf16.mxu1 %v2428_v20  ;;  %v19557_v33 = vcombine.high %v19538_v30, %v19538_v30  ;;  %v19567_v34 = vld.sshfl [vmem:[%s19430_s14 + $0x36] sm:$0x33 pattern:$0x76325410]  ;;  %v2294_v59 = vcombine.high %v2286_v57, %v2286_v57  ;;  %vm10800_vm13 = vcmask 1046528   ;;  %vm10795_vm14 = vcmask 629760  }
  0x1e   : > { %2634 = vrot.lane.b32.xlu0 %v19446_v7, %s19326_s15  ;;  %2636 = vrot.lane.b32.xlu1 %v19450_v8, %s19326_s15  ;;  %v19571_v35 = vld.sshfl [vmem:[%s19430_s14 + $0x3c] sm:$0x33 pattern:$0x76325410]  ;;  %v19579_v36 = vcombine.high %v19567_v34, %v19567_v34  ;;  %v991_v53 = vand.u32 %v19546_v31, %v19435_v5  ;;  %vm19336_vm15 = vmmov 0   ;;  %vm15736_vm0 = vcmask 523264  }
  0x1f   : > { %15870 = vmatmul.mubr.msk.bf16.vlgmr.msra.gmra.mrb[0].mxu0 %vm462_vm2, %v18724_v13  ;;  %2431 = vmatpush1.bf16.msra.mxu1 %v2425_v21  ;;  %v19590_v38 = vcombine.high %v19571_v35, %v19571_v35  ;;  %v19598_v39 = vld.sshfl [vmem:[%s19430_s14 + $0x48] sm:$0x33 pattern:$0x76325410]  ;;  %v18730_v13 = vld [vmem:[%s23395_s1 + $0x20] sm:$0xff]   ;;  %vm15810_vm1 = vcmask 0  }
  0x20   : > { %543 = vmatpush1.bf16.msra.mxu0 %v537_v16  ;;  %574 = vmatprep.mubr.bf16.mxu0 %v23409_v1  ;;  %v19603_v40 = vcombine.high %v19598_v39, %v19598_v39  ;;  %v19614_v41 = vld.sshfl [vmem:[%s19430_s14 + $0x4e] sm:$0x33 pattern:$0x76325410] }
  0x21   : > { %613 = vmatprep.subr.bf16.mxu0 %v611_v19  ;;  %2496 = vmatprep.subr.bf16.mxu1 %v611_v19  ;;  %v19618_v42 = vcombine.high %v19614_v41, %v19614_v41  ;;  %v16123_v43 = vld.sshfl [vmem:[%s19430_s14 + $0x54] sm:$0x33 pattern:$0x76325410] }
  0x22   : > { %2712 = vrot.lane.b32.xlu0 %v19453_v9, %s19326_s15  ;;  %2714 = vrot.lane.b32.xlu1 %v19470_v14, %s19326_s15  ;;  %v19629_v44 = vcombine.high %v16123_v43, %v16123_v43 }
  0x23   : > { %16014 = vmatmul.mubr.msk.bf16.vlgmr.msra.gmra.mrb[0].mxu1 %vm462_vm2, %v18727_v22 }
  0x24   : > { %2497 = vmatpush1.bf16.msra.mxu1 %v608_v26  ;;  %2528 = vmatprep.mubr.bf16.mxu1 %v23409_v1 }
  0x26   : > { %2936 = vrot.lane.b32.xlu0 %v19482_v18, %s19326_s15  ;;  %2938 = vrot.lane.b32.xlu1 %v19505_v23, %s19326_s15 }
  0x2a   : > { %1133 = vrot.lane.b32.xlu0 %v19482_v18, %s19326_s15  ;;  %1135 = vrot.lane.b32.xlu1 %v19505_v23, %s19326_s15 }
  0x2b   : > { %15873 = vmatmul.mubr.msk.bf16.vlgmr.msra.gmra.mrb[0].mxu0 %vm462_vm2, %v18725_v25 }
  0x2c   : > { %614 = vmatpush1.bf16.msra.mxu0 %v608_v26  ;;  %645 = vmatprep.mubr.bf16.mxu0 %v23409_v1  ;;  %v916_v26 = vand.u32 %v19530_v28, %v19435_v5 }
  0x2d   : > { %688 = vmatprep.subr.bf16.mxu0 %v2428_v20 }
  0x2e   : > { %3014 = vrot.lane.b32.xlu0 %v19508_v24, %s19326_s15  ;;  %3016 = vrot.lane.b32.xlu1 %v19530_v28, %s19326_s15 }
  0x2f   : > { %16017 = vmatmul.mubr.msk.bf16.vlgmr.msra.gmra.mrb[0].mxu1 %vm462_vm2, %v18729_v29 }
  0x30   : > { %2602 = vmatprep.mubr.bf16.mxu1 %v23409_v1 }
  0x32   : > { %3092 = vrot.lane.b32.xlu0 %v19522_v27, %s19326_s15  ;;  %3094 = vrot.lane.b32.xlu1 %v19546_v31, %s19326_s15  ;;  %v18735_v31 = vld [vmem:[%s23395_s1 + $0x20] sm:$0xff]  }
  0x36   : > { %3316 = vrot.lane.b32.xlu0 %v19538_v30, %s19326_s15  ;;  %3318 = vrot.lane.b32.xlu1 %v19557_v33, %s19326_s15 }
  0x37   : > { %15879 = vmatmul.mubr.msk.bf16.vlgmr.msra.gmra.mrb[0].mxu0 %vm462_vm2, %v18726_v32  ;;  %v16146_v32 = vld [vmem:[%s19430_s14 + $0xc] sm:$0x3f] }
  0x38   : > { %689 = vmatpush1.bf16.msra.mxu0 %v2425_v21  ;;  %720 = vmatprep.mubr.bf16.mxu0 %v23409_v1  ;;  %v838_v21 = vand.u32 %v19482_v18, %v19435_v5  ;;  %v4263_v28 = vrot.slane %v16146_v32, %v19654_v50 }
  0x3a   : > { %1512 = vrot.lane.b32.xlu0 %v19538_v30, %s19326_s15  ;;  %1514 = vrot.lane.b32.xlu1 %v19557_v33, %s19326_s15  ;;  %v4271_v45 = vcombine.high %v4263_v28, %v4263_v28 }
  0x3e   : > { %3394 = vrot.lane.b32.xlu0 %v19567_v34, %s19326_s15  ;;  %3396 = vrot.lane.b32.xlu1 %v19579_v36, %s19326_s15 }
  0x42   : > { %3472 = vrot.lane.b32.xlu0 %v19571_v35, %s19326_s15  ;;  %3474 = vrot.lane.b32.xlu1 %v19590_v38, %s19326_s15 }
  0x43   : > { %15885 = vmatmul.mubr.msk.bf16.vlgmr.msra.gmra.mrb[0].mxu0 %vm462_vm2, %v18728_v37 }
  0x44   : > { %800 = vmatprep.mubr.bf16.mxu0 %v23409_v1 }
  0x46   : > { %3696 = vrot.lane.b32.xlu0 %v19598_v39, %s19326_s15  ;;  %3698 = vrot.lane.b32.xlu1 %v19603_v40, %s19326_s15 }
  0x4a   : > { %1891 = vrot.lane.b32.xlu0 %v19598_v39, %s19326_s15  ;;  %1893 = vrot.lane.b32.xlu1 %v19603_v40, %s19326_s15 }
  0x4e   : > { %3774 = vrot.lane.b32.xlu0 %v19614_v41, %s19326_s15  ;;  %3776 = vrot.lane.b32.xlu1 %v19618_v42, %s19326_s15 }
  0x52   : > { %1970 = vrot.lane.b32.xlu0 %v19433_v4, %s19327_s29  ;;  %1972 = vrot.lane.b32.xlu1 %v19441_v6, %s19327_s29 }
  0x56   : > { %3852 = vrot.lane.b32.xlu0 %v16123_v43, %s19326_s15  ;;  %3854 = vrot.lane.b32.xlu1 %v19629_v44, %s19326_s15  ;;  %v4256_v43 = vcombine.high %v16146_v32, %v16146_v32 }
  0x58   : > { %v4270_v49 = vrot.slane %v4256_v43, %v19654_v50 }
  0x5a   : > { %2050 = vrot.lane.b32.xlu0 %v19446_v7, %s19327_s29  ;;  %2052 = vrot.lane.b32.xlu1 %v19450_v8, %s19327_s29  ;;  %v841_v7 = vand.u32 %v19505_v23, %v19435_v5  ;;  %v4182_v8 = vcombine.high %v4174_v0, %v4174_v0 }
  0x5e   : > { %3930 = vrot.lane.b32.xlu0 %v19453_v9, %s19327_s29  ;;  %3932 = vrot.lane.b32.xlu1 %v19470_v14, %s19327_s29 }
  0x62   : > { %2129 = vrot.lane.b32.xlu0 %v19453_v9, %s19327_s29  ;;  %2131 = vrot.lane.b32.xlu1 %v19470_v14, %s19327_s29  ;;  %v18731_v14 = vld [vmem:[%s23395_s1 + $0x10] sm:$0xff]  }
  0x66   : > { %4008 = vrot.lane.b32.xlu0 %v19473_v15, %s19327_s29  ;;  %4010 = vrot.lane.b32.xlu1 %v19479_v17, %s19327_s29 }
  0x6a   : > { %2208 = vrot.lane.b32.xlu0 %v19473_v15, %s19327_s29  ;;  %2210 = vrot.lane.b32.xlu1 %v19479_v17, %s19327_s29  ;;  %v4181_v17 = vrot.slane %v4167_v3, %v19654_v50 }
  0x6e   : > { %4096 = vrot.lane.b32.xlu0 %v4093_v54, %s19329_s30  ;;  %4098 = vrot.lane.b32.xlu1 %v4092_v56, %s19329_s30  ;;  %v15913_v54 = vld.sshfl [vmem:[%s19430_s14 + $0x2a] sm:$0x33 pattern:$0x76325410]  ;;  %v988_v56 = vand.u32 %v19522_v27, %v19435_v5  ;;  %v18736_v27 = vld [vmem:[%s23395_s1 + $0x38] sm:$0xff]  }
  0x6f   : > { %v1058_v55 = vcombine.high %v15913_v54, %v15913_v54 }
  0x72   : > { %4094 = vrot.lane.b32.xlu0 %v4085_v52, %s19329_s30  ;;  %2297 = vrot.lane.b32.xlu1 %v2294_v59, %s19329_s30  ;;  %v913_v52 = vand.u32 %v19508_v24, %v19435_v5  ;;  %v18734_v24 = vld [vmem:[%s23395_s1 + $0x30] sm:$0xff]  }
  0x76   : > { %2299 = vrot.lane.b32.xlu0 %v2293_v60, %s19329_s30  ;;  %2295 = vrot.lane.b32.xlu1 %v2286_v57, %s19329_s30  ;;  %v1066_v57 = vand.u32 %v1058_v55, %v19435_v5 }
  0x7a   : > { %4185 = vrot.lane.b32.xlu0 %v4182_v8, %s19329_s30  ;;  %4187 = vrot.lane.b32.xlu1 %v4181_v17, %s19329_s30 }
  0x7e   : > { %4183 = vrot.lane.b32.xlu0 %v4174_v0, %s19329_s30  ;;  %4274 = vrot.lane.b32.xlu1 %v4271_v45, %s19329_s30 }
  0x82   : > { %4276 = vrot.lane.b32.xlu0 %v4270_v49, %s19329_s30  ;;  %4272 = vrot.lane.b32.xlu1 %v4263_v28, %s19329_s30  ;;  %v16218_v28 = vld.sshfl [vmem:[%s19430_s14 + $0x6] sm:$0x33 pattern:$0x76325410] }
  0x86   : > { %6510 = vrot.lane.b32.xlu1 %v19557_v33, %s19326_s15  ;;  %6508 = vrot.lane.b32.xlu0 %v19538_v30, %s19326_s15 }
  0x88   : > { %v2557_v61 = vpop.permute.xlu0 %2556  ;;  %v754_v62 = vpop.permute.xlu1 %753 }
  0x8a   : > { %4680 = vrot.lane.b32.xlu1 %v19557_v33, %s19326_s15  ;;  %4678 = vrot.lane.b32.xlu0 %v19538_v30, %s19326_s15  ;;  %v18737_v30 = vld [vmem:[%s23395_s1 + $0x28] sm:$0xff]  }
  0x8c   : > { %v2559_v4 = vpop.permute.xlu0 %2558  ;;  %v756_v6 = vpop.permute.xlu1 %755 }
  0x8d   : > { %v2560_v9 = vsel %vm757_vm3, %v2557_v61, %v2559_v4  ;;  %v2568_v10 = vand.u32 %v2559_v4, %v19435_v5  ;;  %v758_v11 = vsel %vm757_vm3, %v754_v62, %v756_v6  ;;  %v766_v12 = vand.u32 %v756_v6, %v19435_v5  ;;  %v18738_v6 = vld [vmem:[%s23395_s1 + $0x40] sm:$0xff]  }
  0x8e   : > { %v2565_v15 = vand.u32 %v2560_v9, %v19435_v5  ;;  %v763_v16 = vand.u32 %v758_v11, %v19435_v5  ;;  %6588 = vrot.lane.b32.xlu1 %v19579_v36, %s19326_s15  ;;  %6586 = vrot.lane.b32.xlu0 %v19567_v34, %s19326_s15  ;;  %v1063_v62 = vand.u32 %v15913_v54, %v19435_v5 }
  0x8f   : > { %768 = vmatprep.subr.bf16.mxu0 %v766_v12  ;;  %2570 = vmatprep.subr.bf16.mxu1 %v2568_v10 }
  0x90   : > { %769 = vmatpush1.bf16.msra.mxu0 %v763_v16  ;;  %2571 = vmatpush1.bf16.msra.mxu1 %v2565_v15  ;;  %v2635_v19 = vpop.permute.xlu0 %2634  ;;  %v2637_v20 = vpop.permute.xlu1 %2636  ;;  %v1220_v15 = vand.u32 %v19557_v33, %v19435_v5  ;;  %v16212_v16 = vld.sshfl [vmem:[%s19430_s14] sm:$0x33 pattern:$0x76325410] }
  0x91   : > { %v2638_v22 = vsel %vm757_vm3, %v2635_v19, %v2637_v20  ;;  %v2646_v23 = vand.u32 %v2637_v20, %v19435_v5  ;;  %843 = vmatprep.subr.bf16.mxu0 %v841_v7  ;;  %v18739_v7 = vld [vmem:[%s23395_s1 + $0x30] sm:$0xff]   ;;  %v5125_v33 = vcombine.high %v16212_v16, %v16212_v16  ;;  %v18740_v20 = vld [vmem:[%s23395_s1 + $0x48] sm:$0xff]  }
  0x92   : > { %v2643_v25 = vand.u32 %v2638_v22, %v19435_v5  ;;  %6666 = vrot.lane.b32.xlu1 %v19590_v38, %s19326_s15  ;;  %6664 = vrot.lane.b32.xlu0 %v19571_v35, %s19326_s15 }
  0x93   : > { %15890 = vmatmul.mubr.msk.bf16.vlgmr.msra.gmra.mrb[0].mxu0 %vm462_vm2, %v18730_v13  ;;  %16022 = vmatmul.mubr.msk.bf16.vlgmr.msra.gmra.mrb[0].mxu1 %vm462_vm2, %v18731_v14 }
  0x94   : > { %2648 = vmatprep.subr.bf16.mxu1 %v2646_v23  ;;  %844 = vmatpush1.bf16.msra.mxu0 %v838_v21  ;;  %v2715_v18 = vpop.permute.xlu1 %2714  ;;  %v2713_v37 = vpop.permute.xlu0 %2712  ;;  %v18741_v21 = vld [vmem:[%s23395_s1 + $0x38] sm:$0xff]  }
  0x95   : > { %2649 = vmatpush1.bf16.msra.mxu1 %v2643_v25  ;;  %2680 = vmatprep.mubr.bf16.mxu1 %v23409_v1  ;;  %v2724_v29 = vand.u32 %v2715_v18, %v19435_v5  ;;  %v2716_v48 = vsel %vm757_vm3, %v2713_v37, %v2715_v18  ;;  %v1295_v37 = vand.u32 %v19579_v36, %v19435_v5  ;;  %v19840_v36 = vld.sshfl [vmem:[%s19430_s14 + $0x54] sm:$0x33 pattern:$0x76325410] }
  0x96   : > { %875 = vmatprep.mubr.bf16.mxu0 %v23409_v1  ;;  %918 = vmatprep.subr.bf16.mxu0 %v916_v26  ;;  %v2721_v51 = vand.u32 %v2716_v48, %v19435_v5  ;;  %v19306_v26 = vld.sshfl [vmem:[%s19430_s14 + $0x30] sm:$0x33 pattern:$0x76325410]  ;;  %v18743_v48 = vld [vmem:[%s23395_s1 + $0x40] sm:$0xff]  }
  0x97   : > { %2726 = vmatprep.subr.bf16.mxu1 %v2724_v29  ;;  %6890 = vrot.lane.b32.xlu1 %v19603_v40, %s19326_s15  ;;  %v1217_v18 = vand.u32 %v19306_v26, %v19435_v5 }
  0x98   : > { %v2937_v58 = vpop.permute.xlu0 %2936  ;;  %v2939_v59 = vpop.permute.xlu1 %2938  ;;  %6888 = vrot.lane.b32.xlu0 %v19598_v39, %s19326_s15 }
  0x99   : > { %v2948_v34 = vand.u32 %v2939_v59, %v19435_v5  ;;  %v2940_v8 = vsel %vm757_vm3, %v2937_v58, %v2939_v59  ;;  %v15943_v59 = vld.sshfl [vmem:[%s19430_s14 + $0x42] sm:$0x33 pattern:$0x76325410] }
  0x9a   : > { %v2945_v12 = vand.u32 %v2940_v8, %v19435_v5  ;;  %v7261_v8 = vld [vmem:[%s19430_s14] sm:$0x3f] }
  0x9b   : > { %5050 = vrot.lane.b32.xlu1 %v19603_v40, %s19326_s15 }
  0x9c   : > { %v1134_v60 = vpop.permute.xlu0 %1133  ;;  %v1136_v61 = vpop.permute.xlu1 %1135  ;;  %5048 = vrot.lane.b32.xlu0 %v19598_v39, %s19326_s15 }
  0x9d   : > { %v1145_v0 = vand.u32 %v1136_v61, %v19435_v5  ;;  %v1137_v9 = vsel %vm757_vm3, %v1134_v60, %v1136_v61  ;;  %v1437_v61 = vcombine.high %v15943_v59, %v15943_v59 }
  0x9e   : > { %v1142_v13 = vand.u32 %v1137_v9, %v19435_v5  ;;  %v18746_v9 = vld [vmem:[%s23395_s1 + $0x60] sm:$0xff]  }
  0x9f   : > { %15896 = vmatmul.mubr.msk.bf16.vlgmr.msra.gmra.mrb[0].mxu0 %vm462_vm2, %v18732_v46  ;;  %16028 = vmatmul.mubr.msk.bf16.vlgmr.msra.gmra.mrb[0].mxu1 %vm462_vm2, %v18733_v47  ;;  %v5203_v46 = vcombine.high %v16218_v28, %v16218_v28  ;;  %v18742_v47 = vld [vmem:[%s23395_s1 + $0x50] sm:$0xff]  }
  0xa0   : > { %919 = vmatpush1.bf16.msra.mxu0 %v913_v52  ;;  %2727 = vmatpush1.bf16.msra.mxu1 %v2721_v51  ;;  %v3015_v63 = vpop.permute.xlu0 %3014  ;;  %v3017_v3 = vpop.permute.xlu1 %3016  ;;  %v16356_v52 = vld.sshfl [vmem:[%s19430_s14 + $0xc] sm:$0x33 pattern:$0x76325410] }
  0xa1   : > { %950 = vmatprep.mubr.bf16.mxu0 %v23409_v1  ;;  %2758 = vmatprep.mubr.bf16.mxu1 %v23409_v1  ;;  %v3026_v14 = vand.u32 %v3017_v3, %v19435_v5  ;;  %v3018_v22 = vsel %vm757_vm3, %v3015_v63, %v3017_v3  ;;  %v7121_v58 = vcombine.high %v16356_v52, %v16356_v52 }
  0xa2   : > { %993 = vmatprep.subr.bf16.mxu0 %v991_v53  ;;  %2799 = vmatprep.subr.bf16.mxu1 %v991_v53 }
  0xa3   : > { %6968 = vrot.lane.b32.xlu1 %v19618_v42, %s19326_s15  ;;  %6966 = vrot.lane.b32.xlu0 %v19614_v41, %s19326_s15  ;;  %v3023_v41 = vand.u32 %v3018_v22, %v19435_v5 }
  0xa4   : > { %v19765_v4 = vpop.permute.xlu0 %3092  ;;  %v3095_v35 = vpop.permute.xlu1 %3094 }
  0xa5   : > { %v3104_v32 = vand.u32 %v3095_v35, %v19435_v5  ;;  %v3096_v49 = vsel %vm757_vm3, %v19765_v4, %v3095_v35  ;;  %v1445_v4 = vand.u32 %v1437_v61, %v19435_v5 }
  0xa6   : > { %v3101_v54 = vand.u32 %v3096_v49, %v19435_v5 }
  0xa7   : > { %5128 = vrot.lane.b32.xlu1 %v5125_v33, %s19327_s29  ;;  %5126 = vrot.lane.b32.xlu0 %v16212_v16, %s19327_s29  ;;  %v7277_v16 = vrot.slane %v7261_v8, %v19654_v50 }
  0xa8   : > { %v19779_v10 = vpop.permute.xlu0 %3316  ;;  %v19781_v11 = vpop.permute.xlu1 %3318 }
  0xa9   : > { %v7285_v26 = vcombine.high %v7277_v16, %v7277_v16  ;;  %v3320_v49 = vsel %vm757_vm3, %v19779_v10, %v19781_v11 }
  0xab   : > { %15902 = vmatmul.mubr.msk.bf16.vlgmr.msra.gmra.mrb[0].mxu0 %vm462_vm2, %v18734_v24  ;;  %16034 = vmatmul.mubr.msk.bf16.vlgmr.msra.gmra.mrb[0].mxu1 %vm462_vm2, %v18735_v31  ;;  %v19308_v24 = vld.sshfl [vmem:[%s19430_s14 + $0x36] sm:$0x33 pattern:$0x76325410] }
  0xac   : > { %994 = vmatpush1.bf16.msra.mxu0 %v988_v56  ;;  %2800 = vmatpush1.bf16.msra.mxu1 %v988_v56  ;;  %v19795_v17 = vpop.permute.xlu0 %1512  ;;  %v19799_v39 = vpop.permute.xlu1 %1514  ;;  %v1292_v31 = vand.u32 %v19308_v24, %v19435_v5  ;;  %v1370_v56 = vand.u32 %v19590_v38, %v19435_v5  ;;  %v18744_v38 = vld [vmem:[%s23395_s1 + $0x58] sm:$0xff]   ;;  %v16368_v24 = vld [vmem:[%s19430_s14 + $0x6] sm:$0x3f] }
  0xad   : > { %1025 = vmatprep.mubr.bf16.mxu0 %v23409_v1  ;;  %2831 = vmatprep.mubr.bf16.mxu1 %v23409_v1  ;;  %v1524_v22 = vand.u32 %v19799_v39, %v19435_v5 }
  0xae   : > { %1068 = vmatprep.subr.bf16.mxu0 %v1066_v57  ;;  %2872 = vmatprep.subr.bf16.mxu1 %v1066_v57 }
  0xaf   : > { %7046 = vrot.lane.b32.xlu1 %v19629_v44, %s19326_s15  ;;  %7044 = vrot.lane.b32.xlu0 %v19840_v36, %s19326_s15 }
  0xb0   : > { %v19801_v19 = vpop.permute.xlu0 %3394  ;;  %v19814_v23 = vpop.permute.xlu1 %3396 }
  0xb1   : > { %v3406_v10 = vand.u32 %v19814_v23, %v19435_v5 }
  0xb3   : > { %5206 = vrot.lane.b32.xlu1 %v5203_v46, %s19327_s29  ;;  %5204 = vrot.lane.b32.xlu0 %v16218_v28, %s19327_s29 }
  0xb4   : > { %v19816_v25 = vpop.permute.xlu0 %3472  ;;  %v19823_v29 = vpop.permute.xlu1 %3474 }
  0xb7   : > { %15908 = vmatmul.mubr.msk.bf16.vlgmr.msra.gmra.mrb[0].mxu0 %vm462_vm2, %v18736_v27  ;;  %16040 = vmatmul.mubr.msk.bf16.vlgmr.msra.gmra.mrb[0].mxu1 %vm462_vm2, %v18737_v30  ;;  %v18745_v30 = vld [vmem:[%s23395_s1 + $0x48] sm:$0xff]  }
  0xb8   : > { %1069 = vmatpush1.bf16.msra.mxu0 %v1063_v62  ;;  %2873 = vmatpush1.bf16.msra.mxu1 %v1063_v62  ;;  %v19831_v43 = vpop.permute.xlu0 %3696  ;;  %v19835_v45 = vpop.permute.xlu1 %3698  ;;  %v16362_v62 = vld.sshfl [vmem:[%s19430_s14 + $0x12] sm:$0x33 pattern:$0x76325410] }
  0xb9   : > { %1100 = vmatprep.mubr.bf16.mxu0 %v23409_v1  ;;  %2904 = vmatprep.mubr.bf16.mxu1 %v23409_v1  ;;  %v7199_v35 = vcombine.high %v16362_v62, %v16362_v62 }
  0xba   : > { %1147 = vmatprep.subr.bf16.mxu0 %v1145_v0  ;;  %2950 = vmatprep.subr.bf16.mxu1 %v2948_v34  ;;  %v19309_v34 = vld.sshfl [vmem:[%s19430_s14 + $0x3c] sm:$0x33 pattern:$0x76325410] }
  0xbb   : > { %7124 = vrot.lane.b32.xlu1 %v7121_v58, %s19327_s29  ;;  %7122 = vrot.lane.b32.xlu0 %v16356_v52, %s19327_s29  ;;  %v1367_v0 = vand.u32 %v19309_v34, %v19435_v5  ;;  %v18752_v34 = vld [vmem:[%s23395_s1 + $0x70] sm:$0xff]  }
  0xbc   : > { %v19852_v51 = vpop.permute.xlu0 %1891  ;;  %v19855_v53 = vpop.permute.xlu1 %1893 }
  0xbf   : > { %5284 = vrot.lane.b32.xlu1 %v7121_v58, %s19327_s29  ;;  %5282 = vrot.lane.b32.xlu0 %v16356_v52, %s19327_s29  ;;  %v1516_v52 = vsel %vm757_vm3, %v19795_v17, %v19799_v39  ;;  %v7359_v39 = vcombine.high %v16368_v24, %v16368_v24 }
  0xc0   : > { %v19862_v55 = vpop.permute.xlu0 %3774  ;;  %v19868_v57 = vpop.permute.xlu1 %3776  ;;  %v1521_v58 = vand.u32 %v1516_v52, %v19435_v5  ;;  %v19311_v52 = vld.sshfl [vmem:[%s19430_s14 + $0x4e] sm:$0x33 pattern:$0x76325410] }
  0xc3   : > { %15914 = vmatmul.mubr.msk.bf16.vlgmr.msra.gmra.mrb[0].mxu0 %vm462_vm2, %v18738_v6  ;;  %16046 = vmatmul.mubr.msk.bf16.vlgmr.msra.gmra.mrb[0].mxu1 %vm462_vm2, %v18739_v7 }
  0xc4   : > { %1148 = vmatpush1.bf16.msra.mxu0 %v1142_v13  ;;  %2951 = vmatpush1.bf16.msra.mxu1 %v2945_v12  ;;  %v19873_v27 = vpop.permute.xlu0 %1970  ;;  %v19883_v60 = vpop.permute.xlu1 %1972  ;;  %v18747_v12 = vld [vmem:[%s23395_s1 + $0x50] sm:$0xff]  }
  0xc5   : > { %1179 = vmatprep.mubr.bf16.mxu0 %v23409_v1  ;;  %2982 = vmatprep.mubr.bf16.mxu1 %v23409_v1 }
  0xc6   : > { %1222 = vmatprep.subr.bf16.mxu0 %v1220_v15  ;;  %3028 = vmatprep.subr.bf16.mxu1 %v3026_v14  ;;  %v5421_v14 = vld [vmem:[%s19430_s14] sm:$0x3f]  ;;  %v7270_v15 = vcombine.high %v7261_v8, %v7261_v8 }
  0xc7   : > { %7202 = vrot.lane.b32.xlu1 %v7199_v35, %s19327_s29  ;;  %7200 = vrot.lane.b32.xlu0 %v16362_v62, %s19327_s29 }
  0xc8   : > { %v19888_v63 = vpop.permute.xlu0 %3852  ;;  %v19892_v3 = vpop.permute.xlu1 %3854 }
  0xcb   : > { %5362 = vrot.lane.b32.xlu1 %v7199_v35, %s19327_s29  ;;  %5360 = vrot.lane.b32.xlu0 %v16362_v62, %s19327_s29 }
  0xcc   : > { %v19899_v6 = vpop.permute.xlu0 %2050  ;;  %v19903_v7 = vpop.permute.xlu1 %2052 }
  0xcf   : > { %15920 = vmatmul.mubr.msk.bf16.vlgmr.msra.gmra.mrb[0].mxu0 %vm462_vm2, %v18740_v20  ;;  %16052 = vmatmul.mubr.msk.bf16.vlgmr.msra.gmra.mrb[0].mxu1 %vm462_vm2, %v18741_v21  ;;  %v1442_v20 = vand.u32 %v15943_v59, %v19435_v5  ;;  %v3328_v21 = vand.u32 %v19781_v11, %v19435_v5  ;;  %v1599_v11 = vand.u32 %v19603_v40, %v19435_v5 }
  0xd0   : > { %1223 = vmatpush1.bf16.msra.mxu0 %v1217_v18  ;;  %3029 = vmatpush1.bf16.msra.mxu1 %v3023_v41  ;;  %v19912_v13 = vpop.permute.xlu0 %3930  ;;  %v19918_v33 = vpop.permute.xlu1 %3932  ;;  %v7284_v41 = vrot.slane %v7270_v15, %v19654_v50  ;;  %v5437_v18 = vrot.slane %v5421_v14, %v19654_v50  ;;  %v7373_v40 = vrot.slane %v7359_v39, %v19654_v50  ;;  %v18758_v39 = vld [vmem:[%s23395_s1 + $0x80] sm:$0xff]  }
  0xd1   : > { %1254 = vmatprep.mubr.bf16.mxu0 %v23409_v1  ;;  %3060 = vmatprep.mubr.bf16.mxu1 %v23409_v1 }
  0xd2   : > { %1297 = vmatprep.subr.bf16.mxu0 %v1295_v37  ;;  %3106 = vmatprep.subr.bf16.mxu1 %v3104_v32  ;;  %v5445_v28 = vcombine.high %v5437_v18, %v5437_v18 }
  0xd3   : > { %7290 = vrot.lane.b32.xlu1 %v7284_v41, %s19329_s30  ;;  %7288 = vrot.lane.b32.xlu0 %v7285_v26, %s19329_s30  ;;  %v18755_v26 = vld [vmem:[%s23395_s1 + $0x78] sm:$0xff]  }
  0xd4   : > { %v19929_v32 = vpop.permute.xlu0 %2129  ;;  %v19933_v37 = vpop.permute.xlu1 %2131 }
  0xd7   : > { %5448 = vrot.lane.b32.xlu1 %v5445_v28, %s19329_s30  ;;  %7286 = vrot.lane.b32.xlu0 %v7277_v16, %s19329_s30  ;;  %v3484_v16 = vand.u32 %v19823_v29, %v19435_v5  ;;  %v3476_v28 = vsel %vm757_vm3, %v19816_v25, %v19823_v29  ;;  %v1749_v25 = vand.u32 %v19629_v44, %v19435_v5  ;;  %v16246_v29 = vld.sshfl [vmem:[%s19430_s14 + $0x1e] sm:$0x33 pattern:$0x76325410] }
  0xd8   : > { %v19937_v46 = vpop.permute.xlu0 %4008  ;;  %v5604_v44 = vcombine.high %v16246_v29, %v16246_v29 }
  0xdb   : > { %15926 = vmatmul.mubr.msk.bf16.vlgmr.msra.gmra.mrb[0].mxu0 %vm462_vm2, %v18742_v47  ;;  %16058 = vmatmul.mubr.msk.bf16.vlgmr.msra.gmra.mrb[0].mxu1 %vm462_vm2, %v18743_v48  ;;  %v18748_v47 = vld [vmem:[%s23395_s1 + $0x68] sm:$0xff]   ;;  %v18749_v48 = vld [vmem:[%s23395_s1 + $0x58] sm:$0xff]  }
  0xdc   : > { %1298 = vmatpush1.bf16.msra.mxu0 %v1292_v31  ;;  %3107 = vmatpush1.bf16.msra.mxu1 %v3101_v54  ;;  %v19951_v54 = vpop.permute.xlu1 %4010  ;;  %v5430_v31 = vcombine.high %v5421_v14, %v5421_v14  ;;  %v19958_v59 = vpop.permute.xlu0 %2208  ;;  %v16373_v14 = vld [vmem:[%s19430_s14 + $0xc] sm:$0x3f] }
  0xdd   : > { %1329 = vmatprep.mubr.bf16.mxu0 %v23409_v1  ;;  %3138 = vmatprep.mubr.bf16.mxu1 %v23409_v1 }
  0xde   : > { %1372 = vmatprep.subr.bf16.mxu0 %v1370_v56  ;;  %3179 = vmatprep.subr.bf16.mxu1 %v1370_v56  ;;  %v3325_v56 = vand.u32 %v3320_v49, %v19435_v5  ;;  %v5444_v17 = vrot.slane %v5430_v31, %v19654_v50  ;;  %v3481_v49 = vand.u32 %v3476_v28, %v19435_v5 }
  0xdf   : > { %5446 = vrot.lane.b32.xlu1 %v5437_v18, %s19329_s30  ;;  %v18756_v18 = vld [vmem:[%s23395_s1 + $0x68] sm:$0xff]   ;;  %v1903_v28 = vand.u32 %v19855_v53, %v19435_v5 }
  0xe0   : > { %5450 = vrot.lane.b32.xlu0 %v5444_v17, %s19329_s30  ;;  %v19975_v62 = vpop.permute.xlu0 %4096 }
  0xe3   : > { %7379 = vrot.lane.b32.xlu1 %v7373_v40, %s19329_s30 }
  0xe4   : > { %v19994_v15 = vpop.permute.xlu0 %4094 }
  0xe7   : > { %15932 = vmatmul.mubr.msk.bf16.vlgmr.msra.gmra.mrb[0].mxu0 %vm462_vm2, %v18744_v38  ;;  %16064 = vmatmul.mubr.msk.bf16.vlgmr.msra.gmra.mrb[0].mxu1 %vm462_vm2, %v18745_v30  ;;  %v7366_v38 = vrot.slane %v16368_v24, %v19654_v50  ;;  %v19968_v30 = vpop.permute.xlu1 %2210  ;;  %v1671_v24 = vand.u32 %v19311_v52, %v19435_v5 }
  0xe8   : > { %1373 = vmatpush1.bf16.msra.mxu0 %v1367_v0  ;;  %3180 = vmatpush1.bf16.msra.mxu1 %v1367_v0  ;;  %v18753_v0 = vld [vmem:[%s23395_s1 + $0x60] sm:$0xff]   ;;  %v20010_v41 = vpop.permute.xlu0 %2299 }
  0xe9   : > { %1404 = vmatprep.mubr.bf16.mxu0 %v23409_v1  ;;  %3211 = vmatprep.mubr.bf16.mxu1 %v23409_v1  ;;  %v7374_v61 = vcombine.high %v7366_v38, %v7366_v38 }
  0xea   : > { %1447 = vmatprep.subr.bf16.mxu0 %v1445_v4  ;;  %3252 = vmatprep.subr.bf16.mxu1 %v1445_v4  ;;  %v3398_v4 = vsel %vm757_vm3, %v19801_v19, %v19814_v23  ;;  %v1674_v19 = vand.u32 %v19618_v42, %v19435_v5  ;;  %v16240_v23 = vld.sshfl [vmem:[%s19430_s14 + $0x18] sm:$0x33 pattern:$0x76325410] }
  0xeb   : > { %v19986_v35 = vpop.permute.xlu1 %4098  ;;  %7377 = vrot.lane.b32.xlu0 %v7374_v61, %s19329_s30  ;;  %v3403_v8 = vand.u32 %v3398_v4, %v19435_v5  ;;  %5527 = vrot.lane.b32.xlu1 %v16240_v23, %s19327_s29  ;;  %v16382_v61 = vld.sshfl [vmem:[%s19430_s14 + $0x24] sm:$0x33 pattern:$0x76325410]  ;;  %v1746_v4 = vand.u32 %v19840_v36, %v19435_v5 }
  0xec   : > { %v20028_v31 = vpop.permute.xlu0 %4185 }
  0xef   : > { %7375 = vrot.lane.b32.xlu0 %v7366_v38, %s19329_s30  ;;  %v18759_v38 = vld [vmem:[%s23395_s1 + $0x70] sm:$0xff]  }
  0xf0   : > { %v20045_v17 = vpop.permute.xlu0 %4183 }
  0xf3   : > { %15938 = vmatmul.mubr.msk.bf16.vlgmr.msra.gmra.mrb[0].mxu0 %vm462_vm2, %v18746_v9  ;;  %16070 = vmatmul.mubr.msk.bf16.vlgmr.msra.gmra.mrb[0].mxu1 %vm462_vm2, %v18747_v12  ;;  %v19310_v9 = vld.sshfl [vmem:[%s19430_s14 + $0x48] sm:$0x33 pattern:$0x76325410] }
  0xf4   : > { %1448 = vmatpush1.bf16.msra.mxu0 %v1442_v20  ;;  %3253 = vmatpush1.bf16.msra.mxu1 %v1442_v20  ;;  %v1596_v12 = vand.u32 %v19310_v9, %v19435_v5  ;;  %v7455_v20 = vrot.slane %v16373_v14, %v19654_v50  ;;  %v7544_v9 = vcombine.high %v16382_v61, %v16382_v61 }
  0xf5   : > { %1479 = vmatprep.mubr.bf16.mxu0 %v23409_v1  ;;  %3284 = vmatprep.mubr.bf16.mxu1 %v23409_v1 }
  0xf6   : > { %1526 = vmatprep.subr.bf16.mxu0 %v1524_v22  ;;  %3330 = vmatprep.subr.bf16.mxu1 %v3328_v21  ;;  %v20004_v21 = vpop.permute.xlu1 %2297  ;;  %v5526_v22 = vcombine.high %v16240_v23, %v16240_v23  ;;  %v7463_v42 = vcombine.high %v7455_v20, %v7455_v20  ;;  %v18761_v23 = vld [vmem:[%s23395_s1 + $0x78] sm:$0xff]  }
  0xf8   : > { %7466 = vrot.lane.b32.xlu1 %v7463_v42, %s19329_s30  ;;  %5529 = vrot.lane.b32.xlu0 %v5526_v22, %s19327_s29 }
  0xfc   : > { %7464 = vrot.lane.b32.xlu1 %v7455_v20, %s19329_s30  ;;  %v16388_v20 = vld.sshfl [vmem:[%s19430_s14 + $0x2a] sm:$0x33 pattern:$0x76325410] }
  0xff   : > { %15944 = vmatmul.mubr.msk.bf16.vlgmr.msra.gmra.mrb[0].mxu0 %vm462_vm2, %v18748_v47  ;;  %16076 = vmatmul.mubr.msk.bf16.vlgmr.msra.gmra.mrb[0].mxu1 %vm462_vm2, %v18749_v48  ;;  %v20021_v47 = vpop.permute.xlu1 %2295  ;;  %v7448_v48 = vcombine.high %v16373_v14, %v16373_v14 }
 0x100   : > { %1527 = vmatpush1.bf16.msra.mxu0 %v1521_v58  ;;  %3331 = vmatpush1.bf16.msra.mxu1 %v3325_v56 }
 0x101   : > { %1558 = vmatprep.mubr.bf16.mxu0 %v23409_v1  ;;  %3362 = vmatprep.mubr.bf16.mxu1 %v23409_v1  ;;  %v7462_v58 = vrot.slane %v7448_v48, %v19654_v50  ;;  %v7622_v48 = vcombine.high %v16388_v20, %v16388_v20 }
 0x102   : > { %1601 = vmatprep.subr.bf16.mxu0 %v1599_v11  ;;  %3408 = vmatprep.subr.bf16.mxu1 %v3406_v10  ;;  %v15973_v11 = vld.sshfl [vmem:[%s19430_s14 + $0x5a] sm:$0x33 pattern:$0x76325410] }
 0x103   : > { %v20030_v56 = vpop.permute.xlu1 %4187  ;;  %7468 = vrot.lane.b32.xlu0 %v7462_v58, %s19329_s30  ;;  %v1816_v40 = vcombine.high %v15973_v11, %v15973_v11  ;;  %5607 = vrot.lane.b32.xlu1 %v5604_v44, %s19327_s29  ;;  %v18762_v58 = vld [vmem:[%s23395_s1 + $0x90] sm:$0xff]   ;;  %v3700_v44 = vsel %vm757_vm3, %v19831_v43, %v19835_v45  ;;  %v16260_v43 = vld [vmem:[%s19430_s14 + $0x18] sm:$0x3f] }
 0x107   : > { %v20040_v10 = vpop.permute.xlu1 %4274  ;;  %5605 = vrot.lane.b32.xlu0 %v16246_v29, %s19327_s29  ;;  %7547 = vrot.lane.b32.xlu1 %v7544_v9, %s19327_s29 }
 0x10b   : > { %15950 = vmatmul.mubr.msk.bf16.vlgmr.msra.gmra.mrb[0].mxu0 %vm462_vm2, %v18752_v34  ;;  %16082 = vmatmul.mubr.msk.bf16.vlgmr.msra.gmra.mrb[0].mxu1 %vm462_vm2, %v18753_v0  ;;  %v20056_v34 = vpop.permute.xlu0 %4276  ;;  %v20058_v0 = vpop.permute.xlu1 %4272 }
 0x10c   : > { %1602 = vmatpush1.bf16.msra.mxu0 %v1596_v12  ;;  %3409 = vmatpush1.bf16.msra.mxu1 %v3403_v8  ;;  %v1824_v8 = vand.u32 %v1816_v40, %v19435_v5 }
 0x10d   : > { %1633 = vmatprep.mubr.bf16.mxu0 %v23409_v1  ;;  %3440 = vmatprep.mubr.bf16.mxu1 %v23409_v1 }
 0x10e   : > { %1676 = vmatprep.subr.bf16.mxu0 %v1674_v19  ;;  %3486 = vmatprep.subr.bf16.mxu1 %v3484_v16  ;;  %v18760_v19 = vld [vmem:[%s23395_s1 + $0x88] sm:$0xff]  }
 0x10f   : > { %v20065_v12 = vpop.permute.xlu1 %6510  ;;  %v20067_v14 = vpop.permute.xlu0 %6508  ;;  %7545 = vrot.lane.b32.xlu0 %v16382_v61, %s19327_s29  ;;  %5685 = vrot.lane.b32.xlu1 %v7544_v9, %s19327_s29 }
 0x113   : > { %v20073_v36 = vpop.permute.xlu1 %4680  ;;  %v20075_v16 = vpop.permute.xlu0 %4678  ;;  %5683 = vrot.lane.b32.xlu0 %v16382_v61, %s19327_s29  ;;  %7625 = vrot.lane.b32.xlu1 %v7622_v48, %s19327_s29 }
 0x117   : > { %15956 = vmatmul.mubr.msk.bf16.vlgmr.msra.gmra.mrb[0].mxu0 %vm462_vm2, %v18755_v26  ;;  %16088 = vmatmul.mubr.msk.bf16.vlgmr.msra.gmra.mrb[0].mxu1 %vm462_vm2, %v18756_v18  ;;  %v20086_v22 = vpop.permute.xlu1 %6588  ;;  %v20088_v42 = vpop.permute.xlu0 %6586  ;;  %v1821_v26 = vand.u32 %v15973_v11, %v19435_v5  ;;  %v3708_v18 = vand.u32 %v19835_v45, %v19435_v5  ;;  %v18763_v11 = vld [vmem:[%s23395_s1 + $0x80] sm:$0xff]   ;;  %v3786_v45 = vand.u32 %v19868_v57, %v19435_v5 }
 0x118   : > { %1677 = vmatpush1.bf16.msra.mxu0 %v1671_v24  ;;  %3487 = vmatpush1.bf16.msra.mxu1 %v3481_v49  ;;  %v16390_v24 = vld [vmem:[%s19430_s14 + $0x18] sm:$0x3f] }
 0x119   : > { %1708 = vmatprep.mubr.bf16.mxu0 %v23409_v1  ;;  %3518 = vmatprep.mubr.bf16.mxu1 %v23409_v1  ;;  %v7700_v40 = vrot.slane %v16390_v24, %v19654_v50 }
 0x11a   : > { %1751 = vmatprep.subr.bf16.mxu0 %v1749_v25  ;;  %3559 = vmatprep.subr.bf16.mxu1 %v1749_v25 }
 0x11b   : > { %v20097_v49 = vpop.permute.xlu1 %6666  ;;  %v20099_v52 = vpop.permute.xlu0 %6664  ;;  %7623 = vrot.lane.b32.xlu0 %v16388_v20, %s19327_s29  ;;  %5763 = vrot.lane.b32.xlu1 %v7622_v48, %s19327_s29 }
 0x11f   : > { %v20106_v25 = vpop.permute.xlu1 %6890  ;;  %v20108_v29 = vpop.permute.xlu0 %6888  ;;  %5761 = vrot.lane.b32.xlu0 %v16388_v20, %s19327_s29 }
 0x123   : > { %15962 = vmatmul.mubr.msk.bf16.vlgmr.msra.gmra.mrb[0].mxu0 %vm462_vm2, %v18758_v39  ;;  %16094 = vmatmul.mubr.msk.bf16.vlgmr.msra.gmra.mrb[0].mxu1 %vm462_vm2, %v18759_v38  ;;  %v1895_v39 = vsel %vm757_vm3, %v19852_v51, %v19855_v53  ;;  %v7693_v38 = vcombine.high %v16390_v24, %v16390_v24  ;;  %v20125_v61 = vpop.permute.xlu1 %5050  ;;  %v1983_v51 = vand.u32 %v19883_v60, %v19435_v5  ;;  %v18764_v24 = vld [vmem:[%s23395_s1 + $0x98] sm:$0xff]  }
 0x124   : > { %1752 = vmatpush1.bf16.msra.mxu0 %v1746_v4  ;;  %3560 = vmatpush1.bf16.msra.mxu1 %v1746_v4  ;;  %v20127_v4 = vpop.permute.xlu0 %5048  ;;  %v1900_v9 = vand.u32 %v1895_v39, %v19435_v5  ;;  %v5831_v39 = vcombine.high %v16260_v43, %v16260_v43 }
 0x125   : > { %1783 = vmatprep.mubr.bf16.mxu0 %v23409_v1  ;;  %3591 = vmatprep.mubr.bf16.mxu1 %v23409_v1  ;;  %v7707_v53 = vrot.slane %v7693_v38, %v19654_v50 }
 0x126   : > { %1826 = vmatprep.subr.bf16.mxu0 %v1824_v8  ;;  %3632 = vmatprep.subr.bf16.mxu1 %v1824_v8  ;;  %v3705_v8 = vand.u32 %v3700_v44, %v19435_v5  ;;  %v1975_v44 = vsel %vm1974_vm4, %v19873_v27, %v19883_v60  ;;  %v5845_v27 = vrot.slane %v5831_v39, %v19654_v50 }
 0x127   : > { %v20140_v20 = vpop.permute.xlu1 %6968  ;;  %7713 = vrot.lane.b32.xlu1 %v7707_v53, %s19329_s30 }
 0x12f   : > { %15968 = vmatmul.mubr.msk.bf16.vlgmr.msra.gmra.mrb[0].mxu0 %vm462_vm2, %v18760_v19  ;;  %16100 = vmatmul.mubr.msk.bf16.vlgmr.msra.gmra.mrb[0].mxu1 %vm462_vm2, %v18761_v23  ;;  %v7708_v19 = vcombine.high %v7700_v40, %v7700_v40  ;;  %v5838_v23 = vrot.slane %v16260_v43, %v19654_v50 }
 0x130   : > { %1827 = vmatpush1.bf16.msra.mxu0 %v1821_v26  ;;  %3633 = vmatpush1.bf16.msra.mxu1 %v1821_v26  ;;  %v20142_v26 = vpop.permute.xlu0 %6966 }
 0x131   : > { %1858 = vmatprep.mubr.bf16.mxu0 %v23409_v1  ;;  %3664 = vmatprep.mubr.bf16.mxu1 %v23409_v1 }
 0x132   : > { %1905 = vmatprep.subr.bf16.mxu0 %v1903_v28  ;;  %3710 = vmatprep.subr.bf16.mxu1 %v3708_v18  ;;  %v5846_v18 = vcombine.high %v5838_v23, %v5838_v23  ;;  %v20148_v28 = vpop.permute.xlu1 %5128 }
 0x133   : > { %7711 = vrot.lane.b32.xlu0 %v7708_v19, %s19329_s30 }
 0x134   : > { %v20150_v48 = vpop.permute.xlu0 %5126  ;;  %5849 = vrot.lane.b32.xlu1 %v5846_v18, %s19329_s30 }
 0x137   : > { %7709 = vrot.lane.b32.xlu0 %v7700_v40, %s19329_s30 }
 0x138   : > { %5847 = vrot.lane.b32.xlu1 %v5838_v23, %s19329_s30  ;;  %v3856_v23 = vsel %vm757_vm3, %v19888_v63, %v19892_v3  ;;  %v3942_v63 = vand.u32 %v19918_v33, %v19435_v5 }
 0x139   : > { %v3861_v39 = vand.u32 %v3856_v23, %v19435_v5 }
 0x13b   : > { %15974 = vmatmul.mubr.msk.bf16.vlgmr.msra.gmra.mrb[0].mxu0 %vm462_vm2, %v18762_v58  ;;  %16106 = vmatmul.mubr.msk.bf16.vlgmr.msra.gmra.mrb[0].mxu1 %vm462_vm2, %v18763_v11  ;;  %v18765_v58 = vld [vmem:[%s23395_s1 + $0x88] sm:$0xff]   ;;  %v3778_v11 = vsel %vm757_vm3, %v19862_v55, %v19868_v57  ;;  %v3864_v55 = vand.u32 %v19892_v3, %v19435_v5  ;;  %v2062_v57 = vand.u32 %v19903_v7, %v19435_v5 }
 0x13c   : > { %1906 = vmatpush1.bf16.msra.mxu0 %v1900_v9  ;;  %3711 = vmatpush1.bf16.msra.mxu1 %v3705_v8  ;;  %v3783_v38 = vand.u32 %v3778_v11, %v19435_v5  ;;  %v1980_v8 = vand.u32 %v1975_v44, %v19435_v5  ;;  %v16395_v9 = vld [vmem:[%s19430_s14 + $0x1e] sm:$0x3f]  ;;  %v2054_v11 = vsel %vm1974_vm4, %v19899_v6, %v19903_v7  ;;  %v16400_v44 = vld [vmem:[%s19430_s14 + $0x24] sm:$0x3f] }
 0x13d   : > { %1937 = vmatprep.mubr.bf16.mxu0 %v23409_v1  ;;  %3742 = vmatprep.mubr.bf16.mxu1 %v23409_v1  ;;  %v7782_v60 = vcombine.high %v16395_v9, %v16395_v9  ;;  %v7789_v40 = vrot.slane %v16395_v9, %v19654_v50  ;;  %v2141_v3 = vand.u32 %v19933_v37, %v19435_v5  ;;  %v20219_v7 = vld.sshfl [vmem:[%s19430_s14 + $0x30] sm:$0x33 pattern:$0x76325410] }
 0x13e   : > { %1985 = vmatprep.subr.bf16.mxu0 %v1983_v51  ;;  %3788 = vmatprep.subr.bf16.mxu1 %v3786_v45  ;;  %v20169_v45 = vpop.permute.xlu1 %7046  ;;  %v20171_v51 = vpop.permute.xlu0 %7044  ;;  %v7878_v6 = vrot.slane %v16400_v44, %v19654_v50 }
 0x13f   : > { %5851 = vrot.lane.b32.xlu0 %v5845_v27, %s19329_s30  ;;  %v7796_v43 = vrot.slane %v7782_v60, %v19654_v50  ;;  %v7797_v53 = vcombine.high %v7789_v40, %v7789_v40  ;;  %v18769_v60 = vld [vmem:[%s23395_s1 + $0xa8] sm:$0xff]  }
 0x141   : > { %7802 = vrot.lane.b32.xlu1 %v7796_v43, %s19329_s30  ;;  %v18770_v43 = vld [vmem:[%s23395_s1 + $0x98] sm:$0xff]  }
 0x142   : > { %v20186_v19 = vpop.permute.xlu1 %5206  ;;  %v20188_v18 = vpop.permute.xlu0 %5204 }
 0x143   : > { %7800 = vrot.lane.b32.xlu0 %v7797_v53, %s19329_s30  ;;  %v3934_v53 = vsel %vm1974_vm4, %v19912_v13, %v19918_v33 }
 0x144   : > { %v3939_v23 = vand.u32 %v3934_v53, %v19435_v5  ;;  %v4101_v53 = vsel %vm2301_vm5, %v19975_v62, %v19986_v35 }
 0x145   : > { %5928 = vrot.lane.b32.xlu1 %v20219_v7, %s19327_s29  ;;  %v4109_v35 = vand.u32 %v4101_v53, %v19435_v5 }
 0x146   : > { %v20209_v9 = vpop.permute.xlu0 %7122 }
 0x147   : > { %15980 = vmatmul.mubr.msk.bf16.vlgmr.msra.gmra.mrb[0].mxu0 %vm462_vm2, %v18764_v24  ;;  %16112 = vmatmul.mubr.msk.bf16.vlgmr.msra.gmra.mrb[0].mxu1 %vm462_vm2, %v18765_v58  ;;  %v18766_v24 = vld [vmem:[%s23395_s1 + $0xa0] sm:$0xff]   ;;  %v18767_v58 = vld [vmem:[%s23395_s1 + $0x90] sm:$0xff]  }
 0x148   : > { %1986 = vmatpush1.bf16.msra.mxu0 %v1980_v8  ;;  %3789 = vmatpush1.bf16.msra.mxu1 %v3783_v38  ;;  %v2059_v38 = vand.u32 %v2054_v11, %v19435_v5  ;;  %v20207_v8 = vpop.permute.xlu1 %7124 }
 0x149   : > { %2017 = vmatprep.mubr.bf16.mxu0 %v23409_v1  ;;  %3820 = vmatprep.mubr.bf16.mxu1 %v23409_v1 }
 0x14a   : > { %2064 = vmatprep.subr.bf16.mxu0 %v2062_v57  ;;  %3866 = vmatprep.subr.bf16.mxu1 %v3864_v55  ;;  %v7886_v55 = vcombine.high %v7878_v6, %v7878_v6  ;;  %v20228_v27 = vpop.permute.xlu0 %5282 }
 0x14b   : > { %7798 = vrot.lane.b32.xlu0 %v7789_v40, %s19329_s30  ;;  %v2133_v40 = vsel %vm1974_vm4, %v19929_v32, %v19933_v37  ;;  %v4020_v32 = vand.u32 %v19951_v54, %v19435_v5  ;;  %v2220_v37 = vand.u32 %v19968_v30, %v19435_v5 }
 0x14c   : > { %v20226_v57 = vpop.permute.xlu1 %5284  ;;  %7889 = vrot.lane.b32.xlu1 %v7886_v55, %s19329_s30  ;;  %v2138_v11 = vand.u32 %v2133_v40, %v19435_v5  ;;  %v18774_v55 = vld [vmem:[%s23395_s1 + $0xa0] sm:$0xff]   ;;  %v2303_v40 = vsel %vm2301_vm5, %v20004_v21, %v20010_v41 }
 0x14e   : > { %v20253_v33 = vpop.permute.xlu0 %7200 }
 0x150   : > { %v20251_v13 = vpop.permute.xlu1 %7202  ;;  %7887 = vrot.lane.b32.xlu1 %v7878_v6, %s19329_s30  ;;  %v2212_v6 = vsel %vm1974_vm4, %v19958_v59, %v19968_v30  ;;  %v20299_v59 = vld.sshfl [vmem:[%s19430_s14 + $0x3c] sm:$0x33 pattern:$0x76325410] }
 0x151   : > { %v20313_v41 = vcombine.high %v20299_v59, %v20299_v59 }
 0x153   : > { %15985 = vmatmul.mubr.msk.bf16.vlgmr.msra.gmra.mrb[0].mxu0 %vm462_vm2, %v18766_v24  ;;  %16118 = vmatmul.mubr.msk.bf16.vlgmr.msra.gmra.mrb[0].mxu1 %vm462_vm2, %v18767_v58  ;;  %v20244_v24 = vcombine.high %v20219_v7, %v20219_v7  ;;  %v7871_v58 = vcombine.high %v16400_v44, %v16400_v44 }
 0x154   : > { %2065 = vmatpush1.bf16.msra.mxu0 %v2059_v38  ;;  %3867 = vmatpush1.bf16.msra.mxu1 %v3861_v39  ;;  %v20263_v39 = vld.sshfl [vmem:[%s19430_s14 + $0x36] sm:$0x33 pattern:$0x76325410]  ;;  %v20269_v38 = vpop.permute.xlu1 %5362 }
 0x155   : > { %2096 = vmatprep.mubr.bf16.mxu0 %v23409_v1  ;;  %3898 = vmatprep.mubr.bf16.mxu1 %v23409_v1  ;;  %v7885_v44 = vrot.slane %v7871_v58, %v19654_v50 }
 0x156   : > { %2143 = vmatprep.subr.bf16.mxu0 %v2141_v3  ;;  %3944 = vmatprep.subr.bf16.mxu1 %v3942_v63  ;;  %v20271_v63 = vpop.permute.xlu0 %5360  ;;  %v18773_v3 = vld [vmem:[%s23395_s1 + $0xb0] sm:$0xff]  }
 0x157   : > { %5930 = vrot.lane.b32.xlu0 %v20244_v24, %s19327_s29 }
 0x158   : > { %v20301_v30 = vpop.permute.xlu1 %7290 }
 0x15a   : > { %v20303_v58 = vpop.permute.xlu0 %7288 }
 0x15b   : > { %7891 = vrot.lane.b32.xlu0 %v7885_v44, %s19329_s30  ;;  %v18776_v44 = vld [vmem:[%s23395_s1 + $0xb8] sm:$0xff]  }
 0x15f   : > { %15991 = vmatmul.mubr.msk.bf16.vlgmr.msra.gmra.mrb[0].mxu0 %vm462_vm2, %v18769_v60  ;;  %16124 = vmatmul.mubr.msk.bf16.vlgmr.msra.gmra.mrb[0].mxu1 %vm462_vm2, %v18770_v43  ;;  %v4012_v60 = vsel %vm1974_vm4, %v19937_v46, %v19951_v54  ;;  %v4396_v43 = vcombine.high %v20263_v39, %v20263_v39  ;;  %v2217_v54 = vand.u32 %v2212_v6, %v19435_v5  ;;  %v20345_v6 = vld.sshfl [vmem:[%s19430_s14 + $0x42] sm:$0x33 pattern:$0x76325410] }
 0x160   : > { %2144 = vmatpush1.bf16.msra.mxu0 %v2138_v11  ;;  %3945 = vmatpush1.bf16.msra.mxu1 %v3939_v23  ;;  %v4017_v46 = vand.u32 %v4012_v60, %v19435_v5  ;;  %v2311_v23 = vand.u32 %v2303_v40, %v19435_v5  ;;  %v20319_v11 = vpop.permute.xlu1 %5448  ;;  %v4190_v60 = vsel %vm2301_vm5, %v20028_v31, %v20030_v56 }
 0x161   : > { %2175 = vmatprep.mubr.bf16.mxu0 %v23409_v1  ;;  %3976 = vmatprep.mubr.bf16.mxu1 %v23409_v1  ;;  %v4404_v56 = vand.u32 %v4396_v43, %v19435_v5  ;;  %v6372_v40 = vcombine.high %v20345_v6, %v20345_v6 }
 0x162   : > { %2222 = vmatprep.subr.bf16.mxu0 %v2220_v37  ;;  %4022 = vmatprep.subr.bf16.mxu1 %v4020_v32  ;;  %v20321_v32 = vpop.permute.xlu0 %7286  ;;  %v4100_v37 = vsel %vm2301_vm5, %v19994_v15, %v19975_v62 }
 0x163   : > { %6008 = vrot.lane.b32.xlu1 %v4396_v43, %s19327_s29  ;;  %6006 = vrot.lane.b32.xlu0 %v20263_v39, %s19327_s29  ;;  %v4106_v62 = vand.u32 %v4100_v37, %v19435_v5  ;;  %v4189_v37 = vsel %vm2301_vm5, %v20045_v17, %v20028_v31  ;;  %v6380_v2 = vand.u32 %v6372_v40, %v19435_v5 }
 0x164   : > { %v20347_v53 = vpop.permute.xlu1 %5446 }
 0x167   : > { %7970 = vrot.lane.b32.xlu1 %v20313_v41, %s19327_s29  ;;  %7968 = vrot.lane.b32.xlu0 %v20299_v59, %s19327_s29 }
 0x168   : > { %v20363_v43 = vpop.permute.xlu1 %7379 }
 0x16b   : > { %15997 = vmatmul.mubr.msk.bf16.vlgmr.msra.gmra.mrb[0].mxu0 %vm462_vm2, %v18773_v3  ;;  %16130 = vmatmul.mubr.msk.bf16.vlgmr.msra.gmra.mrb[0].mxu1 %vm462_vm2, %v18774_v55  ;;  %v18777_v3 = vld [vmem:[%s23395_s1 + $0xa8] sm:$0xff]   ;;  %v2302_v55 = vsel %vm2301_vm5, %v20021_v47, %v20004_v21  ;;  %v20349_v21 = vpop.permute.xlu0 %5450  ;;  %v4198_v47 = vand.u32 %v4190_v60, %v19435_v5 }
 0x16c   : > { %4023 = vmatpush1.bf16.msra.mxu1 %v4017_v46  ;;  %2223 = vmatpush1.bf16.msra.mxu0 %v2217_v54  ;;  %v2308_v15 = vand.u32 %v2302_v55, %v19435_v5  ;;  %v16417_v46 = vld [vmem:[%s19430_s14 + $0x30] sm:$0x3f] }
 0x16d   : > { %2254 = vmatprep.mubr.bf16.mxu0 %v23409_v1  ;;  %4054 = vmatprep.mubr.bf16.mxu1 %v23409_v1  ;;  %v8116_v55 = vcombine.high %v16417_v46, %v16417_v46  ;;  %v8123_v60 = vrot.slane %v16417_v46, %v19654_v50 }
 0x16e   : > { %4111 = vmatprep.subr.bf16.mxu1 %v4109_v35  ;;  %2313 = vmatprep.subr.bf16.mxu0 %v2311_v23  ;;  %v18778_v35 = vld [vmem:[%s23395_s1 + $0xb0] sm:$0xff]   ;;  %v18779_v23 = vld [vmem:[%s23395_s1 + $0xc0] sm:$0xff]  }
 0x16f   : > { %6086 = vrot.lane.b32.xlu1 %v20313_v41, %s19327_s29  ;;  %6084 = vrot.lane.b32.xlu0 %v20299_v59, %s19327_s29  ;;  %v20365_v54 = vpop.permute.xlu0 %7377  ;;  %v8131_v46 = vcombine.high %v8123_v60, %v8123_v60 }
 0x173   : > { %8048 = vrot.lane.b32.xlu1 %v6372_v40, %s19327_s29  ;;  %8046 = vrot.lane.b32.xlu0 %v20345_v6, %s19327_s29  ;;  %v20389_v31 = vpop.permute.xlu0 %7375 }
 0x177   : > { %16003 = vmatmul.mubr.msk.bf16.vlgmr.msra.gmra.mrb[0].mxu0 %vm462_vm2, %v18776_v44  ;;  %16136 = vmatmul.mubr.msk.bf16.vlgmr.msra.gmra.mrb[0].mxu1 %vm462_vm2, %v18777_v3  ;;  %v16289_v44 = vld [vmem:[%s19430_s14 + $0x30] sm:$0x3f]  ;;  %v4279_v3 = vsel %vm2301_vm5, %v20040_v10, %v20056_v34  ;;  %v4470_v34 = vand.u32 %v20244_v24, %v19435_v5  ;;  %v16422_v24 = vld [vmem:[%s19430_s14 + $0x36] sm:$0x3f] }
 0x178   : > { %4112 = vmatpush1.bf16.msra.mxu1 %v4106_v62  ;;  %2314 = vmatpush1.bf16.msra.mxu0 %v2308_v15  ;;  %v4195_v62 = vand.u32 %v4189_v37, %v19435_v5  ;;  %v4401_v15 = vand.u32 %v20263_v39, %v19435_v5  ;;  %v4287_v17 = vand.u32 %v4279_v3, %v19435_v5  ;;  %v18780_v39 = vld [vmem:[%s23395_s1 + $0x8] sm:$0xff]   ;;  %v20408_v3 = vpop.permute.xlu0 %5529 }
 0x179   : > { %2345 = vmatprep.mubr.bf16.mxu0 %v23409_v1  ;;  %4143 = vmatprep.mubr.bf16.mxu1 %v23409_v1  ;;  %v6239_v37 = vrot.slane %v16289_v44, %v19654_v50 }
 0x17a   : > { %4200 = vmatprep.subr.bf16.mxu1 %v4198_v47  ;;  %4406 = vmatprep.subr.bf16.mxu0 %v4404_v56  ;;  %v20387_v47 = vpop.permute.xlu1 %5527  ;;  %v8130_v56 = vrot.slane %v8116_v55, %v19654_v50  ;;  %v4467_v55 = vand.u32 %v20219_v7, %v19435_v5 }
 0x17b   : > { %6164 = vrot.lane.b32.xlu1 %v6372_v40, %s19327_s29  ;;  %6162 = vrot.lane.b32.xlu0 %v20345_v6, %s19327_s29  ;;  %v18784_v40 = vld [vmem:[%s23395_s1] sm:$0xff]  }
 0x17f   : > { %8136 = vrot.lane.b32.xlu1 %v8130_v56, %s19329_s30  ;;  %8134 = vrot.lane.b32.xlu0 %v8131_v46, %s19329_s30  ;;  %v16427_v56 = vld [vmem:[%s19430_s14 + $0x3c] sm:$0x3f]  ;;  %v8205_v46 = vcombine.high %v16422_v24, %v16422_v24 }
 0x183   : > { %16140 = vmatmul.mubr.msk.bf16.vlgmr.msra.gmra.mrb[0].mxu1 %vm462_vm2, %v18778_v35  ;;  %16007 = vmatmul.mubr.msk.bf16.vlgmr.msra.gmra.mrb[0].mxu0 %vm462_vm2, %v18779_v23  ;;  %v6247_v35 = vcombine.high %v6239_v37, %v6239_v37  ;;  %v20406_v23 = vpop.permute.xlu1 %7466 }
 0x184   : > { %4201 = vmatpush1.bf16.msra.mxu1 %v4195_v62  ;;  %4407 = vmatpush1.bf16.msra.mxu0 %v4401_v15  ;;  %v18782_v62 = vld [vmem:[%s23395_s1 + $0xb8] sm:$0xff]   ;;  %v4278_v15 = vsel %vm2301_vm5, %v20058_v0, %v20040_v10  ;;  %v8212_v0 = vrot.slane %v16422_v24, %v19654_v50 }
 0x185   : > { %4438 = vmatprep.mubr.bf16.mxu0 %v23409_v1  ;;  %4232 = vmatprep.mubr.bf16.mxu1 %v23409_v1  ;;  %v4284_v7 = vand.u32 %v4278_v15, %v19435_v5  ;;  %v18786_v15 = vld [vmem:[%s23395_s1 + $0xc0] sm:$0xff]  }
 0x186   : > { %4289 = vmatprep.subr.bf16.mxu1 %v4287_v17  ;;  %4472 = vmatprep.subr.bf16.mxu0 %v4470_v34  ;;  %v4539_v17 = vand.u32 %v20313_v41, %v19435_v5  ;;  %v6232_v34 = vcombine.high %v16289_v44, %v16289_v44  ;;  %v20431_v44 = vpop.permute.xlu0 %7468 }
 0x187   : > { %6250 = vrot.lane.b32.xlu1 %v6247_v35, %s19329_s30  ;;  %8132 = vrot.lane.b32.xlu0 %v8123_v60, %s19329_s30  ;;  %v20429_v41 = vpop.permute.xlu1 %7464  ;;  %v8301_v35 = vrot.slane %v16427_v56, %v19654_v50  ;;  %v8220_v60 = vcombine.high %v8212_v0, %v8212_v0 }
 0x188   : > { %v6246_v10 = vrot.slane %v6232_v34, %v19654_v50  ;;  %v8294_v34 = vcombine.high %v16427_v56, %v16427_v56  ;;  %v20467_v56 = vld [vmem:[%s23396_s2 + $0x8] sm:$0xff] }
 0x189   : > { %v8309_v24 = vcombine.high %v8301_v35, %v8301_v35 }
 0x18b   : > { %16157 = vmatmul.mubr.msk.bf16.vlgmr.msra.gmra.mrb[4].mxu0 %vm462_vm2, %v18780_v39  ;;  %6248 = vrot.lane.b32.xlu1 %v6239_v37, %s19329_s30  ;;  %v8219_v39 = vrot.slane %v8205_v46, %v19654_v50  ;;  %v20445_v37 = vpop.permute.xlu0 %5605  ;;  %v6377_v46 = vand.u32 %v20345_v6, %v19435_v5  ;;  %v2360_v6 = vld [vmem:[%s23396_s2] sm:$0xff] }
 0x18c   : > { %4473 = vmatpush1.bf16.msra.mxu0 %v4467_v55  ;;  %4504 = vmatprep.mubr.bf16.mxu0 %v23409_v1  ;;  %v20443_v55 = vpop.permute.xlu1 %5607 }
 0x18d   : > { %4541 = vmatprep.subr.bf16.mxu0 %v4539_v17  ;;  %6252 = vrot.lane.b32.xlu0 %v6246_v10, %s19329_s30 }
 0x18f   : > { %16145 = vmatmul.mubr.msk.bf16.vlgmr.msra.gmra.mrb[0].mxu1 %vm462_vm2, %v18782_v62  ;;  %8225 = vrot.lane.b32.xlu1 %v8219_v39, %s19329_s30  ;;  %v4536_v62 = vand.u32 %v20299_v59, %v19435_v5  ;;  %v8308_v59 = vrot.slane %v8294_v34, %v19654_v50  ;;  %v20462_v10 = vpop.permute.xlu0 %7545  ;;  %v18788_v50 = vld [vmem:[%s23395_s1 + $0x8] sm:$0xff]  }
 0x190   : > { %4290 = vmatpush1.bf16.msra.mxu1 %v4284_v7  ;;  %4321 = vmatprep.mubr.bf16.mxu1 %v23409_v1  ;;  %v20460_v7 = vpop.permute.xlu1 %7547 }
 0x191   : > { %6382 = vmatprep.subr.bf16.mxu1 %v6380_v2  ;;  %8223 = vrot.lane.b32.xlu0 %v8220_v60, %s19329_s30  ;;  %v20499_v60 = vld [vmem:[%s23397_s3 + $0x8] sm:$0xff] }
 0x192   : > { %23415 = vst [vmem:[#allocation5_spill] sm:$0xff] %v20499_v60 }
 0x193   : > { %8312 = vrot.lane.b32.xlu1 %v8309_v24, %s19329_s30  ;;  %v20485_v39 = vpop.permute.xlu0 %5683  ;;  %v16183_v24 = vld.sshfl [vmem:[%s19430_s14 + $0x48] sm:$0x33 pattern:$0x76325410] }
 0x195   : > { %8221 = vrot.lane.b32.xlu0 %v8212_v0, %s19329_s30  ;;  %v20483_v0 = vpop.permute.xlu1 %5685 }
 0x197   : > { %16160 = vmatmul.mubr.msk.bf16.vlgmr.msra.gmra.mrb[4].mxu0 %vm462_vm2, %v18784_v40  ;;  %8310 = vrot.lane.b32.xlu1 %v8301_v35, %s19329_s30  ;;  %v6520_v35 = vand.u32 %v20065_v12, %v19435_v5  ;;  %v20494_v40 = vld [vmem:[%s23397_s3] sm:$0xff]  ;;  %v20508_v34 = vpop.permute.xlu0 %7623 }
 0x198   : > { %4542 = vmatpush1.bf16.msra.mxu0 %v4536_v62  ;;  %4573 = vmatprep.mubr.bf16.mxu0 %v23409_v1  ;;  %23414 = vst [vmem:[#allocation4_spill] sm:$0xff] %v20494_v40  ;;  %23416 = vst [vmem:[#allocation6_spill] sm:$0xff] %v20508_v34 }
 0x199   : > { %4614 = vmatprep.subr.bf16.mxu0 %v6380_v2  ;;  %v18787_v2 = vld [vmem:[%s23395_s1 + $0x10] sm:$0xff]   ;;  %8314 = vrot.lane.b32.xlu0 %v8308_v59, %s19329_s30  ;;  %v18790_v59 = vld [vmem:[%s23395_s1 + $0x18] sm:$0xff]  }
 0x19b   : > { %16150 = vmatmul.mubr.msk.bf16.vlgmr.msra.gmra.mrb[0].mxu1 %vm462_vm2, %v18786_v15  ;;  %2369 = vperm.xlu1 %18723, %v20467_v56   ;;  %v20506_v15 = vpop.permute.xlu1 %7625 }
 0x19c   : > { %6383 = vmatpush1.bf16.msra.mxu1 %v6377_v46  ;;  %6414 = vmatprep.mubr.bf16.mxu1 %v23409_v1 }
 0x19d   : > { %6448 = vmatprep.subr.bf16.mxu1 %v4539_v17  ;;  %2364 = vperm.xlu0 %18722, %v2360_v6   ;;  %v4690_v17 = vand.u32 %v20073_v36, %v19435_v5 }
 0x19f   : > { %2380 = vperm.xlu1 %18723, %v20494_v40  }
 0x1a1   : > { %2385 = vperm.xlu0 %18722, %v20499_v60  }
 0x1a3   : > { %16166 = vmatmul.mubr.msk.bf16.vlgmr.msra.gmra.mrb[4].mxu0 %vm462_vm2, %v18787_v2  ;;  %16300 = vmatmul.mubr.msk.bf16.vlgmr.msra.gmra.mrb[4].mxu1 %vm462_vm2, %v18788_v50  ;;  %v18791_v2 = vld [vmem:[%s23395_s1] sm:$0xff]   ;;  %v4755_v50 = vcombine.high %v16183_v24, %v16183_v24 }
 0x1a4   : > { %6449 = vmatpush1.bf16.msra.mxu1 %v4536_v62  ;;  %4615 = vmatpush1.bf16.msra.mxu0 %v6377_v46  ;;  %v6512_v62 = vsel %vm757_vm3, %v20067_v14, %v20065_v12  ;;  %v4682_v46 = vsel %vm757_vm3, %v20075_v16, %v20073_v36  ;;  %v20527_v12 = vpop.permute.xlu0 %5761  ;;  %v6598_v16 = vand.u32 %v20086_v22, %v19435_v5 }
 0x1a5   : > { %4646 = vmatprep.mubr.bf16.mxu0 %v23409_v1  ;;  %6480 = vmatprep.mubr.bf16.mxu1 %v23409_v1  ;;  %23417 = vst [vmem:[#allocation7_spill] sm:$0xff] %v20527_v12  ;;  %v6517_v14 = vand.u32 %v6512_v62, %v19435_v5  ;;  %v4687_v36 = vand.u32 %v4682_v46, %v19435_v5  ;;  %v16189_v12 = vld.sshfl [vmem:[%s19430_s14 + $0x4e] sm:$0x33 pattern:$0x76325410] }
 0x1a6   : > { %4692 = vmatprep.subr.bf16.mxu0 %v4690_v17  ;;  %6522 = vmatprep.subr.bf16.mxu1 %v6520_v35  ;;  %v20525_v35 = vpop.permute.xlu1 %5763  ;;  %v4763_v17 = vand.u32 %v4755_v50, %v19435_v5  ;;  %v6590_v46 = vsel %vm757_vm3, %v20088_v42, %v20086_v22  ;;  %v4828_v50 = vcombine.high %v16189_v12, %v16189_v12 }
 0x1a7   : > { %4340 = vperm.xlu1 %18723, %v2360_v6   ;;  %4345 = vperm.xlu0 %18722, %v20467_v56   ;;  %v4760_v22 = vand.u32 %v16183_v24, %v19435_v5  ;;  %v6676_v42 = vand.u32 %v20097_v49, %v19435_v5  ;;  %v6668_v24 = vsel %vm757_vm3, %v20099_v52, %v20097_v49  ;;  %v23418_v52 = vmov 0  }
 0x1a8   : > { %v20541_v62 = vpop.permute.xlu0 %7711 }
 0x1aa   : > { %v20539_v34 = vpop.permute.xlu1 %7713 }
 0x1ab   : > { %4356 = vperm.xlu1 %18723, %v20494_v40   ;;  %4361 = vperm.xlu0 %18722, %v20499_v60   ;;  %v16201_v60 = vld.sshfl [vmem:[%s19430_s14 + $0x5a] sm:$0x33 pattern:$0x76325410] }
 0x1af   : > { %16172 = vmatmul.mubr.msk.bf16.vlgmr.msra.gmra.mrb[4].mxu0 %vm462_vm2, %v18790_v59  ;;  %16303 = vmatmul.mubr.msk.bf16.vlgmr.msra.gmra.mrb[4].mxu1 %vm462_vm2, %v18791_v2  ;;  %v18792_v59 = vld [vmem:[%s23395_s1 + $0x20] sm:$0xff]   ;;  %v18793_v2 = vld [vmem:[%s23395_s1 + $0x10] sm:$0xff]  }
 0x1b0   : > { %6523 = vmatpush1.bf16.msra.mxu1 %v6517_v14  ;;  %4693 = vmatpush1.bf16.msra.mxu0 %v4687_v36  ;;  %v20554_v14 = vpop.permute.xlu1 %5849  ;;  %v20556_v36 = vpop.permute.xlu0 %7709 }
 0x1b1   : > { %4724 = vmatprep.mubr.bf16.mxu0 %v23409_v1  ;;  %6554 = vmatprep.mubr.bf16.mxu1 %v23409_v1 }
 0x1b2   : > { %4765 = vmatprep.subr.bf16.mxu0 %v4763_v17  ;;  %6600 = vmatprep.subr.bf16.mxu1 %v6598_v16  ;;  %v6595_v16 = vand.u32 %v6590_v46, %v19435_v5  ;;  %v4836_v17 = vand.u32 %v4828_v50, %v19435_v5 }
 0x1b3   : > { %6316 = vperm.xlu1 %18723, %v2360_v6   ;;  %6321 = vperm.xlu0 %18722, %v20467_v56   ;;  %v16195_v56 = vld.sshfl [vmem:[%s19430_s14 + $0x54] sm:$0x33 pattern:$0x76325410] }
 0x1b4   : > { %v20569_v6 = vpop.permute.xlu1 %5847  ;;  %v20571_v46 = vpop.permute.xlu0 %5851 }
 0x1b8   : > { %v7803_v50 = vpop.permute.xlu1 %7802 }
 0x1bb   : > { %16178 = vmatmul.mubr.msk.bf16.vlgmr.msra.gmra.mrb[4].mxu0 %vm462_vm2, %v18792_v59  ;;  %16309 = vmatmul.mubr.msk.bf16.vlgmr.msra.gmra.mrb[4].mxu1 %vm462_vm2, %v18793_v2  ;;  %v18796_v59 = vld [vmem:[%s23395_s1 + $0x28] sm:$0xff]   ;;  %v18797_v2 = vld [vmem:[%s23395_s1 + $0x18] sm:$0xff]  }
 0x1bc   : > { %6601 = vmatpush1.bf16.msra.mxu1 %v6595_v16  ;;  %4766 = vmatpush1.bf16.msra.mxu0 %v4760_v22  ;;  %v7801_v16 = vpop.permute.xlu0 %7800  ;;  %v4901_v22 = vcombine.high %v16195_v56, %v16195_v56  ;;  %v5929_v40 = vpop.permute.xlu1 %5928 }
 0x1bd   : > { %4797 = vmatprep.mubr.bf16.mxu0 %v23409_v1  ;;  %6632 = vmatprep.mubr.bf16.mxu1 %v23409_v1  ;;  %v20583_v1 = vsel %vm2301_vm5, %v7801_v16, %v7803_v50 }
 0x1be   : > { %4838 = vmatprep.subr.bf16.mxu0 %v4836_v17  ;;  %6678 = vmatprep.subr.bf16.mxu1 %v6676_v42  ;;  %v6673_v42 = vand.u32 %v6668_v24, %v19435_v5  ;;  %v4833_v17 = vand.u32 %v16189_v12, %v19435_v5  ;;  %v4909_v49 = vand.u32 %v4901_v22, %v19435_v5  ;;  %v18800_v12 = vld [vmem:[%s23395_s1 + $0x30] sm:$0xff]  }
 0x1bf   : > { %v4974_v22 = vcombine.high %v16201_v60, %v16201_v60 }
 0x1c0   : > { %v7799_v50 = vpop.permute.xlu0 %7798 }
 0x1c1   : > { %v20594_v24 = vsel %vm2301_vm5, %v7799_v50, %v7801_v16  ;;  %v4982_v16 = vand.u32 %v4974_v22, %v19435_v5 }
 0x1c2   : > { %23419 = vst [vmem:[#allocation8_spill] sm:$0xff] %v20594_v24 }
 0x1c7   : > { %16184 = vmatmul.mubr.msk.bf16.vlgmr.msra.gmra.mrb[4].mxu0 %vm462_vm2, %v18796_v59  ;;  %16315 = vmatmul.mubr.msk.bf16.vlgmr.msra.gmra.mrb[4].mxu1 %vm462_vm2, %v18797_v2  ;;  %v18801_v59 = vld [vmem:[%s23395_s1 + $0x20] sm:$0xff]  }
 0x1c8   : > { %6679 = vmatpush1.bf16.msra.mxu1 %v6673_v42  ;;  %4839 = vmatpush1.bf16.msra.mxu0 %v4833_v17  ;;  %v7890_v17 = vpop.permute.xlu1 %7889 }
 0x1c9   : > { %4870 = vmatprep.mubr.bf16.mxu0 %v23418_v52  ;;  %6710 = vmatprep.mubr.bf16.mxu1 %v23418_v52  ;;  %v20602_v2 = vpop.permute.xlu0 %5930 }
 0x1ca   : > { %4911 = vmatprep.subr.bf16.mxu0 %v4909_v49  ;;  %6751 = vmatprep.subr.bf16.mxu1 %v4909_v49  ;;  %v20606_v42 = vsel %vm1974_vm4, %v5929_v40, %v20602_v2  ;;  %v6746_v49 = vand.u32 %v16195_v56, %v19435_v5 }
 0x1cc   : > { %v7888_v50 = vpop.permute.xlu1 %7887 }
 0x1cd   : > { %v7892_v24 = vpop.permute.xlu0 %7891  ;;  %v20615_v40 = vsel %vm2301_vm5, %v7888_v50, %v7890_v17  ;;  %v6819_v50 = vand.u32 %v16201_v60, %v19435_v5 }
 0x1ce   : > { %23420 = vst [vmem:[#allocation9_spill] sm:$0xff] %v20615_v40  ;;  %v20618_v56 = vsel %vm2301_vm5, %v7890_v17, %v7892_v24  ;;  %v6900_v24 = vand.u32 %v20106_v25, %v19435_v5  ;;  %v5060_v17 = vand.u32 %v20125_v61, %v19435_v5 }
 0x1d3   : > { %16190 = vmatmul.mubr.msk.bf16.vlgmr.msra.gmra.mrb[4].mxu0 %vm462_vm2, %v18800_v12  ;;  %16321 = vmatmul.mubr.msk.bf16.vlgmr.msra.gmra.mrb[4].mxu1 %vm462_vm2, %v18801_v59 }
 0x1d4   : > { %6752 = vmatpush1.bf16.msra.mxu1 %v6746_v49  ;;  %4912 = vmatpush1.bf16.msra.mxu0 %v6746_v49  ;;  %v18802_v49 = vld [vmem:[%s23395_s1 + $0x38] sm:$0xff]  }
 0x1d5   : > { %4943 = vmatprep.mubr.bf16.mxu0 %v23418_v52  ;;  %6783 = vmatprep.mubr.bf16.mxu1 %v23418_v52  ;;  %v20620_v22 = vpop.permute.xlu1 %6008  ;;  %v6007_v12 = vpop.permute.xlu0 %6006 }
 0x1d6   : > { %4984 = vmatprep.subr.bf16.mxu0 %v4982_v16  ;;  %6824 = vmatprep.subr.bf16.mxu1 %v4982_v16  ;;  %23421 = vst [vmem:[#allocation10_spill] sm:$0xff] %v20620_v22  ;;  %v20624_v59 = vsel %vm1974_vm4, %v6007_v12, %v20620_v22  ;;  %v18803_v16 = vld [vmem:[%s23395_s1 + $0x28] sm:$0xff]  }
 0x1d7   : > { %23422 = vst [vmem:[#allocation11_spill] sm:$0xff] %v20624_v59 }
 0x1d9   : > { %v20641_v12 = vpop.permute.xlu1 %7970  ;;  %v7969_v59 = vpop.permute.xlu0 %7968 }
 0x1da   : > { %v20645_v60 = vsel %vm1974_vm4, %v7969_v59, %v20641_v12  ;;  %v18804_v59 = vld [vmem:[%s23395_s1 + $0x40] sm:$0xff]  }
 0x1df   : > { %16196 = vmatmul.mubr.msk.bf16.vlgmr.msra.gmra.mrb[4].mxu0 %vm462_vm2, %v18802_v49  ;;  %16327 = vmatmul.mubr.msk.bf16.vlgmr.msra.gmra.mrb[4].mxu1 %vm462_vm2, %v18803_v16  ;;  %v6892_v49 = vsel %vm757_vm3, %v20108_v29, %v20106_v25  ;;  %v5052_v16 = vsel %vm757_vm3, %v20127_v4, %v20125_v61  ;;  %v6978_v61 = vand.u32 %v20140_v20, %v19435_v5 }
 0x1e0   : > { %6825 = vmatpush1.bf16.msra.mxu1 %v6819_v50  ;;  %4985 = vmatpush1.bf16.msra.mxu0 %v6819_v50  ;;  %v6897_v25 = vand.u32 %v6892_v49, %v19435_v5  ;;  %v5057_v29 = vand.u32 %v5052_v16, %v19435_v5  ;;  %v5138_v4 = vand.u32 %v20148_v28, %v19435_v5 }
 0x1e1   : > { %5016 = vmatprep.mubr.bf16.mxu0 %v23418_v52  ;;  %6856 = vmatprep.mubr.bf16.mxu1 %v23418_v52  ;;  %v20653_v50 = vpop.permute.xlu1 %6086  ;;  %v6085_v40 = vpop.permute.xlu0 %6084  ;;  %v6970_v16 = vsel %vm757_vm3, %v20142_v26, %v20140_v20 }
 0x1e2   : > { %5062 = vmatprep.subr.bf16.mxu0 %v5060_v17  ;;  %6902 = vmatprep.subr.bf16.mxu1 %v6900_v24  ;;  %v20657_v22 = vsel %vm1974_vm4, %v6085_v40, %v20653_v50  ;;  %v18805_v24 = vld [vmem:[%s23395_s1 + $0x30] sm:$0xff]   ;;  %v6975_v20 = vand.u32 %v6970_v16, %v19435_v5 }
 0x1e5   : > { %v20675_v40 = vpop.permute.xlu1 %8048  ;;  %v8047_v17 = vpop.permute.xlu0 %8046 }
 0x1e6   : > { %v20679_v49 = vsel %vm1974_vm4, %v8047_v17, %v20675_v40 }
 0x1eb   : > { %16202 = vmatmul.mubr.msk.bf16.vlgmr.msra.gmra.mrb[4].mxu0 %vm462_vm2, %v18804_v59  ;;  %16333 = vmatmul.mubr.msk.bf16.vlgmr.msra.gmra.mrb[4].mxu1 %vm462_vm2, %v18805_v24  ;;  %v5130_v59 = vsel %vm1974_vm4, %v20150_v48, %v20148_v28  ;;  %v7056_v28 = vand.u32 %v20169_v45, %v19435_v5  ;;  %v5216_v48 = vand.u32 %v20186_v19, %v19435_v5 }
 0x1ec   : > { %6903 = vmatpush1.bf16.msra.mxu1 %v6897_v25  ;;  %5063 = vmatpush1.bf16.msra.mxu0 %v5057_v29  ;;  %v5135_v26 = vand.u32 %v5130_v59, %v19435_v5 }
 0x1ed   : > { %5094 = vmatprep.mubr.bf16.mxu0 %v23418_v52  ;;  %6934 = vmatprep.mubr.bf16.mxu1 %v23418_v52  ;;  %v20687_v24 = vpop.permute.xlu1 %6164  ;;  %v6163_v25 = vpop.permute.xlu0 %6162 }
 0x1ee   : > { %5140 = vmatprep.subr.bf16.mxu0 %v5138_v4  ;;  %6980 = vmatprep.subr.bf16.mxu1 %v6978_v61  ;;  %v20691_v29 = vsel %vm1974_vm4, %v6163_v25, %v20687_v24  ;;  %v18806_v61 = vld [vmem:[%s23395_s1 + $0x48] sm:$0xff]   ;;  %v18807_v4 = vld [vmem:[%s23395_s1 + $0x38] sm:$0xff]   ;;  %v7048_v25 = vsel %vm757_vm3, %v20171_v51, %v20169_v45 }
 0x1f1   : > { %v8137_v17 = vpop.permute.xlu1 %8136  ;;  %v8135_v16 = vpop.permute.xlu0 %8134 }
 0x1f2   : > { %v20710_v59 = vsel %vm2301_vm5, %v8135_v16, %v8137_v17 }
 0x1f3   : > { %23423 = vst [vmem:[#allocation12_spill] sm:$0xff] %v20710_v59 }
 0x1f7   : > { %16208 = vmatmul.mubr.msk.bf16.vlgmr.msra.gmra.mrb[4].mxu0 %vm462_vm2, %v18806_v61  ;;  %16339 = vmatmul.mubr.msk.bf16.vlgmr.msra.gmra.mrb[4].mxu1 %vm462_vm2, %v18807_v4  ;;  %v5208_v61 = vsel %vm1974_vm4, %v20188_v18, %v20186_v19  ;;  %v7134_v19 = vand.u32 %v20207_v8, %v19435_v5  ;;  %v5294_v18 = vand.u32 %v20226_v57, %v19435_v5 }
 0x1f8   : > { %6981 = vmatpush1.bf16.msra.mxu1 %v6975_v20  ;;  %5141 = vmatpush1.bf16.msra.mxu0 %v5135_v26  ;;  %v18808_v20 = vld [vmem:[%s23395_s1 + $0x50] sm:$0xff]   ;;  %v18809_v26 = vld [vmem:[%s23395_s1 + $0x40] sm:$0xff]   ;;  %v5213_v17 = vand.u32 %v5208_v61, %v19435_v5 }
 0x1f9   : > { %5172 = vmatprep.mubr.bf16.mxu0 %v23418_v52  ;;  %7012 = vmatprep.mubr.bf16.mxu1 %v23418_v52  ;;  %v6251_v4 = vpop.permute.xlu1 %6250 }
 0x1fa   : > { %5218 = vmatprep.subr.bf16.mxu0 %v5216_v48  ;;  %7058 = vmatprep.subr.bf16.mxu1 %v7056_v28  ;;  %v8133_v28 = vpop.permute.xlu0 %8132  ;;  %v7053_v48 = vand.u32 %v7048_v25, %v19435_v5 }
 0x1fb   : > { %v20727_v45 = vsel %vm2301_vm5, %v8133_v28, %v8135_v16 }
 0x1fd   : > { %v6249_v51 = vpop.permute.xlu1 %6248 }
 0x1fe   : > { %v20734_v59 = vsel %vm2301_vm5, %v6249_v51, %v6251_v4 }
 0x1ff   : > { %v6253_v25 = vpop.permute.xlu0 %6252 }
 0x200   : > { %v20739_v16 = vsel %vm2301_vm5, %v6251_v4, %v6253_v25  ;;  %v5286_v4 = vsel %vm1974_vm4, %v20228_v27, %v20226_v57  ;;  %v7212_v57 = vand.u32 %v20251_v13, %v19435_v5  ;;  %v5372_v27 = vand.u32 %v20269_v38, %v19435_v5 }
 0x201   : > { %v8226_v61 = vpop.permute.xlu1 %8225  ;;  %v5291_v25 = vand.u32 %v5286_v4, %v19435_v5  ;;  %v7204_v4 = vsel %vm1974_vm4, %v20253_v33, %v20251_v13  ;;  %v18813_v13 = vld [vmem:[%s23395_s1 + $0x50] sm:$0xff]  }
 0x202   : > { %v7209_v33 = vand.u32 %v7204_v4, %v19435_v5  ;;  %v18816_v4 = vld [vmem:[%s23395_s1 + $0x70] sm:$0xff]  }
 0x203   : > { %16213 = vmatmul.mubr.msk.bf16.vlgmr.msra.gmra.mrb[4].mxu0 %vm462_vm2, %v18808_v20  ;;  %16345 = vmatmul.mubr.msk.bf16.vlgmr.msra.gmra.mrb[4].mxu1 %vm462_vm2, %v18809_v26  ;;  %v8224_v28 = vpop.permute.xlu0 %8223  ;;  %v7126_v20 = vsel %vm1974_vm4, %v20209_v9, %v20207_v8 }
 0x204   : > { %7059 = vmatpush1.bf16.msra.mxu1 %v7053_v48  ;;  %5219 = vmatpush1.bf16.msra.mxu0 %v5213_v17  ;;  %v20744_v51 = vsel %vm2301_vm5, %v8224_v28, %v8226_v61  ;;  %v18810_v48 = vld [vmem:[%s23395_s1 + $0x58] sm:$0xff]   ;;  %v18811_v17 = vld [vmem:[%s23395_s1 + $0x48] sm:$0xff]  }
 0x205   : > { %5250 = vmatprep.mubr.bf16.mxu0 %v23418_v52  ;;  %7090 = vmatprep.mubr.bf16.mxu1 %v23418_v52  ;;  %v8313_v26 = vpop.permute.xlu1 %8312 }
 0x206   : > { %5296 = vmatprep.subr.bf16.mxu0 %v5294_v18  ;;  %7136 = vmatprep.subr.bf16.mxu1 %v7134_v19  ;;  %v7131_v18 = vand.u32 %v7126_v20, %v19435_v5 }
 0x207   : > { %v8222_v19 = vpop.permute.xlu0 %8221 }
 0x208   : > { %v20761_v8 = vsel %vm2301_vm5, %v8222_v19, %v8224_v28  ;;  %v18812_v19 = vld [vmem:[%s23395_s1 + $0x60] sm:$0xff]  }
 0x209   : > { %v8311_v9 = vpop.permute.xlu1 %8310 }
 0x20a   : > { %v20768_v61 = vsel %vm2301_vm5, %v8311_v9, %v8313_v26  ;;  %v18814_v9 = vld [vmem:[%s23395_s1 + $0x68] sm:$0xff]  }
 0x20b   : > { %v8315_v20 = vpop.permute.xlu0 %8314 }
 0x20c   : > { %v20773_v28 = vsel %vm2301_vm5, %v8313_v26, %v8315_v20  ;;  %v5453_v26 = vsel %vm2301_vm5, %v20319_v11, %v20349_v21  ;;  %v7292_v21 = vsel %vm2301_vm5, %v20321_v32, %v20303_v58  ;;  %v5539_v32 = vand.u32 %v20408_v3, %v19435_v5 }
 0x20d   : > { %v7471_v20 = vsel %vm2301_vm5, %v20406_v23, %v20431_v44  ;;  %v5609_v44 = vsel %vm1974_vm4, %v20445_v37, %v20443_v55  ;;  %v18820_v37 = vld [vmem:[%s23395_s1 + $0x80] sm:$0xff]  }
 0x20f   : > { %16219 = vmatmul.mubr.msk.bf16.vlgmr.msra.gmra.mrb[4].mxu0 %vm462_vm2, %v18810_v48  ;;  %16351 = vmatmul.mubr.msk.bf16.vlgmr.msra.gmra.mrb[4].mxu1 %vm462_vm2, %v18811_v17  ;;  %v5364_v48 = vsel %vm1974_vm4, %v20271_v63, %v20269_v38  ;;  %v7293_v17 = vsel %vm2301_vm5, %v20303_v58, %v20301_v30  ;;  %v5461_v63 = vand.u32 %v5453_v26, %v19435_v5  ;;  %v18818_v26 = vld [vmem:[%s23395_s1 + $0x78] sm:$0xff]  }
 0x210   : > { %7137 = vmatpush1.bf16.msra.mxu1 %v7131_v18  ;;  %5297 = vmatpush1.bf16.msra.mxu0 %v5291_v25  ;;  %v5369_v38 = vand.u32 %v5364_v48, %v19435_v5  ;;  %v7301_v30 = vand.u32 %v7293_v17, %v19435_v5  ;;  %v5452_v18 = vsel %vm2301_vm5, %v20347_v53, %v20319_v11  ;;  %v18817_v48 = vld [vmem:[%s23395_s1 + $0x60] sm:$0xff]  }
 0x211   : > { %5328 = vmatprep.mubr.bf16.mxu0 %v23418_v52  ;;  %7168 = vmatprep.mubr.bf16.mxu1 %v23418_v52  ;;  %v7382_v25 = vsel %vm2301_vm5, %v20365_v54, %v20363_v43  ;;  %v5458_v58 = vand.u32 %v5452_v18, %v19435_v5  ;;  %v7381_v53 = vsel %vm2301_vm5, %v20389_v31, %v20365_v54 }
 0x212   : > { %5374 = vmatprep.subr.bf16.mxu0 %v5372_v27  ;;  %7214 = vmatprep.subr.bf16.mxu1 %v7212_v57  ;;  %v18815_v57 = vld [vmem:[%s23395_s1 + $0x58] sm:$0xff]   ;;  %v7298_v27 = vand.u32 %v7292_v21, %v19435_v5  ;;  %v7390_v11 = vand.u32 %v7382_v25, %v19435_v5  ;;  %v5531_v43 = vsel %vm1974_vm4, %v20387_v47, %v20408_v3 }
 0x213   : > { %v7387_v17 = vand.u32 %v7381_v53, %v19435_v5  ;;  %v5536_v54 = vand.u32 %v5531_v43, %v19435_v5  ;;  %v7479_v31 = vand.u32 %v7471_v20, %v19435_v5  ;;  %v5617_v47 = vand.u32 %v20443_v55, %v19435_v5  ;;  %v23425_v25 = vld [vmem:[#allocation7_spill] sm:$0xff] }
 0x214   : > { %v7470_v3 = vsel %vm2301_vm5, %v20429_v41, %v20406_v23  ;;  %v5695_v23 = vand.u32 %v20483_v0, %v19435_v5  ;;  %v7549_v41 = vsel %vm1974_vm4, %v20462_v10, %v20460_v7  ;;  %v5687_v55 = vsel %vm1974_vm4, %v20485_v39, %v20483_v0  ;;  %v23424_v0 = vld [vmem:[#allocation6_spill] sm:$0xff] }
 0x215   : > { %v5692_v21 = vand.u32 %v5687_v55, %v19435_v5  ;;  %v7635_v18 = vand.u32 %v20506_v15, %v19435_v5  ;;  %v7627_v39 = vsel %vm1974_vm4, %v23424_v0, %v20506_v15  ;;  %v18823_v15 = vld [vmem:[%s23395_s1 + $0x78] sm:$0xff]  }
 0x21a   : > { %v2370_v10 = vpop.permute.xlu1 %2369 }
 0x21b   : > { %16225 = vmatmul.mubr.msk.bf16.vlgmr.msra.gmra.mrb[4].mxu0 %vm462_vm2, %v18812_v19  ;;  %16357 = vmatmul.mubr.msk.bf16.vlgmr.msra.gmra.mrb[4].mxu1 %vm462_vm2, %v18813_v13  ;;  %v18819_v19 = vld [vmem:[%s23395_s1 + $0x68] sm:$0xff]   ;;  %v7476_v13 = vand.u32 %v7470_v3, %v19435_v5 }
 0x21c   : > { %7215 = vmatpush1.bf16.msra.mxu1 %v7209_v33  ;;  %5375 = vmatpush1.bf16.msra.mxu0 %v5369_v38  ;;  %v5614_v33 = vand.u32 %v5609_v44, %v19435_v5  ;;  %v7557_v38 = vand.u32 %v20460_v7, %v19435_v5  ;;  %v5773_v7 = vand.u32 %v20525_v35, %v19435_v5 }
 0x21d   : > { %5406 = vmatprep.mubr.bf16.mxu0 %v23418_v52  ;;  %7246 = vmatprep.mubr.bf16.mxu1 %v23418_v52 }
 0x21e   : > { %7303 = vmatprep.subr.bf16.mxu1 %v7301_v30  ;;  %5463 = vmatprep.subr.bf16.mxu0 %v5461_v63  ;;  %v18821_v63 = vld [vmem:[%s23395_s1 + $0x70] sm:$0xff]   ;;  %v7554_v30 = vand.u32 %v7549_v41, %v19435_v5 }
 0x227   : > { %16231 = vmatmul.mubr.msk.bf16.vlgmr.msra.gmra.mrb[4].mxu0 %vm462_vm2, %v18814_v9  ;;  %16363 = vmatmul.mubr.msk.bf16.vlgmr.msra.gmra.mrb[4].mxu1 %vm462_vm2, %v18815_v57  ;;  %v5765_v9 = vsel %vm1974_vm4, %v23425_v25, %v20525_v35  ;;  %v2365_v57 = vpop.permute.xlu0 %2364  ;;  %v18827_v25 = vld [vmem:[%s23395_s1 + $0x88] sm:$0xff]  }
 0x228   : > { %7304 = vmatpush1.bf16.msra.mxu1 %v7298_v27  ;;  %5464 = vmatpush1.bf16.msra.mxu0 %v5458_v58  ;;  %v7716_v27 = vsel %vm2301_vm5, %v20541_v62, %v20539_v34  ;;  %v5854_v58 = vsel %vm2301_vm5, %v20554_v14, %v20571_v46  ;;  %v5770_v35 = vand.u32 %v5765_v9, %v19435_v5  ;;  %v2381_v34 = vpop.permute.xlu1 %2380  ;;  %v23427_v9 = vld [vmem:[#allocation8_spill] sm:$0xff] }
 0x229   : > { %5495 = vmatprep.mubr.bf16.mxu0 %v23418_v52  ;;  %7335 = vmatprep.mubr.bf16.mxu1 %v23418_v52  ;;  %v5862_v53 = vand.u32 %v5854_v58, %v19435_v5  ;;  %v7724_v20 = vand.u32 %v7716_v27, %v19435_v5  ;;  %v5937_v27 = vand.u32 %v20606_v42, %v19435_v5 }
 0x22a   : > { %7392 = vmatprep.subr.bf16.mxu1 %v7390_v11  ;;  %5541 = vmatprep.subr.bf16.mxu0 %v5539_v32  ;;  %v18822_v32 = vld [vmem:[%s23395_s1 + $0x88] sm:$0xff]   ;;  %v7632_v11 = vand.u32 %v7627_v39, %v19435_v5  ;;  %v18826_v39 = vld [vmem:[%s23395_s1 + $0x98] sm:$0xff]   ;;  %v7902_v58 = vand.u32 %v20618_v56, %v19435_v5 }
 0x233   : > { %16235 = vmatmul.mubr.msk.bf16.vlgmr.msra.gmra.mrb[4].mxu0 %vm462_vm2, %v18816_v4  ;;  %16367 = vmatmul.mubr.msk.bf16.vlgmr.msra.gmra.mrb[4].mxu1 %vm462_vm2, %v18817_v48 }
 0x234   : > { %7393 = vmatpush1.bf16.msra.mxu1 %v7387_v17  ;;  %5542 = vmatpush1.bf16.msra.mxu0 %v5536_v54  ;;  %v2386_v54 = vpop.permute.xlu0 %2385 }
 0x235   : > { %5573 = vmatprep.mubr.bf16.mxu0 %v23418_v52  ;;  %7424 = vmatprep.mubr.bf16.mxu1 %v23418_v52 }
 0x236   : > { %7481 = vmatprep.subr.bf16.mxu1 %v7479_v31  ;;  %5619 = vmatprep.subr.bf16.mxu0 %v5617_v47 }
 0x238   : > { %v4346_v0 = vpop.permute.xlu0 %4345 }
 0x23f   : > { %16241 = vmatmul.mubr.msk.bf16.vlgmr.msra.gmra.mrb[4].mxu0 %vm462_vm2, %v18818_v26  ;;  %16372 = vmatmul.mubr.msk.bf16.vlgmr.msra.gmra.mrb[4].mxu1 %vm462_vm2, %v18819_v19 }
 0x240   : > { %7482 = vmatpush1.bf16.msra.mxu1 %v7476_v13  ;;  %5620 = vmatpush1.bf16.msra.mxu0 %v5614_v33  ;;  %v7715_v33 = vsel %vm2301_vm5, %v20556_v36, %v20541_v62 }
 0x241   : > { %5651 = vmatprep.mubr.bf16.mxu0 %v23418_v52  ;;  %7513 = vmatprep.mubr.bf16.mxu1 %v23418_v52  ;;  %v7721_v62 = vand.u32 %v7715_v33, %v19435_v5 }
 0x242   : > { %5697 = vmatprep.subr.bf16.mxu0 %v5695_v23  ;;  %7559 = vmatprep.subr.bf16.mxu1 %v7557_v38  ;;  %v5853_v38 = vsel %vm2301_vm5, %v20569_v6, %v20554_v14  ;;  %v7813_v14 = vand.u32 %v20583_v1, %v19435_v5  ;;  %v5940_v6 = vand.u32 %v20602_v2, %v19435_v5  ;;  %v4341_v1 = vpop.permute.xlu1 %4340  ;;  %v19312_v2 = vld [vmem:[%s23396_s2] sm:$0xff] }
 0x243   : > { %v5859_v36 = vand.u32 %v5853_v38, %v19435_v5  ;;  %v18828_v38 = vld [vmem:[%s23395_s1 + $0xa0] sm:$0xff]  }
 0x24b   : > { %16247 = vmatmul.mubr.msk.bf16.vlgmr.msra.gmra.mrb[4].mxu0 %vm462_vm2, %v18820_v37  ;;  %16377 = vmatmul.mubr.msk.bf16.vlgmr.msra.gmra.mrb[4].mxu1 %vm462_vm2, %v18821_v63 }
 0x24c   : > { %7560 = vmatpush1.bf16.msra.mxu1 %v7554_v30  ;;  %5698 = vmatpush1.bf16.msra.mxu0 %v5692_v21  ;;  %v18824_v30 = vld [vmem:[%s23395_s1 + $0x90] sm:$0xff]   ;;  %v18825_v21 = vld [vmem:[%s23395_s1 + $0x80] sm:$0xff]  }
 0x24d   : > { %5729 = vmatprep.mubr.bf16.mxu0 %v23418_v52  ;;  %7591 = vmatprep.mubr.bf16.mxu1 %v23418_v52 }
 0x24e   : > { %5775 = vmatprep.subr.bf16.mxu0 %v5773_v7  ;;  %7637 = vmatprep.subr.bf16.mxu1 %v7635_v18  ;;  %v23426_v7 = vld [vmem:[#allocation4_spill] sm:$0xff] }
 0x256   : > { %v2347_v43 = vpop.f32.mrb[0].mxu0 }
 0x257   : > { %v2372_v4 = vmul.f32 %v2365_v57, %v2347_v43  ;;  %v2349_v46 = vpop.f32.mrb[1].mxu0  ;;  %16253 = vmatmul.mubr.msk.bf16.vlgmr.msra.gmra.mrb[4].mxu0 %vm462_vm2, %v18822_v32  ;;  %16383 = vmatmul.mubr.msk.bf16.vlgmr.msra.gmra.mrb[4].mxu1 %vm462_vm2, %v18823_v15  ;;  %v23428_v15 = vld [vmem:[#allocation5_spill] sm:$0xff] }
 0x258   : > { %v2373_v48 = vmul.f32 %v2365_v57, %v2349_v46  ;;  %v2351_v17 = vpop.f32.mrb[2].mxu0  ;;  %5776 = vmatpush1.bf16.msra.mxu0 %v5770_v35  ;;  %7638 = vmatpush1.bf16.msra.mxu1 %v7632_v11  ;;  %v7810_v57 = vand.u32 %v23427_v9, %v19435_v5  ;;  %v4357_v11 = vpop.permute.xlu1 %4356  ;;  %v23429_v35 = vld [vmem:[#allocation10_spill] sm:$0xff] }
 0x259   : > { %v2388_v31 = vadd.f32 %v2381_v34, %v2372_v4  ;;  %v2374_v47 = vmul.f32 %v2370_v10, %v2351_v17  ;;  %v2353_v3 = vpop.f32.mrb[3].mxu0  ;;  %5807 = vmatprep.mubr.bf16.mxu0 %v23418_v52  ;;  %7669 = vmatprep.mubr.bf16.mxu1 %v23418_v52  ;;  %v4362_v46 = vpop.permute.xlu0 %4361 }
 0x25a   : > { %v2389_v44 = vadd.f32 %v2381_v34, %v2373_v48  ;;  %v2375_v26 = vmul.f32 %v2370_v10, %v2353_v3  ;;  %7726 = vmatprep.subr.bf16.mxu1 %v7724_v20  ;;  %5864 = vmatprep.subr.bf16.mxu0 %v5862_v53  ;;  %v6018_v53 = vand.u32 %v23429_v35, %v19435_v5 }
 0x25b   : > { %v2390_v19 = vadd.f32 %v2386_v54, %v2374_v47  ;;  %v2392_v23 = vmax.f32 %v2388_v31, 0.0  ;;  %v19313_v31 = vld [vmem:[%s23396_s2 + $0x8] sm:$0xff] }
 0x25c   : > { %v2391_v13 = vadd.f32 %v2386_v54, %v2375_v26  ;;  %v2393_v55 = vmax.f32 %v2389_v44, 0.0 }
 0x25d   : > { %v2394_v41 = vmax.f32 %v2390_v19, 0.0 }
 0x25e   : > { %v2395_v37 = vmax.f32 %v2391_v13, 0.0 }
 0x25f   : > { %v20927_v63 = vpack.c.bf16 %v2394_v41, %v2392_v23  ;;  %v18829_v23 = vld [vmem:[%s23395_s1 + $0x90] sm:$0xff]  }
 0x260   : > { %v2397_v18 = vpack.c.bf16 %v2395_v37, %v2393_v55  ;;  %v23430_v41 = vld [vmem:[#allocation9_spill] sm:$0xff]  ;;  %v23431_v37 = vld [vmem:[#allocation11_spill] sm:$0xff] }
 0x261   : > { %8584 = vrot.lane.b32.xlu1 %v20927_v63, %s19326_s15  ;;  %v7899_v55 = vand.u32 %v23430_v41, %v19435_v5 }
 0x262   : > { %2400 = vst.msk [vmem:[#allocation2 + $0x8] sm:$0xff] %vm1974_vm4, %v2397_v18  ;;  %v19314_v18 = vld [vmem:[%s23397_s3] sm:$0xff] }
 0x263   : > { %16259 = vmatmul.mubr.msk.bf16.vlgmr.msra.gmra.mrb[4].mxu0 %vm462_vm2, %v18824_v30  ;;  %16389 = vmatmul.mubr.msk.bf16.vlgmr.msra.gmra.mrb[4].mxu1 %vm462_vm2, %v18825_v21  ;;  %v6015_v30 = vand.u32 %v23431_v37, %v19435_v5 }
 0x264   : > { %7727 = vmatpush1.bf16.msra.mxu1 %v7721_v62  ;;  %5865 = vmatpush1.bf16.msra.mxu0 %v5859_v36  ;;  %v6096_v62 = vand.u32 %v20653_v50, %v19435_v5  ;;  %v7980_v36 = vand.u32 %v20641_v12, %v19435_v5  ;;  %v18830_v12 = vld [vmem:[%s23395_s1 + $0xa8] sm:$0xff]  }
 0x265   : > { %6332 = vperm.xlu1 %18723, %v23426_v7   ;;  %5896 = vmatprep.mubr.bf16.mxu0 %v23418_v52  ;;  %v6093_v7 = vand.u32 %v20657_v22, %v19435_v5  ;;  %v18832_v22 = vld [vmem:[%s23395_s1 + $0xb0] sm:$0xff]  }
 0x266   : > { %7758 = vmatprep.mubr.bf16.mxu1 %v23418_v52  ;;  %7815 = vmatprep.subr.bf16.mxu1 %v7813_v14  ;;  %v18831_v14 = vld [vmem:[%s23395_s1 + $0x98] sm:$0xff]  }
 0x267   : > { %5942 = vmatprep.subr.bf16.mxu0 %v5940_v6  ;;  %v7977_v6 = vand.u32 %v20645_v60, %v19435_v5  ;;  %v18833_v60 = vld [vmem:[%s23395_s1 + $0xa0] sm:$0xff]  }
 0x269   : > { %v20949_v10 = vld [vmem:[#allocation2 + $0x8] sm:$0xff]  ;;  %8378 = vperm.xlu1 %18723, %v19312_v2  }
 0x26a   : > { %8586 = vrot.lane.b32.xlu0 %v20949_v10, %s19326_s15  ;;  %v19315_v2 = vld [vmem:[%s23397_s3 + $0x8] sm:$0xff] }
 0x26e   : > { %v4323_v32 = vpop.f32.mrb[0].mxu1  ;;  %6337 = vperm.xlu0 %18722, %v23428_v15   ;;  %v18841_v15 = vld [vmem:[%s23398_s4 + $0x8] sm:$0xff]  }
 0x26f   : > { %v4348_v43 = vmul.f32 %v4341_v1, %v4323_v32  ;;  %v4325_v34 = vpop.f32.mrb[1].mxu1  ;;  %16264 = vmatmul.mubr.msk.bf16.vlgmr.msra.gmra.mrb[4].mxu0 %vm462_vm2, %v18826_v39  ;;  %16394 = vmatmul.mubr.msk.bf16.vlgmr.msra.gmra.mrb[4].mxu1 %vm462_vm2, %v18827_v25  ;;  %v6263_v39 = vand.u32 %v20739_v16, %v19435_v5  ;;  %v23432_v25 = vld [vmem:[#allocation12_spill] sm:$0xff]  ;;  %v8144_v16 = vand.u32 %v20727_v45, %v19435_v5  ;;  %v18837_v45 = vld [vmem:[%s23395_s1 + $0xb0] sm:$0xff]  }
 0x270   : > { %v4349_v20 = vmul.f32 %v4341_v1, %v4325_v34  ;;  %v4327_v4 = vpop.f32.mrb[2].mxu1  ;;  %7816 = vmatpush1.bf16.msra.mxu1 %v7810_v57  ;;  %5943 = vmatpush1.bf16.msra.mxu0 %v5937_v27  ;;  %v6174_v1 = vand.u32 %v20687_v24, %v19435_v5  ;;  %v6171_v24 = vand.u32 %v20691_v29, %v19435_v5  ;;  %v18835_v29 = vld [vmem:[%s23395_s1 + $0xa8] sm:$0xff]   ;;  %v18840_v32 = vld [vmem:[%s23398_s4] sm:$0xff]  }
 0x271   : > { %v4350_v42 = vmul.f32 %v4346_v0, %v4327_v4  ;;  %v4364_v56 = vadd.f32 %v4357_v11, %v4348_v43  ;;  %v4329_v48 = vpop.f32.mrb[3].mxu1  ;;  %5974 = vmatprep.mubr.bf16.mxu0 %v23418_v52  ;;  %7847 = vmatprep.mubr.bf16.mxu1 %v23418_v52  ;;  %v8147_v9 = vand.u32 %v23432_v25, %v19435_v5  ;;  %v18842_v34 = vld [vmem:[%s23398_s4 + $0x20] sm:$0xff]  }
 0x272   : > { %v4365_v17 = vadd.f32 %v4357_v11, %v4349_v20  ;;  %v4351_v54 = vmul.f32 %v4346_v0, %v4329_v48  ;;  %8383 = vperm.xlu0 %18722, %v19313_v31   ;;  %7904 = vmatprep.subr.bf16.mxu1 %v7902_v58  ;;  %v8058_v0 = vand.u32 %v20675_v40, %v19435_v5  ;;  %v6322_v11 = vpop.permute.xlu0 %6321  ;;  %v18843_v20 = vld [vmem:[%s23398_s4 + $0x28] sm:$0xff]   ;;  %v18844_v31 = vld [vmem:[%s23398_s4 + $0x30] sm:$0xff]  }
 0x273   : > { %v4366_v47 = vadd.f32 %v4362_v46, %v4350_v42  ;;  %6020 = vmatprep.subr.bf16.mxu0 %v6018_v53  ;;  %v4368_v44 = vmax.f32 %v4364_v56, 0.0  ;;  %v8055_v40 = vand.u32 %v20679_v49, %v19435_v5  ;;  %v18834_v49 = vld [vmem:[%s23395_s1 + $0xb8] sm:$0xff]   ;;  %v6260_v57 = vand.u32 %v20734_v59, %v19435_v5  ;;  %v18836_v59 = vld [vmem:[%s23395_s1 + $0xc0] sm:$0xff]  }
 0x274   : > { %v4367_v3 = vadd.f32 %v4362_v46, %v4351_v54  ;;  %v4369_v19 = vmax.f32 %v4365_v17, 0.0  ;;  %v8236_v27 = vand.u32 %v20744_v51, %v19435_v5  ;;  %v8233_v51 = vand.u32 %v20761_v8, %v19435_v5  ;;  %v18838_v8 = vld [vmem:[%s23395_s1 + $0xb8] sm:$0xff]  }
 0x275   : > { %v4370_v26 = vmax.f32 %v4366_v47, 0.0  ;;  %v8325_v58 = vand.u32 %v20773_v28, %v19435_v5  ;;  %v8322_v28 = vand.u32 %v20768_v61, %v19435_v5  ;;  %v18839_v5 = vld [vmem:[%s23395_s1 + $0xc0] sm:$0xff]   ;;  %v6317_v61 = vpop.permute.xlu1 %6316 }
 0x276   : > { %v4371_v13 = vmax.f32 %v4367_v3, 0.0 }
 0x277   : > { %v20978_v33 = vpack.c.bf16 %v4370_v26, %v4368_v44 }
 0x278   : > { %v4373_v21 = vpack.c.bf16 %v4371_v13, %v4369_v19  ;;  %v18845_v13 = vld [vmem:[%s23398_s4 + $0x38] sm:$0xff]  }
 0x279   : > { %8675 = vrot.lane.b32.xlu1 %v20978_v33, %s19326_s15 }
 0x27a   : > { %4376 = vst.msk [vmem:[#allocation2 + $0x18] sm:$0xff] %vm1974_vm4, %v4373_v21 }
 0x27b   : > { %16270 = vmatmul.mubr.msk.bf16.vlgmr.msra.gmra.mrb[4].mxu0 %vm462_vm2, %v18828_v38  ;;  %16399 = vmatmul.mubr.msk.bf16.vlgmr.msra.gmra.mrb[4].mxu1 %vm462_vm2, %v18829_v23  ;;  %v18846_v38 = vld [vmem:[%s23398_s4 + $0x40] sm:$0xff]   ;;  %v18847_v23 = vld [vmem:[%s23398_s4 + $0x48] sm:$0xff]  }
 0x27c   : > { %7905 = vmatpush1.bf16.msra.mxu1 %v7899_v55  ;;  %6021 = vmatpush1.bf16.msra.mxu0 %v6015_v30 }
 0x27d   : > { %8394 = vperm.xlu1 %18723, %v19314_v18   ;;  %6052 = vmatprep.mubr.bf16.mxu0 %v23418_v52 }
 0x27e   : > { %7936 = vmatprep.mubr.bf16.mxu1 %v23418_v52  ;;  %6098 = vmatprep.subr.bf16.mxu0 %v6096_v62 }
 0x27f   : > { %7982 = vmatprep.subr.bf16.mxu1 %v7980_v36 }
 0x281   : > { %v21004_v50 = vld [vmem:[#allocation2 + $0x18] sm:$0xff]  ;;  %8764 = vrot.lane.b32.xlu1 %v20927_v63, %s19330_s25 }
 0x282   : > { %8677 = vrot.lane.b32.xlu0 %v21004_v50, %s19326_s15 }
 0x286   : > { %8399 = vperm.xlu0 %18722, %v19315_v2  }
 0x287   : > { %16276 = vmatmul.mubr.msk.bf16.vlgmr.msra.gmra.mrb[4].mxu0 %vm462_vm2, %v18830_v12  ;;  %16404 = vmatmul.mubr.msk.bf16.vlgmr.msra.gmra.mrb[4].mxu1 %vm462_vm2, %v18831_v14 }
 0x288   : > { %6099 = vmatpush1.bf16.msra.mxu0 %v6093_v7  ;;  %7983 = vmatpush1.bf16.msra.mxu1 %v7977_v6 }
 0x289   : > { %6130 = vmatprep.mubr.bf16.mxu0 %v23418_v52  ;;  %8014 = vmatprep.mubr.bf16.mxu1 %v23418_v52 }
 0x28a   : > { %8766 = vrot.lane.b32.xlu0 %v20949_v10, %s19330_s25  ;;  %6176 = vmatprep.subr.bf16.mxu0 %v6174_v1 }
 0x28b   : > { %8060 = vmatprep.subr.bf16.mxu1 %v8058_v0 }
 0x293   : > { %16282 = vmatmul.mubr.msk.bf16.vlgmr.msra.gmra.mrb[4].mxu0 %vm462_vm2, %v18832_v22  ;;  %16410 = vmatmul.mubr.msk.bf16.vlgmr.msra.gmra.mrb[4].mxu1 %vm462_vm2, %v18833_v60 }
 0x294   : > { %6177 = vmatpush1.bf16.msra.mxu0 %v6171_v24  ;;  %8061 = vmatpush1.bf16.msra.mxu1 %v8055_v40 }
 0x295   : > { %6208 = vmatprep.mubr.bf16.mxu0 %v23418_v52  ;;  %6265 = vmatprep.subr.bf16.mxu0 %v6263_v39  ;;  %v18848_v39 = vld [vmem:[%s23398_s4 + $0x50] sm:$0xff]  }
 0x296   : > { %8092 = vmatprep.mubr.bf16.mxu1 %v23418_v52  ;;  %8149 = vmatprep.subr.bf16.mxu1 %v8147_v9 }
 0x29f   : > { %16288 = vmatmul.mubr.msk.bf16.vlgmr.msra.gmra.mrb[4].mxu0 %vm462_vm2, %v18834_v49  ;;  %16416 = vmatmul.mubr.msk.bf16.vlgmr.msra.gmra.mrb[4].mxu1 %vm462_vm2, %v18835_v29 }
 0x2a0   : > { %6266 = vmatpush1.bf16.msra.mxu0 %v6260_v57  ;;  %8150 = vmatpush1.bf16.msra.mxu1 %v8144_v16 }
 0x2a1   : > { %8514 = vmatprep.subr.bf16.mxu0 %v20949_v10  ;;  %6297 = vmatprep.mubr.bf16.mxu0 %v23418_v52 }
 0x2a2   : > { %8181 = vmatprep.mubr.bf16.mxu1 %v23418_v52  ;;  %8238 = vmatprep.subr.bf16.mxu1 %v8236_v27 }
 0x2ab   : > { %16293 = vmatmul.mubr.msk.bf16.vlgmr.msra.gmra.mrb[4].mxu0 %vm462_vm2, %v18836_v59  ;;  %16421 = vmatmul.mubr.msk.bf16.vlgmr.msra.gmra.mrb[4].mxu1 %vm462_vm2, %v18837_v45 }
 0x2ac   : > { %8515 = vmatpush1.bf16.msra.mxu0 %v20927_v63  ;;  %8239 = vmatpush1.bf16.msra.mxu1 %v8233_v51 }
 0x2ad   : > { %8270 = vmatprep.mubr.bf16.mxu1 %v23418_v52  ;;  %8327 = vmatprep.subr.bf16.mxu1 %v8325_v58  ;;  %v18849_v58 = vld [vmem:[%s23398_s4 + $0x58] sm:$0xff]  }
 0x2ae   : > { %8546 = vmatprep.mubr.bf16.mxu0 %v23418_v52 }
 0x2b3   : > { %16442 = vmatmul.mubr.msk.bf16.vlgmr.msra.gmra.mrb[8].mxu0 %vm8438_vm6, %v18840_v32 }
 0x2b4   : > { %8556 = vmatprep.mubr.bf16.mxu0 %v23418_v52 }
 0x2b7   : > { %16426 = vmatmul.mubr.msk.bf16.vlgmr.msra.gmra.mrb[4].mxu1 %vm462_vm2, %v18838_v8 }
 0x2b8   : > { %8328 = vmatpush1.bf16.msra.mxu1 %v8322_v28  ;;  %8359 = vmatprep.mubr.bf16.mxu1 %v23418_v52 }
 0x2b9   : > { %8445 = vmatprep.subr.bf16.mxu1 %v21004_v50 }
 0x2bb   : > { %16443 = vmatmul.mubr.msk.bf16.gmra.mrb[12].mxu0 %vm8438_vm6, %v18841_v15 }
 0x2bc   : > { %8629 = vmatprep.mubr.bf16.mxu0 %v23418_v52 }
 0x2c3   : > { %16431 = vmatmul.mubr.msk.bf16.vlgmr.msra.gmra.mrb[4].mxu1 %vm462_vm2, %v18839_v5 }
 0x2c4   : > { %8446 = vmatpush1.bf16.msra.mxu1 %v20978_v33  ;;  %8477 = vmatprep.mubr.bf16.mxu1 %v23418_v52 }
 0x2c5   : > { %12663 = vmatprep.subr.bf16.mxu1 %v23418_v52 }
 0x2d3   : > { %v8585_v35 = vpop.permute.xlu1 %8584 }
 0x2dc   : > { %v8587_v53 = vpop.permute.xlu0 %8586 }
 0x2dd   : > { %v8588_v43 = vsel %vm757_vm3, %v8585_v35, %v8587_v53  ;;  %8597 = vmatprep.subr.bf16.mxu0 %v8587_v53 }
 0x2de   : > { %8598 = vmatpush1.bf16.msra.mxu0 %v8588_v43  ;;  %v18850_v43 = vld [vmem:[%s23398_s4 + $0x60] sm:$0xff]  }
 0x2e1   : > { %16450 = vmatmul.mubr.msk.bf16.vlgmr.msra.gmra.mrb[8].mxu0 %vm8438_vm6, %v18842_v34  ;;  %v18851_v34 = vld [vmem:[%s23398_s4 + $0x68] sm:$0xff]  }
 0x2e2   : > { %8639 = vmatprep.mubr.bf16.mxu0 %v23418_v52 }
 0x2e4   : > { %v6333_v4 = vpop.permute.xlu1 %6332 }
 0x2e8   : > { %v8379_v42 = vpop.permute.xlu1 %8378 }
 0x2e9   : > { %16451 = vmatmul.mubr.msk.bf16.gmra.mrb[12].mxu0 %vm8438_vm6, %v18843_v20  ;;  %v10618_v20 = vld [vmem:[%s23399_s5 + $0x8] sm:$0xff] }
 0x2ea   : > { %8720 = vmatprep.mubr.bf16.mxu0 %v23418_v52 }
 0x2ec   : > { %v8676_v48 = vpop.permute.xlu1 %8675 }
 0x2ed   : > { %v6338_v46 = vpop.permute.xlu0 %6337 }
 0x2f1   : > { %v8384_v56 = vpop.permute.xlu0 %8383 }
 0x2f5   : > { %v8678_v17 = vpop.permute.xlu0 %8677 }
 0x2f6   : > { %v8679_v54 = vsel %vm757_vm3, %v8676_v48, %v8678_v17  ;;  %8688 = vmatprep.subr.bf16.mxu0 %v8678_v17 }
 0x2f7   : > { %8689 = vmatpush1.bf16.msra.mxu0 %v8679_v54  ;;  %v18852_v54 = vld [vmem:[%s23398_s4 + $0x70] sm:$0xff]  }
 0x2fa   : > { %16458 = vmatmul.mubr.msk.bf16.vlgmr.msra.gmra.mrb[8].mxu0 %vm8438_vm6, %v18844_v31  ;;  %v18853_v31 = vld [vmem:[%s23398_s4 + $0x78] sm:$0xff]  }
 0x2fb   : > { %8730 = vmatprep.mubr.bf16.mxu0 %v23418_v52 }
 0x2fc   : > { %v8395_v47 = vpop.permute.xlu1 %8394 }
 0x300   : > { %v8765_v44 = vpop.permute.xlu1 %8764 }
 0x302   : > { %16459 = vmatmul.mubr.msk.bf16.gmra.mrb[12].mxu0 %vm8438_vm6, %v18845_v13 }
 0x303   : > { %8810 = vmatprep.mubr.bf16.mxu0 %v23418_v52 }
 0x305   : > { %v8400_v3 = vpop.permute.xlu0 %8399 }
 0x309   : > { %v8767_v26 = vpop.permute.xlu0 %8766 }
 0x30a   : > { %v8769_v19 = vsel %vm8768_vm7, %v8765_v44, %v8767_v26  ;;  %8778 = vmatprep.subr.bf16.mxu0 %v8767_v26  ;;  %v18854_v26 = vld [vmem:[%s23398_s4 + $0x80] sm:$0xff]  }
 0x30b   : > { %8779 = vmatpush1.bf16.msra.mxu0 %v8769_v19 }
 0x30e   : > { %16466 = vmatmul.mubr.msk.bf16.vlgmr.msra.gmra.mrb[8].mxu0 %vm8438_vm6, %v18846_v38 }
 0x30f   : > { %8820 = vmatprep.mubr.bf16.mxu0 %v23418_v52 }
 0x316   : > { %16467 = vmatmul.mubr.msk.bf16.gmra.mrb[12].mxu0 %vm8438_vm6, %v18847_v23 }
 0x317   : > { %8894 = vmatprep.mubr.bf16.mxu0 %v23418_v52 }
 0x37e   : > { %v6299_v41 = vpop.f32.mrb[4].mxu0 }
 0x37f   : > { %v6324_v55 = vmul.f32 %v6317_v61, %v6299_v41  ;;  %v6301_v37 = vpop.f32.mrb[5].mxu0  ;;  %v18855_v41 = vld [vmem:[%s23398_s4 + $0x88] sm:$0xff]  }
 0x380   : > { %v6325_v30 = vmul.f32 %v6317_v61, %v6301_v37  ;;  %v6303_v21 = vpop.f32.mrb[6].mxu0 }
 0x381   : > { %v6340_v62 = vadd.f32 %v6333_v4, %v6324_v55  ;;  %v6326_v36 = vmul.f32 %v6322_v11, %v6303_v21  ;;  %v6305_v18 = vpop.f32.mrb[7].mxu0  ;;  %v18856_v55 = vld [vmem:[%s23398_s4 + $0x90] sm:$0xff]  }
 0x382   : > { %v6341_v12 = vadd.f32 %v6333_v4, %v6325_v30  ;;  %v6327_v14 = vmul.f32 %v6322_v11, %v6305_v18  ;;  %v10619_v4 = vld [vmem:[%s23399_s5 + $0x10] sm:$0xff] }
 0x383   : > { %v6342_v6 = vadd.f32 %v6338_v46, %v6326_v36  ;;  %v6344_v1 = vmax.f32 %v6340_v62, 0.0  ;;  %v18857_v62 = vld [vmem:[%s23398_s4 + $0x98] sm:$0xff]   ;;  %v18858_v36 = vld [vmem:[%s23398_s4 + $0xa0] sm:$0xff]  }
 0x384   : > { %v6343_v7 = vadd.f32 %v6338_v46, %v6327_v14  ;;  %v6345_v0 = vmax.f32 %v6341_v12, 0.0  ;;  %v10651_v46 = vld [vmem:[%s23400_s6 + $0x10] sm:$0xff] }
 0x385   : > { %v6346_v2 = vmax.f32 %v6342_v6, 0.0  ;;  %v18859_v6 = vld [vmem:[%s23398_s4 + $0xa8] sm:$0xff]  }
 0x386   : > { %v6347_v22 = vmax.f32 %v6343_v7, 0.0  ;;  %v18860_v7 = vld [vmem:[%s23398_s4 + $0xb0] sm:$0xff]  }
 0x387   : > { %v6348_v60 = vpack.c.bf16 %v6346_v2, %v6344_v1 }
 0x388   : > { %v6349_v40 = vpack.c.bf16 %v6347_v22, %v6345_v0  ;;  %v18861_v22 = vld [vmem:[%s23398_s4 + $0xb8] sm:$0xff]  }
 0x389   : > { %9024 = vrot.lane.b32.xlu1 %v6348_v60, %s19326_s15 }
 0x38a   : > { %6352 = vst.msk [vmem:[#allocation2 + $0x28] sm:$0xff] %vm1974_vm4, %v6349_v40 }
 0x391   : > { %v21143_v24 = vld [vmem:[#allocation2 + $0x28] sm:$0xff] }
 0x392   : > { %9026 = vrot.lane.b32.xlu0 %v21143_v24, %s19326_s15  ;;  %8862 = vmatprep.subr.bf16.mxu0 %v21143_v24 }
 0x393   : > { %8863 = vmatpush1.bf16.msra.mxu0 %v6348_v60 }
 0x396   : > { %v8361_v25 = vpop.f32.mrb[4].mxu1  ;;  %16474 = vmatmul.mubr.msk.bf16.vlgmr.msra.gmra.mrb[8].mxu0 %vm8438_vm6, %v18848_v39 }
 0x397   : > { %v8386_v9 = vmul.f32 %v8379_v42, %v8361_v25  ;;  %v8363_v49 = vpop.f32.mrb[5].mxu1  ;;  %8904 = vmatprep.mubr.bf16.mxu0 %v23418_v52  ;;  %v18863_v25 = vld [vmem:[%s23398_s4 + $0xc8] sm:$0xff]  }
 0x398   : > { %v8387_v29 = vmul.f32 %v8379_v42, %v8363_v49  ;;  %v8365_v16 = vpop.f32.mrb[6].mxu1  ;;  %v10652_v42 = vld [vmem:[%s23400_s6 + $0x18] sm:$0xff] }
 0x399   : > { %v8402_v57 = vadd.f32 %v8395_v47, %v8386_v9  ;;  %v8388_v27 = vmul.f32 %v8384_v56, %v8365_v16  ;;  %v8367_v59 = vpop.f32.mrb[7].mxu1  ;;  %v18864_v9 = vld [vmem:[%s23398_s4 + $0xd0] sm:$0xff]  }
 0x39a   : > { %v8403_v45 = vadd.f32 %v8395_v47, %v8387_v29  ;;  %v8389_v51 = vmul.f32 %v8384_v56, %v8367_v59 }
 0x39b   : > { %v8404_v32 = vadd.f32 %v8400_v3, %v8388_v27  ;;  %v8406_v28 = vmax.f32 %v8402_v57, 0.0  ;;  %v18865_v57 = vld [vmem:[%s23398_s4 + $0xd8] sm:$0xff]   ;;  %v18866_v27 = vld [vmem:[%s23398_s4 + $0xe0] sm:$0xff]  }
 0x39c   : > { %v8405_v8 = vadd.f32 %v8400_v3, %v8389_v51  ;;  %v8407_v5 = vmax.f32 %v8403_v45, 0.0 }
 0x39d   : > { %v8408_v15 = vmax.f32 %v8404_v32, 0.0  ;;  %v18868_v32 = vld [vmem:[%s23398_s4 + $0xf0] sm:$0xff]  }
 0x39e   : > { %v8409_v61 = vmax.f32 %v8405_v8, 0.0  ;;  %16475 = vmatmul.mubr.msk.bf16.gmra.mrb[12].mxu0 %vm8438_vm6, %v18849_v58  ;;  %v18867_v58 = vld [vmem:[%s23398_s4 + $0xe8] sm:$0xff]  }
 0x39f   : > { %v8410_v11 = vpack.c.bf16 %v8408_v15, %v8406_v28  ;;  %8978 = vmatprep.mubr.bf16.mxu0 %v23418_v52 }
 0x3a0   : > { %v8411_v35 = vpack.c.bf16 %v8409_v61, %v8407_v5  ;;  %v18869_v5 = vld [vmem:[%s23398_s4 + $0xf8] sm:$0xff]   ;;  %v18886_v61 = vld [vmem:[%s23398_s4 + $0x10] sm:$0xff]  }
 0x3a1   : > { %9115 = vrot.lane.b32.xlu1 %v8410_v11, %s19326_s15  ;;  %16438 = vmatmul.mubr.msk.bf16.vlgmr.msra.gmra.mrb[8].mxu1 %vm8438_vm6, %v18886_v61 }
 0x3a2   : > { %8414 = vst.msk [vmem:[#allocation2 + $0x38] sm:$0xff] %vm1974_vm4, %v8411_v35  ;;  %8487 = vmatprep.mubr.bf16.mxu1 %v23418_v52 }
 0x3a5   : > { %9204 = vrot.lane.b32.xlu1 %v6348_v60, %s19330_s25 }
 0x3a9   : > { %v8924_v53 = vld [vmem:[#allocation2 + $0x38] sm:$0xff]  ;;  %9293 = vrot.lane.b32.xlu1 %v20927_v63, %s19327_s29 }
 0x3aa   : > { %9117 = vrot.lane.b32.xlu0 %v8924_v53, %s19326_s15  ;;  %8946 = vmatprep.subr.bf16.mxu0 %v8924_v53 }
 0x3ab   : > { %8947 = vmatpush1.bf16.msra.mxu0 %v8410_v11 }
 0x3ad   : > { %9382 = vrot.lane.b32.xlu1 %v20978_v33, %s19327_s29 }
 0x3ae   : > { %9206 = vrot.lane.b32.xlu0 %v21143_v24, %s19330_s25  ;;  %16482 = vmatmul.mubr.msk.bf16.vlgmr.msra.gmra.mrb[8].mxu0 %vm8438_vm6, %v18850_v43  ;;  %s19331_s25 = smov 110  }
 0x3af   : > { %8988 = vmatprep.mubr.bf16.mxu0 %v23418_v52 }
 0x3b1   : > { %9471 = vrot.lane.b32.xlu1 %v20927_v63, %s19329_s30 }
 0x3b2   : > { %9295 = vrot.lane.b32.xlu0 %v20949_v10, %s19327_s29 }
 0x3b5   : > { %9560 = vrot.lane.b32.xlu1 %v20978_v33, %s19329_s30 }
 0x3b6   : > { %9384 = vrot.lane.b32.xlu0 %v21004_v50, %s19327_s29  ;;  %16483 = vmatmul.mubr.msk.bf16.gmra.mrb[12].mxu0 %vm8438_vm6, %v18851_v34  ;;  %v18888_v34 = vld [vmem:[%s23398_s4 + $0x18] sm:$0xff]  }
 0x3b7   : > { %9069 = vmatprep.mubr.bf16.mxu0 %v23418_v52  ;;  %16439 = vmatmul.mubr.msk.bf16.gmra.mrb[12].mxu1 %vm8438_vm6, %v18888_v34  ;;  %v18911_v34 = vld [vmem:[%s23401_s7 + $0x58] sm:$0xff]  }
 0x3b9   : > { %9649 = vrot.lane.b32.xlu1 %v20927_v63, %s19331_s25 }
 0x3ba   : > { %9473 = vrot.lane.b32.xlu0 %v20949_v10, %s19329_s30 }
 0x3bd   : > { %9739 = vrot.lane.b32.xlu1 %v6348_v60, %s19327_s29 }
 0x3be   : > { %9562 = vrot.lane.b32.xlu0 %v21004_v50, %s19329_s30 }
 0x3c1   : > { %9828 = vrot.lane.b32.xlu1 %v8410_v11, %s19327_s29 }
 0x3c2   : > { %9651 = vrot.lane.b32.xlu0 %v20949_v10, %s19331_s25 }
 0x3c5   : > { %9917 = vrot.lane.b32.xlu1 %v6348_v60, %s19329_s30 }
 0x3c6   : > { %9741 = vrot.lane.b32.xlu0 %v21143_v24, %s19327_s29 }
 0x3c9   : > { %10006 = vrot.lane.b32.xlu1 %v8410_v11, %s19329_s30  ;;  %v18870_v11 = vld [vmem:[%s23398_s4 + $0x100] sm:$0xff]  }
 0x3ca   : > { %9830 = vrot.lane.b32.xlu0 %v8924_v53, %s19327_s29  ;;  %s19334_s29 = smov 94  }
 0x3cd   : > { %10095 = vrot.lane.b32.xlu1 %v6348_v60, %s19331_s25  ;;  %v18862_v60 = vld [vmem:[%s23398_s4 + $0xc0] sm:$0xff]  }
 0x3ce   : > { %9919 = vrot.lane.b32.xlu0 %v21143_v24, %s19329_s30 }
 0x3d1   : > { %10184 = vrot.lane.b32.xlu1 %v20927_v63, %s19332_s22 }
 0x3d2   : > { %10008 = vrot.lane.b32.xlu0 %v8924_v53, %s19329_s30 }
 0x3d5   : > { %10274 = vrot.lane.b32.xlu1 %v20978_v33, %s19332_s22 }
 0x3d6   : > { %10097 = vrot.lane.b32.xlu0 %v21143_v24, %s19331_s25 }
 0x3d9   : > { %10363 = vrot.lane.b32.xlu1 %v20927_v63, %s19333_s23 }
 0x3da   : > { %10186 = vrot.lane.b32.xlu0 %v20949_v10, %s19332_s22 }
 0x3dd   : > { %10453 = vrot.lane.b32.xlu1 %v20978_v33, %s19333_s23  ;;  %v10650_v33 = vld [vmem:[%s23400_s6 + $0x8] sm:$0xff] }
 0x3de   : > { %10276 = vrot.lane.b32.xlu0 %v21004_v50, %s19332_s22 }
 0x3e1   : > { %10542 = vrot.lane.b32.xlu1 %v20927_v63, %s19334_s29  ;;  %v10617_v63 = vld [vmem:[%s23399_s5] sm:$0xff] }
 0x3e2   : > { %10365 = vrot.lane.b32.xlu0 %v20949_v10, %s19333_s23 }
 0x3e5   : > { %10628 = vperm.xlu1 %18723, %v10618_v20   ;;  %v18871_v20 = vld [vmem:[%s23398_s4 + $0x108] sm:$0xff]  }
 0x3e6   : > { %10455 = vrot.lane.b32.xlu0 %v21004_v50, %s19333_s23  ;;  %v10620_v50 = vld [vmem:[%s23399_s5 + $0x18] sm:$0xff] }
 0x3e9   : > { %10633 = vperm.xlu1 %18723, %v10619_v4   ;;  %v18892_v4 = vld [vmem:[%s23401_s7 + $0x4e0] sm:$0xff]  }
 0x3ea   : > { %10544 = vrot.lane.b32.xlu0 %v20949_v10, %s19334_s29  ;;  %v10649_v10 = vld [vmem:[%s23400_s6] sm:$0xff]  ;;  %12664 = vmatpush1.bf16.msra.mxu1 %v18892_v4 }
 0x3eb   : > { %12665 = vmatprep.subr.bf16.mxu1 %v23418_v52  ;;  %v18913_v4 = vld [vmem:[%s23401_s7 + $0x60] sm:$0x7f]  }
 0x3ed   : > { %10623 = vperm.xlu1 %18723, %v10617_v63   ;;  %v18894_v63 = vld [vmem:[%s23401_s7 + $0x4e8] sm:$0xff]  }
 0x3ee   : > { %10660 = vperm.xlu0 %18722, %v10650_v33   ;;  %v18872_v33 = vld [vmem:[%s23398_s4 + $0x110] sm:$0xff]   ;;  %12666 = vmatpush1.bf16.msra.mxu1 %v18894_v63  ;;  %v23433_v63 = vmov 65535  }
 0x3ef   : > { %12667 = vmatprep.subr.bf16.mxu1 %v23418_v52 }
 0x3f1   : > { %10638 = vperm.xlu1 %18723, %v10620_v50   ;;  %v18896_v50 = vld [vmem:[%s23401_s7 + $0x4f0] sm:$0xff]  }
 0x3f2   : > { %10665 = vperm.xlu0 %18722, %v10651_v46   ;;  %12668 = vmatpush1.bf16.msra.mxu1 %v18896_v50 }
 0x3f3   : > { %12669 = vmatprep.subr.bf16.mxu1 %v23418_v52 }
 0x3f6   : > { %10655 = vperm.xlu0 %18722, %v10649_v10  }
 0x3fa   : > { %10670 = vperm.xlu0 %18722, %v10652_v42  }
 0x3fb   : > { %v9025_v56 = vpop.permute.xlu1 %9024 }
 0x404   : > { %v9027_v48 = vpop.permute.xlu0 %9026 }
 0x405   : > { %v9028_v17 = vsel %vm757_vm3, %v9025_v56, %v9027_v48  ;;  %9037 = vmatprep.subr.bf16.mxu0 %v9027_v48  ;;  %v18898_v56 = vld [vmem:[%s23401_s7 + $0x4f8] sm:$0xff]  }
 0x406   : > { %9038 = vmatpush1.bf16.msra.mxu0 %v9028_v17  ;;  %v18873_v48 = vld [vmem:[%s23398_s4 + $0x118] sm:$0xff]   ;;  %12670 = vmatpush1.bf16.msra.mxu1 %v18898_v56  ;;  %v18900_v17 = vld [vmem:[%s23401_s7 + $0x500] sm:$0xff]  }
 0x407   : > { %12671 = vmatprep.subr.bf16.mxu1 %v23418_v52 }
 0x409   : > { %16490 = vmatmul.mubr.msk.bf16.vlgmr.msra.gmra.mrb[8].mxu0 %vm8438_vm6, %v18852_v54  ;;  %v18902_v54 = vld [vmem:[%s23401_s7 + $0x508] sm:$0xff]  }
 0x40a   : > { %9079 = vmatprep.mubr.bf16.mxu0 %v23418_v52  ;;  %12672 = vmatpush1.bf16.msra.mxu1 %v18900_v17 }
 0x40b   : > { %12673 = vmatprep.subr.bf16.mxu1 %v23418_v52 }
 0x40e   : > { %12674 = vmatpush1.bf16.msra.mxu1 %v18902_v54 }
 0x40f   : > { %12675 = vmatprep.subr.bf16.mxu1 %v23418_v52 }
 0x411   : > { %16491 = vmatmul.mubr.msk.bf16.gmra.mrb[12].mxu0 %vm8438_vm6, %v18853_v31  ;;  %v18874_v31 = vld [vmem:[%s23398_s4 + $0x120] sm:$0xff]  }
 0x412   : > { %9160 = vmatprep.mubr.bf16.mxu0 %v23418_v52 }
 0x413   : > { %v9116_v47 = vpop.permute.xlu1 %9115 }
 0x417   : > { %v9205_v19 = vpop.permute.xlu1 %9204 }
 0x41b   : > { %v9294_v37 = vpop.permute.xlu1 %9293 }
 0x41c   : > { %v9118_v3 = vpop.permute.xlu0 %9117 }
 0x41d   : > { %v9119_v44 = vsel %vm757_vm3, %v9116_v47, %v9118_v3  ;;  %9128 = vmatprep.subr.bf16.mxu0 %v9118_v3  ;;  %v18904_v47 = vld [vmem:[%s23401_s7 + $0x510] sm:$0xff]  }
 0x41e   : > { %9129 = vmatpush1.bf16.msra.mxu0 %v9119_v44  ;;  %12676 = vmatpush1.bf16.msra.mxu1 %v18904_v47 }
 0x41f   : > { %v9383_v18 = vpop.permute.xlu1 %9382  ;;  %12677 = vmatprep.subr.bf16.mxu1 %v23418_v52 }
 0x420   : > { %v9207_v13 = vpop.permute.xlu0 %9206 }
 0x421   : > { %v9208_v38 = vsel %vm8768_vm7, %v9205_v19, %v9207_v13  ;;  %16498 = vmatmul.mubr.msk.bf16.vlgmr.msra.gmra.mrb[8].mxu0 %vm8438_vm6, %v18854_v26  ;;  %9217 = vmatprep.subr.bf16.mxu0 %v9207_v13  ;;  %v18906_v19 = vld [vmem:[%s23401_s7 + $0x518] sm:$0xff]   ;;  %v18875_v13 = vld [vmem:[%s23398_s4 + $0x128] sm:$0xff]  }
 0x422   : > { %9218 = vmatpush1.bf16.msra.mxu0 %v9208_v38  ;;  %9170 = vmatprep.mubr.bf16.mxu0 %v23418_v52  ;;  %v18908_v38 = vld [vmem:[%s23401_s7 + $0x520] sm:$0xff]  }
 0x423   : > { %v9472_v1 = vpop.permute.xlu1 %9471  ;;  %12678 = vmatpush1.bf16.msra.mxu1 %v18906_v19 }
 0x424   : > { %v9296_v23 = vpop.permute.xlu0 %9295  ;;  %12679 = vmatprep.subr.bf16.mxu1 %v23418_v52 }
 0x425   : > { %9306 = vmatprep.subr.bf16.mxu0 %v9296_v23  ;;  %v9297_v30 = vsel %vm1974_vm4, %v9294_v37, %v9296_v23  ;;  %v18876_v23 = vld [vmem:[%s23398_s4 + $0x130] sm:$0xff]  }
 0x427   : > { %v9561_v40 = vpop.permute.xlu1 %9560  ;;  %12680 = vmatpush1.bf16.msra.mxu1 %v18908_v38 }
 0x428   : > { %v9385_v21 = vpop.permute.xlu0 %9384  ;;  %12681 = vmatprep.subr.bf16.mxu1 %v23418_v52 }
 0x429   : > { %16499 = vmatmul.mubr.msk.bf16.gmra.mrb[12].mxu0 %vm8438_vm6, %v18855_v41  ;;  %v9386_v12 = vsel %vm1974_vm4, %v9383_v18, %v9385_v21 }
 0x42a   : > { %9249 = vmatprep.mubr.bf16.mxu0 %v23418_v52 }
 0x42b   : > { %v9650_v49 = vpop.permute.xlu1 %9649 }
 0x42c   : > { %v9474_v14 = vpop.permute.xlu0 %9473 }
 0x42d   : > { %v9475_v2 = vsel %vm2301_vm5, %v9472_v1, %v9474_v14 }
 0x42f   : > { %v9740_v59 = vpop.permute.xlu1 %9739 }
 0x430   : > { %v9563_v0 = vpop.permute.xlu0 %9562 }
 0x431   : > { %16506 = vmatmul.mubr.msk.bf16.vlgmr.msra.gmra.mrb[8].mxu0 %vm8438_vm6, %v18856_v55  ;;  %v9564_v24 = vsel %vm2301_vm5, %v9561_v40, %v9563_v0 }
 0x432   : > { %9307 = vmatpush1.bf16.msra.mxu0 %v9297_v30  ;;  %9259 = vmatprep.mubr.bf16.mxu0 %v23418_v52  ;;  %v18877_v30 = vld [vmem:[%s23398_s4 + $0x138] sm:$0xff]  }
 0x433   : > { %9395 = vmatprep.subr.bf16.mxu0 %v9385_v21  ;;  %v9829_v8 = vpop.permute.xlu1 %9828  ;;  %v18878_v21 = vld [vmem:[%s23398_s4 + $0x140] sm:$0xff]  }
 0x434   : > { %v9652_v39 = vpop.permute.xlu0 %9651 }
 0x435   : > { %v9654_v29 = vsel %vm9653_vm8, %v9650_v49, %v9652_v39  ;;  %v18885_v49 = vld [vmem:[%s23398_s4 + $0x178] sm:$0xff]  }
 0x437   : > { %v9918_v35 = vpop.permute.xlu1 %9917 }
 0x438   : > { %v9742_v16 = vpop.permute.xlu0 %9741 }
 0x439   : > { %16507 = vmatmul.mubr.msk.bf16.gmra.mrb[12].mxu0 %vm8438_vm6, %v18857_v62  ;;  %v9743_v45 = vsel %vm1974_vm4, %v9740_v59, %v9742_v16  ;;  %v18893_v59 = vld [vmem:[%s23401_s7 + $0x10] sm:$0xff]  }
 0x43a   : > { %9338 = vmatprep.mubr.bf16.mxu0 %v23418_v52 }
 0x43b   : > { %v10007_v46 = vpop.permute.xlu1 %10006 }
 0x43c   : > { %v9831_v51 = vpop.permute.xlu0 %9830 }
 0x43d   : > { %v9832_v28 = vsel %vm1974_vm4, %v9829_v8, %v9831_v51  ;;  %v18903_v8 = vld [vmem:[%s23401_s7 + $0x38] sm:$0xff]  }
 0x43f   : > { %v10096_v3 = vpop.permute.xlu1 %10095 }
 0x440   : > { %v9920_v15 = vpop.permute.xlu0 %9919 }
 0x441   : > { %16514 = vmatmul.mubr.msk.bf16.vlgmr.msra.gmra.mrb[8].mxu0 %vm8438_vm6, %v18858_v36  ;;  %v9921_v53 = vsel %vm2301_vm5, %v9918_v35, %v9920_v15  ;;  %v18910_v35 = vld [vmem:[%s23401_s7 + $0x528] sm:$0xff]  }
 0x442   : > { %9396 = vmatpush1.bf16.msra.mxu0 %v9386_v12  ;;  %9348 = vmatprep.mubr.bf16.mxu0 %v23418_v52  ;;  %v18879_v12 = vld [vmem:[%s23398_s4 + $0x148] sm:$0xff]  }
 0x443   : > { %9484 = vmatprep.subr.bf16.mxu0 %v9474_v14  ;;  %v10185_v41 = vpop.permute.xlu1 %10184  ;;  %v18880_v14 = vld [vmem:[%s23398_s4 + $0x150] sm:$0xff]   ;;  %12682 = vmatpush1.bf16.msra.mxu1 %v18910_v35  ;;  %v18919_v35 = vld [vmem:[%s23401_s7 + $0x78] sm:$0xff]  }
 0x444   : > { %v10009_v43 = vpop.permute.xlu0 %10008  ;;  %12683 = vmatprep.subr.bf16.mxu1 %v23418_v52 }
 0x445   : > { %v10010_v10 = vsel %vm2301_vm5, %v10007_v46, %v10009_v43 }
 0x447   : > { %v10275_v62 = vpop.permute.xlu1 %10274 }
 0x448   : > { %v10098_v42 = vpop.permute.xlu0 %10097 }
 0x449   : > { %16515 = vmatmul.mubr.msk.bf16.gmra.mrb[12].mxu0 %vm8438_vm6, %v18859_v6  ;;  %v10099_v44 = vsel %vm9653_vm8, %v10096_v3, %v10098_v42 }
 0x44a   : > { %9427 = vmatprep.mubr.bf16.mxu0 %v23418_v52 }
 0x44b   : > { %v10364_v6 = vpop.permute.xlu1 %10363 }
 0x44c   : > { %v10187_v26 = vpop.permute.xlu0 %10186 }
 0x44d   : > { %v10189_v55 = vsel %vm10188_vm9, %v10185_v41, %v10187_v26 }
 0x450   : > { %v10277_v37 = vpop.permute.xlu0 %10276 }
 0x451   : > { %16522 = vmatmul.mubr.msk.bf16.vlgmr.msra.gmra.mrb[8].mxu0 %vm8438_vm6, %v18860_v7  ;;  %v10278_v36 = vsel %vm10188_vm9, %v10275_v62, %v10277_v37 }
 0x452   : > { %9485 = vmatpush1.bf16.msra.mxu0 %v9475_v2  ;;  %9437 = vmatprep.mubr.bf16.mxu0 %v23418_v52  ;;  %v18881_v2 = vld [vmem:[%s23398_s4 + $0x158] sm:$0xff]  }
 0x453   : > { %9573 = vmatprep.subr.bf16.mxu0 %v9563_v0  ;;  %v18882_v0 = vld [vmem:[%s23398_s4 + $0x160] sm:$0xff]  }
 0x454   : > { %v10366_v18 = vpop.permute.xlu0 %10365 }
 0x455   : > { %v10368_v7 = vsel %vm10367_vm10, %v10364_v6, %v10366_v18 }
 0x458   : > { %v10456_v1 = vpop.permute.xlu0 %10455 }
 0x459   : > { %16523 = vmatmul.mubr.msk.bf16.gmra.mrb[12].mxu0 %vm8438_vm6, %v18861_v22  ;;  %v10454_v22 = vpop.permute.xlu1 %10453 }
 0x45a   : > { %9516 = vmatprep.mubr.bf16.mxu0 %v23418_v52 }
 0x45c   : > { %v10545_v40 = vpop.permute.xlu0 %10544 }
 0x461   : > { %16530 = vmatmul.mubr.msk.bf16.vlgmr.msra.gmra.mrb[8].mxu0 %vm8438_vm6, %v18862_v60  ;;  %v10457_v60 = vsel %vm10367_vm10, %v10454_v22, %v10456_v1 }
 0x462   : > { %9574 = vmatpush1.bf16.msra.mxu0 %v9564_v24  ;;  %9526 = vmatprep.mubr.bf16.mxu0 %v23418_v52  ;;  %v18883_v24 = vld [vmem:[%s23398_s4 + $0x168] sm:$0xff]  }
 0x463   : > { %9663 = vmatprep.subr.bf16.mxu0 %v9652_v39  ;;  %v18884_v39 = vld [vmem:[%s23398_s4 + $0x170] sm:$0xff]  }
 0x469   : > { %16531 = vmatmul.mubr.msk.bf16.gmra.mrb[12].mxu0 %vm8438_vm6, %v18863_v25  ;;  %v10543_v25 = vpop.permute.xlu1 %10542 }
 0x46a   : > { %9605 = vmatprep.mubr.bf16.mxu0 %v23418_v52 }
 0x46d   : > { %v10629_v47 = vpop.permute.xlu1 %10628  ;;  %v10661_v3 = vpop.permute.xlu0 %10660 }
 0x471   : > { %16538 = vmatmul.mubr.msk.bf16.vlgmr.msra.gmra.mrb[8].mxu0 %vm8438_vm6, %v18864_v9  ;;  %v10547_v9 = vsel %vm10546_vm11, %v10543_v25, %v10545_v40 }
 0x472   : > { %9664 = vmatpush1.bf16.msra.mxu0 %v9654_v29  ;;  %9615 = vmatprep.mubr.bf16.mxu0 %v23418_v52  ;;  %v18887_v29 = vld [vmem:[%s23398_s4 + $0x180] sm:$0xff]  }
 0x473   : > { %9752 = vmatprep.subr.bf16.mxu0 %v9742_v16  ;;  %v18890_v16 = vld [vmem:[%s23401_s7] sm:$0xff]  }
 0x479   : > { %16539 = vmatmul.mubr.msk.bf16.gmra.mrb[12].mxu0 %vm8438_vm6, %v18865_v57  ;;  %v18891_v57 = vld [vmem:[%s23401_s7 + $0x8] sm:$0xff]  }
 0x47a   : > { %9695 = vmatprep.mubr.bf16.mxu0 %v23418_v52 }
 0x481   : > { %16546 = vmatmul.mubr.msk.bf16.vlgmr.msra.gmra.mrb[8].mxu0 %vm8438_vm6, %v18866_v27  ;;  %v18889_v27 = vld [vmem:[%s23398_s4 + $0x188] sm:$0xff]  }
 0x482   : > { %9753 = vmatpush1.bf16.msra.mxu0 %v9743_v45  ;;  %9705 = vmatprep.mubr.bf16.mxu0 %v23418_v52  ;;  %v18895_v45 = vld [vmem:[%s23401_s7 + $0x18] sm:$0xff]  }
 0x483   : > { %9841 = vmatprep.subr.bf16.mxu0 %v9831_v51  ;;  %v18897_v51 = vld [vmem:[%s23401_s7 + $0x20] sm:$0xff]  }
 0x489   : > { %16547 = vmatmul.mubr.msk.bf16.gmra.mrb[12].mxu0 %vm8438_vm6, %v18867_v58  ;;  %v18899_v58 = vld [vmem:[%s23401_s7 + $0x28] sm:$0xff]  }
 0x48a   : > { %9784 = vmatprep.mubr.bf16.mxu0 %v23418_v52 }
 0x491   : > { %16554 = vmatmul.mubr.msk.bf16.vlgmr.msra.gmra.mrb[8].mxu0 %vm8438_vm6, %v18868_v32  ;;  %v18901_v32 = vld [vmem:[%s23401_s7 + $0x30] sm:$0xff]  }
 0x492   : > { %9842 = vmatpush1.bf16.msra.mxu0 %v9832_v28  ;;  %9794 = vmatprep.mubr.bf16.mxu0 %v23418_v52  ;;  %v18905_v28 = vld [vmem:[%s23401_s7 + $0x40] sm:$0xff]  }
 0x493   : > { %9930 = vmatprep.subr.bf16.mxu0 %v9920_v15  ;;  %v18907_v15 = vld [vmem:[%s23401_s7 + $0x48] sm:$0xff]  }
 0x499   : > { %16555 = vmatmul.mubr.msk.bf16.gmra.mrb[12].mxu0 %vm8438_vm6, %v18869_v5  ;;  %v8479_v5 = vpop.f32.mrb[8].mxu1 }
 0x49a   : > { %9873 = vmatprep.mubr.bf16.mxu0 %v23418_v52  ;;  %v8481_v61 = vpop.f32.mrb[9].mxu1 }
 0x4a1   : > { %16562 = vmatmul.mubr.msk.bf16.vlgmr.msra.gmra.mrb[8].mxu0 %vm8438_vm6, %v18870_v11  ;;  %v18909_v11 = vld [vmem:[%s23401_s7 + $0x50] sm:$0xff]  }
 0x4a2   : > { %9931 = vmatpush1.bf16.msra.mxu0 %v9921_v53  ;;  %9883 = vmatprep.mubr.bf16.mxu0 %v23418_v52  ;;  %v8483_v53 = vpop.f32.mrb[10].mxu1 }
 0x4a3   : > { %10019 = vmatprep.subr.bf16.mxu0 %v10009_v43  ;;  %v8485_v43 = vpop.f32.mrb[11].mxu1 }
 0x4a9   : > { %16563 = vmatmul.mubr.msk.bf16.gmra.mrb[12].mxu0 %vm8438_vm6, %v18871_v20  ;;  %v18912_v20 = vld [vmem:[%s23401_s7 + $0x530] sm:$0xff]  }
 0x4aa   : > { %9962 = vmatprep.mubr.bf16.mxu0 %v23418_v52  ;;  %12684 = vmatpush1.bf16.msra.mxu1 %v18912_v20  ;;  %v18923_v20 = vld [vmem:[%s23401_s7 + $0x88] sm:$0xff]  }
 0x4ab   : > { %12685 = vmatprep.subr.bf16.mxu1 %v23418_v52 }
 0x4b1   : > { %16570 = vmatmul.mubr.msk.bf16.vlgmr.msra.gmra.mrb[8].mxu0 %vm8438_vm6, %v18872_v33  ;;  %v10801_v33 = vsel %vm10799_vm12, 4294967295, %v23433_v63  ;;  %v18925_v63 = vld [vmem:[%s23401_s7 + $0x90] sm:$0xff]  }
 0x4b2   : > { %10020 = vmatpush1.bf16.msra.mxu0 %v10010_v10  ;;  %9972 = vmatprep.mubr.bf16.mxu0 %v23418_v52  ;;  %v21535_v50 = vsel %vm10800_vm13, %v10801_v33, 0  ;;  %v18914_v10 = vld [vmem:[%s23401_s7 + $0x538] sm:$0xff]   ;;  %v18926_v33 = vld [vmem:[%s23401_s7 + $0x568] sm:$0xff]  }
 0x4b3   : > { %10108 = vmatprep.subr.bf16.mxu0 %v10098_v42  ;;  %v10804_v46 = vand.u32 %v18913_v4, %v21535_v50  ;;  %v8489_v42 = vpop.f32.mrb[12].mxu1  ;;  %12686 = vmatpush1.bf16.msra.mxu1 %v18914_v10  ;;  %v18924_v4 = vld [vmem:[%s23401_s7 + $0x560] sm:$0xff]   ;;  %v18928_v10 = vld [vmem:[%s23401_s7 + $0x570] sm:$0xff]  }
 0x4b4   : > { %v8491_v56 = vpop.f32.mrb[13].mxu1  ;;  %12687 = vmatprep.subr.bf16.mxu1 %v23418_v52 }
 0x4b5   : > { %v8493_v17 = vpop.f32.mrb[14].mxu1 }
 0x4b6   : > { %v8495_v54 = vpop.f32.mrb[15].mxu1 }
 0x4b9   : > { %16571 = vmatmul.mubr.msk.bf16.gmra.mrb[12].mxu0 %vm8438_vm6, %v18873_v48  ;;  %v18916_v48 = vld [vmem:[%s23401_s7 + $0x540] sm:$0x7f]  }
 0x4ba   : > { %10051 = vmatprep.mubr.bf16.mxu0 %v23418_v52 }
 0x4c1   : > { %16578 = vmatmul.mubr.msk.bf16.vlgmr.msra.gmra.mrb[8].mxu0 %vm8438_vm6, %v18874_v31  ;;  %v12661_v31 = vand.u32 %v18916_v48, %v21535_v50  ;;  %v18931_v48 = vld [vmem:[%s23401_s7 + $0xa8] sm:$0xff]  }
 0x4c2   : > { %10109 = vmatpush1.bf16.msra.mxu0 %v10099_v44  ;;  %10061 = vmatprep.mubr.bf16.mxu0 %v23418_v52  ;;  %v21548_v44 = vpop.permute.xlu1 %10633 }
 0x4c3   : > { %10198 = vmatprep.subr.bf16.mxu0 %v10187_v26  ;;  %12688 = vmatpush1.bf16.msra.mxu1 %v12661_v31  ;;  %v21550_v26 = vpop.permute.xlu0 %10665  ;;  %v18934_v31 = vld [vmem:[%s23401_s7 + $0x588] sm:$0xff]  }
 0x4c4   : > { %12817 = vmatprep.subr.bf16.mxu1 %v23418_v52 }
 0x4c7   : > { %v10656_v62 = vpop.permute.xlu0 %10655 }
 0x4c9   : > { %16579 = vmatmul.mubr.msk.bf16.gmra.mrb[12].mxu0 %vm8438_vm6, %v18875_v13 }
 0x4ca   : > { %10140 = vmatprep.mubr.bf16.mxu0 %v23418_v52 }
 0x4d1   : > { %16586 = vmatmul.mubr.msk.bf16.vlgmr.msra.gmra.mrb[8].mxu0 %vm8438_vm6, %v18876_v23  ;;  %v10624_v23 = vpop.permute.xlu1 %10623 }
 0x4d2   : > { %10199 = vmatpush1.bf16.msra.mxu0 %v10189_v55  ;;  %10150 = vmatprep.mubr.bf16.mxu0 %v23418_v52 }
 0x4d3   : > { %10287 = vmatprep.subr.bf16.mxu0 %v10277_v37 }
 0x4d9   : > { %16587 = vmatmul.mubr.msk.bf16.gmra.mrb[12].mxu0 %vm8438_vm6, %v18877_v30 }
 0x4da   : > { %10230 = vmatprep.mubr.bf16.mxu0 %v23418_v52 }
 0x4e1   : > { %16594 = vmatmul.mubr.msk.bf16.vlgmr.msra.gmra.mrb[8].mxu0 %vm8438_vm6, %v18878_v21 }
 0x4e2   : > { %10288 = vmatpush1.bf16.msra.mxu0 %v10278_v36  ;;  %10240 = vmatprep.mubr.bf16.mxu0 %v23418_v52 }
 0x4e3   : > { %10377 = vmatprep.subr.bf16.mxu0 %v10366_v18 }
 0x4e9   : > { %16595 = vmatmul.mubr.msk.bf16.gmra.mrb[12].mxu0 %vm8438_vm6, %v18879_v12 }
 0x4ea   : > { %10319 = vmatprep.mubr.bf16.mxu0 %v23418_v52 }
 0x4f1   : > { %16602 = vmatmul.mubr.msk.bf16.vlgmr.msra.gmra.mrb[8].mxu0 %vm8438_vm6, %v18880_v14 }
 0x4f2   : > { %10378 = vmatpush1.bf16.msra.mxu0 %v10368_v7  ;;  %10329 = vmatprep.mubr.bf16.mxu0 %v23418_v52 }
 0x4f3   : > { %10466 = vmatprep.subr.bf16.mxu0 %v10456_v1 }
 0x4f9   : > { %16603 = vmatmul.mubr.msk.bf16.gmra.mrb[12].mxu0 %vm8438_vm6, %v18881_v2 }
 0x4fa   : > { %10409 = vmatprep.mubr.bf16.mxu0 %v23418_v52 }
 0x501   : > { %16610 = vmatmul.mubr.msk.bf16.vlgmr.msra.gmra.mrb[8].mxu0 %vm8438_vm6, %v18882_v0 }
 0x502   : > { %10467 = vmatpush1.bf16.msra.mxu0 %v10457_v60  ;;  %10419 = vmatprep.mubr.bf16.mxu0 %v23418_v52 }
 0x503   : > { %10556 = vmatprep.subr.bf16.mxu0 %v10545_v40 }
 0x509   : > { %16611 = vmatmul.mubr.msk.bf16.gmra.mrb[12].mxu0 %vm8438_vm6, %v18883_v24 }
 0x50a   : > { %10498 = vmatprep.mubr.bf16.mxu0 %v23418_v52 }
 0x511   : > { %16618 = vmatmul.mubr.msk.bf16.vlgmr.msra.gmra.mrb[8].mxu0 %vm8438_vm6, %v18884_v39 }
 0x512   : > { %10557 = vmatpush1.bf16.msra.mxu0 %v10547_v9  ;;  %10508 = vmatprep.mubr.bf16.mxu0 %v23418_v52 }
 0x513   : > { %10806 = vmatprep.subr.bf16.mxu0 %v23418_v52 }
 0x519   : > { %16619 = vmatmul.mubr.msk.bf16.gmra.mrb[12].mxu0 %vm8438_vm6, %v18885_v49 }
 0x51a   : > { %10588 = vmatprep.mubr.bf16.mxu0 %v23418_v52 }
 0x521   : > { %16626 = vmatmul.mubr.msk.bf16.vlgmr.msra.gmra.mrb[8].mxu0 %vm8438_vm6, %v18887_v29 }
 0x522   : > { %10598 = vmatprep.mubr.bf16.mxu0 %v23418_v52  ;;  %10807 = vmatpush1.bf16.msra.mxu0 %v18890_v16  ;;  %v18915_v16 = vld [vmem:[%s23401_s7 + $0x68] sm:$0xff]  }
 0x523   : > { %10808 = vmatprep.subr.bf16.mxu0 %v23418_v52 }
 0x526   : > { %10809 = vmatpush1.bf16.msra.mxu0 %v18891_v57 }
 0x527   : > { %10810 = vmatprep.subr.bf16.mxu0 %v23418_v52 }
 0x529   : > { %16627 = vmatmul.mubr.msk.bf16.gmra.mrb[12].mxu0 %vm8438_vm6, %v18889_v27 }
 0x52a   : > { %10811 = vmatpush1.bf16.msra.mxu0 %v18893_v59 }
 0x52b   : > { %10812 = vmatprep.subr.bf16.mxu0 %v23418_v52 }
 0x52e   : > { %10813 = vmatpush1.bf16.msra.mxu0 %v18895_v45 }
 0x52f   : > { %10814 = vmatprep.subr.bf16.mxu0 %v23418_v52 }
 0x532   : > { %10815 = vmatpush1.bf16.msra.mxu0 %v18897_v51 }
 0x533   : > { %10816 = vmatprep.subr.bf16.mxu0 %v23418_v52 }
 0x536   : > { %10817 = vmatpush1.bf16.msra.mxu0 %v18899_v58 }
 0x537   : > { %10818 = vmatprep.subr.bf16.mxu0 %v23418_v52 }
 0x53a   : > { %10819 = vmatpush1.bf16.msra.mxu0 %v18901_v32 }
 0x53b   : > { %10820 = vmatprep.subr.bf16.mxu0 %v23418_v52 }
 0x53e   : > { %10821 = vmatpush1.bf16.msra.mxu0 %v18903_v8 }
 0x53f   : > { %10822 = vmatprep.subr.bf16.mxu0 %v23418_v52 }
 0x542   : > { %10823 = vmatpush1.bf16.msra.mxu0 %v18905_v28  ;;  %v18917_v28 = vld [vmem:[%s23401_s7 + $0x70] sm:$0xff]  }
 0x543   : > { %10824 = vmatprep.subr.bf16.mxu0 %v23418_v52 }
 0x546   : > { %10825 = vmatpush1.bf16.msra.mxu0 %v18907_v15  ;;  %v18918_v15 = vld [vmem:[%s23401_s7 + $0x548] sm:$0xff]  }
 0x547   : > { %10826 = vmatprep.subr.bf16.mxu0 %v23418_v52 }
 0x54a   : > { %10827 = vmatpush1.bf16.msra.mxu0 %v18909_v11 }
 0x54b   : > { %10828 = vmatprep.subr.bf16.mxu0 %v23418_v52 }
 0x54e   : > { %10829 = vmatpush1.bf16.msra.mxu0 %v18911_v34  ;;  %v18922_v34 = vld [vmem:[%s23401_s7 + $0x558] sm:$0xff]  }
 0x54f   : > { %10830 = vmatprep.subr.bf16.mxu0 %v23418_v52 }
 0x552   : > { %10831 = vmatpush1.bf16.msra.mxu0 %v10804_v46  ;;  %v18927_v46 = vld [vmem:[%s23401_s7 + $0x98] sm:$0xff]  }
 0x553   : > { %10963 = vmatprep.subr.bf16.mxu0 %v23418_v52 }
 0x5f4   : > { %v10590_v19 = vpop.f32.mrb[8].mxu0 }
 0x5f5   : > { %v18001_v13 = vadd.f32 %v10590_v19, %v8479_v5  ;;  %v10592_v38 = vpop.f32.mrb[9].mxu0  ;;  %v18937_v19 = vld [vmem:[%s23401_s7 + $0xc0] sm:$0xff]  }
 0x5f6   : > { %v18002_v41 = vadd.f32 %v10592_v38, %v8481_v61  ;;  %v10594_v55 = vpop.f32.mrb[10].mxu0  ;;  %v18939_v38 = vld [vmem:[%s23401_s7 + $0xc8] sm:$0x7f]  }
 0x5f7   : > { %v10641_v37 = vmul.f32 %v18001_v13, %v10624_v23  ;;  %v18003_v30 = vadd.f32 %v10594_v55, %v8483_v53  ;;  %v10596_v21 = vpop.f32.mrb[11].mxu0  ;;  %v18920_v53 = vld [vmem:[%s23401_s7 + $0x550] sm:$0xff]   ;;  %v18938_v13 = vld [vmem:[%s23401_s7 + $0x598] sm:$0xff]   ;;  %v18942_v55 = vld [vmem:[%s23401_s7 + $0x5a8] sm:$0x7f]  }
 0x5f8   : > { %v10642_v36 = vmul.f32 %v18002_v41, %v10624_v23  ;;  %v18004_v18 = vadd.f32 %v10596_v21, %v8485_v43  ;;  %v18921_v43 = vld [vmem:[%s23401_s7 + $0x80] sm:$0xff]   ;;  %v10961_v23 = vand.u32 %v18939_v38, %v21535_v50  ;;  %v12815_v21 = vand.u32 %v18942_v55, %v21535_v50  ;;  %v18976_v38 = vld [vmem:[%s23401_s7 + $0x630] sm:$0xff]   ;;  %v18979_v55 = vld [vmem:[%s23401_s7 + $0x168] sm:$0xff]  }
 0x5f9   : > { %v10673_v12 = vadd.f32 %v10656_v62, %v10641_v37  ;;  %v10643_v14 = vmul.f32 %v18003_v30, %v10629_v47  ;;  %v18940_v41 = vld [vmem:[%s23401_s7 + $0x5a0] sm:$0xff]   ;;  %v18941_v37 = vld [vmem:[%s23401_s7 + $0xd0] sm:$0xff]  }
 0x5fa   : > { %v10674_v6 = vadd.f32 %v10656_v62, %v10642_v36  ;;  %v10644_v7 = vmul.f32 %v18004_v18, %v10629_v47  ;;  %v18935_v47 = vld [vmem:[%s23401_s7 + $0xb8] sm:$0xff]  }
 0x5fb   : > { %v10681_v1 = vmax.f32 %v10673_v12, 0.0  ;;  %v10675_v2 = vadd.f32 %v10661_v3, %v10643_v14  ;;  %v18943_v18 = vld [vmem:[%s23401_s7 + $0xd8] sm:$0xff]   ;;  %v18944_v12 = vld [vmem:[%s23401_s7 + $0x5b0] sm:$0xff]  }
 0x5fc   : > { %v10682_v0 = vmax.f32 %v10674_v6, 0.0  ;;  %v10676_v22 = vadd.f32 %v10661_v3, %v10644_v7  ;;  %v10600_v60 = vpop.f32.mrb[12].mxu0  ;;  %v18936_v3 = vld [vmem:[%s23401_s7 + $0x590] sm:$0xff]   ;;  %v18945_v7 = vld [vmem:[%s23401_s7 + $0xe0] sm:$0xff]  }
 0x5fd   : > { %v10683_v40 = vmax.f32 %v10675_v2, 0.0  ;;  %v21552_v24 = vadd.f32 %v10600_v60, %v8489_v42  ;;  %v10602_v39 = vpop.f32.mrb[13].mxu0  ;;  %v21561_v57 = vpack.c.bf16 %v10681_v1, %v10681_v1  ;;  %v18929_v42 = vld [vmem:[%s23401_s7 + $0xa0] sm:$0xff]   ;;  %v18946_v1 = vld [vmem:[%s23401_s7 + $0x5b8] sm:$0xff]   ;;  %v18947_v2 = vld [vmem:[%s23401_s7 + $0xe8] sm:$0xff]  }
 0x5fe   : > { %v21554_v25 = vpack.c.bf16 %v10682_v0, %v10682_v0  ;;  %v10684_v9 = vmax.f32 %v10676_v22, 0.0  ;;  %v21556_v49 = vadd.f32 %v10602_v39, %v8491_v56  ;;  %v10604_v29 = vpop.f32.mrb[14].mxu0  ;;  %v18930_v56 = vld [vmem:[%s23401_s7 + $0x578] sm:$0xff]   ;;  %v18948_v0 = vld [vmem:[%s23401_s7 + $0x5c0] sm:$0xff]   ;;  %v18949_v22 = vld [vmem:[%s23401_s7 + $0xf0] sm:$0xff]  }
 0x5ff   : > { %v21563_v27 = vpack.c.bf16 %v10683_v40, %v10683_v40  ;;  %v21565_v59 = vadd.f32 %v10604_v29, %v8493_v17  ;;  %v10606_v45 = vpop.f32.mrb[15].mxu0  ;;  %v18932_v17 = vld [vmem:[%s23401_s7 + $0x580] sm:$0xff]   ;;  %v21690_v30 = vshrl.u32 %v21561_v57, 16  ;;  %v18950_v60 = vld [vmem:[%s23401_s7 + $0x5c8] sm:$0xff]   ;;  %v18951_v40 = vld [vmem:[%s23401_s7 + $0xf8] sm:$0xff]  }
 0x600   : > { %v21567_v51 = vpack.c.bf16 %v10684_v9, %v10684_v9  ;;  %v21569_v58 = vadd.f32 %v10606_v45, %v8495_v54  ;;  %16641 = vmatprep.mubr.msk.bf16.mxu0 %vm10795_vm14, %v21554_v25  ;;  %v21574_v32 = vshrl.u32 %v21554_v25, 16  ;;  %v18933_v54 = vld [vmem:[%s23401_s7 + $0xb0] sm:$0xff]   ;;  %v11034_v62 = vrot.slane %v21554_v25, 1  ;;  %v18953_v9 = vld [vmem:[%s23401_s7 + $0x100] sm:$0xff]   ;;  %v18954_v29 = vld [vmem:[%s23401_s7 + $0x5d8] sm:$0xff]  }
 0x601   : > { %10839 = vmatmul.mubr.bf16.vlgmr.msra.gmra.mrb[16].mxu0 %v21561_v57  ;;  %v12577_v61 = vrot.slane %v21563_v27, 2  ;;  %v21697_v36 = vshrl.u32 %v21563_v27, 16  ;;  %v18952_v39 = vld [vmem:[%s23401_s7 + $0x5d0] sm:$0xff]   ;;  %v18956_v45 = vld [vmem:[%s23401_s7 + $0x5e0] sm:$0xff]  }
 0x602   : > { %10964 = vmatpush1.bf16.msra.mxu0 %v18915_v16  ;;  %16681 = vmatprep.mubr.msk.bf16.mxu0 %vm10795_vm14, %v21574_v32  ;;  %v12578_v8 = vrot.slane %v21567_v51, 2  ;;  %v21587_v5 = vshrl.u32 %v21567_v51, 16  ;;  %v12886_v6 = vrot.slane %v21567_v51, 3  ;;  %v18955_v16 = vld [vmem:[%s23401_s7 + $0x108] sm:$0xff]  }
 0x603   : > { %10965 = vmatprep.subr.bf16.mxu0 %v23418_v52  ;;  %v12731_v14 = vrot.slane %v21697_v36, 2 }
 0x604   : > { %17121 = vmatprep.mubr.msk.bf16.mxu1 %vm10795_vm14, %v12578_v8  ;;  %v12732_v11 = vrot.slane %v21587_v5, 2  ;;  %v18957_v8 = vld [vmem:[%s23401_s7 + $0x110] sm:$0xff]  }
 0x605   : > { %12696 = vmatmul.mubr.bf16.vlgmr.msra.gmra.mrb[16].mxu1 %v12577_v61  ;;  %v18960_v61 = vld [vmem:[%s23401_s7 + $0x5f0] sm:$0xff]  }
 0x606   : > { %10966 = vmatpush1.bf16.msra.mxu0 %v18917_v28  ;;  %12818 = vmatpush1.bf16.msra.mxu1 %v18918_v15  ;;  %v18958_v28 = vld [vmem:[%s23401_s7 + $0x5e8] sm:$0xff]   ;;  %v18959_v15 = vld [vmem:[%s23401_s7 + $0x118] sm:$0xff]  }
 0x607   : > { %17161 = vmatprep.mubr.msk.bf16.mxu1 %vm10795_vm14, %v12732_v11  ;;  %10967 = vmatprep.subr.bf16.mxu0 %v23418_v52  ;;  %v18961_v11 = vld [vmem:[%s23401_s7 + $0x120] sm:$0xff]  }
 0x608   : > { %12819 = vmatprep.subr.bf16.mxu1 %v23418_v52 }
 0x60a   : > { %10968 = vmatpush1.bf16.msra.mxu0 %v18919_v35  ;;  %12820 = vmatpush1.bf16.msra.mxu1 %v18920_v53  ;;  %v18962_v35 = vld [vmem:[%s23401_s7 + $0x5f8] sm:$0xff]   ;;  %v18963_v53 = vld [vmem:[%s23401_s7 + $0x128] sm:$0xff]  }
 0x60b   : > { %10969 = vmatprep.subr.bf16.mxu0 %v23418_v52  ;;  %12821 = vmatprep.subr.bf16.mxu1 %v23418_v52 }
 0x60e   : > { %10970 = vmatpush1.bf16.msra.mxu0 %v18921_v43  ;;  %12822 = vmatpush1.bf16.msra.mxu1 %v18922_v34  ;;  %v18965_v43 = vld [vmem:[%s23401_s7 + $0x130] sm:$0x7f]   ;;  %v18964_v34 = vld [vmem:[%s23401_s7 + $0x600] sm:$0xff]  }
 0x60f   : > { %10971 = vmatprep.subr.bf16.mxu0 %v23418_v52  ;;  %12823 = vmatprep.subr.bf16.mxu1 %v23418_v52 }
 0x612   : > { %10972 = vmatpush1.bf16.msra.mxu0 %v18923_v20  ;;  %12824 = vmatpush1.bf16.msra.mxu1 %v18924_v4  ;;  %v11117_v20 = vand.u32 %v18965_v43, %v21535_v50  ;;  %v18966_v4 = vld [vmem:[%s23401_s7 + $0x608] sm:$0xff]  }
 0x613   : > { %10973 = vmatprep.subr.bf16.mxu0 %v23418_v52  ;;  %12825 = vmatprep.subr.bf16.mxu1 %v23418_v52  ;;  %v18998_v43 = vld [vmem:[%s23401_s7 + $0x688] sm:$0xff]  }
 0x616   : > { %10974 = vmatpush1.bf16.msra.mxu0 %v18925_v63  ;;  %12826 = vmatpush1.bf16.msra.mxu1 %v18926_v33  ;;  %v18968_v63 = vld [vmem:[%s23401_s7 + $0x610] sm:$0x7f]   ;;  %v18967_v33 = vld [vmem:[%s23401_s7 + $0x138] sm:$0xff]  }
 0x617   : > { %10975 = vmatprep.subr.bf16.mxu0 %v23418_v52  ;;  %12827 = vmatprep.subr.bf16.mxu1 %v23418_v52 }
 0x61a   : > { %10976 = vmatpush1.bf16.msra.mxu0 %v18927_v46  ;;  %12828 = vmatpush1.bf16.msra.mxu1 %v18928_v10  ;;  %v11033_v46 = vrot.slane %v21561_v57, 1  ;;  %v12969_v10 = vand.u32 %v18968_v63, %v21535_v50  ;;  %v19002_v63 = vld [vmem:[%s23401_s7 + $0x698] sm:$0xff]  }
 0x61b   : > { %10977 = vmatprep.subr.bf16.mxu0 %v23418_v52  ;;  %12829 = vmatprep.subr.bf16.mxu1 %v23418_v52 }
 0x61e   : > { %10978 = vmatpush1.bf16.msra.mxu0 %v18929_v42  ;;  %12830 = vmatpush1.bf16.msra.mxu1 %v18930_v56  ;;  %v11188_v42 = vrot.slane %v21574_v32, 1  ;;  %v18969_v56 = vld [vmem:[%s23401_s7 + $0x140] sm:$0xff]  }
 0x61f   : > { %10979 = vmatprep.subr.bf16.mxu0 %v23418_v52  ;;  %12831 = vmatprep.subr.bf16.mxu1 %v23418_v52 }
 0x622   : > { %10980 = vmatpush1.bf16.msra.mxu0 %v18931_v48  ;;  %12832 = vmatpush1.bf16.msra.mxu1 %v18932_v17  ;;  %v18970_v48 = vld [vmem:[%s23401_s7 + $0x618] sm:$0xff]   ;;  %v12885_v17 = vrot.slane %v21563_v27, 3 }
 0x623   : > { %10981 = vmatprep.subr.bf16.mxu0 %v23418_v52  ;;  %12833 = vmatprep.subr.bf16.mxu1 %v23418_v52 }
 0x626   : > { %10982 = vmatpush1.bf16.msra.mxu0 %v18933_v54  ;;  %12834 = vmatpush1.bf16.msra.mxu1 %v18934_v31  ;;  %v13040_v54 = vrot.slane %v21587_v5, 3  ;;  %v18971_v31 = vld [vmem:[%s23401_s7 + $0x148] sm:$0xff]  }
 0x627   : > { %10983 = vmatprep.subr.bf16.mxu0 %v23418_v52  ;;  %12835 = vmatprep.subr.bf16.mxu1 %v23418_v52 }
 0x62a   : > { %10984 = vmatpush1.bf16.msra.mxu0 %v18935_v47  ;;  %12836 = vmatpush1.bf16.msra.mxu1 %v18936_v3  ;;  %v18972_v47 = vld [vmem:[%s23401_s7 + $0x620] sm:$0xff]   ;;  %v18973_v3 = vld [vmem:[%s23401_s7 + $0x150] sm:$0xff]  }
 0x62b   : > { %10985 = vmatprep.subr.bf16.mxu0 %v23418_v52  ;;  %12837 = vmatprep.subr.bf16.mxu1 %v23418_v52 }
 0x62e   : > { %10986 = vmatpush1.bf16.msra.mxu0 %v18937_v19  ;;  %12838 = vmatpush1.bf16.msra.mxu1 %v18938_v13  ;;  %v18974_v19 = vld [vmem:[%s23401_s7 + $0x628] sm:$0xff]   ;;  %v18975_v13 = vld [vmem:[%s23401_s7 + $0x158] sm:$0xff]  }
 0x62f   : > { %10987 = vmatprep.subr.bf16.mxu0 %v23418_v52  ;;  %12839 = vmatprep.subr.bf16.mxu1 %v23418_v52 }
 0x632   : > { %10988 = vmatpush1.bf16.msra.mxu0 %v10961_v23  ;;  %12840 = vmatpush1.bf16.msra.mxu1 %v18940_v41  ;;  %v18977_v23 = vld [vmem:[%s23401_s7 + $0x160] sm:$0xff]   ;;  %v18978_v41 = vld [vmem:[%s23401_s7 + $0x638] sm:$0xff]  }
 0x633   : > { %11119 = vmatprep.subr.bf16.mxu0 %v23418_v52  ;;  %12841 = vmatprep.subr.bf16.mxu1 %v23418_v52 }
 0x635   : > { %10996 = vmatmul.mubr.bf16.vlgmr.msra.gmra.mrb[16].mxu0 %v21690_v30 }
 0x636   : > { %11120 = vmatpush1.bf16.msra.mxu0 %v18941_v37  ;;  %16721 = vmatprep.mubr.msk.bf16.mxu0 %vm10795_vm14, %v11034_v62  ;;  %v18980_v37 = vld [vmem:[%s23401_s7 + $0x640] sm:$0xff]   ;;  %v18982_v62 = vld [vmem:[%s23401_s7 + $0x648] sm:$0xff]  }
 0x637   : > { %12842 = vmatpush1.bf16.msra.mxu1 %v12815_v21  ;;  %11121 = vmatprep.subr.bf16.mxu0 %v23418_v52  ;;  %v18981_v21 = vld [vmem:[%s23401_s7 + $0x170] sm:$0xff]  }
 0x638   : > { %12971 = vmatprep.subr.bf16.mxu1 %v23418_v52 }
 0x63a   : > { %12850 = vmatmul.mubr.bf16.vlgmr.msra.gmra.mrb[16].mxu1 %v12731_v14  ;;  %11122 = vmatpush1.bf16.msra.mxu0 %v18943_v18  ;;  %v18983_v18 = vld [vmem:[%s23401_s7 + $0x178] sm:$0xff]   ;;  %v18985_v14 = vld [vmem:[%s23401_s7 + $0x180] sm:$0xff]  }
 0x63b   : > { %12972 = vmatpush1.bf16.msra.mxu1 %v18944_v12  ;;  %17201 = vmatprep.mubr.msk.bf16.mxu1 %vm10795_vm14, %v12886_v6  ;;  %v18984_v12 = vld [vmem:[%s23401_s7 + $0x650] sm:$0xff]   ;;  %v18986_v6 = vld [vmem:[%s23401_s7 + $0x658] sm:$0xff]  }
 0x63c   : > { %11123 = vmatprep.subr.bf16.mxu0 %v23418_v52  ;;  %12973 = vmatprep.subr.bf16.mxu1 %v23418_v52 }
 0x63e   : > { %11124 = vmatpush1.bf16.msra.mxu0 %v18945_v7  ;;  %v18987_v7 = vld [vmem:[%s23401_s7 + $0x188] sm:$0xff]  }
 0x63f   : > { %12974 = vmatpush1.bf16.msra.mxu1 %v18946_v1  ;;  %11125 = vmatprep.subr.bf16.mxu0 %v23418_v52  ;;  %v18988_v1 = vld [vmem:[%s23401_s7 + $0x660] sm:$0xff]  }
 0x640   : > { %12975 = vmatprep.subr.bf16.mxu1 %v23418_v52 }
 0x642   : > { %11126 = vmatpush1.bf16.msra.mxu0 %v18947_v2  ;;  %v18989_v2 = vld [vmem:[%s23401_s7 + $0x190] sm:$0xff]  }
 0x643   : > { %12976 = vmatpush1.bf16.msra.mxu1 %v18948_v0  ;;  %11127 = vmatprep.subr.bf16.mxu0 %v23418_v52  ;;  %v18991_v0 = vld [vmem:[%s23401_s7 + $0x198] sm:$0x7f]  }
 0x644   : > { %12977 = vmatprep.subr.bf16.mxu1 %v23418_v52 }
 0x646   : > { %11128 = vmatpush1.bf16.msra.mxu0 %v18949_v22  ;;  %v18990_v22 = vld [vmem:[%s23401_s7 + $0x668] sm:$0xff]  }
 0x647   : > { %12978 = vmatpush1.bf16.msra.mxu1 %v18950_v60  ;;  %11129 = vmatprep.subr.bf16.mxu0 %v23418_v52  ;;  %v10646_v60 = vmul.f32 %v21556_v49, %v21548_v44  ;;  %v18993_v49 = vld [vmem:[%s23401_s7 + $0x1a0] sm:$0xff]  }
 0x648   : > { %12979 = vmatprep.subr.bf16.mxu1 %v23418_v52 }
 0x64a   : > { %11130 = vmatpush1.bf16.msra.mxu0 %v18951_v40  ;;  %v11271_v40 = vand.u32 %v18991_v0, %v21535_v50  ;;  %v19024_v0 = vld [vmem:[%s23401_s7 + $0x6f0] sm:$0xff]  }
 0x64b   : > { %12980 = vmatpush1.bf16.msra.mxu1 %v18952_v39  ;;  %11131 = vmatprep.subr.bf16.mxu0 %v23418_v52  ;;  %v18992_v39 = vld [vmem:[%s23401_s7 + $0x670] sm:$0xff]  }
 0x64c   : > { %12981 = vmatprep.subr.bf16.mxu1 %v23418_v52 }
 0x64e   : > { %11132 = vmatpush1.bf16.msra.mxu0 %v18953_v9  ;;  %v18994_v9 = vld [vmem:[%s23401_s7 + $0x678] sm:$0x7f]  }
 0x64f   : > { %12982 = vmatpush1.bf16.msra.mxu1 %v18954_v29  ;;  %11133 = vmatprep.subr.bf16.mxu0 %v23418_v52  ;;  %v10678_v29 = vadd.f32 %v21550_v26, %v10646_v60  ;;  %v19026_v60 = vld [vmem:[%s23401_s7 + $0x6f8] sm:$0xff]  }
 0x650   : > { %12983 = vmatprep.subr.bf16.mxu1 %v23418_v52 }
 0x652   : > { %11134 = vmatpush1.bf16.msra.mxu0 %v18955_v16  ;;  %v11187_v16 = vrot.slane %v21690_v30, 1 }
 0x653   : > { %12984 = vmatpush1.bf16.msra.mxu1 %v18956_v45  ;;  %11135 = vmatprep.subr.bf16.mxu0 %v23418_v52  ;;  %v13123_v45 = vand.u32 %v18994_v9, %v21535_v50  ;;  %v19029_v9 = vld [vmem:[%s23401_s7 + $0x230] sm:$0xff]  }
 0x654   : > { %12985 = vmatprep.subr.bf16.mxu1 %v23418_v52 }
 0x656   : > { %11136 = vmatpush1.bf16.msra.mxu0 %v18957_v8  ;;  %v11342_v8 = vrot.slane %v21554_v25, 2 }
 0x657   : > { %12986 = vmatpush1.bf16.msra.mxu1 %v18958_v28  ;;  %11137 = vmatprep.subr.bf16.mxu0 %v23418_v52  ;;  %v10686_v28 = vmax.f32 %v10678_v29, 0.0  ;;  %v19030_v29 = vld [vmem:[%s23401_s7 + $0x708] sm:$0xff]  }
 0x658   : > { %12987 = vmatprep.subr.bf16.mxu1 %v23418_v52 }
 0x65a   : > { %11138 = vmatpush1.bf16.msra.mxu0 %v18959_v15  ;;  %v18995_v15 = vld [vmem:[%s23401_s7 + $0x1a8] sm:$0xff]  }
 0x65b   : > { %12988 = vmatpush1.bf16.msra.mxu1 %v18960_v61  ;;  %11139 = vmatprep.subr.bf16.mxu0 %v23418_v52  ;;  %v18996_v61 = vld [vmem:[%s23401_s7 + $0x680] sm:$0xff]  }
 0x65c   : > { %12989 = vmatprep.subr.bf16.mxu1 %v23418_v52 }
 0x65e   : > { %11140 = vmatpush1.bf16.msra.mxu0 %v18961_v11  ;;  %v13039_v11 = vrot.slane %v21697_v36, 3 }
 0x65f   : > { %12990 = vmatpush1.bf16.msra.mxu1 %v18962_v35  ;;  %11141 = vmatprep.subr.bf16.mxu0 %v23418_v52  ;;  %v21937_v35 = vpack.c.bf16 %v10686_v28, %v10686_v28  ;;  %v19035_v28 = vld [vmem:[%s23401_s7 + $0x248] sm:$0xff]  }
 0x660   : > { %12991 = vmatprep.subr.bf16.mxu1 %v23418_v52 }
 0x662   : > { %11142 = vmatpush1.bf16.msra.mxu0 %v18963_v53  ;;  %v18997_v53 = vld [vmem:[%s23401_s7 + $0x1b0] sm:$0xff]  }
 0x663   : > { %12992 = vmatpush1.bf16.msra.mxu1 %v18964_v34  ;;  %11143 = vmatprep.subr.bf16.mxu0 %v23418_v52  ;;  %v18999_v34 = vld [vmem:[%s23401_s7 + $0x1b8] sm:$0xff]  }
 0x664   : > { %12993 = vmatprep.subr.bf16.mxu1 %v23418_v52 }
 0x666   : > { %11144 = vmatpush1.bf16.msra.mxu0 %v11117_v20  ;;  %v19000_v20 = vld [vmem:[%s23401_s7 + $0x690] sm:$0xff]  }
 0x667   : > { %12994 = vmatpush1.bf16.msra.mxu1 %v18966_v4  ;;  %11273 = vmatprep.subr.bf16.mxu0 %v23418_v52  ;;  %v19001_v4 = vld [vmem:[%s23401_s7 + $0x1c0] sm:$0xff]  }
 0x668   : > { %12995 = vmatprep.subr.bf16.mxu1 %v23418_v52 }
 0x669   : > { %11152 = vmatmul.mubr.bf16.vlgmr.msra.gmra.mrb[16].mxu0 %v11033_v46  ;;  %v19004_v46 = vld [vmem:[%s23401_s7 + $0x6a0] sm:$0xff]  }
 0x66a   : > { %11274 = vmatpush1.bf16.msra.mxu0 %v18967_v33  ;;  %16761 = vmatprep.mubr.msk.bf16.mxu0 %vm10795_vm14, %v11188_v42  ;;  %v19003_v33 = vld [vmem:[%s23401_s7 + $0x1c8] sm:$0xff]  }
 0x66b   : > { %12996 = vmatpush1.bf16.msra.mxu1 %v12969_v10  ;;  %11275 = vmatprep.subr.bf16.mxu0 %v23418_v52  ;;  %v19005_v10 = vld [vmem:[%s23401_s7 + $0x1d0] sm:$0xff]   ;;  %v19006_v42 = vld [vmem:[%s23401_s7 + $0x6a8] sm:$0xff]  }
 0x66c   : > { %13125 = vmatprep.subr.bf16.mxu1 %v23418_v52 }
 0x66e   : > { %13004 = vmatmul.mubr.bf16.vlgmr.msra.gmra.mrb[16].mxu1 %v12885_v17  ;;  %11276 = vmatpush1.bf16.msra.mxu0 %v18969_v56  ;;  %v19007_v56 = vld [vmem:[%s23401_s7 + $0x1d8] sm:$0xff]   ;;  %v19009_v17 = vld [vmem:[%s23401_s7 + $0x1e0] sm:$0xff]  }
 0x66f   : > { %13126 = vmatpush1.bf16.msra.mxu1 %v18970_v48  ;;  %17241 = vmatprep.mubr.msk.bf16.mxu1 %vm10795_vm14, %v13040_v54  ;;  %v19008_v48 = vld [vmem:[%s23401_s7 + $0x6b0] sm:$0xff]   ;;  %v19010_v54 = vld [vmem:[%s23401_s7 + $0x6b8] sm:$0xff]  }
 0x670   : > { %11277 = vmatprep.subr.bf16.mxu0 %v23418_v52  ;;  %13127 = vmatprep.subr.bf16.mxu1 %v23418_v52 }
 0x672   : > { %11278 = vmatpush1.bf16.msra.mxu0 %v18971_v31  ;;  %v19011_v31 = vld [vmem:[%s23401_s7 + $0x1e8] sm:$0xff]  }
 0x673   : > { %13128 = vmatpush1.bf16.msra.mxu1 %v18972_v47  ;;  %11279 = vmatprep.subr.bf16.mxu0 %v23418_v52  ;;  %v19012_v47 = vld [vmem:[%s23401_s7 + $0x6c0] sm:$0xff]  }
 0x674   : > { %13129 = vmatprep.subr.bf16.mxu1 %v23418_v52 }
 0x676   : > { %11280 = vmatpush1.bf16.msra.mxu0 %v18973_v3  ;;  %v19013_v3 = vld [vmem:[%s23401_s7 + $0x1f0] sm:$0xff]  }
 0x677   : > { %13130 = vmatpush1.bf16.msra.mxu1 %v18974_v19  ;;  %11281 = vmatprep.subr.bf16.mxu0 %v23418_v52  ;;  %v19014_v19 = vld [vmem:[%s23401_s7 + $0x6c8] sm:$0xff]  }
 0x678   : > { %13131 = vmatprep.subr.bf16.mxu1 %v23418_v52 }
 0x67a   : > { %11282 = vmatpush1.bf16.msra.mxu0 %v18975_v13  ;;  %v19015_v13 = vld [vmem:[%s23401_s7 + $0x1f8] sm:$0xff]  }
 0x67b   : > { %13132 = vmatpush1.bf16.msra.mxu1 %v18976_v38  ;;  %11283 = vmatprep.subr.bf16.mxu0 %v23418_v52  ;;  %v19017_v38 = vld [vmem:[%s23401_s7 + $0x200] sm:$0x7f]  }
 0x67c   : > { %13133 = vmatprep.subr.bf16.mxu1 %v23418_v52 }
 0x67e   : > { %11284 = vmatpush1.bf16.msra.mxu0 %v18977_v23  ;;  %v19016_v23 = vld [vmem:[%s23401_s7 + $0x6d0] sm:$0xff]  }
 0x67f   : > { %13134 = vmatpush1.bf16.msra.mxu1 %v18978_v41  ;;  %11285 = vmatprep.subr.bf16.mxu0 %v23418_v52  ;;  %v10645_v41 = vmul.f32 %v21552_v24, %v21548_v44  ;;  %v19019_v44 = vld [vmem:[%s23401_s7 + $0x208] sm:$0xff]   ;;  %v11341_v24 = vrot.slane %v21561_v57, 2 }
 0x680   : > { %13135 = vmatprep.subr.bf16.mxu1 %v23418_v52 }
 0x682   : > { %11286 = vmatpush1.bf16.msra.mxu0 %v18979_v55  ;;  %v11425_v55 = vand.u32 %v19017_v38, %v21535_v50  ;;  %v19053_v38 = vld [vmem:[%s23401_s7 + $0x290] sm:$0xff]  }
 0x683   : > { %13136 = vmatpush1.bf16.msra.mxu1 %v18980_v37  ;;  %11287 = vmatprep.subr.bf16.mxu0 %v23418_v52  ;;  %v19018_v37 = vld [vmem:[%s23401_s7 + $0x6d8] sm:$0xff]  }
 0x684   : > { %13137 = vmatprep.subr.bf16.mxu1 %v23418_v52 }
 0x686   : > { %11288 = vmatpush1.bf16.msra.mxu0 %v18981_v21  ;;  %v19020_v21 = vld [vmem:[%s23401_s7 + $0x6e0] sm:$0x7f]  }
 0x687   : > { %13138 = vmatpush1.bf16.msra.mxu1 %v18982_v62  ;;  %11289 = vmatprep.subr.bf16.mxu0 %v23418_v52  ;;  %v10677_v62 = vadd.f32 %v21550_v26, %v10645_v41  ;;  %v19021_v26 = vld [vmem:[%s23401_s7 + $0x210] sm:$0xff]   ;;  %v19055_v41 = vld [vmem:[%s23401_s7 + $0x298] sm:$0xff]  }
 0x688   : > { %13139 = vmatprep.subr.bf16.mxu1 %v23418_v52 }
 0x68a   : > { %11290 = vmatpush1.bf16.msra.mxu0 %v18983_v18  ;;  %v13276_v18 = vand.u32 %v19020_v21, %v21535_v50  ;;  %v19058_v21 = vld [vmem:[%s23401_s7 + $0x778] sm:$0xff]  }
 0x68b   : > { %13140 = vmatpush1.bf16.msra.mxu1 %v18984_v12  ;;  %11291 = vmatprep.subr.bf16.mxu0 %v23418_v52  ;;  %v10685_v12 = vmax.f32 %v10677_v62, 0.0  ;;  %v19059_v62 = vld [vmem:[%s23401_s7 + $0x2a8] sm:$0xff]  }
 0x68c   : > { %13141 = vmatprep.subr.bf16.mxu1 %v23418_v52 }
 0x68e   : > { %11292 = vmatpush1.bf16.msra.mxu0 %v18985_v14  ;;  %v11496_v14 = vrot.slane %v21574_v32, 2 }
 0x68f   : > { %13142 = vmatpush1.bf16.msra.mxu1 %v18986_v6  ;;  %11293 = vmatprep.subr.bf16.mxu0 %v23418_v52  ;;  %v19022_v6 = vld [vmem:[%s23401_s7 + $0x6e8] sm:$0xff]  }
 0x690   : > { %13143 = vmatprep.subr.bf16.mxu1 %v23418_v52 }
 0x692   : > { %11294 = vmatpush1.bf16.msra.mxu0 %v18987_v7  ;;  %v22052_v7 = vpack.c.bf16 %v10685_v12, %v10685_v12  ;;  %v19063_v12 = vld [vmem:[%s23401_s7 + $0x2b8] sm:$0xff]  }
 0x693   : > { %13144 = vmatpush1.bf16.msra.mxu1 %v18988_v1  ;;  %11295 = vmatprep.subr.bf16.mxu0 %v23418_v52  ;;  %v22056_v1 = vshrl.u32 %v21937_v35, 16 }
 0x694   : > { %13145 = vmatprep.subr.bf16.mxu1 %v23418_v52 }
 0x696   : > { %11296 = vmatpush1.bf16.msra.mxu0 %v18989_v2  ;;  %v19023_v2 = vld [vmem:[%s23401_s7 + $0x218] sm:$0xff]  }
 0x697   : > { %13146 = vmatpush1.bf16.msra.mxu1 %v18990_v22  ;;  %11297 = vmatprep.subr.bf16.mxu0 %v23418_v52  ;;  %v19025_v22 = vld [vmem:[%s23401_s7 + $0x220] sm:$0xff]  }
 0x698   : > { %13147 = vmatprep.subr.bf16.mxu1 %v23418_v52 }
 0x69a   : > { %11298 = vmatpush1.bf16.msra.mxu0 %v11271_v40  ;;  %v19027_v40 = vld [vmem:[%s23401_s7 + $0x228] sm:$0xff]  }
 0x69b   : > { %13148 = vmatpush1.bf16.msra.mxu1 %v18992_v39  ;;  %11427 = vmatprep.subr.bf16.mxu0 %v23418_v52  ;;  %v19028_v39 = vld [vmem:[%s23401_s7 + $0x700] sm:$0xff]  }
 0x69c   : > { %13149 = vmatprep.subr.bf16.mxu1 %v23418_v52 }
 0x69d   : > { %11306 = vmatmul.mubr.bf16.vlgmr.msra.gmra.mrb[16].mxu0 %v11187_v16  ;;  %v19032_v16 = vld [vmem:[%s23401_s7 + $0x710] sm:$0xff]  }
 0x69e   : > { %11428 = vmatpush1.bf16.msra.mxu0 %v18993_v49  ;;  %16801 = vmatprep.mubr.msk.bf16.mxu0 %vm10795_vm14, %v11342_v8  ;;  %v19031_v49 = vld [vmem:[%s23401_s7 + $0x238] sm:$0xff]  }
 0x69f   : > { %13150 = vmatpush1.bf16.msra.mxu1 %v13123_v45  ;;  %11429 = vmatprep.subr.bf16.mxu0 %v23418_v52  ;;  %v19033_v45 = vld [vmem:[%s23401_s7 + $0x240] sm:$0xff]   ;;  %v19034_v8 = vld [vmem:[%s23401_s7 + $0x718] sm:$0xff]  }
 0x6a0   : > { %13278 = vmatprep.subr.bf16.mxu1 %v23418_v52 }
 0x6a2   : > { %13158 = vmatmul.mubr.bf16.vlgmr.msra.gmra.mrb[16].mxu1 %v13039_v11  ;;  %11430 = vmatpush1.bf16.msra.mxu0 %v18995_v15  ;;  %v19036_v15 = vld [vmem:[%s23401_s7 + $0x720] sm:$0xff]   ;;  %v19038_v11 = vld [vmem:[%s23401_s7 + $0x728] sm:$0xff]  }
 0x6a3   : > { %13279 = vmatpush1.bf16.msra.mxu1 %v18996_v61  ;;  %17281 = vmatprep.mubr.msk.bf16.mxu1 %vm10795_vm14, %v21937_v35  ;;  %v19037_v61 = vld [vmem:[%s23401_s7 + $0x250] sm:$0xff]  }
 0x6a4   : > { %11431 = vmatprep.subr.bf16.mxu0 %v23418_v52  ;;  %13280 = vmatprep.subr.bf16.mxu1 %v23418_v52 }
 0x6a6   : > { %11432 = vmatpush1.bf16.msra.mxu0 %v18997_v53  ;;  %v19039_v53 = vld [vmem:[%s23401_s7 + $0x258] sm:$0xff]  }
 0x6a7   : > { %13281 = vmatpush1.bf16.msra.mxu1 %v18998_v43  ;;  %11433 = vmatprep.subr.bf16.mxu0 %v23418_v52  ;;  %v19040_v43 = vld [vmem:[%s23401_s7 + $0x730] sm:$0xff]  }
 0x6a8   : > { %13282 = vmatprep.subr.bf16.mxu1 %v23418_v52 }
 0x6aa   : > { %11434 = vmatpush1.bf16.msra.mxu0 %v18999_v34  ;;  %v19041_v34 = vld [vmem:[%s23401_s7 + $0x260] sm:$0xff]  }
 0x6ab   : > { %13283 = vmatpush1.bf16.msra.mxu1 %v19000_v20  ;;  %11435 = vmatprep.subr.bf16.mxu0 %v23418_v52  ;;  %v19043_v20 = vld [vmem:[%s23401_s7 + $0x268] sm:$0x7f]  }
 0x6ac   : > { %13284 = vmatprep.subr.bf16.mxu1 %v23418_v52 }
 0x6ae   : > { %11436 = vmatpush1.bf16.msra.mxu0 %v19001_v4  ;;  %v19042_v4 = vld [vmem:[%s23401_s7 + $0x738] sm:$0xff]  }
 0x6af   : > { %13285 = vmatpush1.bf16.msra.mxu1 %v19002_v63  ;;  %11437 = vmatprep.subr.bf16.mxu0 %v23418_v52  ;;  %v11579_v63 = vand.u32 %v19043_v20, %v21535_v50  ;;  %v19082_v20 = vld [vmem:[%s23401_s7 + $0x7d8] sm:$0xff]  }
 0x6b0   : > { %13286 = vmatprep.subr.bf16.mxu1 %v23418_v52 }
 0x6b2   : > { %11438 = vmatpush1.bf16.msra.mxu0 %v19003_v33  ;;  %v19044_v33 = vld [vmem:[%s23401_s7 + $0x740] sm:$0xff]  }
 0x6b3   : > { %13287 = vmatpush1.bf16.msra.mxu1 %v19004_v46  ;;  %11439 = vmatprep.subr.bf16.mxu0 %v23418_v52  ;;  %v19046_v46 = vld [vmem:[%s23401_s7 + $0x748] sm:$0x7f]  }
 0x6b4   : > { %13288 = vmatprep.subr.bf16.mxu1 %v23418_v52 }
 0x6b6   : > { %11440 = vmatpush1.bf16.msra.mxu0 %v19005_v10  ;;  %v19045_v10 = vld [vmem:[%s23401_s7 + $0x270] sm:$0xff]  }
 0x6b7   : > { %13289 = vmatpush1.bf16.msra.mxu1 %v19006_v42  ;;  %11441 = vmatprep.subr.bf16.mxu0 %v23418_v52  ;;  %v11495_v42 = vrot.slane %v21690_v30, 2 }
 0x6b8   : > { %13290 = vmatprep.subr.bf16.mxu1 %v23418_v52 }
 0x6ba   : > { %11442 = vmatpush1.bf16.msra.mxu0 %v19007_v56  ;;  %v13433_v56 = vand.u32 %v19046_v46, %v21535_v50  ;;  %v19086_v46 = vld [vmem:[%s23401_s7 + $0x7e8] sm:$0xff]  }
 0x6bb   : > { %13291 = vmatpush1.bf16.msra.mxu1 %v19008_v48  ;;  %11443 = vmatprep.subr.bf16.mxu0 %v23418_v52  ;;  %v11650_v48 = vrot.slane %v21554_v25, 3  ;;  %v13506_v25 = vrot.slane %v21937_v35, 1 }
 0x6bc   : > { %13292 = vmatprep.subr.bf16.mxu1 %v23418_v52 }
 0x6be   : > { %11444 = vmatpush1.bf16.msra.mxu0 %v19009_v17  ;;  %v19047_v17 = vld [vmem:[%s23401_s7 + $0x278] sm:$0xff]  }
 0x6bf   : > { %13293 = vmatpush1.bf16.msra.mxu1 %v19010_v54  ;;  %11445 = vmatprep.subr.bf16.mxu0 %v23418_v52  ;;  %v19048_v54 = vld [vmem:[%s23401_s7 + $0x750] sm:$0xff]  }
 0x6c0   : > { %13294 = vmatprep.subr.bf16.mxu1 %v23418_v52 }
 0x6c2   : > { %11446 = vmatpush1.bf16.msra.mxu0 %v19011_v31  ;;  %v22170_v31 = vshrl.u32 %v22052_v7, 16 }
 0x6c3   : > { %13295 = vmatpush1.bf16.msra.mxu1 %v19012_v47  ;;  %11447 = vmatprep.subr.bf16.mxu0 %v23418_v52  ;;  %v19049_v47 = vld [vmem:[%s23401_s7 + $0x280] sm:$0xff]  }
 0x6c4   : > { %13296 = vmatprep.subr.bf16.mxu1 %v23418_v52 }
 0x6c6   : > { %11448 = vmatpush1.bf16.msra.mxu0 %v19013_v3  ;;  %v19050_v3 = vld [vmem:[%s23401_s7 + $0x758] sm:$0xff]  }
 0x6c7   : > { %13297 = vmatpush1.bf16.msra.mxu1 %v19014_v19  ;;  %11449 = vmatprep.subr.bf16.mxu0 %v23418_v52  ;;  %v19051_v19 = vld [vmem:[%s23401_s7 + $0x288] sm:$0xff]  }
 0x6c8   : > { %13298 = vmatprep.subr.bf16.mxu1 %v23418_v52 }
 0x6ca   : > { %11450 = vmatpush1.bf16.msra.mxu0 %v19015_v13  ;;  %v19052_v13 = vld [vmem:[%s23401_s7 + $0x760] sm:$0xff]  }
 0x6cb   : > { %13299 = vmatpush1.bf16.msra.mxu1 %v19016_v23  ;;  %11451 = vmatprep.subr.bf16.mxu0 %v23418_v52  ;;  %v19054_v23 = vld [vmem:[%s23401_s7 + $0x768] sm:$0xff]  }
 0x6cc   : > { %13300 = vmatprep.subr.bf16.mxu1 %v23418_v52 }
 0x6ce   : > { %11452 = vmatpush1.bf16.msra.mxu0 %v11425_v55  ;;  %v19056_v55 = vld [vmem:[%s23401_s7 + $0x770] sm:$0xff]  }
 0x6cf   : > { %13301 = vmatpush1.bf16.msra.mxu1 %v19018_v37  ;;  %11581 = vmatprep.subr.bf16.mxu0 %v23418_v52  ;;  %v19057_v37 = vld [vmem:[%s23401_s7 + $0x2a0] sm:$0xff]  }
 0x6d0   : > { %13302 = vmatprep.subr.bf16.mxu1 %v23418_v52 }
 0x6d1   : > { %11460 = vmatmul.mubr.bf16.vlgmr.msra.gmra.mrb[16].mxu0 %v11341_v24  ;;  %v19061_v24 = vld [vmem:[%s23401_s7 + $0x2b0] sm:$0xff]  }
 0x6d2   : > { %11582 = vmatpush1.bf16.msra.mxu0 %v19019_v44  ;;  %16841 = vmatprep.mubr.msk.bf16.mxu0 %vm10795_vm14, %v11496_v14  ;;  %v19060_v44 = vld [vmem:[%s23401_s7 + $0x780] sm:$0xff]   ;;  %v19064_v14 = vld [vmem:[%s23401_s7 + $0x790] sm:$0xff]  }
 0x6d3   : > { %13303 = vmatpush1.bf16.msra.mxu1 %v13276_v18  ;;  %11583 = vmatprep.subr.bf16.mxu0 %v23418_v52  ;;  %v19062_v18 = vld [vmem:[%s23401_s7 + $0x788] sm:$0xff]  }
 0x6d4   : > { %13435 = vmatprep.subr.bf16.mxu1 %v23418_v52 }
 0x6d6   : > { %13311 = vmatmul.mubr.bf16.vlgmr.msra.gmra.mrb[16].mxu1 %v22052_v7  ;;  %11584 = vmatpush1.bf16.msra.mxu0 %v19021_v26  ;;  %v19065_v26 = vld [vmem:[%s23401_s7 + $0x2c0] sm:$0xff]  }
 0x6d7   : > { %13436 = vmatpush1.bf16.msra.mxu1 %v19022_v6  ;;  %17321 = vmatprep.mubr.msk.bf16.mxu1 %vm10795_vm14, %v22056_v1  ;;  %v19066_v6 = vld [vmem:[%s23401_s7 + $0x798] sm:$0xff]  }
 0x6d8   : > { %11585 = vmatprep.subr.bf16.mxu0 %v23418_v52  ;;  %13437 = vmatprep.subr.bf16.mxu1 %v23418_v52 }
 0x6da   : > { %11586 = vmatpush1.bf16.msra.mxu0 %v19023_v2  ;;  %v19067_v2 = vld [vmem:[%s23401_s7 + $0x2c8] sm:$0xff]  }
 0x6db   : > { %13438 = vmatpush1.bf16.msra.mxu1 %v19024_v0  ;;  %11587 = vmatprep.subr.bf16.mxu0 %v23418_v52  ;;  %v19069_v0 = vld [vmem:[%s23401_s7 + $0x2d0] sm:$0x7f]  }
 0x6dc   : > { %13439 = vmatprep.subr.bf16.mxu1 %v23418_v52 }
 0x6de   : > { %11588 = vmatpush1.bf16.msra.mxu0 %v19025_v22  ;;  %v19068_v22 = vld [vmem:[%s23401_s7 + $0x7a0] sm:$0xff]  }
 0x6df   : > { %13440 = vmatpush1.bf16.msra.mxu1 %v19026_v60  ;;  %11589 = vmatprep.subr.bf16.mxu0 %v23418_v52  ;;  %v11733_v60 = vand.u32 %v19069_v0, %v21535_v50  ;;  %v19109_v0 = vld [vmem:[%s23401_s7 + $0x370] sm:$0xff]  }
 0x6e0   : > { %13441 = vmatprep.subr.bf16.mxu1 %v23418_v52 }
 0x6e2   : > { %11590 = vmatpush1.bf16.msra.mxu0 %v19027_v40  ;;  %v19070_v40 = vld [vmem:[%s23401_s7 + $0x7a8] sm:$0xff]  }
 0x6e3   : > { %13442 = vmatpush1.bf16.msra.mxu1 %v19028_v39  ;;  %11591 = vmatprep.subr.bf16.mxu0 %v23418_v52  ;;  %v19072_v39 = vld [vmem:[%s23401_s7 + $0x7b0] sm:$0x7f]  }
 0x6e4   : > { %13443 = vmatprep.subr.bf16.mxu1 %v23418_v52 }
 0x6e6   : > { %11592 = vmatpush1.bf16.msra.mxu0 %v19029_v9  ;;  %v19071_v9 = vld [vmem:[%s23401_s7 + $0x2d8] sm:$0xff]  }
 0x6e7   : > { %13444 = vmatpush1.bf16.msra.mxu1 %v19030_v29  ;;  %11593 = vmatprep.subr.bf16.mxu0 %v23418_v52  ;;  %v11649_v29 = vrot.slane %v21561_v57, 3  ;;  %v19074_v57 = vld [vmem:[%s23401_s7 + $0x7b8] sm:$0xff]  }
 0x6e8   : > { %13445 = vmatprep.subr.bf16.mxu1 %v23418_v52 }
 0x6ea   : > { %11594 = vmatpush1.bf16.msra.mxu0 %v19031_v49  ;;  %v13589_v49 = vand.u32 %v19072_v39, %v21535_v50  ;;  %v19113_v39 = vld [vmem:[%s23401_s7 + $0x380] sm:$0xff]  }
 0x6eb   : > { %13446 = vmatpush1.bf16.msra.mxu1 %v19032_v16  ;;  %11595 = vmatprep.subr.bf16.mxu0 %v23418_v52  ;;  %v11804_v16 = vrot.slane %v21574_v32, 3  ;;  %v13660_v32 = vrot.slane %v22056_v1, 1 }
 0x6ec   : > { %13447 = vmatprep.subr.bf16.mxu1 %v23418_v52 }
 0x6ee   : > { %11596 = vmatpush1.bf16.msra.mxu0 %v19033_v45  ;;  %v19073_v45 = vld [vmem:[%s23401_s7 + $0x2e0] sm:$0xff]  }
 0x6ef   : > { %13448 = vmatpush1.bf16.msra.mxu1 %v19034_v8  ;;  %11597 = vmatprep.subr.bf16.mxu0 %v23418_v52  ;;  %v13505_v8 = vrot.slane %v22052_v7, 1 }
 0x6f0   : > { %13449 = vmatprep.subr.bf16.mxu1 %v23418_v52 }
 0x6f2   : > { %11598 = vmatpush1.bf16.msra.mxu0 %v19035_v28  ;;  %v19075_v28 = vld [vmem:[%s23401_s7 + $0x2e8] sm:$0xff]  }
 0x6f3   : > { %13450 = vmatpush1.bf16.msra.mxu1 %v19036_v15  ;;  %11599 = vmatprep.subr.bf16.mxu0 %v23418_v52  ;;  %v19076_v15 = vld [vmem:[%s23401_s7 + $0x7c0] sm:$0xff]  }
 0x6f4   : > { %13451 = vmatprep.subr.bf16.mxu1 %v23418_v52 }
 0x6f6   : > { %11600 = vmatpush1.bf16.msra.mxu0 %v19037_v61  ;;  %v19077_v61 = vld [vmem:[%s23401_s7 + $0x2f0] sm:$0xff]  }
 0x6f7   : > { %13452 = vmatpush1.bf16.msra.mxu1 %v19038_v11  ;;  %11601 = vmatprep.subr.bf16.mxu0 %v23418_v52  ;;  %v19078_v11 = vld [vmem:[%s23401_s7 + $0x7c8] sm:$0xff]  }
 0x6f8   : > { %13453 = vmatprep.subr.bf16.mxu1 %v23418_v52 }
 0x6fa   : > { %11602 = vmatpush1.bf16.msra.mxu0 %v19039_v53  ;;  %v19079_v53 = vld [vmem:[%s23401_s7 + $0x2f8] sm:$0xff]  }
 0x6fb   : > { %13454 = vmatpush1.bf16.msra.mxu1 %v19040_v43  ;;  %11603 = vmatprep.subr.bf16.mxu0 %v23418_v52  ;;  %v19080_v43 = vld [vmem:[%s23401_s7 + $0x7d0] sm:$0xff]  }
 0x6fc   : > { %13455 = vmatprep.subr.bf16.mxu1 %v23418_v52 }
 0x6fe   : > { %11604 = vmatpush1.bf16.msra.mxu0 %v19041_v34  ;;  %v19081_v34 = vld [vmem:[%s23401_s7 + $0x300] sm:$0xff]  }
 0x6ff   : > { %13456 = vmatpush1.bf16.msra.mxu1 %v19042_v4  ;;  %11605 = vmatprep.subr.bf16.mxu0 %v23418_v52  ;;  %v19083_v4 = vld [vmem:[%s23401_s7 + $0x308] sm:$0xff]  }
 0x700   : > { %13457 = vmatprep.subr.bf16.mxu1 %v23418_v52 }
 0x702   : > { %11606 = vmatpush1.bf16.msra.mxu0 %v11579_v63  ;;  %v19084_v63 = vld [vmem:[%s23401_s7 + $0x7e0] sm:$0xff]  }
 0x703   : > { %13458 = vmatpush1.bf16.msra.mxu1 %v19044_v33  ;;  %11735 = vmatprep.subr.bf16.mxu0 %v23418_v52  ;;  %v19085_v33 = vld [vmem:[%s23401_s7 + $0x310] sm:$0xff]  }
 0x704   : > { %13459 = vmatprep.subr.bf16.mxu1 %v23418_v52 }
 0x705   : > { %11614 = vmatmul.mubr.bf16.vlgmr.msra.gmra.mrb[16].mxu0 %v11495_v42  ;;  %v19088_v42 = vld [vmem:[%s23401_s7 + $0x7f0] sm:$0xff]  }
 0x706   : > { %11736 = vmatpush1.bf16.msra.mxu0 %v19045_v10  ;;  %16881 = vmatprep.mubr.msk.bf16.mxu0 %vm10795_vm14, %v11650_v48  ;;  %v19087_v10 = vld [vmem:[%s23401_s7 + $0x318] sm:$0xff]  }
 0x707   : > { %13460 = vmatpush1.bf16.msra.mxu1 %v13433_v56  ;;  %11737 = vmatprep.subr.bf16.mxu0 %v23418_v52  ;;  %v19089_v56 = vld [vmem:[%s23401_s7 + $0x320] sm:$0xff]   ;;  %v19090_v48 = vld [vmem:[%s23401_s7 + $0x7f8] sm:$0xff]  }
 0x708   : > { %13591 = vmatprep.subr.bf16.mxu1 %v23418_v52 }
 0x70a   : > { %13468 = vmatmul.mubr.bf16.vlgmr.msra.gmra.mrb[16].mxu1 %v22170_v31  ;;  %11738 = vmatpush1.bf16.msra.mxu0 %v19047_v17  ;;  %v19091_v17 = vld [vmem:[%s23401_s7 + $0x328] sm:$0xff]  }
 0x70b   : > { %13592 = vmatpush1.bf16.msra.mxu1 %v19048_v54  ;;  %17361 = vmatprep.mubr.msk.bf16.mxu1 %vm10795_vm14, %v13506_v25  ;;  %v19092_v54 = vld [vmem:[%s23401_s7 + $0x800] sm:$0xff]   ;;  %v19093_v25 = vld [vmem:[%s23401_s7 + $0x330] sm:$0xff]  }
 0x70c   : > { %11739 = vmatprep.subr.bf16.mxu0 %v23418_v52  ;;  %13593 = vmatprep.subr.bf16.mxu1 %v23418_v52 }
 0x70e   : > { %11740 = vmatpush1.bf16.msra.mxu0 %v19049_v47  ;;  %v19095_v47 = vld [vmem:[%s23401_s7 + $0x338] sm:$0x7f]  }
 0x70f   : > { %13594 = vmatpush1.bf16.msra.mxu1 %v19050_v3  ;;  %11741 = vmatprep.subr.bf16.mxu0 %v23418_v52  ;;  %v19094_v3 = vld [vmem:[%s23401_s7 + $0x808] sm:$0xff]  }
 0x710   : > { %13595 = vmatprep.subr.bf16.mxu1 %v23418_v52 }
 0x712   : > { %11742 = vmatpush1.bf16.msra.mxu0 %v19051_v19  ;;  %v11887_v19 = vand.u32 %v19095_v47, %v21535_v50  ;;  %v19137_v47 = vld [vmem:[%s23401_s7 + $0x3e0] sm:$0xff]  }
 0x713   : > { %13596 = vmatpush1.bf16.msra.mxu1 %v19052_v13  ;;  %11743 = vmatprep.subr.bf16.mxu0 %v23418_v52  ;;  %v19096_v13 = vld [vmem:[%s23401_s7 + $0x810] sm:$0xff]  }
 0x714   : > { %13597 = vmatprep.subr.bf16.mxu1 %v23418_v52 }
 0x716   : > { %11744 = vmatpush1.bf16.msra.mxu0 %v19053_v38  ;;  %v19098_v38 = vld [vmem:[%s23401_s7 + $0x818] sm:$0x7f]  }
 0x717   : > { %13598 = vmatpush1.bf16.msra.mxu1 %v19054_v23  ;;  %11745 = vmatprep.subr.bf16.mxu0 %v23418_v52  ;;  %v19097_v23 = vld [vmem:[%s23401_s7 + $0x340] sm:$0xff]  }
 0x718   : > { %13599 = vmatprep.subr.bf16.mxu1 %v23418_v52 }
 0x71a   : > { %11746 = vmatpush1.bf16.msra.mxu0 %v19055_v41  ;;  %v11803_v41 = vrot.slane %v21690_v30, 3  ;;  %v19100_v30 = vld [vmem:[%s23401_s7 + $0x820] sm:$0xff]  }
 0x71b   : > { %13600 = vmatpush1.bf16.msra.mxu1 %v19056_v55  ;;  %11747 = vmatprep.subr.bf16.mxu0 %v23418_v52  ;;  %v13743_v55 = vand.u32 %v19098_v38, %v21535_v50  ;;  %v19141_v38 = vld [vmem:[%s23401_s7 + $0x3f0] sm:$0xff]  }
 0x71c   : > { %13601 = vmatprep.subr.bf16.mxu1 %v23418_v52 }
 0x71e   : > { %11748 = vmatpush1.bf16.msra.mxu0 %v19057_v37  ;;  %v19099_v37 = vld [vmem:[%s23401_s7 + $0x348] sm:$0xff]  }
 0x71f   : > { %13602 = vmatpush1.bf16.msra.mxu1 %v19058_v21  ;;  %11749 = vmatprep.subr.bf16.mxu0 %v23418_v52  ;;  %v13659_v21 = vrot.slane %v22170_v31, 1 }
 0x720   : > { %13603 = vmatprep.subr.bf16.mxu1 %v23418_v52 }
 0x722   : > { %11750 = vmatpush1.bf16.msra.mxu0 %v19059_v62  ;;  %v13814_v62 = vrot.slane %v21937_v35, 2 }
 0x723   : > { %13604 = vmatpush1.bf16.msra.mxu1 %v19060_v44  ;;  %11751 = vmatprep.subr.bf16.mxu0 %v23418_v52  ;;  %v19101_v44 = vld [vmem:[%s23401_s7 + $0x350] sm:$0xff]  }
 0x724   : > { %13605 = vmatprep.subr.bf16.mxu1 %v23418_v52 }
 0x726   : > { %11752 = vmatpush1.bf16.msra.mxu0 %v19061_v24  ;;  %v19102_v24 = vld [vmem:[%s23401_s7 + $0x828] sm:$0xff]  }
 0x727   : > { %13606 = vmatpush1.bf16.msra.mxu1 %v19062_v18  ;;  %11753 = vmatprep.subr.bf16.mxu0 %v23418_v52  ;;  %v19103_v18 = vld [vmem:[%s23401_s7 + $0x358] sm:$0xff]  }
 0x728   : > { %13607 = vmatprep.subr.bf16.mxu1 %v23418_v52 }
 0x72a   : > { %11754 = vmatpush1.bf16.msra.mxu0 %v19063_v12  ;;  %v19104_v12 = vld [vmem:[%s23401_s7 + $0x830] sm:$0xff]  }
 0x72b   : > { %13608 = vmatpush1.bf16.msra.mxu1 %v19064_v14  ;;  %11755 = vmatprep.subr.bf16.mxu0 %v23418_v52  ;;  %v19105_v14 = vld [vmem:[%s23401_s7 + $0x360] sm:$0xff]  }
 0x72c   : > { %13609 = vmatprep.subr.bf16.mxu1 %v23418_v52 }
 0x72e   : > { %11756 = vmatpush1.bf16.msra.mxu0 %v19065_v26  ;;  %v19106_v26 = vld [vmem:[%s23401_s7 + $0x838] sm:$0xff]  }
 0x72f   : > { %13610 = vmatpush1.bf16.msra.mxu1 %v19066_v6  ;;  %11757 = vmatprep.subr.bf16.mxu0 %v23418_v52  ;;  %v19107_v6 = vld [vmem:[%s23401_s7 + $0x368] sm:$0xff]  }
 0x730   : > { %13611 = vmatprep.subr.bf16.mxu1 %v23418_v52 }
 0x732   : > { %11758 = vmatpush1.bf16.msra.mxu0 %v19067_v2  ;;  %v19108_v2 = vld [vmem:[%s23401_s7 + $0x840] sm:$0xff]  }
 0x733   : > { %13612 = vmatpush1.bf16.msra.mxu1 %v19068_v22  ;;  %11759 = vmatprep.subr.bf16.mxu0 %v23418_v52  ;;  %v19110_v22 = vld [vmem:[%s23401_s7 + $0x848] sm:$0xff]  }
 0x734   : > { %13613 = vmatprep.subr.bf16.mxu1 %v23418_v52 }
 0x736   : > { %11760 = vmatpush1.bf16.msra.mxu0 %v11733_v60  ;;  %v19111_v60 = vld [vmem:[%s23401_s7 + $0x378] sm:$0xff]  }
 0x737   : > { %13614 = vmatpush1.bf16.msra.mxu1 %v19070_v40  ;;  %11889 = vmatprep.subr.bf16.mxu0 %v23418_v52  ;;  %v19112_v40 = vld [vmem:[%s23401_s7 + $0x850] sm:$0xff]  }
 0x738   : > { %13615 = vmatprep.subr.bf16.mxu1 %v23418_v52 }
 0x739   : > { %11768 = vmatmul.mubr.bf16.vlgmr.msra.gmra.mrb[16].mxu0 %v11649_v29  ;;  %v19115_v29 = vld [vmem:[%s23401_s7 + $0x388] sm:$0xff]  }
 0x73a   : > { %11890 = vmatpush1.bf16.msra.mxu0 %v19071_v9  ;;  %16921 = vmatprep.mubr.msk.bf16.mxu0 %vm10795_vm14, %v11804_v16  ;;  %v19114_v9 = vld [vmem:[%s23401_s7 + $0x858] sm:$0xff]   ;;  %v19117_v16 = vld [vmem:[%s23401_s7 + $0x390] sm:$0xff]  }
 0x73b   : > { %13616 = vmatpush1.bf16.msra.mxu1 %v13589_v49  ;;  %11891 = vmatprep.subr.bf16.mxu0 %v23418_v52  ;;  %v19116_v49 = vld [vmem:[%s23401_s7 + $0x860] sm:$0xff]  }
 0x73c   : > { %13745 = vmatprep.subr.bf16.mxu1 %v23418_v52 }
 0x73e   : > { %13624 = vmatmul.mubr.bf16.vlgmr.msra.gmra.mrb[16].mxu1 %v13505_v8  ;;  %11892 = vmatpush1.bf16.msra.mxu0 %v19073_v45  ;;  %v19118_v45 = vld [vmem:[%s23401_s7 + $0x868] sm:$0xff]   ;;  %v19121_v8 = vld [vmem:[%s23401_s7 + $0x3a0] sm:$0x7f]  }
 0x73f   : > { %13746 = vmatpush1.bf16.msra.mxu1 %v19074_v57  ;;  %17401 = vmatprep.mubr.msk.bf16.mxu1 %vm10795_vm14, %v13660_v32  ;;  %v19119_v57 = vld [vmem:[%s23401_s7 + $0x398] sm:$0xff]   ;;  %v19120_v32 = vld [vmem:[%s23401_s7 + $0x870] sm:$0xff]  }
 0x740   : > { %11893 = vmatprep.subr.bf16.mxu0 %v23418_v52  ;;  %13747 = vmatprep.subr.bf16.mxu1 %v23418_v52 }
 0x742   : > { %11894 = vmatpush1.bf16.msra.mxu0 %v19075_v28  ;;  %v12040_v28 = vand.u32 %v19121_v8, %v21535_v50  ;;  %v19165_v8 = vld [vmem:[%s23401_s7 + $0x450] sm:$0xff]  }
 0x743   : > { %13748 = vmatpush1.bf16.msra.mxu1 %v19076_v15  ;;  %11895 = vmatprep.subr.bf16.mxu0 %v23418_v52  ;;  %v19122_v15 = vld [vmem:[%s23401_s7 + $0x878] sm:$0xff]  }
 0x744   : > { %13749 = vmatprep.subr.bf16.mxu1 %v23418_v52 }
 0x746   : > { %11896 = vmatpush1.bf16.msra.mxu0 %v19077_v61  ;;  %v19124_v61 = vld [vmem:[%s23401_s7 + $0x880] sm:$0x7f]  }
 0x747   : > { %13750 = vmatpush1.bf16.msra.mxu1 %v19078_v11  ;;  %11897 = vmatprep.subr.bf16.mxu0 %v23418_v52  ;;  %v19123_v11 = vld [vmem:[%s23401_s7 + $0x3a8] sm:$0xff]  }
 0x748   : > { %13751 = vmatprep.subr.bf16.mxu1 %v23418_v52 }
 0x74a   : > { %11898 = vmatpush1.bf16.msra.mxu0 %v19079_v53  ;;  %v13897_v53 = vand.u32 %v19124_v61, %v21535_v50  ;;  %v19169_v61 = vld [vmem:[%s23401_s7 + $0x460] sm:$0xff]  }
 0x74b   : > { %13752 = vmatpush1.bf16.msra.mxu1 %v19080_v43  ;;  %11899 = vmatprep.subr.bf16.mxu0 %v23418_v52  ;;  %v19125_v43 = vld [vmem:[%s23401_s7 + $0x3b0] sm:$0xff]  }
 0x74c   : > { %13753 = vmatprep.subr.bf16.mxu1 %v23418_v52 }
 0x74e   : > { %11900 = vmatpush1.bf16.msra.mxu0 %v19081_v34  ;;  %v19126_v34 = vld [vmem:[%s23401_s7 + $0x888] sm:$0xff]  }
 0x74f   : > { %13754 = vmatpush1.bf16.msra.mxu1 %v19082_v20  ;;  %11901 = vmatprep.subr.bf16.mxu0 %v23418_v52  ;;  %v13813_v20 = vrot.slane %v22052_v7, 2 }
 0x750   : > { %13755 = vmatprep.subr.bf16.mxu1 %v23418_v52 }
 0x752   : > { %11902 = vmatpush1.bf16.msra.mxu0 %v19083_v4  ;;  %v13968_v4 = vrot.slane %v22056_v1, 2 }
 0x753   : > { %13756 = vmatpush1.bf16.msra.mxu1 %v19084_v63  ;;  %11903 = vmatprep.subr.bf16.mxu0 %v23418_v52  ;;  %v19127_v63 = vld [vmem:[%s23401_s7 + $0x3b8] sm:$0xff]  }
 0x754   : > { %13757 = vmatprep.subr.bf16.mxu1 %v23418_v52 }
 0x756   : > { %11904 = vmatpush1.bf16.msra.mxu0 %v19085_v33  ;;  %v19128_v33 = vld [vmem:[%s23401_s7 + $0x890] sm:$0xff]  }
 0x757   : > { %13758 = vmatpush1.bf16.msra.mxu1 %v19086_v46  ;;  %11905 = vmatprep.subr.bf16.mxu0 %v23418_v52  ;;  %v19129_v46 = vld [vmem:[%s23401_s7 + $0x3c0] sm:$0xff]  }
 0x758   : > { %13759 = vmatprep.subr.bf16.mxu1 %v23418_v52 }
 0x75a   : > { %11906 = vmatpush1.bf16.msra.mxu0 %v19087_v10  ;;  %v19130_v10 = vld [vmem:[%s23401_s7 + $0x898] sm:$0xff]  }
 0x75b   : > { %13760 = vmatpush1.bf16.msra.mxu1 %v19088_v42  ;;  %11907 = vmatprep.subr.bf16.mxu0 %v23418_v52  ;;  %v19131_v42 = vld [vmem:[%s23401_s7 + $0x3c8] sm:$0xff]  }
 0x75c   : > { %13761 = vmatprep.subr.bf16.mxu1 %v23418_v52 }
 0x75e   : > { %11908 = vmatpush1.bf16.msra.mxu0 %v19089_v56  ;;  %v19132_v56 = vld [vmem:[%s23401_s7 + $0x8a0] sm:$0xff]  }
 0x75f   : > { %13762 = vmatpush1.bf16.msra.mxu1 %v19090_v48  ;;  %11909 = vmatprep.subr.bf16.mxu0 %v23418_v52  ;;  %v19133_v48 = vld [vmem:[%s23401_s7 + $0x3d0] sm:$0xff]  }
 0x760   : > { %13763 = vmatprep.subr.bf16.mxu1 %v23418_v52 }
 0x762   : > { %11910 = vmatpush1.bf16.msra.mxu0 %v19091_v17  ;;  %v19134_v17 = vld [vmem:[%s23401_s7 + $0x8a8] sm:$0xff]  }
 0x763   : > { %13764 = vmatpush1.bf16.msra.mxu1 %v19092_v54  ;;  %11911 = vmatprep.subr.bf16.mxu0 %v23418_v52  ;;  %v19135_v54 = vld [vmem:[%s23401_s7 + $0x3d8] sm:$0xff]  }
 0x764   : > { %13765 = vmatprep.subr.bf16.mxu1 %v23418_v52 }
 0x766   : > { %11912 = vmatpush1.bf16.msra.mxu0 %v19093_v25  ;;  %v19136_v25 = vld [vmem:[%s23401_s7 + $0x8b0] sm:$0xff]  }
 0x767   : > { %13766 = vmatpush1.bf16.msra.mxu1 %v19094_v3  ;;  %11913 = vmatprep.subr.bf16.mxu0 %v23418_v52  ;;  %v19138_v3 = vld [vmem:[%s23401_s7 + $0x8b8] sm:$0xff]  }
 0x768   : > { %13767 = vmatprep.subr.bf16.mxu1 %v23418_v52 }
 0x76a   : > { %11914 = vmatpush1.bf16.msra.mxu0 %v11887_v19  ;;  %v19139_v19 = vld [vmem:[%s23401_s7 + $0x3e8] sm:$0xff]  }
 0x76b   : > { %13768 = vmatpush1.bf16.msra.mxu1 %v19096_v13  ;;  %12042 = vmatprep.subr.bf16.mxu0 %v23418_v52  ;;  %v19140_v13 = vld [vmem:[%s23401_s7 + $0x8c0] sm:$0xff]  }
 0x76c   : > { %13769 = vmatprep.subr.bf16.mxu1 %v23418_v52 }
 0x76d   : > { %11922 = vmatmul.mubr.bf16.vlgmr.msra.gmra.mrb[16].mxu0 %v11803_v41  ;;  %v19143_v41 = vld [vmem:[%s23401_s7 + $0x3f8] sm:$0xff]  }
 0x76e   : > { %12043 = vmatpush1.bf16.msra.mxu0 %v19097_v23  ;;  %16961 = vmatprep.mubr.msk.bf16.mxu0 %vm10795_vm14, %v21567_v51  ;;  %v19142_v23 = vld [vmem:[%s23401_s7 + $0x8c8] sm:$0xff]  }
 0x76f   : > { %13770 = vmatpush1.bf16.msra.mxu1 %v13743_v55  ;;  %12044 = vmatprep.subr.bf16.mxu0 %v23418_v52  ;;  %v19144_v55 = vld [vmem:[%s23401_s7 + $0x8d0] sm:$0xff]  }
 0x770   : > { %13899 = vmatprep.subr.bf16.mxu1 %v23418_v52 }
 0x772   : > { %13778 = vmatmul.mubr.bf16.vlgmr.msra.gmra.mrb[16].mxu1 %v13659_v21  ;;  %12045 = vmatpush1.bf16.msra.mxu0 %v19099_v37  ;;  %v19145_v37 = vld [vmem:[%s23401_s7 + $0x400] sm:$0xff]   ;;  %v19146_v21 = vld [vmem:[%s23401_s7 + $0x8d8] sm:$0xff]  }
 0x773   : > { %13900 = vmatpush1.bf16.msra.mxu1 %v19100_v30  ;;  %17441 = vmatprep.mubr.msk.bf16.mxu1 %vm10795_vm14, %v13814_v62  ;;  %v19147_v30 = vld [vmem:[%s23401_s7 + $0x408] sm:$0x7f]  }
 0x774   : > { %12046 = vmatprep.subr.bf16.mxu0 %v23418_v52  ;;  %13901 = vmatprep.subr.bf16.mxu1 %v23418_v52  ;;  %v12197_v62 = vand.u32 %v19147_v30, %v21535_v50  ;;  %v19193_v30 = vld [vmem:[%s23401_s7 + $0x4c0] sm:$0xff]  }
 0x776   : > { %12047 = vmatpush1.bf16.msra.mxu0 %v19101_v44  ;;  %v19148_v44 = vld [vmem:[%s23401_s7 + $0x8e0] sm:$0xff]  }
 0x777   : > { %13902 = vmatpush1.bf16.msra.mxu1 %v19102_v24  ;;  %12048 = vmatprep.subr.bf16.mxu0 %v23418_v52  ;;  %v19150_v24 = vld [vmem:[%s23401_s7 + $0x8e8] sm:$0x7f]  }
 0x778   : > { %13903 = vmatprep.subr.bf16.mxu1 %v23418_v52 }
 0x77a   : > { %12049 = vmatpush1.bf16.msra.mxu0 %v19103_v18  ;;  %v19149_v18 = vld [vmem:[%s23401_s7 + $0x410] sm:$0xff]  }
 0x77b   : > { %13904 = vmatpush1.bf16.msra.mxu1 %v19104_v12  ;;  %12050 = vmatprep.subr.bf16.mxu0 %v23418_v52  ;;  %v14051_v12 = vand.u32 %v19150_v24, %v21535_v50  ;;  %v19197_v24 = vld [vmem:[%s23401_s7 + $0x4d0] sm:$0xff]  }
 0x77c   : > { %13905 = vmatprep.subr.bf16.mxu1 %v23418_v52 }
 0x77e   : > { %12051 = vmatpush1.bf16.msra.mxu0 %v19105_v14  ;;  %v12270_v14 = vrot.slane %v21567_v51, 1  ;;  %v14122_v51 = vrot.slane %v21937_v35, 3  ;;  %v19155_v35 = vld [vmem:[%s23401_s7 + $0x428] sm:$0xff]  }
 0x77f   : > { %13906 = vmatpush1.bf16.msra.mxu1 %v19106_v26  ;;  %12052 = vmatprep.subr.bf16.mxu0 %v23418_v52  ;;  %v19151_v26 = vld [vmem:[%s23401_s7 + $0x418] sm:$0xff]  }
 0x780   : > { %13907 = vmatprep.subr.bf16.mxu1 %v23418_v52 }
 0x782   : > { %12053 = vmatpush1.bf16.msra.mxu0 %v19107_v6  ;;  %v19152_v6 = vld [vmem:[%s23401_s7 + $0x8f0] sm:$0xff]  }
 0x783   : > { %13908 = vmatpush1.bf16.msra.mxu1 %v19108_v2  ;;  %12054 = vmatprep.subr.bf16.mxu0 %v23418_v52  ;;  %v13967_v2 = vrot.slane %v22170_v31, 2 }
 0x784   : > { %13909 = vmatprep.subr.bf16.mxu1 %v23418_v52 }
 0x786   : > { %12055 = vmatpush1.bf16.msra.mxu0 %v19109_v0  ;;  %v19153_v0 = vld [vmem:[%s23401_s7 + $0x420] sm:$0xff]  }
 0x787   : > { %13910 = vmatpush1.bf16.msra.mxu1 %v19110_v22  ;;  %12056 = vmatprep.subr.bf16.mxu0 %v23418_v52  ;;  %v19154_v22 = vld [vmem:[%s23401_s7 + $0x8f8] sm:$0xff]  }
 0x788   : > { %13911 = vmatprep.subr.bf16.mxu1 %v23418_v52 }
 0x78a   : > { %12057 = vmatpush1.bf16.msra.mxu0 %v19111_v60  ;;  %v19156_v60 = vld [vmem:[%s23401_s7 + $0x900] sm:$0xff]  }
 0x78b   : > { %13912 = vmatpush1.bf16.msra.mxu1 %v19112_v40  ;;  %12058 = vmatprep.subr.bf16.mxu0 %v23418_v52  ;;  %v19157_v40 = vld [vmem:[%s23401_s7 + $0x430] sm:$0xff]  }
 0x78c   : > { %13913 = vmatprep.subr.bf16.mxu1 %v23418_v52 }
 0x78e   : > { %12059 = vmatpush1.bf16.msra.mxu0 %v19113_v39  ;;  %v19158_v39 = vld [vmem:[%s23401_s7 + $0x908] sm:$0xff]  }
 0x78f   : > { %13914 = vmatpush1.bf16.msra.mxu1 %v19114_v9  ;;  %12060 = vmatprep.subr.bf16.mxu0 %v23418_v52  ;;  %v19159_v9 = vld [vmem:[%s23401_s7 + $0x438] sm:$0xff]  }
 0x790   : > { %13915 = vmatprep.subr.bf16.mxu1 %v23418_v52 }
 0x792   : > { %12061 = vmatpush1.bf16.msra.mxu0 %v19115_v29  ;;  %v19160_v29 = vld [vmem:[%s23401_s7 + $0x910] sm:$0xff]  }
 0x793   : > { %13916 = vmatpush1.bf16.msra.mxu1 %v19116_v49  ;;  %12062 = vmatprep.subr.bf16.mxu0 %v23418_v52  ;;  %v19161_v49 = vld [vmem:[%s23401_s7 + $0x440] sm:$0xff]  }
 0x794   : > { %13917 = vmatprep.subr.bf16.mxu1 %v23418_v52 }
 0x796   : > { %12063 = vmatpush1.bf16.msra.mxu0 %v19117_v16  ;;  %v19162_v16 = vld [vmem:[%s23401_s7 + $0x918] sm:$0xff]  }
 0x797   : > { %13918 = vmatpush1.bf16.msra.mxu1 %v19118_v45  ;;  %12064 = vmatprep.subr.bf16.mxu0 %v23418_v52  ;;  %v19163_v45 = vld [vmem:[%s23401_s7 + $0x448] sm:$0xff]  }
 0x798   : > { %13919 = vmatprep.subr.bf16.mxu1 %v23418_v52 }
 0x79a   : > { %12065 = vmatpush1.bf16.msra.mxu0 %v19119_v57  ;;  %v19164_v57 = vld [vmem:[%s23401_s7 + $0x920] sm:$0xff]  }
 0x79b   : > { %13920 = vmatpush1.bf16.msra.mxu1 %v19120_v32  ;;  %12066 = vmatprep.subr.bf16.mxu0 %v23418_v52  ;;  %v19166_v32 = vld [vmem:[%s23401_s7 + $0x928] sm:$0xff]  }
 0x79c   : > { %13921 = vmatprep.subr.bf16.mxu1 %v23418_v52 }
 0x79e   : > { %12067 = vmatpush1.bf16.msra.mxu0 %v12040_v28  ;;  %v19167_v28 = vld [vmem:[%s23401_s7 + $0x458] sm:$0xff]  }
 0x79f   : > { %13922 = vmatpush1.bf16.msra.mxu1 %v19122_v15  ;;  %12199 = vmatprep.subr.bf16.mxu0 %v23418_v52  ;;  %v19168_v15 = vld [vmem:[%s23401_s7 + $0x930] sm:$0xff]  }
 0x7a0   : > { %13923 = vmatprep.subr.bf16.mxu1 %v23418_v52 }
 0x7a1   : > { %12075 = vmatmul.mubr.bf16.vlgmr.msra.gmra.mrb[16].mxu0 %v21563_v27 }
 0x7a2   : > { %12200 = vmatpush1.bf16.msra.mxu0 %v19123_v11  ;;  %17001 = vmatprep.mubr.msk.bf16.mxu0 %vm10795_vm14, %v21587_v5  ;;  %v19170_v11 = vld [vmem:[%s23401_s7 + $0x938] sm:$0xff]  }
 0x7a3   : > { %13924 = vmatpush1.bf16.msra.mxu1 %v13897_v53  ;;  %12201 = vmatprep.subr.bf16.mxu0 %v23418_v52  ;;  %v19171_v53 = vld [vmem:[%s23401_s7 + $0x468] sm:$0xff]  }
 0x7a4   : > { %14053 = vmatprep.subr.bf16.mxu1 %v23418_v52 }
 0x7a6   : > { %13932 = vmatmul.mubr.bf16.vlgmr.msra.gmra.mrb[16].mxu1 %v13813_v20  ;;  %12202 = vmatpush1.bf16.msra.mxu0 %v19125_v43  ;;  %v19173_v43 = vld [vmem:[%s23401_s7 + $0x470] sm:$0x7f]  }
 0x7a7   : > { %14054 = vmatpush1.bf16.msra.mxu1 %v19126_v34  ;;  %17481 = vmatprep.mubr.msk.bf16.mxu1 %vm10795_vm14, %v13968_v4  ;;  %v19172_v34 = vld [vmem:[%s23401_s7 + $0x940] sm:$0xff]   ;;  %v12353_v20 = vand.u32 %v19173_v43, %v21535_v50  ;;  %v19174_v4 = vld [vmem:[%s23401_s7 + $0x948] sm:$0xff]  }
 0x7a8   : > { %12203 = vmatprep.subr.bf16.mxu0 %v23418_v52  ;;  %14055 = vmatprep.subr.bf16.mxu1 %v23418_v52 }
 0x7aa   : > { %12204 = vmatpush1.bf16.msra.mxu0 %v19127_v63  ;;  %v19176_v63 = vld [vmem:[%s23401_s7 + $0x950] sm:$0x7f]  }
 0x7ab   : > { %14056 = vmatpush1.bf16.msra.mxu1 %v19128_v33  ;;  %12205 = vmatprep.subr.bf16.mxu0 %v23418_v52  ;;  %v19175_v33 = vld [vmem:[%s23401_s7 + $0x478] sm:$0xff]  }
 0x7ac   : > { %14057 = vmatprep.subr.bf16.mxu1 %v23418_v52 }
 0x7ae   : > { %12206 = vmatpush1.bf16.msra.mxu0 %v19129_v46  ;;  %v12269_v46 = vrot.slane %v21563_v27, 1  ;;  %v19178_v27 = vld [vmem:[%s23401_s7 + $0x958] sm:$0xff]  }
 0x7af   : > { %14058 = vmatpush1.bf16.msra.mxu1 %v19130_v10  ;;  %12207 = vmatprep.subr.bf16.mxu0 %v23418_v52  ;;  %v14205_v10 = vand.u32 %v19176_v63, %v21535_v50  ;;  %v19216_v63 = vld [vmem:[%s23401_s7 + $0xa30] sm:$0xff]  }
 0x7b0   : > { %14059 = vmatprep.subr.bf16.mxu1 %v23418_v52 }
 0x7b2   : > { %12208 = vmatpush1.bf16.msra.mxu0 %v19131_v42  ;;  %v12424_v42 = vrot.slane %v21587_v5, 1  ;;  %v14276_v5 = vrot.slane %v22056_v1, 3  ;;  %v19182_v1 = vld [vmem:[%s23401_s7 + $0x968] sm:$0xff]  }
 0x7b3   : > { %14060 = vmatpush1.bf16.msra.mxu1 %v19132_v56  ;;  %12209 = vmatprep.subr.bf16.mxu0 %v23418_v52  ;;  %v19177_v56 = vld [vmem:[%s23401_s7 + $0x480] sm:$0xff]  }
 0x7b4   : > { %14061 = vmatprep.subr.bf16.mxu1 %v23418_v52 }
 0x7b6   : > { %12210 = vmatpush1.bf16.msra.mxu0 %v19133_v48  ;;  %v14121_v48 = vrot.slane %v22052_v7, 3  ;;  %v19181_v7 = vld [vmem:[%s23401_s7 + $0x490] sm:$0xff]  }
 0x7b7   : > { %14062 = vmatpush1.bf16.msra.mxu1 %v19134_v17  ;;  %12211 = vmatprep.subr.bf16.mxu0 %v23418_v52  ;;  %v19179_v17 = vld [vmem:[%s23401_s7 + $0x488] sm:$0xff]  }
 0x7b8   : > { %14063 = vmatprep.subr.bf16.mxu1 %v23418_v52 }
 0x7ba   : > { %12212 = vmatpush1.bf16.msra.mxu0 %v19135_v54  ;;  %v19180_v54 = vld [vmem:[%s23401_s7 + $0x960] sm:$0xff]  }
 0x7bb   : > { %14064 = vmatpush1.bf16.msra.mxu1 %v19136_v25  ;;  %12213 = vmatprep.subr.bf16.mxu0 %v23418_v52  ;;  %v19183_v25 = vld [vmem:[%s23401_s7 + $0x498] sm:$0xff]  }
 0x7bc   : > { %14065 = vmatprep.subr.bf16.mxu1 %v23418_v52 }
 0x7be   : > { %12214 = vmatpush1.bf16.msra.mxu0 %v19137_v47  ;;  %v19184_v47 = vld [vmem:[%s23401_s7 + $0x970] sm:$0xff]  }
 0x7bf   : > { %14066 = vmatpush1.bf16.msra.mxu1 %v19138_v3  ;;  %12215 = vmatprep.subr.bf16.mxu0 %v23418_v52  ;;  %v19185_v3 = vld [vmem:[%s23401_s7 + $0x4a0] sm:$0xff]  }
 0x7c0   : > { %14067 = vmatprep.subr.bf16.mxu1 %v23418_v52 }
 0x7c2   : > { %12216 = vmatpush1.bf16.msra.mxu0 %v19139_v19  ;;  %v19186_v19 = vld [vmem:[%s23401_s7 + $0x978] sm:$0xff]  }
 0x7c3   : > { %14068 = vmatpush1.bf16.msra.mxu1 %v19140_v13  ;;  %12217 = vmatprep.subr.bf16.mxu0 %v23418_v52  ;;  %v19187_v13 = vld [vmem:[%s23401_s7 + $0x4a8] sm:$0xff]  }
 0x7c4   : > { %14069 = vmatprep.subr.bf16.mxu1 %v23418_v52 }
 0x7c6   : > { %12218 = vmatpush1.bf16.msra.mxu0 %v19141_v38  ;;  %v19188_v38 = vld [vmem:[%s23401_s7 + $0x980] sm:$0xff]  }
 0x7c7   : > { %14070 = vmatpush1.bf16.msra.mxu1 %v19142_v23  ;;  %12219 = vmatprep.subr.bf16.mxu0 %v23418_v52  ;;  %v19189_v23 = vld [vmem:[%s23401_s7 + $0x4b0] sm:$0xff]  }
 0x7c8   : > { %14071 = vmatprep.subr.bf16.mxu1 %v23418_v52 }
 0x7ca   : > { %12220 = vmatpush1.bf16.msra.mxu0 %v19143_v41  ;;  %v19190_v41 = vld [vmem:[%s23401_s7 + $0x988] sm:$0xff]  }
 0x7cb   : > { %14072 = vmatpush1.bf16.msra.mxu1 %v19144_v55  ;;  %12221 = vmatprep.subr.bf16.mxu0 %v23418_v52  ;;  %v19191_v55 = vld [vmem:[%s23401_s7 + $0x4b8] sm:$0xff]  }
 0x7cc   : > { %14073 = vmatprep.subr.bf16.mxu1 %v23418_v52 }
 0x7ce   : > { %12222 = vmatpush1.bf16.msra.mxu0 %v19145_v37  ;;  %v19192_v37 = vld [vmem:[%s23401_s7 + $0x990] sm:$0xff]  }
 0x7cf   : > { %14074 = vmatpush1.bf16.msra.mxu1 %v19146_v21  ;;  %12223 = vmatprep.subr.bf16.mxu0 %v23418_v52  ;;  %v19194_v21 = vld [vmem:[%s23401_s7 + $0x998] sm:$0xff]  }
 0x7d0   : > { %14075 = vmatprep.subr.bf16.mxu1 %v23418_v52 }
 0x7d2   : > { %12224 = vmatpush1.bf16.msra.mxu0 %v12197_v62  ;;  %v19195_v62 = vld [vmem:[%s23401_s7 + $0x4c8] sm:$0xff]  }
 0x7d3   : > { %14076 = vmatpush1.bf16.msra.mxu1 %v19148_v44  ;;  %12355 = vmatprep.subr.bf16.mxu0 %v23418_v52  ;;  %v19196_v44 = vld [vmem:[%s23401_s7 + $0x9a0] sm:$0xff]  }
 0x7d4   : > { %14077 = vmatprep.subr.bf16.mxu1 %v23418_v52 }
 0x7d5   : > { %12232 = vmatmul.mubr.bf16.vlgmr.msra.gmra.mrb[16].mxu0 %v21697_v36 }
 0x7d6   : > { %12356 = vmatpush1.bf16.msra.mxu0 %v19149_v18  ;;  %17041 = vmatprep.mubr.msk.bf16.mxu0 %vm10795_vm14, %v12270_v14  ;;  %v19199_v18 = vld [vmem:[%s23401_s7 + $0x4d8] sm:$0x7f]   ;;  %v10639_v14 = vpop.permute.xlu1 %10638 }
 0x7d7   : > { %14078 = vmatpush1.bf16.msra.mxu1 %v14051_v12  ;;  %12357 = vmatprep.subr.bf16.mxu0 %v23418_v52  ;;  %v19198_v12 = vld [vmem:[%s23401_s7 + $0x9a8] sm:$0xff]  }
 0x7d8   : > { %14207 = vmatprep.subr.bf16.mxu1 %v23418_v52 }
 0x7da   : > { %14086 = vmatmul.mubr.bf16.vlgmr.msra.gmra.mrb[16].mxu1 %v13967_v2  ;;  %12358 = vmatpush1.bf16.msra.mxu0 %v19151_v26  ;;  %v10648_v26 = vmul.f32 %v21569_v58, %v10639_v14  ;;  %v19200_v2 = vld [vmem:[%s23401_s7 + $0x9b0] sm:$0xff]   ;;  %v12423_v58 = vrot.slane %v21697_v36, 1  ;;  %v19203_v36 = vld [vmem:[%s23401_s7 + $0x9c8] sm:$0xff]  }
 0x7db   : > { %14208 = vmatpush1.bf16.msra.mxu1 %v19152_v6  ;;  %17521 = vmatprep.mubr.msk.bf16.mxu1 %vm10795_vm14, %v14122_v51  ;;  %v12507_v6 = vand.u32 %v19199_v18, %v21535_v50  ;;  %v19201_v51 = vld [vmem:[%s23401_s7 + $0x9b8] sm:$0x7f]  }
 0x7dc   : > { %12359 = vmatprep.subr.bf16.mxu0 %v23418_v52  ;;  %14209 = vmatprep.subr.bf16.mxu1 %v23418_v52 }
 0x7de   : > { %12360 = vmatpush1.bf16.msra.mxu0 %v19153_v0  ;;  %v10671_v0 = vpop.permute.xlu0 %10670 }
 0x7df   : > { %14210 = vmatpush1.bf16.msra.mxu1 %v19154_v22  ;;  %12361 = vmatprep.subr.bf16.mxu0 %v23418_v52  ;;  %v10680_v22 = vadd.f32 %v10671_v0, %v10648_v26 }
 0x7e0   : > { %14211 = vmatprep.subr.bf16.mxu1 %v23418_v52 }
 0x7e2   : > { %12362 = vmatpush1.bf16.msra.mxu0 %v19155_v35  ;;  %v14359_v35 = vand.u32 %v19201_v51, %v21535_v50  ;;  %v19244_v51 = vld [vmem:[%s23401_s7 + $0xb10] sm:$0xff]  }
 0x7e3   : > { %14212 = vmatpush1.bf16.msra.mxu1 %v19156_v60  ;;  %12363 = vmatprep.subr.bf16.mxu0 %v23418_v52  ;;  %v10688_v60 = vmax.f32 %v10680_v22, 0.0  ;;  %v19246_v22 = vld [vmem:[%s23401_s7 + $0xb20] sm:$0xff]  }
 0x7e4   : > { %14213 = vmatprep.subr.bf16.mxu1 %v23418_v52 }
 0x7e6   : > { %12364 = vmatpush1.bf16.msra.mxu0 %v19157_v40  ;;  %v19202_v40 = vld [vmem:[%s23401_s7 + $0x9c0] sm:$0xff]  }
 0x7e7   : > { %14214 = vmatpush1.bf16.msra.mxu1 %v19158_v39  ;;  %12365 = vmatprep.subr.bf16.mxu0 %v23418_v52  ;;  %v14275_v39 = vrot.slane %v22170_v31, 3  ;;  %v19204_v31 = vld [vmem:[%s23401_s7 + $0x9d0] sm:$0xff]  }
 0x7e8   : > { %14215 = vmatprep.subr.bf16.mxu1 %v23418_v52 }
 0x7ea   : > { %12366 = vmatpush1.bf16.msra.mxu0 %v19159_v9  ;;  %v22837_v9 = vpack.c.bf16 %v10688_v60, %v10688_v60  ;;  %v19249_v60 = vld [vmem:[%s23401_s7 + $0xb38] sm:$0xff]  }
 0x7eb   : > { %14216 = vmatpush1.bf16.msra.mxu1 %v19160_v29  ;;  %12367 = vmatprep.subr.bf16.mxu0 %v23418_v52  ;;  %v19205_v29 = vld [vmem:[%s23401_s7 + $0x9d8] sm:$0xff]  }
 0x7ec   : > { %14217 = vmatprep.subr.bf16.mxu1 %v23418_v52 }
 0x7ee   : > { %12368 = vmatpush1.bf16.msra.mxu0 %v19161_v49  ;;  %v19206_v49 = vld [vmem:[%s23401_s7 + $0x9e0] sm:$0xff]  }
 0x7ef   : > { %14218 = vmatpush1.bf16.msra.mxu1 %v19162_v16  ;;  %12369 = vmatprep.subr.bf16.mxu0 %v23418_v52  ;;  %v19207_v16 = vld [vmem:[%s23401_s7 + $0x9e8] sm:$0xff]  }
 0x7f0   : > { %14219 = vmatprep.subr.bf16.mxu1 %v23418_v52 }
 0x7f2   : > { %12370 = vmatpush1.bf16.msra.mxu0 %v19163_v45  ;;  %v19208_v45 = vld [vmem:[%s23401_s7 + $0x9f0] sm:$0xff]  }
 0x7f3   : > { %14220 = vmatpush1.bf16.msra.mxu1 %v19164_v57  ;;  %12371 = vmatprep.subr.bf16.mxu0 %v23418_v52  ;;  %v19209_v57 = vld [vmem:[%s23401_s7 + $0x9f8] sm:$0xff]  }
 0x7f4   : > { %14221 = vmatprep.subr.bf16.mxu1 %v23418_v52 }
 0x7f6   : > { %12372 = vmatpush1.bf16.msra.mxu0 %v19165_v8  ;;  %v19210_v8 = vld [vmem:[%s23401_s7 + $0xa00] sm:$0xff]  }
 0x7f7   : > { %14222 = vmatpush1.bf16.msra.mxu1 %v19166_v32  ;;  %12373 = vmatprep.subr.bf16.mxu0 %v23418_v52  ;;  %v19211_v32 = vld [vmem:[%s23401_s7 + $0xa08] sm:$0xff]  }
 0x7f8   : > { %14223 = vmatprep.subr.bf16.mxu1 %v23418_v52 }
 0x7fa   : > { %12374 = vmatpush1.bf16.msra.mxu0 %v19167_v28  ;;  %v19212_v28 = vld [vmem:[%s23401_s7 + $0xa10] sm:$0xff]  }
 0x7fb   : > { %14224 = vmatpush1.bf16.msra.mxu1 %v19168_v15  ;;  %12375 = vmatprep.subr.bf16.mxu0 %v23418_v52  ;;  %v10647_v15 = vmul.f32 %v21565_v59, %v10639_v14  ;;  %v19215_v59 = vld [vmem:[%s23401_s7 + $0xa28] sm:$0xff]  }
 0x7fc   : > { %14225 = vmatprep.subr.bf16.mxu1 %v23418_v52 }
 0x7fe   : > { %12376 = vmatpush1.bf16.msra.mxu0 %v19169_v61  ;;  %v19213_v61 = vld [vmem:[%s23401_s7 + $0xa18] sm:$0xff]  }
 0x7ff   : > { %14226 = vmatpush1.bf16.msra.mxu1 %v19170_v11  ;;  %12377 = vmatprep.subr.bf16.mxu0 %v23418_v52  ;;  %v19214_v11 = vld [vmem:[%s23401_s7 + $0xa20] sm:$0x7f]  }
 0x800   : > { %14227 = vmatprep.subr.bf16.mxu1 %v23418_v52  ;;  %v14512_v43 = vand.u32 %v19214_v11, %v21535_v50  ;;  %v19257_v11 = vld [vmem:[%s23401_s7 + $0xb78] sm:$0xff]  }
 0x802   : > { %12378 = vmatpush1.bf16.msra.mxu0 %v19171_v53  ;;  %v10679_v53 = vadd.f32 %v10671_v0, %v10647_v15  ;;  %v19245_v0 = vld [vmem:[%s23401_s7 + $0xb18] sm:$0xff]   ;;  %v19255_v15 = vld [vmem:[%s23401_s7 + $0xb68] sm:$0xff]  }
 0x803   : > { %14228 = vmatpush1.bf16.msra.mxu1 %v19172_v34  ;;  %12379 = vmatprep.subr.bf16.mxu0 %v23418_v52 }
 0x804   : > { %14229 = vmatprep.subr.bf16.mxu1 %v23418_v52  ;;  %v10687_v34 = vmax.f32 %v10679_v53, 0.0  ;;  %v19258_v53 = vld [vmem:[%s23401_s7 + $0xb80] sm:$0xff]  }
 0x806   : > { %12380 = vmatpush1.bf16.msra.mxu0 %v12353_v20  ;;  %v22894_v20 = vpack.c.bf16 %v10687_v34, %v10687_v34  ;;  %v19260_v34 = vld [vmem:[%s23401_s7 + $0xb90] sm:$0xff]  }
 0x807   : > { %14230 = vmatpush1.bf16.msra.mxu1 %v19174_v4  ;;  %12509 = vmatprep.subr.bf16.mxu0 %v23418_v52  ;;  %v22898_v4 = vshrl.u32 %v22837_v9, 16 }
 0x808   : > { %14231 = vmatprep.subr.bf16.mxu1 %v23418_v52  ;;  %v14741_v14 = vrot.slane %v22894_v20, 1 }
 0x809   : > { %12388 = vmatmul.mubr.bf16.vlgmr.msra.gmra.mrb[16].mxu0 %v12269_v46  ;;  %v19218_v46 = vld [vmem:[%s23401_s7 + $0xa40] sm:$0xff]   ;;  %v14896_v26 = vrot.slane %v22898_v4, 1 }
 0x80a   : > { %12510 = vmatpush1.bf16.msra.mxu0 %v19175_v33  ;;  %17081 = vmatprep.mubr.msk.bf16.mxu0 %vm10795_vm14, %v12424_v42  ;;  %v19217_v33 = vld [vmem:[%s23401_s7 + $0xa38] sm:$0xff]   ;;  %v19220_v42 = vld [vmem:[%s23401_s7 + $0xa50] sm:$0xff]  }
 0x80b   : > { %14232 = vmatpush1.bf16.msra.mxu1 %v14205_v10  ;;  %12511 = vmatprep.subr.bf16.mxu0 %v23418_v52  ;;  %v19219_v10 = vld [vmem:[%s23401_s7 + $0xa48] sm:$0xff]  }
 0x80c   : > { %14361 = vmatprep.subr.bf16.mxu1 %v23418_v52 }
 0x80e   : > { %14240 = vmatmul.mubr.bf16.vlgmr.msra.gmra.mrb[16].mxu1 %v14121_v48  ;;  %12512 = vmatpush1.bf16.msra.mxu0 %v19177_v56  ;;  %v19221_v56 = vld [vmem:[%s23401_s7 + $0xa58] sm:$0xff]   ;;  %v19223_v48 = vld [vmem:[%s23401_s7 + $0xa68] sm:$0xff]  }
 0x80f   : > { %14362 = vmatpush1.bf16.msra.mxu1 %v19178_v27  ;;  %17561 = vmatprep.mubr.msk.bf16.mxu1 %vm10795_vm14, %v14276_v5  ;;  %v19222_v27 = vld [vmem:[%s23401_s7 + $0xa60] sm:$0xff]   ;;  %v19224_v5 = vld [vmem:[%s23401_s7 + $0xa70] sm:$0xff]  }
 0x810   : > { %12513 = vmatprep.subr.bf16.mxu0 %v23418_v52  ;;  %14363 = vmatprep.subr.bf16.mxu1 %v23418_v52 }
 0x812   : > { %12514 = vmatpush1.bf16.msra.mxu0 %v19179_v17  ;;  %v19225_v17 = vld [vmem:[%s23401_s7 + $0xa78] sm:$0xff]  }
 0x813   : > { %14364 = vmatpush1.bf16.msra.mxu1 %v19180_v54  ;;  %12515 = vmatprep.subr.bf16.mxu0 %v23418_v52  ;;  %v19226_v54 = vld [vmem:[%s23401_s7 + $0xa80] sm:$0xff]  }
 0x814   : > { %14365 = vmatprep.subr.bf16.mxu1 %v23418_v52 }
 0x816   : > { %12516 = vmatpush1.bf16.msra.mxu0 %v19181_v7  ;;  %v19227_v7 = vld [vmem:[%s23401_s7 + $0xa88] sm:$0x7f]  }
 0x817   : > { %14366 = vmatpush1.bf16.msra.mxu1 %v19182_v1  ;;  %12517 = vmatprep.subr.bf16.mxu0 %v23418_v52  ;;  %v14669_v1 = vand.u32 %v19227_v7, %v21535_v50  ;;  %v19270_v7 = vld [vmem:[%s23401_s7 + $0xbe0] sm:$0xff]  }
 0x818   : > { %14367 = vmatprep.subr.bf16.mxu1 %v23418_v52 }
 0x81a   : > { %12518 = vmatpush1.bf16.msra.mxu0 %v19183_v25  ;;  %v19228_v25 = vld [vmem:[%s23401_s7 + $0xa90] sm:$0xff]  }
 0x81b   : > { %14368 = vmatpush1.bf16.msra.mxu1 %v19184_v47  ;;  %12519 = vmatprep.subr.bf16.mxu0 %v23418_v52  ;;  %v22956_v47 = vshrl.u32 %v22894_v20, 16 }
 0x81c   : > { %14369 = vmatprep.subr.bf16.mxu1 %v23418_v52 }
 0x81e   : > { %12520 = vmatpush1.bf16.msra.mxu0 %v19185_v3  ;;  %v14742_v3 = vrot.slane %v22837_v9, 1 }
 0x81f   : > { %14370 = vmatpush1.bf16.msra.mxu1 %v19186_v19  ;;  %12521 = vmatprep.subr.bf16.mxu0 %v23418_v52  ;;  %v19229_v19 = vld [vmem:[%s23401_s7 + $0xa98] sm:$0xff]  }
 0x820   : > { %14371 = vmatprep.subr.bf16.mxu1 %v23418_v52 }
 0x822   : > { %12522 = vmatpush1.bf16.msra.mxu0 %v19187_v13  ;;  %v19230_v13 = vld [vmem:[%s23401_s7 + $0xaa0] sm:$0xff]  }
 0x823   : > { %14372 = vmatpush1.bf16.msra.mxu1 %v19188_v38  ;;  %12523 = vmatprep.subr.bf16.mxu0 %v23418_v52  ;;  %v19231_v38 = vld [vmem:[%s23401_s7 + $0xaa8] sm:$0xff]  }
 0x824   : > { %14373 = vmatprep.subr.bf16.mxu1 %v23418_v52 }
 0x826   : > { %12524 = vmatpush1.bf16.msra.mxu0 %v19189_v23  ;;  %v19232_v23 = vld [vmem:[%s23401_s7 + $0xab0] sm:$0xff]  }
 0x827   : > { %14374 = vmatpush1.bf16.msra.mxu1 %v19190_v41  ;;  %12525 = vmatprep.subr.bf16.mxu0 %v23418_v52  ;;  %v19233_v41 = vld [vmem:[%s23401_s7 + $0xab8] sm:$0xff]  }
 0x828   : > { %14375 = vmatprep.subr.bf16.mxu1 %v23418_v52 }
 0x82a   : > { %12526 = vmatpush1.bf16.msra.mxu0 %v19191_v55  ;;  %v19234_v55 = vld [vmem:[%s23401_s7 + $0xac0] sm:$0xff]  }
 0x82b   : > { %14376 = vmatpush1.bf16.msra.mxu1 %v19192_v37  ;;  %12527 = vmatprep.subr.bf16.mxu0 %v23418_v52  ;;  %v19235_v37 = vld [vmem:[%s23401_s7 + $0xac8] sm:$0xff]  }
 0x82c   : > { %14377 = vmatprep.subr.bf16.mxu1 %v23418_v52 }
 0x82e   : > { %12528 = vmatpush1.bf16.msra.mxu0 %v19193_v30  ;;  %v19236_v30 = vld [vmem:[%s23401_s7 + $0xad0] sm:$0xff]  }
 0x82f   : > { %14378 = vmatpush1.bf16.msra.mxu1 %v19194_v21  ;;  %12529 = vmatprep.subr.bf16.mxu0 %v23418_v52  ;;  %v19237_v21 = vld [vmem:[%s23401_s7 + $0xad8] sm:$0xff]  }
 0x830   : > { %14379 = vmatprep.subr.bf16.mxu1 %v23418_v52 }
 0x832   : > { %12530 = vmatpush1.bf16.msra.mxu0 %v19195_v62  ;;  %v19238_v62 = vld [vmem:[%s23401_s7 + $0xae0] sm:$0xff]  }
 0x833   : > { %14380 = vmatpush1.bf16.msra.mxu1 %v19196_v44  ;;  %12531 = vmatprep.subr.bf16.mxu0 %v23418_v52  ;;  %v19239_v44 = vld [vmem:[%s23401_s7 + $0xae8] sm:$0xff]  }
 0x834   : > { %14381 = vmatprep.subr.bf16.mxu1 %v23418_v52 }
 0x836   : > { %12532 = vmatpush1.bf16.msra.mxu0 %v19197_v24  ;;  %v19240_v24 = vld [vmem:[%s23401_s7 + $0xaf0] sm:$0x7f]  }
 0x837   : > { %14382 = vmatpush1.bf16.msra.mxu1 %v19198_v12  ;;  %12533 = vmatprep.subr.bf16.mxu0 %v23418_v52  ;;  %v14825_v18 = vand.u32 %v19240_v24, %v21535_v50  ;;  %v19241_v12 = vld [vmem:[%s23401_s7 + $0xaf8] sm:$0xff]   ;;  %v19276_v24 = vld [vmem:[%s23401_s7 + $0xc10] sm:$0xff]  }
 0x838   : > { %14383 = vmatprep.subr.bf16.mxu1 %v23418_v52 }
 0x83a   : > { %12534 = vmatpush1.bf16.msra.mxu0 %v12507_v6  ;;  %v19242_v6 = vld [vmem:[%s23401_s7 + $0xb00] sm:$0xff]  }
 0x83b   : > { %14384 = vmatpush1.bf16.msra.mxu1 %v19200_v2  ;;  %v19243_v2 = vld [vmem:[%s23401_s7 + $0xb08] sm:$0xff]  }
 0x83c   : > { %14385 = vmatprep.subr.bf16.mxu1 %v23418_v52 }
 0x83d   : > { %12542 = vmatmul.mubr.bf16.vlgmr.msra.gmra.mrb[16].mxu0 %v12423_v58  ;;  %v19247_v58 = vld [vmem:[%s23401_s7 + $0xb28] sm:$0xff]  }
 0x83f   : > { %14386 = vmatpush1.bf16.msra.mxu1 %v14359_v35  ;;  %v19248_v35 = vld [vmem:[%s23401_s7 + $0xb30] sm:$0xff]  }
 0x840   : > { %14514 = vmatprep.subr.bf16.mxu1 %v23418_v52 }
 0x842   : > { %14394 = vmatmul.mubr.bf16.vlgmr.msra.gmra.mrb[16].mxu1 %v14275_v39  ;;  %v19251_v39 = vld [vmem:[%s23401_s7 + $0xb48] sm:$0xff]  }
 0x843   : > { %14515 = vmatpush1.bf16.msra.mxu1 %v19202_v40  ;;  %17601 = vmatprep.mubr.msk.bf16.mxu1 %vm10795_vm14, %v22837_v9  ;;  %v19250_v40 = vld [vmem:[%s23401_s7 + $0xb40] sm:$0xff]  }
 0x844   : > { %14516 = vmatprep.subr.bf16.mxu1 %v23418_v52 }
 0x847   : > { %14517 = vmatpush1.bf16.msra.mxu1 %v19203_v36  ;;  %v19252_v36 = vld [vmem:[%s23401_s7 + $0xb50] sm:$0xff]  }
 0x848   : > { %14518 = vmatprep.subr.bf16.mxu1 %v23418_v52 }
 0x84b   : > { %14519 = vmatpush1.bf16.msra.mxu1 %v19204_v31  ;;  %v19253_v31 = vld [vmem:[%s23401_s7 + $0xb58] sm:$0x7f]  }
 0x84c   : > { %14520 = vmatprep.subr.bf16.mxu1 %v23418_v52 }
 0x84f   : > { %14521 = vmatpush1.bf16.msra.mxu1 %v19205_v29  ;;  %v14979_v29 = vand.u32 %v19253_v31, %v21535_v50  ;;  %v15652_v31 = vld [vmem:[%s23403_s9 + $0x68] sm:$0xff] }
 0x850   : > { %14522 = vmatprep.subr.bf16.mxu1 %v23418_v52 }
 0x853   : > { %14523 = vmatpush1.bf16.msra.mxu1 %v19206_v49  ;;  %v19254_v49 = vld [vmem:[%s23401_s7 + $0xb60] sm:$0xff]  }
 0x854   : > { %14524 = vmatprep.subr.bf16.mxu1 %v23418_v52 }
 0x857   : > { %14525 = vmatpush1.bf16.msra.mxu1 %v19207_v16 }
 0x858   : > { %14526 = vmatprep.subr.bf16.mxu1 %v23418_v52 }
 0x85b   : > { %14527 = vmatpush1.bf16.msra.mxu1 %v19208_v45  ;;  %v14895_v45 = vrot.slane %v22956_v47, 1 }
 0x85c   : > { %14528 = vmatprep.subr.bf16.mxu1 %v23418_v52 }
 0x85f   : > { %14529 = vmatpush1.bf16.msra.mxu1 %v19209_v57 }
 0x860   : > { %14530 = vmatprep.subr.bf16.mxu1 %v23418_v52 }
 0x863   : > { %14531 = vmatpush1.bf16.msra.mxu1 %v19210_v8  ;;  %v15050_v8 = vrot.slane %v22837_v9, 2 }
 0x864   : > { %14532 = vmatprep.subr.bf16.mxu1 %v23418_v52 }
 0x867   : > { %14533 = vmatpush1.bf16.msra.mxu1 %v19211_v32 }
 0x868   : > { %14534 = vmatprep.subr.bf16.mxu1 %v23418_v52 }
 0x86b   : > { %14535 = vmatpush1.bf16.msra.mxu1 %v19212_v28 }
 0x86c   : > { %14536 = vmatprep.subr.bf16.mxu1 %v23418_v52 }
 0x86f   : > { %14537 = vmatpush1.bf16.msra.mxu1 %v19213_v61  ;;  %v19256_v61 = vld [vmem:[%s23401_s7 + $0xb70] sm:$0xff]  }
 0x870   : > { %14538 = vmatprep.subr.bf16.mxu1 %v23418_v52 }
 0x873   : > { %14539 = vmatpush1.bf16.msra.mxu1 %v14512_v43  ;;  %v19259_v43 = vld [vmem:[%s23401_s7 + $0xb88] sm:$0xff]  }
 0x874   : > { %14671 = vmatprep.subr.bf16.mxu1 %v23418_v52 }
 0x876   : > { %14547 = vmatmul.mubr.bf16.vlgmr.msra.gmra.mrb[16].mxu1 %v22894_v20 }
 0x877   : > { %14672 = vmatpush1.bf16.msra.mxu1 %v19215_v59  ;;  %17641 = vmatprep.mubr.msk.bf16.mxu1 %vm10795_vm14, %v22898_v4  ;;  %v19261_v59 = vld [vmem:[%s23401_s7 + $0xb98] sm:$0xff]  }
 0x878   : > { %14673 = vmatprep.subr.bf16.mxu1 %v23418_v52 }
 0x87b   : > { %14674 = vmatpush1.bf16.msra.mxu1 %v19216_v63  ;;  %v19262_v63 = vld [vmem:[%s23401_s7 + $0xba0] sm:$0xff]  }
 0x87c   : > { %14675 = vmatprep.subr.bf16.mxu1 %v23418_v52 }
 0x87f   : > { %14676 = vmatpush1.bf16.msra.mxu1 %v19217_v33  ;;  %v19263_v33 = vld [vmem:[%s23401_s7 + $0xba8] sm:$0xff]  }
 0x880   : > { %14677 = vmatprep.subr.bf16.mxu1 %v23418_v52 }
 0x883   : > { %14678 = vmatpush1.bf16.msra.mxu1 %v19218_v46  ;;  %v19264_v46 = vld [vmem:[%s23401_s7 + $0xbb0] sm:$0xff]  }
 0x884   : > { %14679 = vmatprep.subr.bf16.mxu1 %v23418_v52 }
 0x887   : > { %14680 = vmatpush1.bf16.msra.mxu1 %v19219_v10  ;;  %v19265_v10 = vld [vmem:[%s23401_s7 + $0xbb8] sm:$0xff]  }
 0x888   : > { %14681 = vmatprep.subr.bf16.mxu1 %v23418_v52 }
 0x88b   : > { %14682 = vmatpush1.bf16.msra.mxu1 %v19220_v42  ;;  %v19266_v42 = vld [vmem:[%s23401_s7 + $0xbc0] sm:$0x7f]  }
 0x88c   : > { %14683 = vmatprep.subr.bf16.mxu1 %v23418_v52 }
 0x88f   : > { %14684 = vmatpush1.bf16.msra.mxu1 %v19221_v56  ;;  %v15133_v56 = vand.u32 %v19266_v42, %v21535_v50  ;;  %v15512_v42 = vrot.slane %v22898_v4, 3 }
 0x890   : > { %14685 = vmatprep.subr.bf16.mxu1 %v23418_v52 }
 0x893   : > { %14686 = vmatpush1.bf16.msra.mxu1 %v19222_v27  ;;  %v19267_v27 = vld [vmem:[%s23401_s7 + $0xbc8] sm:$0xff]  }
 0x894   : > { %14687 = vmatprep.subr.bf16.mxu1 %v23418_v52 }
 0x897   : > { %14688 = vmatpush1.bf16.msra.mxu1 %v19223_v48  ;;  %v15049_v48 = vrot.slane %v22894_v20, 2 }
 0x898   : > { %14689 = vmatprep.subr.bf16.mxu1 %v23418_v52 }
 0x89b   : > { %14690 = vmatpush1.bf16.msra.mxu1 %v19224_v5  ;;  %v15204_v5 = vrot.slane %v22898_v4, 2  ;;  %v19297_v4 = vld [vmem:[%s23401_s7 + $0xcb8] sm:$0xff]  }
 0x89c   : > { %14691 = vmatprep.subr.bf16.mxu1 %v23418_v52 }
 0x89f   : > { %14692 = vmatpush1.bf16.msra.mxu1 %v19225_v17  ;;  %v19268_v17 = vld [vmem:[%s23401_s7 + $0xbd0] sm:$0xff]  }
 0x8a0   : > { %14693 = vmatprep.subr.bf16.mxu1 %v23418_v52 }
 0x8a3   : > { %14694 = vmatpush1.bf16.msra.mxu1 %v19226_v54  ;;  %v19269_v54 = vld [vmem:[%s23401_s7 + $0xbd8] sm:$0xff]  }
 0x8a4   : > { %14695 = vmatprep.subr.bf16.mxu1 %v23418_v52 }
 0x8a7   : > { %14696 = vmatpush1.bf16.msra.mxu1 %v14669_v1  ;;  %v19271_v1 = vld [vmem:[%s23401_s7 + $0xbe8] sm:$0xff]  }
 0x8a8   : > { %14827 = vmatprep.subr.bf16.mxu1 %v23418_v52 }
 0x8aa   : > { %14704 = vmatmul.mubr.bf16.vlgmr.msra.gmra.mrb[16].mxu1 %v22956_v47 }
 0x8ab   : > { %14828 = vmatpush1.bf16.msra.mxu1 %v19228_v25  ;;  %17681 = vmatprep.mubr.msk.bf16.mxu1 %vm10795_vm14, %v14742_v3  ;;  %v19272_v25 = vld [vmem:[%s23401_s7 + $0xbf0] sm:$0xff]   ;;  %v19273_v3 = vld [vmem:[%s23401_s7 + $0xbf8] sm:$0xff]  }
 0x8ac   : > { %14829 = vmatprep.subr.bf16.mxu1 %v23418_v52 }
 0x8af   : > { %14830 = vmatpush1.bf16.msra.mxu1 %v19229_v19  ;;  %v19274_v19 = vld [vmem:[%s23401_s7 + $0xc00] sm:$0xff]  }
 0x8b0   : > { %14831 = vmatprep.subr.bf16.mxu1 %v23418_v52 }
 0x8b3   : > { %14832 = vmatpush1.bf16.msra.mxu1 %v19230_v13  ;;  %v15639_v13 = vld [vmem:[%s23403_s9] sm:$0xff] }
 0x8b4   : > { %14833 = vmatprep.subr.bf16.mxu1 %v23418_v52 }
 0x8b7   : > { %14834 = vmatpush1.bf16.msra.mxu1 %v19231_v38  ;;  %v15640_v38 = vld [vmem:[%s23403_s9 + $0x8] sm:$0xff] }
 0x8b8   : > { %14835 = vmatprep.subr.bf16.mxu1 %v23418_v52 }
 0x8bb   : > { %14836 = vmatpush1.bf16.msra.mxu1 %v19232_v23  ;;  %v15641_v23 = vld [vmem:[%s23403_s9 + $0x10] sm:$0xff] }
 0x8bc   : > { %14837 = vmatprep.subr.bf16.mxu1 %v23418_v52 }
 0x8bf   : > { %14838 = vmatpush1.bf16.msra.mxu1 %v19233_v41  ;;  %v19275_v41 = vld [vmem:[%s23401_s7 + $0xc08] sm:$0xff]  }
 0x8c0   : > { %14839 = vmatprep.subr.bf16.mxu1 %v23418_v52 }
 0x8c3   : > { %14840 = vmatpush1.bf16.msra.mxu1 %v19234_v55  ;;  %v19335_v55 = vmov 0.0|0.0  }
 0x8c4   : > { %14841 = vmatprep.subr.bf16.mxu1 %v23418_v52  ;;  %17965 = vmatprep.subr.bf16.mxu0 %v19335_v55 }
 0x8c7   : > { %14842 = vmatpush1.bf16.msra.mxu1 %v19235_v37  ;;  %v17966_v37 = vpack.c.bf16 %v15640_v38, %v15639_v13  ;;  %v15511_v13 = vrot.slane %v22956_v47, 3  ;;  %v15653_v38 = vld [vmem:[%s23403_s9 + $0x70] sm:$0xff] }
 0x8c8   : > { %14843 = vmatprep.subr.bf16.mxu1 %v23418_v52 }
 0x8c9   : > { %17967 = vmatpush3.bf16.msra.mxu0 %v17966_v37  ;;  %v19337_v37 = vmov 0.0  }
 0x8ca   : > { %17968 = vmatprep.subr.bf16.mxu0 %v19335_v55  ;;  %17943 = vmatprep.mubr.msk.f32.mxu0 %vm19336_vm15, %v19337_v37 }
 0x8cb   : > { %14844 = vmatpush1.bf16.msra.mxu1 %v19236_v30  ;;  %v15642_v30 = vld [vmem:[%s23403_s9 + $0x18] sm:$0xff] }
 0x8cc   : > { %14845 = vmatprep.subr.bf16.mxu1 %v23418_v52 }
 0x8cf   : > { %14846 = vmatpush1.bf16.msra.mxu1 %v19237_v21  ;;  %v17969_v21 = vpack.c.bf16 %v15642_v30, %v15641_v23  ;;  %v15654_v23 = vld [vmem:[%s23403_s9 + $0x78] sm:$0xff]  ;;  %v15728_v30 = vld [vmem:[%s23405_s11 + $0x8] sm:$0xff] }
 0x8d0   : > { %14847 = vmatprep.subr.bf16.mxu1 %v23418_v52 }
 0x8d1   : > { %17970 = vmatpush3.bf16.msra.mxu0 %v17969_v21 }
 0x8d2   : > { %17971 = vmatprep.subr.bf16.mxu0 %v19335_v55 }
 0x8d3   : > { %14848 = vmatpush1.bf16.msra.mxu1 %v19238_v62  ;;  %v15643_v62 = vld [vmem:[%s23403_s9 + $0x20] sm:$0xff] }
 0x8d4   : > { %14849 = vmatprep.subr.bf16.mxu1 %v23418_v52 }
 0x8d7   : > { %14850 = vmatpush1.bf16.msra.mxu1 %v19239_v44  ;;  %v15644_v44 = vld [vmem:[%s23403_s9 + $0x28] sm:$0xff] }
 0x8d8   : > { %14851 = vmatprep.subr.bf16.mxu1 %v23418_v52 }
 0x8db   : > { %14852 = vmatpush1.bf16.msra.mxu1 %v14825_v18  ;;  %v17972_v18 = vpack.c.bf16 %v15644_v44, %v15643_v62 }
 0x8dc   : > { %14981 = vmatprep.subr.bf16.mxu1 %v23418_v52 }
 0x8dd   : > { %17973 = vmatpush3.bf16.msra.mxu0 %v17972_v18 }
 0x8de   : > { %14860 = vmatmul.mubr.bf16.vlgmr.msra.gmra.mrb[16].mxu1 %v14741_v14  ;;  %v15646_v14 = vld [vmem:[%s23403_s9 + $0x38] sm:$0xff]  ;;  %17974 = vmatprep.subr.bf16.mxu0 %v19335_v55 }
 0x8df   : > { %14982 = vmatpush1.bf16.msra.mxu1 %v19241_v12  ;;  %17721 = vmatprep.mubr.msk.bf16.mxu1 %vm10795_vm14, %v14896_v26  ;;  %v15645_v12 = vld [vmem:[%s23403_s9 + $0x30] sm:$0xff]  ;;  %v19277_v26 = vld [vmem:[%s23401_s7 + $0xc18] sm:$0xff]  }
 0x8e0   : > { %14983 = vmatprep.subr.bf16.mxu1 %v23418_v52 }
 0x8e3   : > { %14984 = vmatpush1.bf16.msra.mxu1 %v19242_v6  ;;  %v17975_v6 = vpack.c.bf16 %v15646_v14, %v15645_v12 }
 0x8e4   : > { %14985 = vmatprep.subr.bf16.mxu1 %v23418_v52 }
 0x8e5   : > { %17976 = vmatpush3.bf16.msra.mxu0 %v17975_v6 }
 0x8e6   : > { %17977 = vmatprep.subr.bf16.mxu0 %v19335_v55 }
 0x8e7   : > { %14986 = vmatpush1.bf16.msra.mxu1 %v19243_v2  ;;  %v15647_v2 = vld [vmem:[%s23403_s9 + $0x40] sm:$0xff] }
 0x8e8   : > { %14987 = vmatprep.subr.bf16.mxu1 %v23418_v52 }
 0x8eb   : > { %14988 = vmatpush1.bf16.msra.mxu1 %v19244_v51  ;;  %v15648_v51 = vld [vmem:[%s23403_s9 + $0x48] sm:$0xff] }
 0x8ec   : > { %14989 = vmatprep.subr.bf16.mxu1 %v23418_v52 }
 0x8ef   : > { %14990 = vmatpush1.bf16.msra.mxu1 %v19245_v0  ;;  %v19278_v0 = vld [vmem:[%s23401_s7 + $0xc20] sm:$0xff]  }
 0x8f0   : > { %14991 = vmatprep.subr.bf16.mxu1 %v23418_v52 }
 0x8f3   : > { %14992 = vmatpush1.bf16.msra.mxu1 %v19246_v22  ;;  %v19279_v22 = vld [vmem:[%s23401_s7 + $0xc28] sm:$0x7f]  }
 0x8f4   : > { %14993 = vmatprep.subr.bf16.mxu1 %v23418_v52 }
 0x8f7   : > { %14994 = vmatpush1.bf16.msra.mxu1 %v19247_v58  ;;  %v17978_v58 = vpack.c.bf16 %v15648_v51, %v15647_v2  ;;  %v15731_v2 = vld [vmem:[%s23405_s11 + $0x20] sm:$0xff]  ;;  %v15732_v51 = vld [vmem:[%s23405_s11 + $0x28] sm:$0xff] }
 0x8f8   : > { %14995 = vmatprep.subr.bf16.mxu1 %v23418_v52 }
 0x8f9   : > { %17979 = vmatpush3.bf16.msra.mxu0 %v17978_v58  ;;  %v15734_v58 = vld [vmem:[%s23405_s11 + $0x38] sm:$0xff] }
 0x8fa   : > { %17980 = vmatprep.subr.bf16.mxu0 %v19335_v55 }
 0x8fb   : > { %14996 = vmatpush1.bf16.msra.mxu1 %v19248_v35  ;;  %v15649_v35 = vld [vmem:[%s23403_s9 + $0x50] sm:$0xff] }
 0x8fc   : > { %14997 = vmatprep.subr.bf16.mxu1 %v23418_v52 }
 0x8ff   : > { %14998 = vmatpush1.bf16.msra.mxu1 %v19249_v60  ;;  %v15650_v60 = vld [vmem:[%s23403_s9 + $0x58] sm:$0xff] }
 0x900   : > { %14999 = vmatprep.subr.bf16.mxu1 %v23418_v52 }
 0x903   : > { %15000 = vmatpush1.bf16.msra.mxu1 %v19250_v40  ;;  %v15287_v40 = vand.u32 %v19279_v22, %v21535_v50  ;;  %v15733_v22 = vld [vmem:[%s23405_s11 + $0x30] sm:$0xff] }
 0x904   : > { %15001 = vmatprep.subr.bf16.mxu1 %v23418_v52 }
 0x907   : > { %15002 = vmatpush1.bf16.msra.mxu1 %v19251_v39  ;;  %v17981_v39 = vpack.c.bf16 %v15650_v60, %v15649_v35  ;;  %v17999_v35 = vpack.c.bf16 %v15734_v58, %v15733_v22  ;;  %v15655_v60 = vld [vmem:[%s23404_s10] sm:$0x1] }
 0x908   : > { %15003 = vmatprep.subr.bf16.mxu1 %v23418_v52 }
 0x909   : > { %17982 = vmatpush3.bf16.msra.mxu0 %v17981_v39 }
 0x90a   : > { %17983 = vmatprep.subr.bf16.mxu0 %v19335_v55 }
 0x90b   : > { %15004 = vmatpush1.bf16.msra.mxu1 %v19252_v36  ;;  %v15651_v36 = vld [vmem:[%s23403_s9 + $0x60] sm:$0xff] }
 0x90c   : > { %15005 = vmatprep.subr.bf16.mxu1 %v23418_v52 }
 0x90f   : > { %15006 = vmatpush1.bf16.msra.mxu1 %v14979_v29  ;;  %v19280_v29 = vld [vmem:[%s23401_s7 + $0xc30] sm:$0xff]  }
 0x910   : > { %v23070_v16 = vpop.f32.mrb[16].mxu0  ;;  %15135 = vmatprep.subr.bf16.mxu1 %v23418_v52 }
 0x911   : > { %v12545_v57 = vpop.f32.mrb[17].mxu0 }
 0x912   : > { %15014 = vmatmul.mubr.bf16.vlgmr.msra.gmra.mrb[16].mxu1 %v14895_v45  ;;  %v12546_v32 = vpop.f32.mrb[18].mxu0  ;;  %v15358_v45 = vrot.slane %v22837_v9, 3  ;;  %v17984_v57 = vpack.c.bf16 %v15652_v31, %v15651_v36  ;;  %v19282_v9 = vld [vmem:[%s23401_s7 + $0xc40] sm:$0xff]  }
 0x913   : > { %15136 = vmatpush1.bf16.msra.mxu1 %v19254_v49  ;;  %17761 = vmatprep.mubr.msk.bf16.mxu1 %vm10795_vm14, %v15050_v8  ;;  %v12547_v28 = vpop.f32.mrb[19].mxu0  ;;  %v15203_v49 = vrot.slane %v22956_v47, 2  ;;  %v19281_v8 = vld [vmem:[%s23401_s7 + $0xc38] sm:$0xff]   ;;  %v19283_v32 = vld [vmem:[%s23401_s7 + $0xc48] sm:$0xff]   ;;  %v15727_v47 = vld [vmem:[%s23405_s11] sm:$0xff] }
 0x914   : > { %15137 = vmatprep.subr.bf16.mxu1 %v23418_v52  ;;  %17985 = vmatpush3.bf16.msra.mxu0 %v17984_v57  ;;  %v19284_v28 = vld [vmem:[%s23401_s7 + $0xc50] sm:$0xff]   ;;  %v17990_v18 = vpack.c.bf16 %v15728_v30, %v15727_v47 }
 0x915   : > { %17986 = vmatprep.subr.bf16.mxu0 %v19335_v55 }
 0x917   : > { %15138 = vmatpush1.bf16.msra.mxu1 %v19255_v15  ;;  %v19285_v15 = vld [vmem:[%s23401_s7 + $0xc58] sm:$0xff]  }
 0x918   : > { %15139 = vmatprep.subr.bf16.mxu1 %v23418_v52 }
 0x91b   : > { %15140 = vmatpush1.bf16.msra.mxu1 %v19256_v61  ;;  %v19286_v61 = vld [vmem:[%s23401_s7 + $0xc60] sm:$0xff]  }
 0x91c   : > { %15141 = vmatprep.subr.bf16.mxu1 %v23418_v52 }
 0x91f   : > { %15142 = vmatpush1.bf16.msra.mxu1 %v19257_v11  ;;  %v19287_v11 = vld [vmem:[%s23401_s7 + $0xc68] sm:$0xff]  }
 0x920   : > { %15143 = vmatprep.subr.bf16.mxu1 %v23418_v52 }
 0x923   : > { %15144 = vmatpush1.bf16.msra.mxu1 %v19258_v53  ;;  %v19288_v53 = vld [vmem:[%s23401_s7 + $0xc70] sm:$0xff]  }
 0x924   : > { %15145 = vmatprep.subr.bf16.mxu1 %v23418_v52 }
 0x927   : > { %15146 = vmatpush1.bf16.msra.mxu1 %v19259_v43  ;;  %v19289_v43 = vld [vmem:[%s23401_s7 + $0xc78] sm:$0xff]  }
 0x928   : > { %15147 = vmatprep.subr.bf16.mxu1 %v23418_v52 }
 0x92b   : > { %15148 = vmatpush1.bf16.msra.mxu1 %v19260_v34  ;;  %v19290_v34 = vld [vmem:[%s23401_s7 + $0xc80] sm:$0xff]  }
 0x92c   : > { %15149 = vmatprep.subr.bf16.mxu1 %v23418_v52 }
 0x92f   : > { %15150 = vmatpush1.bf16.msra.mxu1 %v19261_v59  ;;  %v19291_v59 = vld [vmem:[%s23401_s7 + $0xc88] sm:$0xff]  }
 0x930   : > { %15151 = vmatprep.subr.bf16.mxu1 %v23418_v52 }
 0x933   : > { %15152 = vmatpush1.bf16.msra.mxu1 %v19262_v63  ;;  %v19292_v63 = vld [vmem:[%s23401_s7 + $0xc90] sm:$0x7f]  }
 0x934   : > { %15153 = vmatprep.subr.bf16.mxu1 %v23418_v52 }
 0x937   : > { %15154 = vmatpush1.bf16.msra.mxu1 %v19263_v33  ;;  %v15441_v33 = vand.u32 %v19292_v63, %v21535_v50 }
 0x938   : > { %15155 = vmatprep.subr.bf16.mxu1 %v23418_v52 }
 0x93b   : > { %15156 = vmatpush1.bf16.msra.mxu1 %v19264_v46  ;;  %v19293_v46 = vld [vmem:[%s23401_s7 + $0xc98] sm:$0xff]  }
 0x93c   : > { %15157 = vmatprep.subr.bf16.mxu1 %v23418_v52 }
 0x93f   : > { %15158 = vmatpush1.bf16.msra.mxu1 %v19265_v10  ;;  %v15357_v10 = vrot.slane %v22894_v20, 3  ;;  %v19296_v20 = vld [vmem:[%s23401_s7 + $0xcb0] sm:$0xff]  }
 0x940   : > { %15159 = vmatprep.subr.bf16.mxu1 %v23418_v52 }
 0x943   : > { %15160 = vmatpush1.bf16.msra.mxu1 %v15133_v56  ;;  %v19294_v56 = vld [vmem:[%s23401_s7 + $0xca0] sm:$0xff]  }
 0x944   : > { %15289 = vmatprep.subr.bf16.mxu1 %v23418_v52 }
 0x946   : > { %15168 = vmatmul.mubr.bf16.vlgmr.msra.gmra.mrb[16].mxu1 %v15049_v48  ;;  %v19298_v48 = vld [vmem:[%s23401_s7 + $0xcc0] sm:$0xff]  }
 0x947   : > { %15290 = vmatpush1.bf16.msra.mxu1 %v19267_v27  ;;  %17801 = vmatprep.mubr.msk.bf16.mxu1 %vm10795_vm14, %v15204_v5  ;;  %v19295_v27 = vld [vmem:[%s23401_s7 + $0xca8] sm:$0xff]  }
 0x948   : > { %15291 = vmatprep.subr.bf16.mxu1 %v23418_v52  ;;  %v19299_v5 = vld [vmem:[%s23401_s7 + $0xcc8] sm:$0xff]  }
 0x94b   : > { %15292 = vmatpush1.bf16.msra.mxu1 %v19268_v17  ;;  %v19300_v17 = vld [vmem:[%s23401_s7 + $0xcd0] sm:$0xff]  }
 0x94c   : > { %15293 = vmatprep.subr.bf16.mxu1 %v23418_v52 }
 0x94f   : > { %15294 = vmatpush1.bf16.msra.mxu1 %v19269_v54  ;;  %v19301_v54 = vld [vmem:[%s23401_s7 + $0xcd8] sm:$0xff]  }
 0x950   : > { %15295 = vmatprep.subr.bf16.mxu1 %v23418_v52 }
 0x953   : > { %15296 = vmatpush1.bf16.msra.mxu1 %v19270_v7  ;;  %v19302_v7 = vld [vmem:[%s23401_s7 + $0xce0] sm:$0xff]  }
 0x954   : > { %15297 = vmatprep.subr.bf16.mxu1 %v23418_v52 }
 0x957   : > { %15298 = vmatpush1.bf16.msra.mxu1 %v19271_v1  ;;  %v19303_v1 = vld [vmem:[%s23401_s7 + $0xce8] sm:$0xff]  }
 0x958   : > { %15299 = vmatprep.subr.bf16.mxu1 %v23418_v52 }
 0x95b   : > { %15300 = vmatpush1.bf16.msra.mxu1 %v19272_v25  ;;  %v19304_v25 = vld [vmem:[%s23401_s7 + $0xcf0] sm:$0xff]  }
 0x95c   : > { %15301 = vmatprep.subr.bf16.mxu1 %v23418_v52 }
 0x95f   : > { %15302 = vmatpush1.bf16.msra.mxu1 %v19273_v3  ;;  %v19305_v3 = vld [vmem:[%s23401_s7 + $0xcf8] sm:$0x7f]  }
 0x960   : > { %15303 = vmatprep.subr.bf16.mxu1 %v23418_v52 }
 0x963   : > { %15304 = vmatpush1.bf16.msra.mxu1 %v19274_v19  ;;  %v15595_v19 = vand.u32 %v19305_v3, %v21535_v50 }
 0x964   : > { %15305 = vmatprep.subr.bf16.mxu1 %v23418_v52 }
 0x967   : > { %15306 = vmatpush1.bf16.msra.mxu1 %v19275_v41  ;;  %v17987_v41 = vpack.c.bf16 %v15654_v23, %v15653_v38 }
 0x968   : > { %15307 = vmatprep.subr.bf16.mxu1 %v23418_v52 }
 0x969   : > { %17988 = vmatpush3.bf16.msra.mxu0 %v17987_v41 }
 0x96a   : > { %17989 = vmatprep.subr.bf16.mxu0 %v19335_v55 }
 0x96b   : > { %15308 = vmatpush1.bf16.msra.mxu1 %v19276_v24 }
 0x96c   : > { %15309 = vmatprep.subr.bf16.mxu1 %v23418_v52 }
 0x96f   : > { %15310 = vmatpush1.bf16.msra.mxu1 %v19277_v26  ;;  %v15729_v26 = vld [vmem:[%s23405_s11 + $0x10] sm:$0xff] }
 0x970   : > { %15311 = vmatprep.subr.bf16.mxu1 %v23418_v52 }
 0x973   : > { %15312 = vmatpush1.bf16.msra.mxu1 %v19278_v0  ;;  %v17996_v0 = vpack.c.bf16 %v15732_v51, %v15731_v2 }
 0x974   : > { %15313 = vmatprep.subr.bf16.mxu1 %v23418_v52 }
 0x977   : > { %15314 = vmatpush1.bf16.msra.mxu1 %v15287_v40 }
 0x978   : > { %15443 = vmatprep.subr.bf16.mxu1 %v23418_v52 }
 0x97a   : > { %15322 = vmatmul.mubr.bf16.vlgmr.msra.gmra.mrb[16].mxu1 %v15203_v49 }
 0x97b   : > { %15444 = vmatpush1.bf16.msra.mxu1 %v19280_v29  ;;  %17841 = vmatprep.mubr.msk.bf16.mxu1 %vm10795_vm14, %v15358_v45 }
 0x97c   : > { %15445 = vmatprep.subr.bf16.mxu1 %v23418_v52 }
 0x97f   : > { %15446 = vmatpush1.bf16.msra.mxu1 %v19281_v8 }
 0x980   : > { %15447 = vmatprep.subr.bf16.mxu1 %v23418_v52 }
 0x983   : > { %15448 = vmatpush1.bf16.msra.mxu1 %v19282_v9 }
 0x984   : > { %15449 = vmatprep.subr.bf16.mxu1 %v23418_v52 }
 0x987   : > { %15450 = vmatpush1.bf16.msra.mxu1 %v19283_v32 }
 0x988   : > { %15451 = vmatprep.subr.bf16.mxu1 %v23418_v52 }
 0x98b   : > { %15452 = vmatpush1.bf16.msra.mxu1 %v19284_v28 }
 0x98c   : > { %15453 = vmatprep.subr.bf16.mxu1 %v23418_v52 }
 0x98f   : > { %15454 = vmatpush1.bf16.msra.mxu1 %v19285_v15 }
 0x990   : > { %15455 = vmatprep.subr.bf16.mxu1 %v23418_v52 }
 0x993   : > { %15456 = vmatpush1.bf16.msra.mxu1 %v19286_v61 }
 0x994   : > { %15457 = vmatprep.subr.bf16.mxu1 %v23418_v52 }
 0x997   : > { %15458 = vmatpush1.bf16.msra.mxu1 %v19287_v11 }
 0x998   : > { %15459 = vmatprep.subr.bf16.mxu1 %v23418_v52 }
 0x99b   : > { %15460 = vmatpush1.bf16.msra.mxu1 %v19288_v53 }
 0x99c   : > { %15461 = vmatprep.subr.bf16.mxu1 %v23418_v52 }
 0x99f   : > { %15462 = vmatpush1.bf16.msra.mxu1 %v19289_v43 }
 0x9a0   : > { %15463 = vmatprep.subr.bf16.mxu1 %v23418_v52 }
 0x9a3   : > { %15464 = vmatpush1.bf16.msra.mxu1 %v19290_v34 }
 0x9a4   : > { %15465 = vmatprep.subr.bf16.mxu1 %v23418_v52 }
 0x9a7   : > { %15466 = vmatpush1.bf16.msra.mxu1 %v19291_v59 }
 0x9a8   : > { %15467 = vmatprep.subr.bf16.mxu1 %v23418_v52 }
 0x9ab   : > { %15468 = vmatpush1.bf16.msra.mxu1 %v15441_v33 }
 0x9ac   : > { %15597 = vmatprep.subr.bf16.mxu1 %v23418_v52 }
 0x9ae   : > { %15476 = vmatmul.mubr.bf16.vlgmr.msra.gmra.mrb[16].mxu1 %v15357_v10 }
 0x9af   : > { %15598 = vmatpush1.bf16.msra.mxu1 %v19293_v46  ;;  %17881 = vmatprep.mubr.msk.bf16.mxu1 %vm10795_vm14, %v15512_v42 }
 0x9b0   : > { %15599 = vmatprep.subr.bf16.mxu1 %v23418_v52 }
 0x9b3   : > { %15600 = vmatpush1.bf16.msra.mxu1 %v19294_v56 }
 0x9b4   : > { %15601 = vmatprep.subr.bf16.mxu1 %v23418_v52 }
 0x9b7   : > { %15602 = vmatpush1.bf16.msra.mxu1 %v19295_v27 }
 0x9b8   : > { %15603 = vmatprep.subr.bf16.mxu1 %v23418_v52 }
 0x9bb   : > { %15604 = vmatpush1.bf16.msra.mxu1 %v19296_v20 }
 0x9bc   : > { %15605 = vmatprep.subr.bf16.mxu1 %v23418_v52 }
 0x9bf   : > { %15606 = vmatpush1.bf16.msra.mxu1 %v19297_v4 }
 0x9c0   : > { %15607 = vmatprep.subr.bf16.mxu1 %v23418_v52 }
 0x9c3   : > { %15608 = vmatpush1.bf16.msra.mxu1 %v19298_v48 }
 0x9c4   : > { %15609 = vmatprep.subr.bf16.mxu1 %v23418_v52 }
 0x9c7   : > { %15610 = vmatpush1.bf16.msra.mxu1 %v19299_v5 }
 0x9c8   : > { %15611 = vmatprep.subr.bf16.mxu1 %v23418_v52 }
 0x9cb   : > { %15612 = vmatpush1.bf16.msra.mxu1 %v19300_v17 }
 0x9cc   : > { %15613 = vmatprep.subr.bf16.mxu1 %v23418_v52 }
 0x9cf   : > { %15614 = vmatpush1.bf16.msra.mxu1 %v19301_v54 }
 0x9d0   : > { %15615 = vmatprep.subr.bf16.mxu1 %v23418_v52 }
 0x9d3   : > { %15616 = vmatpush1.bf16.msra.mxu1 %v19302_v7 }
 0x9d4   : > { %15617 = vmatprep.subr.bf16.mxu1 %v23418_v52 }
 0x9d7   : > { %15618 = vmatpush1.bf16.msra.mxu1 %v19303_v1 }
 0x9d8   : > { %15619 = vmatprep.subr.bf16.mxu1 %v23418_v52 }
 0x9db   : > { %15620 = vmatpush1.bf16.msra.mxu1 %v19304_v25 }
 0x9dc   : > { %15621 = vmatprep.subr.bf16.mxu1 %v23418_v52  ;;  %v10689_v52 = vld [vmem:[%s23402_s8] sm:$0x1] }
 0x9dd   : > { %v18009_v50 = vadd.f32 %v23070_v16, %v10689_v52  ;;  %v15730_v16 = vld [vmem:[%s23405_s11 + $0x18] sm:$0xff] }
 0x9de   : > { %v17993_v6 = vpack.c.bf16 %v15730_v16, %v15729_v26 }
 0x9df   : > { %15622 = vmatpush1.bf16.msra.mxu1 %v15595_v19 }
 0x9e2   : > { %15630 = vmatmul.mubr.bf16.vlgmr.msra.gmra.mrb[16].mxu1 %v15511_v13 }
 0xab5   : > { %v15631_v21 = vpop.f32.mrb[16].mxu1 }
 0xab6   : > { %v18010_v62 = vadd.f32 %v18009_v50, %v15631_v21  ;;  %v15633_v44 = vpop.f32.mrb[17].mxu1 }
 0xab7   : > { %v15634_v24 = vpop.f32.mrb[18].mxu1 }
 0xab8   : > { %v15638_v12 = vmax.f32 %v18010_v62, 0.0  ;;  %v15635_v14 = vpop.f32.mrb[19].mxu1 }
 0xaba   : > { %17944 = vmatmul.mubr.f32.vlgmr.msra.gmra.mrb[20].mxu0 %v15638_v12 }
 0xabb   : > { %17991 = vmatpush3.bf16.msra.mxu0 %v17990_v18  ;;  %17962 = vmatprep.mubr.msk.f32.mxu0 %vm19336_vm15, %v19337_v37 }
 0xabc   : > { %17992 = vmatprep.subr.bf16.mxu0 %v19335_v55 }
 0xabf   : > { %17994 = vmatpush3.bf16.msra.mxu0 %v17993_v6 }
 0xac0   : > { %17995 = vmatprep.subr.bf16.mxu0 %v19335_v55 }
 0xac3   : > { %17997 = vmatpush3.bf16.msra.mxu0 %v17996_v0 }
 0xac4   : > { %17998 = vmatprep.subr.bf16.mxu0 %v19335_v55  ;;  %v15735_v55 = vld [vmem:[#allocation3] sm:$0x1] }
 0xac7   : > { %18000 = vmatpush3.bf16.msra.mxu0 %v17999_v35 }
 0xb8d   : > { %v15722_v40 = vpop.f32.mrb[20].mxu0 }
 0xb8e   : > { %v15723_v39 = vadd.f32 %v15722_v40, %v15655_v60  ;;  %v17945_v36 = vpop.f32.mrb[21].mxu0 }
 0xb90   : > { %v15726_v31 = vmax.f32 %v15723_v39, 0.0 }
 0xb92   : > { %17963 = vmatmul.mubr.msk.f32.vlgmr.msra.gmra.mrb[22].mxu0 %vm15736_vm0, %v15726_v31 }
 0xc65   : > { %v15806_v29 = vpop.f32.mrb[22].mxu0 }
 0xc66   : > { %v15807_v49 = vadd.f32 %v15806_v29, %v15735_v55  ;;  %v17964_v45 = vpop.f32.mrb[23].mxu0 }
 0xc68   : > { %15811 = vst.msk [vmem:[%s438_s26] sm:$0x1] %vm15810_vm1, %v15807_v49 }
 0xc69 PF: > { %s25_s27 = sadd.s32 1, %s19322_s27  }
 0xc6a   : > { %p22_p4 = scmp.ge.s32.totalorder %s25_s27, 4  }
 0xc6c   :  { %24 = sbr.rel (!%p22_p4) target bundleno = 3 (0x3), region = 199 }

</bundles_post_ra>
